<compile_context>
chip_gen: v7x
topology: tpu7x:2x2x1
jax: 0.10.0
libtpu: 0.0.40
codegen_flags: <defaults>
</compile_context>

<pallas_src>
import functools

import jax
import jax.numpy as jnp
from jax.experimental import pallas as pl
from jax.experimental.pallas import tpu as pltpu

EPS = 1e-5
LANE = 128


def _round_up(a, b):
    return (a + b - 1) // b * b


def _pick_tile(m, cap=2048):
    """Row tile: prefer an exact divisor of m (avoids pad + slice passes)."""
    t = min(cap, _round_up(m, 8))
    for c in (2048, 1024, 512, 256, 128, 64, 32, 16, 8):
        if c <= t and m % c == 0:
            return c
    return t


def _parallel1(**kw):
    return pltpu.CompilerParams(dimension_semantics=("parallel",), **kw)


# --------------------------------------------------------------------------
# Kernels
# --------------------------------------------------------------------------
def _conv1x1_stats_kernel(x_ref, w_ref, y_ref, st_ref):
    """1x1 conv (bf16 MXU matmul); bf16 output + f32 per-tile (sum, sumsq)."""
    acc = jnp.dot(x_ref[...], w_ref[...], preferred_element_type=jnp.float32)
    y_ref[...] = acc.astype(y_ref.dtype)
    st_ref[...] = jnp.concatenate(
        [jnp.sum(acc, axis=0, keepdims=True),
         jnp.sum(acc * acc, axis=0, keepdims=True)], axis=0)[None]


def _bn_conv1x1_stats_kernel(m_valid, tm, y_ref, s_ref, t_ref, w_ref,
                             o_ref, st_ref):
    """Fused BN(scale/shift)+ReLU of the bf16 input, 1x1 conv, stat partials."""
    row = (jax.lax.broadcasted_iota(jnp.int32, (tm, 1), 0)
           + pl.program_id(0) * tm)
    rmask = (row < m_valid).astype(jnp.float32)       # zero any padded tail rows
    z = jnp.maximum(y_ref[...].astype(jnp.float32) * s_ref[...] + t_ref[...],
                    0.0) * rmask
    acc = jnp.dot(z.astype(jnp.bfloat16), w_ref[...],
                  preferred_element_type=jnp.float32)
    o_ref[...] = acc.astype(o_ref.dtype)
    st_ref[...] = jnp.concatenate(
        [jnp.sum(acc, axis=0, keepdims=True),
         jnp.sum(acc * acc, axis=0, keepdims=True)], axis=0)[None]


def _bn_conv3x3_stats_kernel(h, w, ws, y_ref, s_ref, t_ref, w_ref,
                             o_ref, st_ref, zp_ref):
    """Fused BN+ReLU, zero-pad in VMEM, 3x3 conv as ONE K=9*C MXU matmul,
    junk columns cropped before the bf16 store; f32 stat partials.

    Layout: the image is flattened with row stride ws = round_up(w+2, 8); image
    row r lives at scratch rows [(r+2)*ws, (r+2)*ws + w).  Two leading zero
    blocks + the zero columns [w, ws) provide the conv padding, and every
    scratch store start is 8-sublane aligned.
    """
    zp_ref[...] = jnp.zeros_like(zp_ref)
    z = jnp.maximum(y_ref[0].astype(jnp.float32) * s_ref[...] + t_ref[...], 0.0)
    for r in range(h):
        zp_ref[(r + 2) * ws:(r + 2) * ws + w, :] = z[r * w:(r + 1) * w, :]
    zp = zp_ref[...]
    rr = h * ws
    # im2col along lanes: 9 shifted views of the padded image -> one matmul.
    taps = []
    for ki in range(3):
        for kj in range(3):
            start = (ki + 1) * ws + (kj - 1)
            taps.append(zp[start:start + rr, :].astype(jnp.bfloat16))
    zc = jnp.concatenate(taps, axis=1)                        # (rr, 9*C) bf16
    acc = jnp.dot(zc, w_ref[...], preferred_element_type=jnp.float32)
    # Crop the junk columns (row stride ws -> w) before stats / store.
    valid = jnp.concatenate([acc[i * ws:i * ws + w, :] for i in range(h)],
                            axis=0)                           # (h*w, C) f32
    o_ref[0] = valid.astype(o_ref.dtype)
    st_ref[...] = jnp.concatenate(
        [jnp.sum(valid, axis=0, keepdims=True),
         jnp.sum(valid * valid, axis=0, keepdims=True)], axis=0)[None]


def _bn_apply_kernel(cout, y_ref, s_ref, t_ref, o_ref):
    """Final bn3: scale/shift; the channel-padding crop is folded in here."""
    y = y_ref[...].astype(jnp.float32)[:, :cout]
    o_ref[...] = y * s_ref[...] + t_ref[...]


# --------------------------------------------------------------------------
# pallas_call wrappers
# --------------------------------------------------------------------------
def _conv1x1_stats(x2d, w):
    m, cin = x2d.shape
    cout = w.shape[1]
    tm = _pick_tile(m)
    mp = _round_up(m, tm)
    if mp != m:                                  # zero rows contribute 0 stats
        x2d = jnp.zeros((mp, cin), x2d.dtype).at[:m].set(x2d)
    g = mp // tm
    y, st = pl.pallas_call(
        _conv1x1_stats_kernel,
        out_shape=(jax.ShapeDtypeStruct((mp, cout), jnp.bfloat16),
                   jax.ShapeDtypeStruct((g, 2, cout), jnp.float32)),
        grid=(g,),
        in_specs=[pl.BlockSpec((tm, cin), lambda i: (i, 0)),
                  pl.BlockSpec((cin, cout), lambda i: (0, 0))],
        out_specs=(pl.BlockSpec((tm, cout), lambda i: (i, 0)),
                   pl.BlockSpec((1, 2, cout), lambda i: (i, 0, 0))),
        compiler_params=_parallel1(),
    )(x2d, w)
    if mp != m:
        y = y[:m]
    return y, jnp.sum(st, axis=0)


def _conv1x1_bn_stats(y2d, s, t, w):
    m, cin = y2d.shape
    cout = w.shape[1]
    tm = _pick_tile(m)
    mp = _round_up(m, tm)
    if mp != m:
        y2d = jnp.zeros((mp, cin), y2d.dtype).at[:m].set(y2d)
    g = mp // tm
    y, st = pl.pallas_call(
        functools.partial(_bn_conv1x1_stats_kernel, m, tm),
        out_shape=(jax.ShapeDtypeStruct((mp, cout), jnp.bfloat16),
                   jax.ShapeDtypeStruct((g, 2, cout), jnp.float32)),
        grid=(g,),
        in_specs=[pl.BlockSpec((tm, cin), lambda i: (i, 0)),
                  pl.BlockSpec((1, cin), lambda i: (0, 0)),
                  pl.BlockSpec((1, cin), lambda i: (0, 0)),
                  pl.BlockSpec((cin, cout), lambda i: (0, 0))],
        out_specs=(pl.BlockSpec((tm, cout), lambda i: (i, 0)),
                   pl.BlockSpec((1, 2, cout), lambda i: (i, 0, 0))),
        compiler_params=_parallel1(),
    )(y2d, s, t, w)
    if mp != m:
        y = y[:m]
    return y, jnp.sum(st, axis=0)


def _conv3x3_bn_stats(y1_img, s, t, w2cat, h, w):
    n, hw, pp = y1_img.shape
    ws = _round_up(w + 2, 8)            # aligned row stride of the padded layout
    p2r = (h + 3) * ws + 8              # scratch rows (covers all 9 tap windows)
    y2, st = pl.pallas_call(
        functools.partial(_bn_conv3x3_stats_kernel, h, w, ws),
        out_shape=(jax.ShapeDtypeStruct((n, hw, pp), jnp.bfloat16),
                   jax.ShapeDtypeStruct((n, 2, pp), jnp.float32)),
        grid=(n,),
        in_specs=[pl.BlockSpec((1, hw, pp), lambda i: (i, 0, 0)),
                  pl.BlockSpec((1, pp), lambda i: (0, 0)),
                  pl.BlockSpec((1, pp), lambda i: (0, 0)),
                  pl.BlockSpec((9 * pp, pp), lambda i: (0, 0))],
        out_specs=(pl.BlockSpec((1, hw, pp), lambda i: (i, 0, 0)),
                   pl.BlockSpec((1, 2, pp), lambda i: (i, 0, 0))),
        scratch_shapes=[pltpu.VMEM((p2r, pp), jnp.float32)],
        compiler_params=_parallel1(vmem_limit_bytes=64 * 1024 * 1024),
    )(y1_img, s, t, w2cat)
    return y2, jnp.sum(st, axis=0)


def _bn_apply(y2d, s, t, cout):
    m, c = y2d.shape
    tm = _pick_tile(m)
    mp = _round_up(m, tm)
    if mp != m:
        y2d = jnp.zeros((mp, c), y2d.dtype).at[:m].set(y2d)
    g = mp // tm
    out = pl.pallas_call(
        functools.partial(_bn_apply_kernel, cout),
        out_shape=jax.ShapeDtypeStruct((mp, cout), jnp.float32),
        grid=(g,),
        in_specs=[pl.BlockSpec((tm, c), lambda i: (i, 0)),
                  pl.BlockSpec((1, cout), lambda i: (0, 0)),
                  pl.BlockSpec((1, cout), lambda i: (0, 0))],
        out_specs=pl.BlockSpec((tm, cout), lambda i: (i, 0)),
        compiler_params=_parallel1(),
    )(y2d, s, t)
    return out[:m]


def _finish_bn(stats, count, gamma, beta):
    """stats: (2, C) global [sum, sumsq] -> folded scale/shift (1, C) each."""
    mean = stats[0:1] / count
    var = jnp.maximum(stats[1:2] / count - mean * mean, 0.0)
    # TODO(synk): E[x^2]-E[x]^2 in f32 cancels when |mean| >> std; switch to a
    # shifted / centred accumulation if real activations approach the tolerance.
    s = gamma * jax.lax.rsqrt(var + EPS)
    return s, beta - mean * s


# --------------------------------------------------------------------------
# Forward
# --------------------------------------------------------------------------
def bottleneck_forward(x_nchw, params):
    """Bottleneck.forward (stride=1) on NCHW input, returns NCHW output."""
    n, cin, h, w = x_nchw.shape
    p = params["w1"].shape[1]
    cout = 4 * p
    pp = _round_up(p, LANE)      # intermediate channel dims lane-padded to 128
    opp = _round_up(cout, LANE)  # (for planes << 128 this is byte-amplifying,
    f32, bf16 = jnp.float32, jnp.bfloat16   # but bf16 storage halves the cost)
    m = n * h * w
    count = float(m)

    # ---- parameters: pad only the output-channel (lane) dims; contraction
    # dims stay at true width (no K zero-padding in HBM) ---------------------
    w1 = jnp.zeros((cin, pp), bf16).at[:, :p].set(params["w1"].astype(bf16))
    w2cat = jnp.zeros((9, pp, pp), bf16).at[:, :p, :p].set(
        params["w2"].reshape(9, p, p).astype(bf16)).reshape(9 * pp, pp)
    w3 = jnp.zeros((pp, opp), bf16).at[:p, :cout].set(params["w3"].astype(bf16))
    g1 = jnp.zeros((1, pp), f32).at[:, :p].set(params["g1"])
    b1 = jnp.zeros((1, pp), f32).at[:, :p].set(params["b1"])
    g2 = jnp.zeros((1, pp), f32).at[:, :p].set(params["g2"])
    b2 = jnp.zeros((1, pp), f32).at[:, :p].set(params["b2"])
    g3 = jnp.zeros((1, opp), f32).at[:, :cout].set(params["g3"])
    b3 = jnp.zeros((1, opp), f32).at[:, :cout].set(params["b3"])

    # ---- stage 1: conv1 (1x1) + stat partials ------------------------------
    x2d = jnp.transpose(x_nchw, (0, 2, 3, 1)).reshape(m, cin).astype(bf16)
    y1, st1 = _conv1x1_stats(x2d, w1)                       # (m, pp) bf16
    s1, t1 = _finish_bn(st1, count, g1, b1)

    # ---- stage 2: fused bn1+relu -> conv2 (3x3, pad=1) + stat partials ------
    y2, st2 = _conv3x3_bn_stats(y1.reshape(n, h * w, pp), s1, t1, w2cat, h, w)
    s2, t2 = _finish_bn(st2, count, g2, b2)

    # ---- stage 3: fused bn2+relu -> conv3 (1x1) + stat partials -------------
    y3, st3 = _conv1x1_bn_stats(y2.reshape(m, pp), s2, t2, w3)  # (m, opp) bf16
    s3, t3 = _finish_bn(st3, count, g3, b3)

    # ---- stage 4: final bn3 (no relu / residual add, per the module); the
    # channel-padding crop is folded into the kernel's store ------------------
    out = _bn_apply(y3, s3[:, :cout], t3[:, :cout], cout)      # (m, cout) f32
    return jnp.transpose(out.reshape(n, h, w, cout), (0, 3, 1, 2))


# --------------------------------------------------------------------------
# Parameters + reference
# --------------------------------------------------------------------------
def init_params(key, inplanes, planes):
    """Deterministic synthetic parameters (no checkpoint)."""
    ks = jax.random.split(key, 9)
    s = 0.1
    return {
        "w1": s * jax.random.normal(ks[0], (inplanes, planes), jnp.float32),
        "w2": s * jax.random.normal(ks[1], (3, 3, planes, planes), jnp.float32),
        "w3": s * jax.random.normal(ks[2], (planes, planes * 4), jnp.float32),
        "g1": 1.0 + 0.1 * jax.random.normal(ks[3], (1, planes), jnp.float32),
        "b1": 0.1 * jax.random.normal(ks[4], (1, planes), jnp.float32),
        "g2": 1.0 + 0.1 * jax.random.normal(ks[5], (1, planes), jnp.float32),
        "b2": 0.1 * jax.random.normal(ks[6], (1, planes), jnp.float32),
        "g3": 1.0 + 0.1 * jax.random.normal(ks[7], (1, planes * 4), jnp.float32),
        "b3": 0.1 * jax.random.normal(ks[8], (1, planes * 4), jnp.float32),
    }


def _reference(x_nchw, params):
    """Pure-JAX reference.  Mirrors the kernel's precision policy: matmul inputs
    in bf16, f32 accumulation, and conv outputs rounded to bf16 before the
    (f32) BatchNorm, exactly like the bf16 intermediate stores in the kernels."""
    x = jnp.transpose(x_nchw, (0, 2, 3, 1))
    bf16 = jnp.bfloat16

    def bn(y, g, b):
        mean = jnp.mean(y, axis=(0, 1, 2), keepdims=True)
        var = jnp.mean((y - mean) ** 2, axis=(0, 1, 2), keepdims=True)
        return (y - mean) * jax.lax.rsqrt(var + EPS) * g.reshape(1, 1, 1, -1) \
            + b.reshape(1, 1, 1, -1)

    def mm(a, wm):
        return jnp.einsum("nhwc,co->nhwo", a.astype(bf16), wm.astype(bf16),
                          preferred_element_type=jnp.float32)

    def rnd(y):                            # mirror the bf16 intermediate store
        return y.astype(bf16).astype(jnp.float32)

    o = rnd(mm(x, params["w1"]))
    o = jnp.maximum(bn(o, params["g1"], params["b1"]), 0.0)
    o = jax.lax.conv_general_dilated(
        o.astype(bf16), params["w2"].astype(bf16), (1, 1), "SAME",
        dimension_numbers=("NHWC", "HWIO", "NHWC"),
        preferred_element_type=jnp.float32)
    o = rnd(o)
    o = jnp.maximum(bn(o, params["g2"], params["b2"]), 0.0)
    o = rnd(mm(o, params["w3"]))
    o = bn(o, params["g3"], params["b3"])
    return jnp.transpose(o, (0, 3, 1, 2))


if __name__ == "__main__":
    key = jax.random.PRNGKey(0)
    k_x, k_p = jax.random.split(key)

    # Shapes consistent with Bottleneck(inplanes=32, planes=8) -> 32 out channels.
    N, INPLANES, PLANES, H, W = 2, 32, 8, 16, 16
    x = jax.random.normal(k_x, (N, INPLANES, H, W), jnp.float32)    # NCHW
    params = init_params(k_p, INPLANES, PLANES)

    out = jax.jit(bottleneck_forward)(x, params)
    out = jax.block_until_ready(out)
    assert out.shape == (N, PLANES * 4, H, W), out.shape

    ref = _reference(x, params)
    if not bool(jnp.allclose(out, ref, atol=3e-2, rtol=3e-2)):
        err = float(jnp.max(jnp.abs(out - ref)))
        raise AssertionError(
            f"Pallas Bottleneck output mismatch vs reference (max abs err {err})")

    print("KERNEL_OK")
</pallas_src>

<mosaic_0001>
module attributes {stable_mosaic.version = 11 : i64} {
  func.func @_conv1x1_stats_kernel(%arg0: i32, %arg1: memref<512x32xbf16, #tpu.memory_space<vmem>>, %arg2: memref<32x128xbf16, #tpu.memory_space<vmem>>, %arg3: memref<512x128xbf16, #tpu.memory_space<vmem>>, %arg4: memref<1x2x128xf32, #tpu.memory_space<vmem>>) attributes {dimension_semantics = [#tpu.dimension_semantics<parallel>], iteration_bounds = array<i64: 1>, scalar_prefetch = 0 : i64, scratch_operands = 0 : i64, tpu.core_type = #tpu.core_type<tc>, window_params = [{transform_indices = @transform_0, window_bounds = array<i64: 512, 32>}, {pipeline_mode = #tpu.pipeline_mode<synchronous>, transform_indices = @transform_1, window_bounds = array<i64: 32, 128>}, {transform_indices = @transform_2, window_bounds = array<i64: 512, 128>}, {transform_indices = @transform_3, window_bounds = array<i64: 1, 2, 128>}]} {
    %c0 = arith.constant 0 : index
    %c0_0 = arith.constant 0 : index
    %0 = vector.load %arg1[%c0, %c0_0] : memref<512x32xbf16, #tpu.memory_space<vmem>>, vector<512x32xbf16>
    %c0_1 = arith.constant 0 : index
    %c0_2 = arith.constant 0 : index
    %1 = vector.load %arg2[%c0_1, %c0_2] : memref<32x128xbf16, #tpu.memory_space<vmem>>, vector<32x128xbf16>
    %cst = arith.constant dense<0.000000e+00> : vector<512x128xf32>
    %2 = tpu.matmul %0, %1, %cst {dimension_numbers = #tpu.dot_dimension_numbers<[1], [0], [0], [1], [0, 0, 1, 1], [], []>} : vector<512x32xbf16>, vector<32x128xbf16>, vector<512x128xf32> -> vector<512x128xf32>
    %3 = arith.truncf %2 : vector<512x128xf32> to vector<512x128xbf16>
    %c0_3 = arith.constant 0 : index
    %c0_4 = arith.constant 0 : index
    %4 = vector.load %arg3[%c0_3, %c0_4] : memref<512x128xbf16, #tpu.memory_space<vmem>>, vector<512x128xbf16>
    tpu.vector_store %arg3[%c0_3, %c0_4], %3 {strides = array<i32>} : memref<512x128xbf16, #tpu.memory_space<vmem>>, vector<512x128xbf16>,
    %cst_5 = arith.constant dense<0.000000e+00> : vector<128xf32>
    %5 = vector.multi_reduction <add>, %2, %cst_5 [0] : vector<512x128xf32> to vector<128xf32>
    %6 = vector.shape_cast %5 : vector<128xf32> to vector<1x128xf32>
    %7 = arith.mulf %2, %2 : vector<512x128xf32>
    %cst_6 = arith.constant dense<0.000000e+00> : vector<128xf32>
    %8 = vector.multi_reduction <add>, %7, %cst_6 [0] : vector<512x128xf32> to vector<128xf32>
    %9 = vector.shape_cast %8 : vector<128xf32> to vector<1x128xf32>
    %10 = tpu.concatenate %6, %9 in 0 : vector<1x128xf32>, vector<1x128xf32> -> vector<2x128xf32>
    %11 = vector.shape_cast %10 : vector<2x128xf32> to vector<1x2x128xf32>
    %c0_7 = arith.constant 0 : index
    %c0_8 = arith.constant 0 : index
    %c0_9 = arith.constant 0 : index
    %12 = vector.load %arg4[%c0_7, %c0_8, %c0_9] : memref<1x2x128xf32, #tpu.memory_space<vmem>>, vector<1x2x128xf32>
    tpu.vector_store %arg4[%c0_7, %c0_8, %c0_9], %11 {strides = array<i32>} : memref<1x2x128xf32, #tpu.memory_space<vmem>>, vector<1x2x128xf32>,
    return
  }
  func.func @transform_0(%arg0: i32) -> (i32, i32) {
    %c0_i32 = arith.constant 0 : i32
    %c0_i32_0 = arith.constant 0 : i32
    return %arg0, %c0_i32 : i32, i32
  }
  func.func @transform_1(%arg0: i32) -> (i32, i32) {
    %c0_i32 = arith.constant 0 : i32
    %c0_i32_0 = arith.constant 0 : i32
    %c0_i32_1 = arith.constant 0 : i32
    return %c0_i32, %c0_i32_0 : i32, i32
  }
  func.func @transform_2(%arg0: i32) -> (i32, i32) {
    %c0_i32 = arith.constant 0 : i32
    %c0_i32_0 = arith.constant 0 : i32
    return %arg0, %c0_i32 : i32, i32
  }
  func.func @transform_3(%arg0: i32) -> (i32, i32, i32) {
    %c0_i32 = arith.constant 0 : i32
    %c0_i32_0 = arith.constant 0 : i32
    %c0_i32_1 = arith.constant 0 : i32
    return %arg0, %c0_i32, %c0_i32_0 : i32, i32, i32
  }
}

module attributes {stable_mosaic.version = 11 : i64} {
  func.func @_bn_conv3x3_stats_kernel(%arg0: i32, %arg1: memref<1x256x128xbf16, #tpu.memory_space<vmem>>, %arg2: memref<1x128xf32, #tpu.memory_space<vmem>>, %arg3: memref<1x128xf32, #tpu.memory_space<vmem>>, %arg4: memref<1152x128xbf16, #tpu.memory_space<vmem>>, %arg5: memref<1x256x128xbf16, #tpu.memory_space<vmem>>, %arg6: memref<1x2x128xf32, #tpu.memory_space<vmem>>, %arg7: memref<464x128xf32, #tpu.memory_space<vmem>>) attributes {dimension_semantics = [#tpu.dimension_semantics<parallel>], iteration_bounds = array<i64: 2>, scalar_prefetch = 0 : i64, scratch_operands = 1 : i64, tpu.core_type = #tpu.core_type<tc>, window_params = [{transform_indices = @transform_0, window_bounds = array<i64: 1, 256, 128>}, {pipeline_mode = #tpu.pipeline_mode<synchronous>, transform_indices = @transform_1, window_bounds = array<i64: 1, 128>}, {pipeline_mode = #tpu.pipeline_mode<synchronous>, transform_indices = @transform_2, window_bounds = array<i64: 1, 128>}, {pipeline_mode = #tpu.pipeline_mode<synchronous>, transform_indices = @transform_3, window_bounds = array<i64: 1152, 128>}, {transform_indices = @transform_4, window_bounds = array<i64: 1, 256, 128>}, {transform_indices = @transform_5, window_bounds = array<i64: 1, 2, 128>}]} {
    %cst = arith.constant 0.000000e+00 : f32
    %0 = vector.broadcast %cst : f32 to vector<464x128xf32>
    %c0 = arith.constant 0 : index
    %c0_0 = arith.constant 0 : index
    %1 = vector.load %arg7[%c0, %c0_0] : memref<464x128xf32, #tpu.memory_space<vmem>>, vector<464x128xf32>
    tpu.vector_store %arg7[%c0, %c0_0], %0 {strides = array<i32>} : memref<464x128xf32, #tpu.memory_space<vmem>>, vector<464x128xf32>,
    %c0_1 = arith.constant 0 : index
    %c0_2 = arith.constant 0 : index
    %c0_3 = arith.constant 0 : index
    %2 = vector.load %arg1[%c0_1, %c0_2, %c0_3] : memref<1x256x128xbf16, #tpu.memory_space<vmem>>, vector<1x256x128xbf16>
    %3 = vector.shape_cast %2 : vector<1x256x128xbf16> to vector<256x128xbf16>
    %4 = arith.extf %3 : vector<256x128xbf16> to vector<256x128xf32>
    %c0_4 = arith.constant 0 : index
    %c0_5 = arith.constant 0 : index
    %5 = vector.load %arg2[%c0_4, %c0_5] : memref<1x128xf32, #tpu.memory_space<vmem>>, vector<1x128xf32>
    %6 = vector.broadcast %5 : vector<1x128xf32> to vector<256x128xf32>
    %7 = arith.mulf %4, %6 : vector<256x128xf32>
    %c0_6 = arith.constant 0 : index
    %c0_7 = arith.constant 0 : index
    %8 = vector.load %arg3[%c0_6, %c0_7] : memref<1x128xf32, #tpu.memory_space<vmem>>, vector<1x128xf32>
    %9 = vector.broadcast %8 : vector<1x128xf32> to vector<256x128xf32>
    %10 = arith.addf %7, %9 : vector<256x128xf32>
    %cst_8 = arith.constant 0.000000e+00 : f32
    %11 = vector.broadcast %cst_8 : f32 to vector<256x128xf32>
    %12 = arith.maximumf %10, %11 : vector<256x128xf32>
    %13 = vector.extract_strided_slice %12 {offsets = [0, 0], sizes = [16, 128], strides = [1, 1]} : vector<256x128xf32> to vector<16x128xf32>
    %c48 = arith.constant 48 : index
    %c0_9 = arith.constant 0 : index
    %14 = vector.load %arg7[%c48, %c0_9] : memref<464x128xf32, #tpu.memory_space<vmem>>, vector<16x128xf32>
    tpu.vector_store %arg7[%c48, %c0_9], %13 {strides = array<i32>} : memref<464x128xf32, #tpu.memory_space<vmem>>, vector<16x128xf32>,
    %15 = vector.extract_strided_slice %12 {offsets = [16, 0], sizes = [16, 128], strides = [1, 1]} : vector<256x128xf32> to vector<16x128xf32>
    %c72 = arith.constant 72 : index
    %c0_10 = arith.constant 0 : index
    %16 = vector.load %arg7[%c72, %c0_10] : memref<464x128xf32, #tpu.memory_space<vmem>>, vector<16x128xf32>
    tpu.vector_store %arg7[%c72, %c0_10], %15 {strides = array<i32>} : memref<464x128xf32, #tpu.memory_space<vmem>>, vector<16x128xf32>,
    %17 = vector.extract_strided_slice %12 {offsets = [32, 0], sizes = [16, 128], strides = [1, 1]} : vector<256x128xf32> to vector<16x128xf32>
    %c96 = arith.constant 96 : index
    %c0_11 = arith.constant 0 : index
    %18 = vector.load %arg7[%c96, %c0_11] : memref<464x128xf32, #tpu.memory_space<vmem>>, vector<16x128xf32>
    tpu.vector_store %arg7[%c96, %c0_11], %17 {strides = array<i32>} : memref<464x128xf32, #tpu.memory_space<vmem>>, vector<16x128xf32>,
    %19 = vector.extract_strided_slice %12 {offsets = [48, 0], sizes = [16, 128], strides = [1, 1]} : vector<256x128xf32> to vector<16x128xf32>
    %c120 = arith.constant 120 : index
    %c0_12 = arith.constant 0 : index
    %20 = vector.load %arg7[%c120, %c0_12] : memref<464x128xf32, #tpu.memory_space<vmem>>, vector<16x128xf32>
    tpu.vector_store %arg7[%c120, %c0_12], %19 {strides = array<i32>} : memref<464x128xf32, #tpu.memory_space<vmem>>, vector<16x128xf32>,
    %21 = vector.extract_strided_slice %12 {offsets = [64, 0], sizes = [16, 128], strides = [1, 1]} : vector<256x128xf32> to vector<16x128xf32>
    %c144 = arith.constant 144 : index
    %c0_13 = arith.constant 0 : index
    %22 = vector.load %arg7[%c144, %c0_13] : memref<464x128xf32, #tpu.memory_space<vmem>>, vector<16x128xf32>
    tpu.vector_store %arg7[%c144, %c0_13], %21 {strides = array<i32>} : memref<464x128xf32, #tpu.memory_space<vmem>>, vector<16x128xf32>,
    %23 = vector.extract_strided_slice %12 {offsets = [80, 0], sizes = [16, 128], strides = [1, 1]} : vector<256x128xf32> to vector<16x128xf32>
    %c168 = arith.constant 168 : index
    %c0_14 = arith.constant 0 : index
    %24 = vector.load %arg7[%c168, %c0_14] : memref<464x128xf32, #tpu.memory_space<vmem>>, vector<16x128xf32>
    tpu.vector_store %arg7[%c168, %c0_14], %23 {strides = array<i32>} : memref<464x128xf32, #tpu.memory_space<vmem>>, vector<16x128xf32>,
    %25 = vector.extract_strided_slice %12 {offsets = [96, 0], sizes = [16, 128], strides = [1, 1]} : vector<256x128xf32> to vector<16x128xf32>
    %c192 = arith.constant 192 : index
    %c0_15 = arith.constant 0 : index
    %26 = vector.load %arg7[%c192, %c0_15] : memref<464x128xf32, #tpu.memory_space<vmem>>, vector<16x128xf32>
    tpu.vector_store %arg7[%c192, %c0_15], %25 {strides = array<i32>} : memref<464x128xf32, #tpu.memory_space<vmem>>, vector<16x128xf32>,
    %27 = vector.extract_strided_slice %12 {offsets = [112, 0], sizes = [16, 128], strides = [1, 1]} : vector<256x128xf32> to vector<16x128xf32>
    %c216 = arith.constant 216 : index
    %c0_16 = arith.constant 0 : index
    %28 = vector.load %arg7[%c216, %c0_16] : memref<464x128xf32, #tpu.memory_space<vmem>>, vector<16x128xf32>
    tpu.vector_store %arg7[%c216, %c0_16], %27 {strides = array<i32>} : memref<464x128xf32, #tpu.memory_space<vmem>>, vector<16x128xf32>,
    %29 = vector.extract_strided_slice %12 {offsets = [128, 0], sizes = [16, 128], strides = [1, 1]} : vector<256x128xf32> to vector<16x128xf32>
    %c240 = arith.constant 240 : index
    %c0_17 = arith.constant 0 : index
    %30 = vector.load %arg7[%c240, %c0_17] : memref<464x128xf32, #tpu.memory_space<vmem>>, vector<16x128xf32>
    tpu.vector_store %arg7[%c240, %c0_17], %29 {strides = array<i32>} : memref<464x128xf32, #tpu.memory_space<vmem>>, vector<16x128xf32>,
    %31 = vector.extract_strided_slice %12 {offsets = [144, 0], sizes = [16, 128], strides = [1, 1]} : vector<256x128xf32> to vector<16x128xf32>
    %c264 = arith.constant 264 : index
    %c0_18 = arith.constant 0 : index
    %32 = vector.load %arg7[%c264, %c0_18] : memref<464x128xf32, #tpu.memory_space<vmem>>, vector<16x128xf32>
    tpu.vector_store %arg7[%c264, %c0_18], %31 {strides = array<i32>} : memref<464x128xf32, #tpu.memory_space<vmem>>, vector<16x128xf32>,
    %33 = vector.extract_strided_slice %12 {offsets = [160, 0], sizes = [16, 128], strides = [1, 1]} : vector<256x128xf32> to vector<16x128xf32>
    %c288 = arith.constant 288 : index
    %c0_19 = arith.constant 0 : index
    %34 = vector.load %arg7[%c288, %c0_19] : memref<464x128xf32, #tpu.memory_space<vmem>>, vector<16x128xf32>
    tpu.vector_store %arg7[%c288, %c0_19], %33 {strides = array<i32>} : memref<464x128xf32, #tpu.memory_space<vmem>>, vector<16x128xf32>,
    %35 = vector.extract_strided_slice %12 {offsets = [176, 0], sizes = [16, 128], strides = [1, 1]} : vector<256x128xf32> to vector<16x128xf32>
    %c312 = arith.constant 312 : index
    %c0_20 = arith.constant 0 : index
    %36 = vector.load %arg7[%c312, %c0_20] : memref<464x128xf32, #tpu.memory_space<vmem>>, vector<16x128xf32>
    tpu.vector_store %arg7[%c312, %c0_20], %35 {strides = array<i32>} : memref<464x128xf32, #tpu.memory_space<vmem>>, vector<16x128xf32>,
    %37 = vector.extract_strided_slice %12 {offsets = [192, 0], sizes = [16, 128], strides = [1, 1]} : vector<256x128xf32> to vector<16x128xf32>
    %c336 = arith.constant 336 : index
    %c0_21 = arith.constant 0 : index
    %38 = vector.load %arg7[%c336, %c0_21] : memref<464x128xf32, #tpu.memory_space<vmem>>, vector<16x128xf32>
    tpu.vector_store %arg7[%c336, %c0_21], %37 {strides = array<i32>} : memref<464x128xf32, #tpu.memory_space<vmem>>, vector<16x128xf32>,
    %39 = vector.extract_strided_slice %12 {offsets = [208, 0], sizes = [16, 128], strides = [1, 1]} : vector<256x128xf32> to vector<16x128xf32>
    %c360 = arith.constant 360 : index
    %c0_22 = arith.constant 0 : index
    %40 = vector.load %arg7[%c360, %c0_22] : memref<464x128xf32, #tpu.memory_space<vmem>>, vector<16x128xf32>
    tpu.vector_store %arg7[%c360, %c0_22], %39 {strides = array<i32>} : memref<464x128xf32, #tpu.memory_space<vmem>>, vector<16x128xf32>,
    %41 = vector.extract_strided_slice %12 {offsets = [224, 0], sizes = [16, 128], strides = [1, 1]} : vector<256x128xf32> to vector<16x128xf32>
    %c384 = arith.constant 384 : index
    %c0_23 = arith.constant 0 : index
    %42 = vector.load %arg7[%c384, %c0_23] : memref<464x128xf32, #tpu.memory_space<vmem>>, vector<16x128xf32>
    tpu.vector_store %arg7[%c384, %c0_23], %41 {strides = array<i32>} : memref<464x128xf32, #tpu.memory_space<vmem>>, vector<16x128xf32>,
    %43 = vector.extract_strided_slice %12 {offsets = [240, 0], sizes = [16, 128], strides = [1, 1]} : vector<256x128xf32> to vector<16x128xf32>
    %c408 = arith.constant 408 : index
    %c0_24 = arith.constant 0 : index
    %44 = vector.load %arg7[%c408, %c0_24] : memref<464x128xf32, #tpu.memory_space<vmem>>, vector<16x128xf32>
    tpu.vector_store %arg7[%c408, %c0_24], %43 {strides = array<i32>} : memref<464x128xf32, #tpu.memory_space<vmem>>, vector<16x128xf32>,
    %c0_25 = arith.constant 0 : index
    %c0_26 = arith.constant 0 : index
    %45 = vector.load %arg7[%c0_25, %c0_26] : memref<464x128xf32, #tpu.memory_space<vmem>>, vector<464x128xf32>
    %46 = vector.extract_strided_slice %45 {offsets = [23, 0], sizes = [384, 128], strides = [1, 1]} : vector<464x128xf32> to vector<384x128xf32>
    %47 = arith.truncf %46 : vector<384x128xf32> to vector<384x128xbf16>
    %48 = vector.extract_strided_slice %45 {offsets = [24, 0], sizes = [384, 128], strides = [1, 1]} : vector<464x128xf32> to vector<384x128xf32>
    %49 = arith.truncf %48 : vector<384x128xf32> to vector<384x128xbf16>
    %50 = vector.extract_strided_slice %45 {offsets = [25, 0], sizes = [384, 128], strides = [1, 1]} : vector<464x128xf32> to vector<384x128xf32>
    %51 = arith.truncf %50 : vector<384x128xf32> to vector<384x128xbf16>
    %52 = vector.extract_strided_slice %45 {offsets = [47, 0], sizes = [384, 128], strides = [1, 1]} : vector<464x128xf32> to vector<384x128xf32>
    %53 = arith.truncf %52 : vector<384x128xf32> to vector<384x128xbf16>
    %54 = vector.extract_strided_slice %45 {offsets = [48, 0], sizes = [384, 128], strides = [1, 1]} : vector<464x128xf32> to vector<384x128xf32>
    %55 = arith.truncf %54 : vector<384x128xf32> to vector<384x128xbf16>
    %56 = vector.extract_strided_slice %45 {offsets = [49, 0], sizes = [384, 128], strides = [1, 1]} : vector<464x128xf32> to vector<384x128xf32>
    %57 = arith.truncf %56 : vector<384x128xf32> to vector<384x128xbf16>
    %58 = vector.extract_strided_slice %45 {offsets = [71, 0], sizes = [384, 128], strides = [1, 1]} : vector<464x128xf32> to vector<384x128xf32>
    %59 = arith.truncf %58 : vector<384x128xf32> to vector<384x128xbf16>
    %60 = vector.extract_strided_slice %45 {offsets = [72, 0], sizes = [384, 128], strides = [1, 1]} : vector<464x128xf32> to vector<384x128xf32>
    %61 = arith.truncf %60 : vector<384x128xf32> to vector<384x128xbf16>
    %62 = vector.extract_strided_slice %45 {offsets = [73, 0], sizes = [384, 128], strides = [1, 1]} : vector<464x128xf32> to vector<384x128xf32>
    %63 = arith.truncf %62 : vector<384x128xf32> to vector<384x128xbf16>
    %64 = tpu.concatenate %47, %49, %51, %53, %55, %57, %59, %61, %63 in 1 : vector<384x128xbf16>, vector<384x128xbf16>, vector<384x128xbf16>, vector<384x128xbf16>, vector<384x128xbf16>, vector<384x128xbf16>, vector<384x128xbf16>, vector<384x128xbf16>, vector<384x128xbf16> -> vector<384x1152xbf16>
    %c0_27 = arith.constant 0 : index
    %c0_28 = arith.constant 0 : index
    %65 = vector.load %arg4[%c0_27, %c0_28] : memref<1152x128xbf16, #tpu.memory_space<vmem>>, vector<1152x128xbf16>
    %cst_29 = arith.constant dense<0.000000e+00> : vector<384x128xf32>
    %66 = tpu.matmul %64, %65, %cst_29 {dimension_numbers = #tpu.dot_dimension_numbers<[1], [0], [0], [1], [0, 0, 1, 1], [], []>} : vector<384x1152xbf16>, vector<1152x128xbf16>, vector<384x128xf32> -> vector<384x128xf32>
    %67 = vector.extract_strided_slice %66 {offsets = [0, 0], sizes = [16, 128], strides = [1, 1]} : vector<384x128xf32> to vector<16x128xf32>
    %68 = vector.extract_strided_slice %66 {offsets = [24, 0], sizes = [16, 128], strides = [1, 1]} : vector<384x128xf32> to vector<16x128xf32>
    %69 = vector.extract_strided_slice %66 {offsets = [48, 0], sizes = [16, 128], strides = [1, 1]} : vector<384x128xf32> to vector<16x128xf32>
    %70 = vector.extract_strided_slice %66 {offsets = [72, 0], sizes = [16, 128], strides = [1, 1]} : vector<384x128xf32> to vector<16x128xf32>
    %71 = vector.extract_strided_slice %66 {offsets = [96, 0], sizes = [16, 128], strides = [1, 1]} : vector<384x128xf32> to vector<16x128xf32>
    %72 = vector.extract_strided_slice %66 {offsets = [120, 0], sizes = [16, 128], strides = [1, 1]} : vector<384x128xf32> to vector<16x128xf32>
    %73 = vector.extract_strided_slice %66 {offsets = [144, 0], sizes = [16, 128], strides = [1, 1]} : vector<384x128xf32> to vector<16x128xf32>
    %74 = vector.extract_strided_slice %66 {offsets = [168, 0], sizes = [16, 128], strides = [1, 1]} : vector<384x128xf32> to vector<16x128xf32>
    %75 = vector.extract_strided_slice %66 {offsets = [192, 0], sizes = [16, 128], strides = [1, 1]} : vector<384x128xf32> to vector<16x128xf32>
    %76 = vector.extract_strided_slice %66 {offsets = [216, 0], sizes = [16, 128], strides = [1, 1]} : vector<384x128xf32> to vector<16x128xf32>
    %77 = vector.extract_strided_slice %66 {offsets = [240, 0], sizes = [16, 128], strides = [1, 1]} : vector<384x128xf32> to vector<16x128xf32>
    %78 = vector.extract_strided_slice %66 {offsets = [264, 0], sizes = [16, 128], strides = [1, 1]} : vector<384x128xf32> to vector<16x128xf32>
    %79 = vector.extract_strided_slice %66 {offsets = [288, 0], sizes = [16, 128], strides = [1, 1]} : vector<384x128xf32> to vector<16x128xf32>
    %80 = vector.extract_strided_slice %66 {offsets = [312, 0], sizes = [16, 128], strides = [1, 1]} : vector<384x128xf32> to vector<16x128xf32>
    %81 = vector.extract_strided_slice %66 {offsets = [336, 0], sizes = [16, 128], strides = [1, 1]} : vector<384x128xf32> to vector<16x128xf32>
    %82 = vector.extract_strided_slice %66 {offsets = [360, 0], sizes = [16, 128], strides = [1, 1]} : vector<384x128xf32> to vector<16x128xf32>
    %83 = tpu.concatenate %67, %68, %69, %70, %71, %72, %73, %74, %75, %76, %77, %78, %79, %80, %81, %82 in 0 : vector<16x128xf32>, vector<16x128xf32>, vector<16x128xf32>, vector<16x128xf32>, vector<16x128xf32>, vector<16x128xf32>, vector<16x128xf32>, vector<16x128xf32>, vector<16x128xf32>, vector<16x128xf32>, vector<16x128xf32>, vector<16x128xf32>, vector<16x128xf32>, vector<16x128xf32>, vector<16x128xf32>, vector<16x128xf32> -> vector<256x128xf32>
    %84 = arith.truncf %83 : vector<256x128xf32> to vector<256x128xbf16>
    %c0_30 = arith.constant 0 : index
    %c0_31 = arith.constant 0 : index
    %c0_32 = arith.constant 0 : index
    %85 = vector.load %arg5[%c0_30, %c0_31, %c0_32] : memref<1x256x128xbf16, #tpu.memory_space<vmem>>, vector<1x256x128xbf16>
    %86 = vector.shape_cast %85 : vector<1x256x128xbf16> to vector<256x128xbf16>
    %87 = vector.shape_cast %84 : vector<256x128xbf16> to vector<1x256x128xbf16>
    tpu.vector_store %arg5[%c0_30, %c0_31, %c0_32], %87 {strides = array<i32>} : memref<1x256x128xbf16, #tpu.memory_space<vmem>>, vector<1x256x128xbf16>,
    %cst_33 = arith.constant dense<0.000000e+00> : vector<128xf32>
    %88 = vector.multi_reduction <add>, %83, %cst_33 [0] : vector<256x128xf32> to vector<128xf32>
    %89 = vector.shape_cast %88 : vector<128xf32> to vector<1x128xf32>
    %90 = arith.mulf %83, %83 : vector<256x128xf32>
    %cst_34 = arith.constant dense<0.000000e+00> : vector<128xf32>
    %91 = vector.multi_reduction <add>, %90, %cst_34 [0] : vector<256x128xf32> to vector<128xf32>
    %92 = vector.shape_cast %91 : vector<128xf32> to vector<1x128xf32>
    %93 = tpu.concatenate %89, %92 in 0 : vector<1x128xf32>, vector<1x128xf32> -> vector<2x128xf32>
    %94 = vector.shape_cast %93 : vector<2x128xf32> to vector<1x2x128xf32>
    %c0_35 = arith.constant 0 : index
    %c0_36 = arith.constant 0 : index
    %c0_37 = arith.constant 0 : index
    %95 = vector.load %arg6[%c0_35, %c0_36, %c0_37] : memref<1x2x128xf32, #tpu.memory_space<vmem>>, vector<1x2x128xf32>
    tpu.vector_store %arg6[%c0_35, %c0_36, %c0_37], %94 {strides = array<i32>} : memref<1x2x128xf32, #tpu.memory_space<vmem>>, vector<1x2x128xf32>,
    return
  }
  func.func @transform_0(%arg0: i32) -> (i32, i32, i32) {
    %c0_i32 = arith.constant 0 : i32
    %c0_i32_0 = arith.constant 0 : i32
    %c0_i32_1 = arith.constant 0 : i32
    return %arg0, %c0_i32, %c0_i32_0 : i32, i32, i32
  }
  func.func @transform_1(%arg0: i32) -> (i32, i32) {
    %c0_i32 = arith.constant 0 : i32
    %c0_i32_0 = arith.constant 0 : i32
    %c0_i32_1 = arith.constant 0 : i32
    return %c0_i32, %c0_i32_0 : i32, i32
  }
  func.func @transform_2(%arg0: i32) -> (i32, i32) {
    %c0_i32 = arith.constant 0 : i32
    %c0_i32_0 = arith.constant 0 : i32
    %c0_i32_1 = arith.constant 0 : i32
    return %c0_i32, %c0_i32_0 : i32, i32
  }
  func.func @transform_3(%arg0: i32) -> (i32, i32) {
    %c0_i32 = arith.constant 0 : i32
    %c0_i32_0 = arith.constant 0 : i32
    %c0_i32_1 = arith.constant 0 : i32
    return %c0_i32, %c0_i32_0 : i32, i32
  }
  func.func @transform_4(%arg0: i32) -> (i32, i32, i32) {
    %c0_i32 = arith.constant 0 : i32
    %c0_i32_0 = arith.constant 0 : i32
    %c0_i32_1 = arith.constant 0 : i32
    return %arg0, %c0_i32, %c0_i32_0 : i32, i32, i32
  }
  func.func @transform_5(%arg0: i32) -> (i32, i32, i32) {
    %c0_i32 = arith.constant 0 : i32
    %c0_i32_0 = arith.constant 0 : i32
    %c0_i32_1 = arith.constant 0 : i32
    return %arg0, %c0_i32, %c0_i32_0 : i32, i32, i32
  }
}

module attributes {stable_mosaic.version = 11 : i64} {
  func.func @_bn_conv1x1_stats_kernel(%arg0: i32, %arg1: memref<512x128xbf16, #tpu.memory_space<vmem>>, %arg2: memref<1x128xf32, #tpu.memory_space<vmem>>, %arg3: memref<1x128xf32, #tpu.memory_space<vmem>>, %arg4: memref<128x128xbf16, #tpu.memory_space<vmem>>, %arg5: memref<512x128xbf16, #tpu.memory_space<vmem>>, %arg6: memref<1x2x128xf32, #tpu.memory_space<vmem>>) attributes {dimension_semantics = [#tpu.dimension_semantics<parallel>], iteration_bounds = array<i64: 1>, scalar_prefetch = 0 : i64, scratch_operands = 0 : i64, tpu.core_type = #tpu.core_type<tc>, window_params = [{transform_indices = @transform_0, window_bounds = array<i64: 512, 128>}, {pipeline_mode = #tpu.pipeline_mode<synchronous>, transform_indices = @transform_1, window_bounds = array<i64: 1, 128>}, {pipeline_mode = #tpu.pipeline_mode<synchronous>, transform_indices = @transform_2, window_bounds = array<i64: 1, 128>}, {pipeline_mode = #tpu.pipeline_mode<synchronous>, transform_indices = @transform_3, window_bounds = array<i64: 128, 128>}, {transform_indices = @transform_4, window_bounds = array<i64: 512, 128>}, {transform_indices = @transform_5, window_bounds = array<i64: 1, 2, 128>}]} {
    %0 = tpu.iota {dimensions = array<i32: 0>} : vector<512x1xi32>
    %c512_i32 = arith.constant 512 : i32
    %1 = arith.muli %arg0, %c512_i32 : i32
    %2 = vector.broadcast %1 : i32 to vector<512x1xi32>
    %3 = arith.addi %0, %2 : vector<512x1xi32>
    %c512_i32_0 = arith.constant 512 : i32
    %4 = vector.broadcast %c512_i32_0 : i32 to vector<512x1xi32>
    %5 = arith.cmpi slt, %3, %4 : vector<512x1xi32>
    %6 = arith.extui %5 : vector<512x1xi1> to vector<512x1xi32>
    %7 = arith.sitofp %6 : vector<512x1xi32> to vector<512x1xf32>
    %c0 = arith.constant 0 : index
    %c0_1 = arith.constant 0 : index
    %8 = vector.load %arg1[%c0, %c0_1] : memref<512x128xbf16, #tpu.memory_space<vmem>>, vector<512x128xbf16>
    %9 = arith.extf %8 : vector<512x128xbf16> to vector<512x128xf32>
    %c0_2 = arith.constant 0 : index
    %c0_3 = arith.constant 0 : index
    %10 = vector.load %arg2[%c0_2, %c0_3] : memref<1x128xf32, #tpu.memory_space<vmem>>, vector<1x128xf32>
    %11 = vector.broadcast %10 : vector<1x128xf32> to vector<512x128xf32>
    %12 = arith.mulf %9, %11 : vector<512x128xf32>
    %c0_4 = arith.constant 0 : index
    %c0_5 = arith.constant 0 : index
    %13 = vector.load %arg3[%c0_4, %c0_5] : memref<1x128xf32, #tpu.memory_space<vmem>>, vector<1x128xf32>
    %14 = vector.broadcast %13 : vector<1x128xf32> to vector<512x128xf32>
    %15 = arith.addf %12, %14 : vector<512x128xf32>
    %cst = arith.constant 0.000000e+00 : f32
    %16 = vector.broadcast %cst : f32 to vector<512x128xf32>
    %17 = arith.maximumf %15, %16 : vector<512x128xf32>
    %18 = vector.broadcast %7 : vector<512x1xf32> to vector<512x128xf32>
    %19 = arith.mulf %17, %18 : vector<512x128xf32>
    %20 = arith.truncf %19 : vector<512x128xf32> to vector<512x128xbf16>
    %c0_6 = arith.constant 0 : index
    %c0_7 = arith.constant 0 : index
    %21 = vector.load %arg4[%c0_6, %c0_7] : memref<128x128xbf16, #tpu.memory_space<vmem>>, vector<128x128xbf16>
    %cst_8 = arith.constant dense<0.000000e+00> : vector<512x128xf32>
    %22 = tpu.matmul %20, %21, %cst_8 {dimension_numbers = #tpu.dot_dimension_numbers<[1], [0], [0], [1], [0, 0, 1, 1], [], []>} : vector<512x128xbf16>, vector<128x128xbf16>, vector<512x128xf32> -> vector<512x128xf32>
    %23 = arith.truncf %22 : vector<512x128xf32> to vector<512x128xbf16>
    %c0_9 = arith.constant 0 : index
    %c0_10 = arith.constant 0 : index
    %24 = vector.load %arg5[%c0_9, %c0_10] : memref<512x128xbf16, #tpu.memory_space<vmem>>, vector<512x128xbf16>
    tpu.vector_store %arg5[%c0_9, %c0_10], %23 {strides = array<i32>} : memref<512x128xbf16, #tpu.memory_space<vmem>>, vector<512x128xbf16>,
    %cst_11 = arith.constant dense<0.000000e+00> : vector<128xf32>
    %25 = vector.multi_reduction <add>, %22, %cst_11 [0] : vector<512x128xf32> to vector<128xf32>
    %26 = vector.shape_cast %25 : vector<128xf32> to vector<1x128xf32>
    %27 = arith.mulf %22, %22 : vector<512x128xf32>
    %cst_12 = arith.constant dense<0.000000e+00> : vector<128xf32>
    %28 = vector.multi_reduction <add>, %27, %cst_12 [0] : vector<512x128xf32> to vector<128xf32>
    %29 = vector.shape_cast %28 : vector<128xf32> to vector<1x128xf32>
    %30 = tpu.concatenate %26, %29 in 0 : vector<1x128xf32>, vector<1x128xf32> -> vector<2x128xf32>
    %31 = vector.shape_cast %30 : vector<2x128xf32> to vector<1x2x128xf32>
    %c0_13 = arith.constant 0 : index
    %c0_14 = arith.constant 0 : index
    %c0_15 = arith.constant 0 : index
    %32 = vector.load %arg6[%c0_13, %c0_14, %c0_15] : memref<1x2x128xf32, #tpu.memory_space<vmem>>, vector<1x2x128xf32>
    tpu.vector_store %arg6[%c0_13, %c0_14, %c0_15], %31 {strides = array<i32>} : memref<1x2x128xf32, #tpu.memory_space<vmem>>, vector<1x2x128xf32>,
    return
  }
  func.func @transform_0(%arg0: i32) -> (i32, i32) {
    %c0_i32 = arith.constant 0 : i32
    %c0_i32_0 = arith.constant 0 : i32
    return %arg0, %c0_i32 : i32, i32
  }
  func.func @transform_1(%arg0: i32) -> (i32, i32) {
    %c0_i32 = arith.constant 0 : i32
    %c0_i32_0 = arith.constant 0 : i32
    %c0_i32_1 = arith.constant 0 : i32
    return %c0_i32, %c0_i32_0 : i32, i32
  }
  func.func @transform_2(%arg0: i32) -> (i32, i32) {
    %c0_i32 = arith.constant 0 : i32
    %c0_i32_0 = arith.constant 0 : i32
    %c0_i32_1 = arith.constant 0 : i32
    return %c0_i32, %c0_i32_0 : i32, i32
  }
  func.func @transform_3(%arg0: i32) -> (i32, i32) {
    %c0_i32 = arith.constant 0 : i32
    %c0_i32_0 = arith.constant 0 : i32
    %c0_i32_1 = arith.constant 0 : i32
    return %c0_i32, %c0_i32_0 : i32, i32
  }
  func.func @transform_4(%arg0: i32) -> (i32, i32) {
    %c0_i32 = arith.constant 0 : i32
    %c0_i32_0 = arith.constant 0 : i32
    return %arg0, %c0_i32 : i32, i32
  }
  func.func @transform_5(%arg0: i32) -> (i32, i32, i32) {
    %c0_i32 = arith.constant 0 : i32
    %c0_i32_0 = arith.constant 0 : i32
    %c0_i32_1 = arith.constant 0 : i32
    return %arg0, %c0_i32, %c0_i32_0 : i32, i32, i32
  }
}

module attributes {stable_mosaic.version = 11 : i64} {
  func.func @_bn_apply_kernel(%arg0: i32, %arg1: memref<512x128xbf16, #tpu.memory_space<vmem>>, %arg2: memref<1x32xf32, #tpu.memory_space<vmem>>, %arg3: memref<1x32xf32, #tpu.memory_space<vmem>>, %arg4: memref<512x32xf32, #tpu.memory_space<vmem>>) attributes {dimension_semantics = [#tpu.dimension_semantics<parallel>], iteration_bounds = array<i64: 1>, scalar_prefetch = 0 : i64, scratch_operands = 0 : i64, tpu.core_type = #tpu.core_type<tc>, window_params = [{transform_indices = @transform_0, window_bounds = array<i64: 512, 128>}, {pipeline_mode = #tpu.pipeline_mode<synchronous>, transform_indices = @transform_1, window_bounds = array<i64: 1, 32>}, {pipeline_mode = #tpu.pipeline_mode<synchronous>, transform_indices = @transform_2, window_bounds = array<i64: 1, 32>}, {transform_indices = @transform_3, window_bounds = array<i64: 512, 32>}]} {
    %c0 = arith.constant 0 : index
    %c0_0 = arith.constant 0 : index
    %0 = vector.load %arg1[%c0, %c0_0] : memref<512x128xbf16, #tpu.memory_space<vmem>>, vector<512x128xbf16>
    %1 = arith.extf %0 : vector<512x128xbf16> to vector<512x128xf32>
    %2 = vector.extract_strided_slice %1 {offsets = [0, 0], sizes = [512, 32], strides = [1, 1]} : vector<512x128xf32> to vector<512x32xf32>
    %c0_1 = arith.constant 0 : index
    %c0_2 = arith.constant 0 : index
    %3 = vector.load %arg2[%c0_1, %c0_2] : memref<1x32xf32, #tpu.memory_space<vmem>>, vector<1x32xf32>
    %4 = vector.broadcast %3 : vector<1x32xf32> to vector<512x32xf32>
    %5 = arith.mulf %2, %4 : vector<512x32xf32>
    %c0_3 = arith.constant 0 : index
    %c0_4 = arith.constant 0 : index
    %6 = vector.load %arg3[%c0_3, %c0_4] : memref<1x32xf32, #tpu.memory_space<vmem>>, vector<1x32xf32>
    %7 = vector.broadcast %6 : vector<1x32xf32> to vector<512x32xf32>
    %8 = arith.addf %5, %7 : vector<512x32xf32>
    %c0_5 = arith.constant 0 : index
    %c0_6 = arith.constant 0 : index
    %9 = vector.load %arg4[%c0_5, %c0_6] : memref<512x32xf32, #tpu.memory_space<vmem>>, vector<512x32xf32>
    tpu.vector_store %arg4[%c0_5, %c0_6], %8 {strides = array<i32>} : memref<512x32xf32, #tpu.memory_space<vmem>>, vector<512x32xf32>,
    return
  }
  func.func @transform_0(%arg0: i32) -> (i32, i32) {
    %c0_i32 = arith.constant 0 : i32
    %c0_i32_0 = arith.constant 0 : i32
    return %arg0, %c0_i32 : i32, i32
  }
  func.func @transform_1(%arg0: i32) -> (i32, i32) {
    %c0_i32 = arith.constant 0 : i32
    %c0_i32_0 = arith.constant 0 : i32
    %c0_i32_1 = arith.constant 0 : i32
    return %c0_i32, %c0_i32_0 : i32, i32
  }
  func.func @transform_2(%arg0: i32) -> (i32, i32) {
    %c0_i32 = arith.constant 0 : i32
    %c0_i32_0 = arith.constant 0 : i32
    %c0_i32_1 = arith.constant 0 : i32
    return %c0_i32, %c0_i32_0 : i32, i32
  }
  func.func @transform_3(%arg0: i32) -> (i32, i32) {
    %c0_i32 = arith.constant 0 : i32
    %c0_i32_0 = arith.constant 0 : i32
    return %arg0, %c0_i32 : i32, i32
  }
}

</mosaic_0001>

<bundles_post_ra>
// kernel: bottleneck_forward.7
= control target key start
LH: loop header
LB: loop body
LE: loop exit
PB: predicated region body
PF: predicated region fallthrough
CT: control target
= control target key end

     0   :  { %vm285_vm0 = vcmask 261120   ;;  %s887_s0 = inlined_call_operand.vmem [shape: bf16[512,128], index: 0, kind: input, shape index: {}]   ;;  %s888_s1 = inlined_call_operand.vmem [shape: f32[1,32], index: 1, kind: input, shape index: {}]   ;;  %s889_s2 = inlined_call_operand.vmem [shape: f32[1,32], index: 2, kind: input, shape index: {}]   ;;  %s890_s3 = inlined_call_operand.hbm [shape: f32[512,32], index: 3, kind: output, shape index: {}]  }
   0x1   :  { %v369_v0 = vld [vmem:[%s887_s0] sm:$0xff]   ;;  %v496_v4 = vld [vmem:[%s887_s0 + $0x8] sm:$0xff]   ;;  %v497_v5 = vld [vmem:[%s887_s0 + $0x10] sm:$0xff]  }
   0x2   :  { %v583_v1 = vld [vmem:[%s888_s1] ss:$0 sm:$0xff]  ;;  %v370_v2 = vunpack.c.l.bf16 %v369_v0  ;;  %v371_v3 = vunpack.c.h.bf16 %v369_v0  ;;  %v498_v6 = vld [vmem:[%s887_s0 + $0x18] sm:$0xff]   ;;  %v374_v8 = vunpack.c.l.bf16 %v496_v4  ;;  %v375_v9 = vunpack.c.h.bf16 %v496_v4  ;;  %v500_v25 = vld [vmem:[%s887_s0 + $0x28] sm:$0xff]  }
   0x3   :  { %v597_v7 = vld [vmem:[%s889_s2] ss:$0 sm:$0xff]  ;;  %v378_v10 = vunpack.c.l.bf16 %v497_v5  ;;  %v379_v11 = vunpack.c.h.bf16 %v497_v5  ;;  %v382_v14 = vunpack.c.l.bf16 %v498_v6  ;;  %v383_v15 = vunpack.c.h.bf16 %v498_v6  ;;  %v501_v26 = vld [vmem:[%s887_s0 + $0x30] sm:$0xff]   ;;  %v502_v31 = vld [vmem:[%s887_s0 + $0x38] sm:$0xff]  }
   0x4   :  { %v150_v12 = vmul.f32 %v370_v2, %v583_v1  ;;  %v151_v13 = vmul.f32 %v371_v3, %v583_v1  ;;  %v152_v16 = vmul.f32 %v374_v8, %v583_v1  ;;  %v153_v17 = vmul.f32 %v375_v9, %v583_v1  ;;  %v499_v20 = vld [vmem:[%s887_s0 + $0x20] sm:$0xff]   ;;  %v504_v53 = vld [vmem:[%s887_s0 + $0x48] sm:$0xff]   ;;  %v505_v54 = vld [vmem:[%s887_s0 + $0x50] sm:$0xff]  }
   0x5   :  { %v154_v18 = vmul.f32 %v378_v10, %v583_v1  ;;  %v155_v19 = vmul.f32 %v379_v11, %v583_v1  ;;  %v156_v23 = vmul.f32 %v382_v14, %v583_v1  ;;  %v157_v24 = vmul.f32 %v383_v15, %v583_v1  ;;  %v503_v48 = vld [vmem:[%s887_s0 + $0x40] sm:$0xff]  }
   0x6   :  { %v221_v21 = vadd.f32 %v597_v7, %v150_v12  ;;  %v222_v22 = vadd.f32 %v597_v7, %v151_v13  ;;  %v223_v27 = vadd.f32 %v597_v7, %v152_v16  ;;  %v224_v28 = vadd.f32 %v597_v7, %v153_v17 }
   0x7   :  { %v225_v29 = vadd.f32 %v597_v7, %v154_v18  ;;  %v226_v30 = vadd.f32 %v597_v7, %v155_v19  ;;  %v227_v32 = vadd.f32 %v597_v7, %v156_v23  ;;  %v228_v33 = vadd.f32 %v597_v7, %v157_v24 }
   0x8   :  { %286 = vst.msk [vmem:[#allocation2] sm:$0xff] %vm285_vm0, %v221_v21  ;;  %287 = vst.msk [vmem:[#allocation2 + $0x8] sm:$0xff] %vm285_vm0, %v222_v22  ;;  %v386_v34 = vunpack.c.l.bf16 %v499_v20  ;;  %v387_v35 = vunpack.c.h.bf16 %v499_v20  ;;  %v390_v36 = vunpack.c.l.bf16 %v500_v25  ;;  %v391_v37 = vunpack.c.h.bf16 %v500_v25 }
   0x9   :  { %288 = vst.msk [vmem:[#allocation2 + $0x10] sm:$0xff] %vm285_vm0, %v223_v27  ;;  %289 = vst.msk [vmem:[#allocation2 + $0x18] sm:$0xff] %vm285_vm0, %v224_v28  ;;  %v394_v38 = vunpack.c.l.bf16 %v501_v26  ;;  %v395_v39 = vunpack.c.h.bf16 %v501_v26  ;;  %v398_v42 = vunpack.c.l.bf16 %v502_v31  ;;  %v399_v43 = vunpack.c.h.bf16 %v502_v31 }
   0xa   :  { %290 = vst.msk [vmem:[#allocation2 + $0x20] sm:$0xff] %vm285_vm0, %v225_v29  ;;  %291 = vst.msk [vmem:[#allocation2 + $0x28] sm:$0xff] %vm285_vm0, %v226_v30  ;;  %v158_v40 = vmul.f32 %v386_v34, %v583_v1  ;;  %v159_v41 = vmul.f32 %v387_v35, %v583_v1  ;;  %v160_v44 = vmul.f32 %v390_v36, %v583_v1 }
   0xb   :  { %292 = vst.msk [vmem:[#allocation2 + $0x30] sm:$0xff] %vm285_vm0, %v227_v32  ;;  %293 = vst.msk [vmem:[#allocation2 + $0x38] sm:$0xff] %vm285_vm0, %v228_v33  ;;  %v161_v45 = vmul.f32 %v391_v37, %v583_v1  ;;  %v162_v46 = vmul.f32 %v394_v38, %v583_v1  ;;  %v163_v47 = vmul.f32 %v395_v39, %v583_v1 }
   0xc   :  { %v229_v49 = vadd.f32 %v597_v7, %v158_v40  ;;  %v230_v50 = vadd.f32 %v597_v7, %v159_v41  ;;  %v164_v51 = vmul.f32 %v398_v42, %v583_v1  ;;  %v165_v52 = vmul.f32 %v399_v43, %v583_v1 }
   0xd   :  { %8 = vsyncpa [#allocation3], 0  ;;  %v231_v55 = vadd.f32 %v597_v7, %v160_v44  ;;  %v232_v56 = vadd.f32 %v597_v7, %v161_v45  ;;  %v233_v57 = vadd.f32 %v597_v7, %v162_v46  ;;  %v234_v58 = vadd.f32 %v597_v7, %v163_v47  ;;  %v506_v59 = vld [vmem:[%s887_s0 + $0x58] sm:$0xff]   ;;  %v507_v14 = vld [vmem:[%s887_s0 + $0x60] sm:$0xff]  }
   0xe   :  { %294 = vst.msk [vmem:[#allocation2 + $0x40] sm:$0xff] %vm285_vm0, %v229_v49  ;;  %295 = vst.msk [vmem:[#allocation2 + $0x48] sm:$0xff] %vm285_vm0, %v230_v50  ;;  %v235_v60 = vadd.f32 %v597_v7, %v164_v51  ;;  %v236_v61 = vadd.f32 %v597_v7, %v165_v52  ;;  %v402_v62 = vunpack.c.l.bf16 %v503_v48  ;;  %v403_v63 = vunpack.c.h.bf16 %v503_v48  ;;  %v508_v19 = vld [vmem:[%s887_s0 + $0x68] sm:$0xff]   ;;  %v509_v20 = vld [vmem:[%s887_s0 + $0x70] sm:$0xff]  }
   0xf   :  { %296 = vst.msk [vmem:[#allocation2 + $0x50] sm:$0xff] %vm285_vm0, %v231_v55  ;;  %297 = vst.msk [vmem:[#allocation2 + $0x58] sm:$0xff] %vm285_vm0, %v232_v56  ;;  %v406_v0 = vunpack.c.l.bf16 %v504_v53  ;;  %v407_v2 = vunpack.c.h.bf16 %v504_v53  ;;  %v410_v3 = vunpack.c.l.bf16 %v505_v54  ;;  %v411_v4 = vunpack.c.h.bf16 %v505_v54  ;;  %v510_v25 = vld [vmem:[%s887_s0 + $0x78] sm:$0xff]   ;;  %v511_v42 = vld [vmem:[%s887_s0 + $0x80] sm:$0xff]  }
  0x10   :  { %298 = vst.msk [vmem:[#allocation2 + $0x60] sm:$0xff] %vm285_vm0, %v233_v57  ;;  %299 = vst.msk [vmem:[#allocation2 + $0x68] sm:$0xff] %vm285_vm0, %v234_v58  ;;  %v166_v5 = vmul.f32 %v402_v62, %v583_v1  ;;  %v167_v6 = vmul.f32 %v403_v63, %v583_v1  ;;  %v414_v8 = vunpack.c.l.bf16 %v506_v59  ;;  %v415_v9 = vunpack.c.h.bf16 %v506_v59  ;;  %v512_v47 = vld [vmem:[%s887_s0 + $0x88] sm:$0xff]   ;;  %v513_v48 = vld [vmem:[%s887_s0 + $0x90] sm:$0xff]  }
  0x11   :  { %300 = vst.msk [vmem:[#allocation2 + $0x70] sm:$0xff] %vm285_vm0, %v235_v60  ;;  %301 = vst.msk [vmem:[#allocation2 + $0x78] sm:$0xff] %vm285_vm0, %v236_v61  ;;  %v168_v10 = vmul.f32 %v406_v0, %v583_v1  ;;  %v169_v11 = vmul.f32 %v407_v2, %v583_v1  ;;  %v170_v12 = vmul.f32 %v410_v3, %v583_v1  ;;  %v418_v28 = vunpack.c.l.bf16 %v507_v14  ;;  %v514_v53 = vld [vmem:[%s887_s0 + $0x98] sm:$0xff]  }
  0x12   :  { %v171_v13 = vmul.f32 %v411_v4, %v583_v1  ;;  %v237_v15 = vadd.f32 %v597_v7, %v166_v5  ;;  %v238_v16 = vadd.f32 %v597_v7, %v167_v6  ;;  %v172_v17 = vmul.f32 %v414_v8, %v583_v1  ;;  %v515_v8 = vld [vmem:[%s887_s0 + $0xa0] sm:$0xff]  }
  0x13   :  { %v173_v18 = vmul.f32 %v415_v9, %v583_v1  ;;  %v239_v21 = vadd.f32 %v597_v7, %v168_v10  ;;  %v240_v22 = vadd.f32 %v597_v7, %v169_v11  ;;  %v241_v23 = vadd.f32 %v597_v7, %v170_v12 }
  0x14   :  { %v242_v24 = vadd.f32 %v597_v7, %v171_v13  ;;  %302 = vst.msk [vmem:[#allocation2 + $0x80] sm:$0xff] %vm285_vm0, %v237_v15  ;;  %303 = vst.msk [vmem:[#allocation2 + $0x88] sm:$0xff] %vm285_vm0, %v238_v16  ;;  %v243_v26 = vadd.f32 %v597_v7, %v172_v17  ;;  %v419_v29 = vunpack.c.h.bf16 %v507_v14  ;;  %v422_v30 = vunpack.c.l.bf16 %v508_v19  ;;  %v516_v13 = vld [vmem:[%s887_s0 + $0xa8] sm:$0xff]   ;;  %v517_v14 = vld [vmem:[%s887_s0 + $0xb0] sm:$0xff]  }
  0x15   :  { %v244_v27 = vadd.f32 %v597_v7, %v173_v18  ;;  %304 = vst.msk [vmem:[#allocation2 + $0x90] sm:$0xff] %vm285_vm0, %v239_v21  ;;  %305 = vst.msk [vmem:[#allocation2 + $0x98] sm:$0xff] %vm285_vm0, %v240_v22  ;;  %v423_v31 = vunpack.c.h.bf16 %v508_v19  ;;  %v426_v32 = vunpack.c.l.bf16 %v509_v20  ;;  %v427_v33 = vunpack.c.h.bf16 %v509_v20  ;;  %v518_v19 = vld [vmem:[%s887_s0 + $0xb8] sm:$0xff]  }
  0x16   :  { %306 = vst.msk [vmem:[#allocation2 + $0xa0] sm:$0xff] %vm285_vm0, %v241_v23  ;;  %307 = vst.msk [vmem:[#allocation2 + $0xa8] sm:$0xff] %vm285_vm0, %v242_v24  ;;  %v174_v34 = vmul.f32 %v418_v28, %v583_v1  ;;  %v175_v35 = vmul.f32 %v419_v29, %v583_v1  ;;  %v430_v36 = vunpack.c.l.bf16 %v510_v25  ;;  %v431_v37 = vunpack.c.h.bf16 %v510_v25 }
  0x17   :  { %308 = vst.msk [vmem:[#allocation2 + $0xb0] sm:$0xff] %vm285_vm0, %v243_v26  ;;  %309 = vst.msk [vmem:[#allocation2 + $0xb8] sm:$0xff] %vm285_vm0, %v244_v27  ;;  %v176_v38 = vmul.f32 %v422_v30, %v583_v1  ;;  %v177_v39 = vmul.f32 %v423_v31, %v583_v1  ;;  %v178_v40 = vmul.f32 %v426_v32, %v583_v1  ;;  %v434_v56 = vunpack.c.l.bf16 %v511_v42 }
  0x18   :  { %v179_v41 = vmul.f32 %v427_v33, %v583_v1  ;;  %v245_v43 = vadd.f32 %v597_v7, %v174_v34  ;;  %v246_v44 = vadd.f32 %v597_v7, %v175_v35  ;;  %v180_v45 = vmul.f32 %v430_v36, %v583_v1  ;;  %v519_v36 = vld [vmem:[%s887_s0 + $0xc0] sm:$0xff]  }
  0x19   :  { %v181_v46 = vmul.f32 %v431_v37, %v583_v1  ;;  %v247_v49 = vadd.f32 %v597_v7, %v176_v38  ;;  %v248_v50 = vadd.f32 %v597_v7, %v177_v39  ;;  %v249_v51 = vadd.f32 %v597_v7, %v178_v40 }
  0x1a   :  { %v250_v52 = vadd.f32 %v597_v7, %v179_v41  ;;  %310 = vst.msk [vmem:[#allocation2 + $0xc0] sm:$0xff] %vm285_vm0, %v245_v43  ;;  %311 = vst.msk [vmem:[#allocation2 + $0xc8] sm:$0xff] %vm285_vm0, %v246_v44  ;;  %v251_v54 = vadd.f32 %v597_v7, %v180_v45  ;;  %v435_v57 = vunpack.c.h.bf16 %v511_v42  ;;  %v438_v58 = vunpack.c.l.bf16 %v512_v47  ;;  %v520_v41 = vld [vmem:[%s887_s0 + $0xc8] sm:$0xff]   ;;  %v521_v42 = vld [vmem:[%s887_s0 + $0xd0] sm:$0xff]  }
  0x1b   :  { %v252_v55 = vadd.f32 %v597_v7, %v181_v46  ;;  %312 = vst.msk [vmem:[#allocation2 + $0xd0] sm:$0xff] %vm285_vm0, %v247_v49  ;;  %313 = vst.msk [vmem:[#allocation2 + $0xd8] sm:$0xff] %vm285_vm0, %v248_v50  ;;  %v439_v59 = vunpack.c.h.bf16 %v512_v47  ;;  %v442_v60 = vunpack.c.l.bf16 %v513_v48  ;;  %v443_v61 = vunpack.c.h.bf16 %v513_v48  ;;  %v522_v47 = vld [vmem:[%s887_s0 + $0xd8] sm:$0xff]  }
  0x1c   :  { %314 = vst.msk [vmem:[#allocation2 + $0xe0] sm:$0xff] %vm285_vm0, %v249_v51  ;;  %315 = vst.msk [vmem:[#allocation2 + $0xe8] sm:$0xff] %vm285_vm0, %v250_v52  ;;  %v182_v62 = vmul.f32 %v434_v56, %v583_v1  ;;  %v183_v63 = vmul.f32 %v435_v57, %v583_v1  ;;  %v446_v0 = vunpack.c.l.bf16 %v514_v53  ;;  %v447_v2 = vunpack.c.h.bf16 %v514_v53 }
  0x1d   :  { %316 = vst.msk [vmem:[#allocation2 + $0xf0] sm:$0xff] %vm285_vm0, %v251_v54  ;;  %317 = vst.msk [vmem:[#allocation2 + $0xf8] sm:$0xff] %vm285_vm0, %v252_v55  ;;  %v184_v3 = vmul.f32 %v438_v58, %v583_v1  ;;  %v185_v4 = vmul.f32 %v439_v59, %v583_v1  ;;  %v186_v5 = vmul.f32 %v442_v60, %v583_v1  ;;  %v450_v22 = vunpack.c.l.bf16 %v515_v8 }
  0x1e   :  { %v187_v6 = vmul.f32 %v443_v61, %v583_v1  ;;  %v253_v9 = vadd.f32 %v597_v7, %v182_v62  ;;  %v254_v10 = vadd.f32 %v597_v7, %v183_v63  ;;  %v188_v11 = vmul.f32 %v446_v0, %v583_v1  ;;  %v523_v0 = vld [vmem:[%s887_s0 + $0xe0] sm:$0xff]  }
  0x1f   :  { %v189_v12 = vmul.f32 %v447_v2, %v583_v1  ;;  %v255_v15 = vadd.f32 %v597_v7, %v184_v3  ;;  %v256_v16 = vadd.f32 %v597_v7, %v185_v4  ;;  %v257_v17 = vadd.f32 %v597_v7, %v186_v5 }
  0x20   :  { %v258_v18 = vadd.f32 %v597_v7, %v187_v6  ;;  %318 = vst.msk [vmem:[#allocation2 + $0x100] sm:$0xff] %vm285_vm0, %v253_v9  ;;  %319 = vst.msk [vmem:[#allocation2 + $0x108] sm:$0xff] %vm285_vm0, %v254_v10  ;;  %v259_v20 = vadd.f32 %v597_v7, %v188_v11  ;;  %v451_v23 = vunpack.c.h.bf16 %v515_v8  ;;  %v454_v24 = vunpack.c.l.bf16 %v516_v13  ;;  %v524_v6 = vld [vmem:[%s887_s0 + $0xe8] sm:$0xff]   ;;  %v525_v8 = vld [vmem:[%s887_s0 + $0xf0] sm:$0xff]  }
  0x21   :  { %v260_v21 = vadd.f32 %v597_v7, %v189_v12  ;;  %320 = vst.msk [vmem:[#allocation2 + $0x110] sm:$0xff] %vm285_vm0, %v255_v15  ;;  %321 = vst.msk [vmem:[#allocation2 + $0x118] sm:$0xff] %vm285_vm0, %v256_v16  ;;  %v455_v25 = vunpack.c.h.bf16 %v516_v13  ;;  %v458_v26 = vunpack.c.l.bf16 %v517_v14  ;;  %v459_v27 = vunpack.c.h.bf16 %v517_v14  ;;  %v526_v13 = vld [vmem:[%s887_s0 + $0xf8] sm:$0xff]   ;;  %s554_s0 = smov [#allocation2]  }
  0x22   :  { %322 = vst.msk [vmem:[#allocation2 + $0x120] sm:$0xff] %vm285_vm0, %v257_v17  ;;  %323 = vst.msk [vmem:[#allocation2 + $0x128] sm:$0xff] %vm285_vm0, %v258_v18  ;;  %v190_v28 = vmul.f32 %v450_v22, %v583_v1  ;;  %v191_v29 = vmul.f32 %v451_v23, %v583_v1  ;;  %v462_v30 = vunpack.c.l.bf16 %v518_v19  ;;  %v463_v31 = vunpack.c.h.bf16 %v518_v19  ;;  %s355_s22 = sshll.u32 %s554_s0, 4  ;;  %s356_s22 = int_to_ptr.vmem [resolvable:$true] %s355_s22 }
  0x23   :  { %324 = vst.msk [vmem:[#allocation2 + $0x130] sm:$0xff] %vm285_vm0, %v259_v20  ;;  %325 = vst.msk [vmem:[#allocation2 + $0x138] sm:$0xff] %vm285_vm0, %v260_v21  ;;  %v192_v32 = vmul.f32 %v454_v24, %v583_v1  ;;  %v193_v33 = vmul.f32 %v455_v25, %v583_v1  ;;  %v194_v34 = vmul.f32 %v458_v26, %v583_v1  ;;  %v466_v50 = vunpack.c.l.bf16 %v519_v36  ;;  %s530_s23 = scalar_lea.vmem %s356_s22, 8192  ;;  %p535_p1 = scmp.lt.s32.totalorder %s356_s22, %s356_s22 }
  0x24   :  { %v195_v35 = vmul.f32 %v459_v27, %v583_v1  ;;  %v261_v37 = vadd.f32 %v597_v7, %v190_v28  ;;  %v262_v38 = vadd.f32 %v597_v7, %v191_v29  ;;  %v196_v39 = vmul.f32 %v462_v30, %v583_v1  ;;  %p531_p0 = scmp.ne.s32.totalorder %s356_s22, %s530_s23  ;;  %p536_p2 = scmp.lt.s32.totalorder %s530_s23, %s530_s23 }
  0x25   :  { %v197_v40 = vmul.f32 %v463_v31, %v583_v1  ;;  %v263_v43 = vadd.f32 %v597_v7, %v192_v32  ;;  %v264_v44 = vadd.f32 %v597_v7, %v193_v33  ;;  %v265_v45 = vadd.f32 %v597_v7, %v194_v34 }
  0x26   :  { %v266_v46 = vadd.f32 %v597_v7, %v195_v35  ;;  %326 = vst.msk [vmem:[#allocation2 + $0x140] sm:$0xff] %vm285_vm0, %v261_v37  ;;  %327 = vst.msk [vmem:[#allocation2 + $0x148] sm:$0xff] %vm285_vm0, %v262_v38  ;;  %v267_v48 = vadd.f32 %v597_v7, %v196_v39  ;;  %v467_v51 = vunpack.c.h.bf16 %v519_v36  ;;  %v470_v52 = vunpack.c.l.bf16 %v520_v41  ;;  %p537_p3 = por %p536_p2, %p535_p1 }
  0x27   :  { %v268_v49 = vadd.f32 %v597_v7, %v197_v40  ;;  %328 = vst.msk [vmem:[#allocation2 + $0x150] sm:$0xff] %vm285_vm0, %v263_v43  ;;  %329 = vst.msk [vmem:[#allocation2 + $0x158] sm:$0xff] %vm285_vm0, %v264_v44  ;;  %v471_v53 = vunpack.c.h.bf16 %v520_v41  ;;  %v474_v54 = vunpack.c.l.bf16 %v521_v42  ;;  %v475_v55 = vunpack.c.h.bf16 %v521_v42 }
  0x28   :  { %330 = vst.msk [vmem:[#allocation2 + $0x160] sm:$0xff] %vm285_vm0, %v265_v45  ;;  %331 = vst.msk [vmem:[#allocation2 + $0x168] sm:$0xff] %vm285_vm0, %v266_v46  ;;  %v198_v56 = vmul.f32 %v466_v50, %v583_v1  ;;  %v199_v57 = vmul.f32 %v467_v51, %v583_v1  ;;  %v478_v58 = vunpack.c.l.bf16 %v522_v47  ;;  %v479_v59 = vunpack.c.h.bf16 %v522_v47  ;;  %p538_p4 = pnand %p537_p3, %p531_p0 }
  0x29   :  { %332 = vst.msk [vmem:[#allocation2 + $0x170] sm:$0xff] %vm285_vm0, %v267_v48  ;;  %333 = vst.msk [vmem:[#allocation2 + $0x178] sm:$0xff] %vm285_vm0, %v268_v49  ;;  %v200_v60 = vmul.f32 %v470_v52, %v583_v1  ;;  %v201_v61 = vmul.f32 %v471_v53, %v583_v1  ;;  %v202_v62 = vmul.f32 %v474_v54, %v583_v1  ;;  %v482_v16 = vunpack.c.l.bf16 %v523_v0 }
  0x2a   :  { %v203_v63 = vmul.f32 %v475_v55, %v583_v1  ;;  %v269_v2 = vadd.f32 %v597_v7, %v198_v56  ;;  %v270_v3 = vadd.f32 %v597_v7, %v199_v57  ;;  %v204_v4 = vmul.f32 %v478_v58, %v583_v1 }
  0x2b   :  { %v205_v5 = vmul.f32 %v479_v59, %v583_v1  ;;  %v271_v9 = vadd.f32 %v597_v7, %v200_v60  ;;  %v272_v10 = vadd.f32 %v597_v7, %v201_v61  ;;  %v273_v11 = vadd.f32 %v597_v7, %v202_v62 }
  0x2c   :  { %v274_v12 = vadd.f32 %v597_v7, %v203_v63  ;;  %334 = vst.msk [vmem:[#allocation2 + $0x180] sm:$0xff] %vm285_vm0, %v269_v2  ;;  %335 = vst.msk [vmem:[#allocation2 + $0x188] sm:$0xff] %vm285_vm0, %v270_v3  ;;  %v275_v14 = vadd.f32 %v597_v7, %v204_v4  ;;  %v483_v17 = vunpack.c.h.bf16 %v523_v0  ;;  %v486_v18 = vunpack.c.l.bf16 %v524_v6 }
  0x2d   :  { %v276_v15 = vadd.f32 %v597_v7, %v205_v5  ;;  %336 = vst.msk [vmem:[#allocation2 + $0x190] sm:$0xff] %vm285_vm0, %v271_v9  ;;  %337 = vst.msk [vmem:[#allocation2 + $0x198] sm:$0xff] %vm285_vm0, %v272_v10  ;;  %v487_v19 = vunpack.c.h.bf16 %v524_v6  ;;  %v490_v20 = vunpack.c.l.bf16 %v525_v8  ;;  %v491_v21 = vunpack.c.h.bf16 %v525_v8 }
  0x2e   :  { %338 = vst.msk [vmem:[#allocation2 + $0x1a0] sm:$0xff] %vm285_vm0, %v273_v11  ;;  %339 = vst.msk [vmem:[#allocation2 + $0x1a8] sm:$0xff] %vm285_vm0, %v274_v12  ;;  %v206_v22 = vmul.f32 %v482_v16, %v583_v1  ;;  %v207_v23 = vmul.f32 %v483_v17, %v583_v1  ;;  %v494_v24 = vunpack.c.l.bf16 %v526_v13  ;;  %v495_v25 = vunpack.c.h.bf16 %v526_v13 }
  0x2f   :  { %340 = vst.msk [vmem:[#allocation2 + $0x1b0] sm:$0xff] %vm285_vm0, %v275_v14  ;;  %341 = vst.msk [vmem:[#allocation2 + $0x1b8] sm:$0xff] %vm285_vm0, %v276_v15  ;;  %v208_v26 = vmul.f32 %v486_v18, %v583_v1  ;;  %v209_v27 = vmul.f32 %v487_v19, %v583_v1  ;;  %v210_v28 = vmul.f32 %v490_v20, %v583_v1 }
  0x30   :  { %v211_v29 = vmul.f32 %v491_v21, %v583_v1  ;;  %v277_v30 = vadd.f32 %v597_v7, %v206_v22  ;;  %v278_v31 = vadd.f32 %v597_v7, %v207_v23  ;;  %v212_v32 = vmul.f32 %v494_v24, %v583_v1 }
  0x31   :  { %v213_v33 = vmul.f32 %v495_v25, %v583_v1  ;;  %v279_v34 = vadd.f32 %v597_v7, %v208_v26  ;;  %v280_v35 = vadd.f32 %v597_v7, %v209_v27  ;;  %v281_v36 = vadd.f32 %v597_v7, %v210_v28 }
  0x32   :  { %v282_v37 = vadd.f32 %v597_v7, %v211_v29  ;;  %342 = vst.msk [vmem:[#allocation2 + $0x1c0] sm:$0xff] %vm285_vm0, %v277_v30  ;;  %343 = vst.msk [vmem:[#allocation2 + $0x1c8] sm:$0xff] %vm285_vm0, %v278_v31  ;;  %v283_v38 = vadd.f32 %v597_v7, %v212_v32 }
  0x33   :  { %v284_v39 = vadd.f32 %v597_v7, %v213_v33  ;;  %344 = vst.msk [vmem:[#allocation2 + $0x1d0] sm:$0xff] %vm285_vm0, %v279_v34  ;;  %345 = vst.msk [vmem:[#allocation2 + $0x1d8] sm:$0xff] %vm285_vm0, %v280_v35 }
  0x34   :  { %346 = vst.msk [vmem:[#allocation2 + $0x1e0] sm:$0xff] %vm285_vm0, %v281_v36  ;;  %347 = vst.msk [vmem:[#allocation2 + $0x1e8] sm:$0xff] %vm285_vm0, %v282_v37 }
  0x35   :  { %348 = vst.msk [vmem:[#allocation2 + $0x1f0] sm:$0xff] %vm285_vm0, %v283_v38  ;;  %349 = vst.msk [vmem:[#allocation2 + $0x1f8] sm:$0xff] %vm285_vm0, %v284_v39 }
  0x36   :  { %541 = shalt.err (!%p538_p4)
}
  0x37   :  { %s542_s24 = scalar_lea.hbm %s890_s3, 8192 }
  0x38   :  { %p543_p5 = scmp.ne.s32.totalorder %s890_s3, %s542_s24  ;;  %p546_p6 = scmp.lt.u32.totalorder %s542_s24, %s890_s3 }
  0x3a   :  { %p548_p7 = pnand %p546_p6, %p543_p5 }
  0x3c   :  { %551 = shalt.err (!%p548_p7)
}
  0x3d   :  { %s555_s29 = smov 128   ;;  %s556_s30 = smov 8  }
  0x3e   :  { %361 = dma.vmem_to_hbm [thread:$0]  %s356_s22, 8192, %s890_s3, [#allocation3], %s555_s29, %s555_s29, %s556_s30  }
  0x3f   :  { %552 = dma.done.wait [#allocation3], 8192  }
  0x40   :  { %553 = vsyncadd [#allocation3], 4294959104 }
  0x41   :  { %365 = vsyncpa [#allocation3], 1 }

// kernel: bottleneck_forward.4
= control target key start
LH: loop header
LB: loop body
LE: loop exit
PB: predicated region body
PF: predicated region fallthrough
CT: control target
= control target key end

     0   :  { %vm255_vm0 = vcmask 261120   ;;  %s2102_s0 = inlined_call_operand.vmem [shape: bf16[512,32], index: 0, kind: input, shape index: {}]   ;;  %s2103_s1 = inlined_call_operand.vmem [shape: bf16[32,128], index: 1, kind: input, shape index: {}]   ;;  %s2104_s2 = inlined_call_operand.hbm [shape: bf16[512,128], index: 2, kind: output, shape index: {0}]   ;;  %s2105_s3 = inlined_call_operand.vmem [shape: f32[1,2,128], index: 3, kind: output, shape index: {1}]  }
   0x1   :  { %v1680_v0 = vld [vmem:[%s2103_s1] sm:$0xff]   ;;  %v1681_v1 = vld [vmem:[%s2103_s1 + $0x8] sm:$0xff]   ;;  %v1684_v4 = vld [vmem:[%s2102_s0 + $0x10] sm:$0xff]  }
   0x2   :  { %1605 = vmatprep.subr.bf16.mxu0 %v1680_v0  ;;  %v1682_v2 = vld [vmem:[%s2102_s0] sm:$0xff]   ;;  %1673 = vmatprep.subr.bf16.mxu1 %v1680_v0  ;;  %v1683_v3 = vld [vmem:[%s2102_s0 + $0x8] sm:$0xff]   ;;  %v1685_v5 = vld [vmem:[%s2102_s0 + $0x18] sm:$0xff]  }
   0x3   :  { %1606 = vmatpush3.bf16.msra.mxu0 %v1680_v0  ;;  %1675 = vmatpush3.bf16.msra.mxu1 %v1680_v0  ;;  %v1686_v6 = vld [vmem:[%s2102_s0 + $0x20] sm:$0xff]   ;;  %v1699_v8 = vld [vmem:[%s2102_s0 + $0x88] sm:$0xff]   ;;  %v1700_v9 = vld [vmem:[%s2102_s0 + $0x90] sm:$0xff]  }
   0x4   :  { %1607 = vmatprep.subr.bf16.mxu0 %v1681_v1  ;;  %1609 = vmatprep.mubr.msk.bf16.mxu0 %vm255_vm0, %v1682_v2  ;;  %v1698_v7 = vld [vmem:[%s2102_s0 + $0x80] sm:$0xff]   ;;  %v1687_v10 = vld [vmem:[%s2102_s0 + $0x28] sm:$0xff]   ;;  %v1688_v11 = vld [vmem:[%s2102_s0 + $0x30] sm:$0xff]  }
   0x5   :  { %1674 = vmatprep.subr.bf16.mxu1 %v1681_v1  ;;  %1641 = vmatprep.mubr.msk.bf16.mxu1 %vm255_vm0, %v1698_v7  ;;  %v1701_v12 = vld [vmem:[%s2102_s0 + $0x98] sm:$0xff]   ;;  %v1702_v13 = vld [vmem:[%s2102_s0 + $0xa0] sm:$0xff]   ;;  %v1703_v16 = vld [vmem:[%s2102_s0 + $0xa8] sm:$0xff]  }
   0x6   :  { %v1689_v14 = vld [vmem:[%s2102_s0 + $0x38] sm:$0xff]   ;;  %v1690_v15 = vld [vmem:[%s2102_s0 + $0x40] sm:$0xff]   ;;  %v1704_v17 = vld [vmem:[%s2102_s0 + $0xb0] sm:$0xff]  }
   0x7   :  { %1608 = vmatpush3.bf16.msra.mxu0 %v1681_v1  ;;  %1676 = vmatpush3.bf16.msra.mxu1 %v1681_v1 }
   0xa   :  { %1610 = vmatmul.mubr.msk.bf16.vlgmr.msra.gmra.mrb[0].mxu0 %vm255_vm0, %v1683_v3  ;;  %1642 = vmatmul.mubr.msk.bf16.vlgmr.msra.gmra.mrb[0].mxu1 %vm255_vm0, %v1699_v8 }
   0xb   :  { %1613 = vmatprep.mubr.msk.bf16.mxu0 %vm255_vm0, %v1684_v4  ;;  %1645 = vmatprep.mubr.msk.bf16.mxu1 %vm255_vm0, %v1700_v9 }
  0x12   :  { %1614 = vmatmul.mubr.msk.bf16.gmra.mrb[4].mxu0 %vm255_vm0, %v1685_v5  ;;  %1646 = vmatmul.mubr.msk.bf16.gmra.mrb[4].mxu1 %vm255_vm0, %v1701_v12 }
  0x13   :  { %1617 = vmatprep.mubr.msk.bf16.mxu0 %vm255_vm0, %v1686_v6  ;;  %1649 = vmatprep.mubr.msk.bf16.mxu1 %vm255_vm0, %v1702_v13 }
  0x1a   :  { %1618 = vmatmul.mubr.msk.bf16.gmra.mrb[8].mxu0 %vm255_vm0, %v1687_v10 }
  0x1b   :  { %1621 = vmatprep.mubr.msk.bf16.mxu0 %vm255_vm0, %v1688_v11 }
  0x22   :  { %1622 = vmatmul.mubr.msk.bf16.gmra.mrb[12].mxu0 %vm255_vm0, %v1689_v14 }
  0x23   :  { %9 = vsyncpa [#allocation3], 0  ;;  %1625 = vmatprep.mubr.msk.bf16.mxu0 %vm255_vm0, %v1690_v15  ;;  %1650 = vmatmul.mubr.msk.bf16.gmra.mrb[8].mxu1 %vm255_vm0, %v1703_v16  ;;  %v1691_v18 = vld [vmem:[%s2102_s0 + $0x48] sm:$0xff]   ;;  %v1692_v19 = vld [vmem:[%s2102_s0 + $0x50] sm:$0xff]  }
  0x24   :  { %1653 = vmatprep.mubr.msk.bf16.mxu1 %vm255_vm0, %v1704_v17  ;;  %v1705_v20 = vld [vmem:[%s2102_s0 + $0xb8] sm:$0xff]   ;;  %v1706_v21 = vld [vmem:[%s2102_s0 + $0xc0] sm:$0xff]   ;;  %v1707_v24 = vld [vmem:[%s2102_s0 + $0xc8] sm:$0xff]  }
  0x25   :  { %v1693_v22 = vld [vmem:[%s2102_s0 + $0x58] sm:$0xff]   ;;  %v1694_v23 = vld [vmem:[%s2102_s0 + $0x60] sm:$0xff]   ;;  %v1708_v25 = vld [vmem:[%s2102_s0 + $0xd0] sm:$0xff]  }
  0x26   :  { %v1695_v26 = vld [vmem:[%s2102_s0 + $0x68] sm:$0xff]   ;;  %v1696_v27 = vld [vmem:[%s2102_s0 + $0x70] sm:$0xff]   ;;  %v1709_v28 = vld [vmem:[%s2102_s0 + $0xd8] sm:$0xff]  }
  0x27   :  { %v1710_v29 = vld [vmem:[%s2102_s0 + $0xe0] sm:$0xff]   ;;  %v1697_v30 = vld [vmem:[%s2102_s0 + $0x78] sm:$0xff]   ;;  %v1711_v31 = vld [vmem:[%s2102_s0 + $0xe8] sm:$0xff]  }
  0x28   :  { %v1712_v32 = vld [vmem:[%s2102_s0 + $0xf0] sm:$0xff]   ;;  %v1713_v33 = vld [vmem:[%s2102_s0 + $0xf8] sm:$0xff]   ;;  %s1738_s0 = smov [#allocation2]  }
  0x29   :  { %s1171_s23 = sshll.u32 %s1738_s0, 4  ;;  %s1172_s23 = int_to_ptr.vmem [resolvable:$true] %s1171_s23 }
  0x2a   :  { %1626 = vmatmul.mubr.msk.bf16.gmra.mrb[16].mxu0 %vm255_vm0, %v1691_v18  ;;  %s1714_s24 = scalar_lea.vmem %s1172_s23, 4096  ;;  %p1719_p1 = scmp.lt.s32.totalorder %s1172_s23, %s1172_s23 }
  0x2b   :  { %1629 = vmatprep.mubr.msk.bf16.mxu0 %vm255_vm0, %v1692_v19  ;;  %1654 = vmatmul.mubr.msk.bf16.gmra.mrb[12].mxu1 %vm255_vm0, %v1705_v20  ;;  %p1715_p0 = scmp.ne.s32.totalorder %s1172_s23, %s1714_s24  ;;  %p1720_p2 = scmp.lt.s32.totalorder %s1714_s24, %s1714_s24 }
  0x2c   :  { %1657 = vmatprep.mubr.msk.bf16.mxu1 %vm255_vm0, %v1706_v21 }
  0x2d   :  { %p1721_p3 = por %p1720_p2, %p1719_p1 }
  0x2f   :  { %p1722_p4 = pnand %p1721_p3, %p1715_p0 }
  0x32   :  { %1630 = vmatmul.mubr.msk.bf16.gmra.mrb[20].mxu0 %vm255_vm0, %v1693_v22 }
  0x33   :  { %1633 = vmatprep.mubr.msk.bf16.mxu0 %vm255_vm0, %v1694_v23  ;;  %1658 = vmatmul.mubr.msk.bf16.gmra.mrb[16].mxu1 %vm255_vm0, %v1707_v24 }
  0x34   :  { %1661 = vmatprep.mubr.msk.bf16.mxu1 %vm255_vm0, %v1708_v25 }
  0x3a   :  { %1634 = vmatmul.mubr.msk.bf16.gmra.mrb[24].mxu0 %vm255_vm0, %v1695_v26 }
  0x3b   :  { %1637 = vmatprep.mubr.msk.bf16.mxu0 %vm255_vm0, %v1696_v27  ;;  %1662 = vmatmul.mubr.msk.bf16.gmra.mrb[20].mxu1 %vm255_vm0, %v1709_v28 }
  0x3c   :  { %1665 = vmatprep.mubr.msk.bf16.mxu1 %vm255_vm0, %v1710_v29 }
  0x42   :  { %1638 = vmatmul.mubr.msk.bf16.gmra.mrb[28].mxu0 %vm255_vm0, %v1697_v30 }
  0x43   :  { %1666 = vmatmul.mubr.msk.bf16.gmra.mrb[24].mxu1 %vm255_vm0, %v1711_v31 }
  0x44   :  { %1669 = vmatprep.mubr.msk.bf16.mxu1 %vm255_vm0, %v1712_v32 }
  0x4b   :  { %1670 = vmatmul.mubr.msk.bf16.gmra.mrb[28].mxu1 %vm255_vm0, %v1713_v33 }
  0xdd   :  { %v1611_v34 = vpop.f32.mrb[0].mxu0  ;;  %v1895_v57 = vpop.f32.mrb[0].mxu1 }
  0xde   :  { %v386_v35 = vpop.f32.mrb[1].mxu0  ;;  %v1032_v43 = vmul.f32 %v1611_v34, %v1611_v34  ;;  %v1897_v62 = vpop.f32.mrb[1].mxu1 }
  0xdf   :  { %v1612_v36 = vpop.f32.mrb[2].mxu0  ;;  %v1030_v39 = vmul.f32 %v386_v35, %v386_v35  ;;  %v1899_v63 = vpop.f32.mrb[2].mxu1 }
  0xe0   :  { %v1388_v37 = vpack.c.bf16 %v1612_v36, %v1611_v34  ;;  %v389_v38 = vpop.f32.mrb[3].mxu0  ;;  %v1033_v46 = vmul.f32 %v1612_v36, %v1612_v36  ;;  %v1468_v3 = vpack.c.bf16 %v1899_v63, %v1895_v57  ;;  %v1903_v4 = vpop.f32.mrb[3].mxu1 }
  0xe1   :  { %v1383_v40 = vpack.c.bf16 %v389_v38, %v386_v35  ;;  %v961_v41 = vadd.f32 %v389_v38, %v386_v35  ;;  %v1031_v42 = vmul.f32 %v389_v38, %v389_v38  ;;  %v1463_v5 = vpack.c.bf16 %v1903_v4, %v1897_v62 }
  0xe2   :  { %1540 = vst [vmem:[#allocation2 + $0x8] sm:$0xff] %v1388_v37   ;;  %1556 = vst [vmem:[#allocation2 + $0x88] sm:$0xff] %v1468_v3  }
  0xe3   :  { %1384 = vst [vmem:[#allocation2] sm:$0xff] %v1383_v40   ;;  %v962_v44 = vadd.f32 %v1611_v34, %v961_v41  ;;  %v1094_v45 = vadd.f32 %v1031_v42, %v1030_v39  ;;  %1555 = vst [vmem:[#allocation2 + $0x80] sm:$0xff] %v1463_v5  }
  0xe5   :  { %v1095_v47 = vadd.f32 %v1094_v45, %v1032_v43  ;;  %v1615_v48 = vpop.f32.mrb[4].mxu0  ;;  %v963_v49 = vadd.f32 %v1612_v36, %v962_v44  ;;  %v1907_v17 = vpop.f32.mrb[4].mxu1 }
  0xe6   :  { %v402_v50 = vpop.f32.mrb[5].mxu0  ;;  %v1036_v0 = vmul.f32 %v1615_v48, %v1615_v48  ;;  %v1909_v22 = vpop.f32.mrb[5].mxu1 }
  0xe7   :  { %v964_v51 = vadd.f32 %v963_v49, %v402_v50  ;;  %v1034_v52 = vmul.f32 %v402_v50, %v402_v50  ;;  %v1096_v53 = vadd.f32 %v1095_v47, %v1033_v46  ;;  %v1616_v54 = vpop.f32.mrb[6].mxu0  ;;  %v1911_v23 = vpop.f32.mrb[6].mxu1 }
  0xe8   :  { %v1398_v55 = vpack.c.bf16 %v1616_v54, %v1615_v48  ;;  %v405_v56 = vpop.f32.mrb[7].mxu0  ;;  %v1037_v6 = vmul.f32 %v1616_v54, %v1616_v54  ;;  %v1478_v27 = vpack.c.bf16 %v1911_v23, %v1907_v17  ;;  %v1915_v28 = vpop.f32.mrb[7].mxu1 }
  0xe9   :  { %v1097_v58 = vadd.f32 %v1096_v53, %v1034_v52  ;;  %v1393_v59 = vpack.c.bf16 %v405_v56, %v402_v50  ;;  %v965_v60 = vadd.f32 %v964_v51, %v405_v56  ;;  %v1035_v61 = vmul.f32 %v405_v56, %v405_v56 }
  0xea   :  { %1542 = vst [vmem:[#allocation2 + $0x18] sm:$0xff] %v1398_v55   ;;  %v1473_v29 = vpack.c.bf16 %v1915_v28, %v1909_v22  ;;  %1558 = vst [vmem:[#allocation2 + $0x98] sm:$0xff] %v1478_v27  }
  0xeb   :  { %1541 = vst [vmem:[#allocation2 + $0x10] sm:$0xff] %v1393_v59   ;;  %v966_v1 = vadd.f32 %v1615_v48, %v965_v60  ;;  %v1098_v2 = vadd.f32 %v1097_v58, %v1035_v61 }
  0xec   :  { %1557 = vst [vmem:[#allocation2 + $0x90] sm:$0xff] %v1473_v29  }
  0xed   :  { %v1099_v7 = vadd.f32 %v1098_v2, %v1036_v0  ;;  %v1619_v8 = vpop.f32.mrb[8].mxu0  ;;  %v967_v9 = vadd.f32 %v1616_v54, %v966_v1 }
  0xee   :  { %v418_v10 = vpop.f32.mrb[9].mxu0  ;;  %v1040_v24 = vmul.f32 %v1619_v8, %v1619_v8 }
  0xef   :  { %v968_v11 = vadd.f32 %v967_v9, %v418_v10  ;;  %v1038_v12 = vmul.f32 %v418_v10, %v418_v10  ;;  %v1100_v13 = vadd.f32 %v1099_v7, %v1037_v6  ;;  %v1620_v14 = vpop.f32.mrb[10].mxu0 }
  0xf0   :  { %v1408_v15 = vpack.c.bf16 %v1620_v14, %v1619_v8  ;;  %v421_v16 = vpop.f32.mrb[11].mxu0  ;;  %v1041_v30 = vmul.f32 %v1620_v14, %v1620_v14 }
  0xf1   :  { %v1101_v18 = vadd.f32 %v1100_v13, %v1038_v12  ;;  %v1403_v19 = vpack.c.bf16 %v421_v16, %v418_v10  ;;  %v969_v20 = vadd.f32 %v968_v11, %v421_v16  ;;  %v1039_v21 = vmul.f32 %v421_v16, %v421_v16 }
  0xf2   :  { %1544 = vst [vmem:[#allocation2 + $0x28] sm:$0xff] %v1408_v15  }
  0xf3   :  { %1543 = vst [vmem:[#allocation2 + $0x20] sm:$0xff] %v1403_v19   ;;  %v970_v25 = vadd.f32 %v1619_v8, %v969_v20  ;;  %v1102_v26 = vadd.f32 %v1101_v18, %v1039_v21 }
  0xf5   :  { %v1103_v31 = vadd.f32 %v1102_v26, %v1040_v24  ;;  %v1623_v32 = vpop.f32.mrb[12].mxu0  ;;  %v971_v33 = vadd.f32 %v1620_v14, %v970_v25 }
  0xf6   :  { %v434_v34 = vpop.f32.mrb[13].mxu0  ;;  %v1919_v41 = vpop.f32.mrb[8].mxu1  ;;  %v1044_v48 = vmul.f32 %v1623_v32, %v1623_v32 }
  0xf7   :  { %v972_v35 = vadd.f32 %v971_v33, %v434_v34  ;;  %v1042_v36 = vmul.f32 %v434_v34, %v434_v34  ;;  %v1104_v37 = vadd.f32 %v1103_v31, %v1041_v30  ;;  %v1624_v38 = vpop.f32.mrb[14].mxu0  ;;  %v1921_v46 = vpop.f32.mrb[9].mxu1 }
  0xf8   :  { %v1418_v39 = vpack.c.bf16 %v1624_v38, %v1623_v32  ;;  %v437_v40 = vpop.f32.mrb[15].mxu0  ;;  %v1923_v47 = vpop.f32.mrb[10].mxu1  ;;  %v1045_v54 = vmul.f32 %v1624_v38, %v1624_v38 }
  0xf9   :  { %v1105_v42 = vadd.f32 %v1104_v37, %v1042_v36  ;;  %v1413_v43 = vpack.c.bf16 %v437_v40, %v434_v34  ;;  %v973_v44 = vadd.f32 %v972_v35, %v437_v40  ;;  %v1043_v45 = vmul.f32 %v437_v40, %v437_v40  ;;  %v1927_v52 = vpop.f32.mrb[11].mxu1 }
  0xfa   :  { %1546 = vst [vmem:[#allocation2 + $0x38] sm:$0xff] %v1418_v39   ;;  %v1488_v51 = vpack.c.bf16 %v1923_v47, %v1919_v41  ;;  %v1483_v53 = vpack.c.bf16 %v1927_v52, %v1921_v46 }
  0xfb   :  { %1545 = vst [vmem:[#allocation2 + $0x30] sm:$0xff] %v1413_v43   ;;  %v974_v49 = vadd.f32 %v1623_v32, %v973_v44  ;;  %v1106_v50 = vadd.f32 %v1105_v42, %v1043_v45 }
  0xfc   :  { %1560 = vst [vmem:[#allocation2 + $0xa8] sm:$0xff] %v1488_v51   ;;  %1559 = vst [vmem:[#allocation2 + $0xa0] sm:$0xff] %v1483_v53  }
  0xfd   :  { %v1107_v55 = vadd.f32 %v1106_v50, %v1044_v48  ;;  %v1627_v56 = vpop.f32.mrb[16].mxu0  ;;  %v975_v58 = vadd.f32 %v1624_v38, %v974_v49 }
  0xfe   :  { %v450_v59 = vpop.f32.mrb[17].mxu0  ;;  %v1931_v5 = vpop.f32.mrb[12].mxu1  ;;  %v1048_v12 = vmul.f32 %v1627_v56, %v1627_v56 }
  0xff   :  { %v976_v60 = vadd.f32 %v975_v58, %v450_v59  ;;  %v1046_v61 = vmul.f32 %v450_v59, %v450_v59  ;;  %v1108_v0 = vadd.f32 %v1107_v55, %v1045_v54  ;;  %v1628_v1 = vpop.f32.mrb[18].mxu0  ;;  %v1933_v10 = vpop.f32.mrb[13].mxu1 }
 0x100   :  { %v1428_v2 = vpack.c.bf16 %v1628_v1, %v1627_v56  ;;  %v453_v3 = vpop.f32.mrb[19].mxu0  ;;  %v1935_v11 = vpop.f32.mrb[14].mxu1  ;;  %v1049_v19 = vmul.f32 %v1628_v1, %v1628_v1 }
 0x101   :  { %v1109_v6 = vadd.f32 %v1108_v0, %v1046_v61  ;;  %v1423_v7 = vpack.c.bf16 %v453_v3, %v450_v59  ;;  %v977_v8 = vadd.f32 %v976_v60, %v453_v3  ;;  %v1047_v9 = vmul.f32 %v453_v3, %v453_v3  ;;  %v1939_v16 = vpop.f32.mrb[15].mxu1 }
 0x102   :  { %1548 = vst [vmem:[#allocation2 + $0x48] sm:$0xff] %v1428_v2   ;;  %v1498_v15 = vpack.c.bf16 %v1935_v11, %v1931_v5  ;;  %v1493_v18 = vpack.c.bf16 %v1939_v16, %v1933_v10 }
 0x103   :  { %1547 = vst [vmem:[#allocation2 + $0x40] sm:$0xff] %v1423_v7   ;;  %v978_v13 = vadd.f32 %v1627_v56, %v977_v8  ;;  %v1110_v14 = vadd.f32 %v1109_v6, %v1047_v9 }
 0x104   :  { %1562 = vst [vmem:[#allocation2 + $0xb8] sm:$0xff] %v1498_v15   ;;  %1561 = vst [vmem:[#allocation2 + $0xb0] sm:$0xff] %v1493_v18  }
 0x105   :  { %v1111_v20 = vadd.f32 %v1110_v14, %v1048_v12  ;;  %v1631_v21 = vpop.f32.mrb[20].mxu0  ;;  %v979_v24 = vadd.f32 %v1628_v1, %v978_v13 }
 0x106   :  { %v466_v25 = vpop.f32.mrb[21].mxu0  ;;  %v1943_v33 = vpop.f32.mrb[16].mxu1  ;;  %v1052_v40 = vmul.f32 %v1631_v21, %v1631_v21 }
 0x107   :  { %v980_v26 = vadd.f32 %v979_v24, %v466_v25  ;;  %v1050_v27 = vmul.f32 %v466_v25, %v466_v25  ;;  %v1112_v29 = vadd.f32 %v1111_v20, %v1049_v19  ;;  %v1632_v30 = vpop.f32.mrb[22].mxu0  ;;  %v1945_v38 = vpop.f32.mrb[17].mxu1 }
 0x108   :  { %v1438_v31 = vpack.c.bf16 %v1632_v30, %v1631_v21  ;;  %v469_v32 = vpop.f32.mrb[23].mxu0  ;;  %v1947_v39 = vpop.f32.mrb[18].mxu1  ;;  %v1053_v49 = vmul.f32 %v1632_v30, %v1632_v30 }
 0x109   :  { %v1113_v34 = vadd.f32 %v1112_v29, %v1050_v27  ;;  %v1433_v35 = vpack.c.bf16 %v469_v32, %v466_v25  ;;  %v981_v36 = vadd.f32 %v980_v26, %v469_v32  ;;  %v1051_v37 = vmul.f32 %v469_v32, %v469_v32  ;;  %v1951_v45 = vpop.f32.mrb[19].mxu1 }
 0x10a   :  { %1550 = vst [vmem:[#allocation2 + $0x58] sm:$0xff] %v1438_v31   ;;  %v1508_v44 = vpack.c.bf16 %v1947_v39, %v1943_v33  ;;  %v1503_v48 = vpack.c.bf16 %v1951_v45, %v1945_v38 }
 0x10b   :  { %1549 = vst [vmem:[#allocation2 + $0x50] sm:$0xff] %v1433_v35   ;;  %v982_v42 = vadd.f32 %v1631_v21, %v981_v36  ;;  %v1114_v43 = vadd.f32 %v1113_v34, %v1051_v37 }
 0x10c   :  { %1564 = vst [vmem:[#allocation2 + $0xc8] sm:$0xff] %v1508_v44   ;;  %1563 = vst [vmem:[#allocation2 + $0xc0] sm:$0xff] %v1503_v48  }
 0x10d   :  { %v1115_v50 = vadd.f32 %v1114_v43, %v1052_v40  ;;  %v1635_v51 = vpop.f32.mrb[24].mxu0  ;;  %v983_v53 = vadd.f32 %v1632_v30, %v982_v42 }
 0x10e   :  { %v482_v54 = vpop.f32.mrb[25].mxu0  ;;  %v1955_v0 = vpop.f32.mrb[20].mxu1  ;;  %v1056_v9 = vmul.f32 %v1635_v51, %v1635_v51 }
 0x10f   :  { %v984_v55 = vadd.f32 %v983_v53, %v482_v54  ;;  %v1054_v56 = vmul.f32 %v482_v54, %v482_v54  ;;  %v1116_v58 = vadd.f32 %v1115_v50, %v1053_v49  ;;  %v1636_v59 = vpop.f32.mrb[26].mxu0  ;;  %v1957_v7 = vpop.f32.mrb[21].mxu1 }
 0x110   :  { %v1448_v60 = vpack.c.bf16 %v1636_v59, %v1635_v51  ;;  %v485_v61 = vpop.f32.mrb[27].mxu0  ;;  %v1959_v8 = vpop.f32.mrb[22].mxu1  ;;  %v1057_v19 = vmul.f32 %v1636_v59, %v1636_v59 }
 0x111   :  { %v1117_v1 = vadd.f32 %v1116_v58, %v1054_v56  ;;  %v1443_v2 = vpack.c.bf16 %v485_v61, %v482_v54  ;;  %v985_v3 = vadd.f32 %v984_v55, %v485_v61  ;;  %v1055_v6 = vmul.f32 %v485_v61, %v485_v61  ;;  %v1963_v15 = vpop.f32.mrb[23].mxu1 }
 0x112   :  { %1552 = vst [vmem:[#allocation2 + $0x68] sm:$0xff] %v1448_v60   ;;  %v1518_v14 = vpack.c.bf16 %v1959_v8, %v1955_v0  ;;  %v1513_v18 = vpack.c.bf16 %v1963_v15, %v1957_v7  ;;  %v1062_v58 = vmul.f32 %v1897_v62, %v1897_v62 }
 0x113   :  { %1551 = vst [vmem:[#allocation2 + $0x60] sm:$0xff] %v1443_v2   ;;  %v986_v12 = vadd.f32 %v1635_v51, %v985_v3  ;;  %v1118_v13 = vadd.f32 %v1117_v1, %v1055_v6  ;;  %v1063_v3 = vmul.f32 %v1903_v4, %v1903_v4 }
 0x114   :  { %1566 = vst [vmem:[#allocation2 + $0xd8] sm:$0xff] %v1518_v14   ;;  %1565 = vst [vmem:[#allocation2 + $0xd0] sm:$0xff] %v1513_v18  }
 0x115   :  { %v1119_v20 = vadd.f32 %v1118_v13, %v1056_v9  ;;  %v1639_v21 = vpop.f32.mrb[28].mxu0  ;;  %v987_v24 = vadd.f32 %v1636_v59, %v986_v12  ;;  %v1064_v12 = vmul.f32 %v1895_v57, %v1895_v57 }
 0x116   :  { %v498_v25 = vpop.f32.mrb[29].mxu0  ;;  %v1967_v34 = vpop.f32.mrb[24].mxu1  ;;  %v1060_v44 = vmul.f32 %v1639_v21, %v1639_v21 }
 0x117   :  { %v988_v26 = vadd.f32 %v987_v24, %v498_v25  ;;  %v1058_v27 = vmul.f32 %v498_v25, %v498_v25  ;;  %v1120_v29 = vadd.f32 %v1119_v20, %v1057_v19  ;;  %v1640_v30 = vpop.f32.mrb[30].mxu0  ;;  %v1969_v42 = vpop.f32.mrb[25].mxu1  ;;  %v1066_v24 = vmul.f32 %v1909_v22, %v1909_v22 }
 0x118   :  { %v1458_v31 = vpack.c.bf16 %v1640_v30, %v1639_v21  ;;  %v501_v32 = vpop.f32.mrb[31].mxu0  ;;  %v1971_v43 = vpop.f32.mrb[26].mxu1  ;;  %v1061_v54 = vmul.f32 %v1640_v30, %v1640_v30 }
 0x119   :  { %v1121_v35 = vadd.f32 %v1120_v29, %v1058_v27  ;;  %v1453_v36 = vpack.c.bf16 %v501_v32, %v498_v25  ;;  %v989_v37 = vadd.f32 %v988_v26, %v501_v32  ;;  %v1059_v40 = vmul.f32 %v501_v32, %v501_v32  ;;  %v1975_v51 = vpop.f32.mrb[27].mxu1 }
 0x11a   :  { %1554 = vst [vmem:[#allocation2 + $0x78] sm:$0xff] %v1458_v31   ;;  %v1528_v50 = vpack.c.bf16 %v1971_v43, %v1967_v34  ;;  %v1523_v53 = vpack.c.bf16 %v1975_v51, %v1969_v42 }
 0x11b   :  { %1553 = vst [vmem:[#allocation2 + $0x70] sm:$0xff] %v1453_v36   ;;  %v990_v48 = vadd.f32 %v1639_v21, %v989_v37  ;;  %v1122_v49 = vadd.f32 %v1121_v35, %v1059_v40 }
 0x11c   :  { %1568 = vst [vmem:[#allocation2 + $0xe8] sm:$0xff] %v1528_v50   ;;  %1567 = vst [vmem:[#allocation2 + $0xe0] sm:$0xff] %v1523_v53  }
 0x11d   :  { %v1123_v55 = vadd.f32 %v1122_v49, %v1060_v44  ;;  %v991_v56 = vadd.f32 %v1640_v30, %v990_v48 }
 0x11e   :  { %v1982_v61 = vpop.f32.mrb[28].mxu1 }
 0x11f   :  { %v992_v59 = vadd.f32 %v991_v56, %v1897_v62  ;;  %v1124_v60 = vadd.f32 %v1123_v55, %v1061_v54  ;;  %v1987_v6 = vpop.f32.mrb[29].mxu1 }
 0x120   :  { %v1989_v9 = vpop.f32.mrb[30].mxu1 }
 0x121   :  { %v1125_v1 = vadd.f32 %v1124_v60, %v1062_v58  ;;  %v993_v2 = vadd.f32 %v992_v59, %v1903_v4  ;;  %v1538_v14 = vpack.c.bf16 %v1989_v9, %v1982_v61  ;;  %v1996_v18 = vpop.f32.mrb[31].mxu1  ;;  %v1065_v4 = vmul.f32 %v1899_v63, %v1899_v63 }
 0x122   :  { %v1533_v19 = vpack.c.bf16 %v1996_v18, %v1987_v6 }
 0x123   :  { %v994_v62 = vadd.f32 %v1895_v57, %v993_v2  ;;  %v1126_v13 = vadd.f32 %v1125_v1, %v1063_v3  ;;  %1570 = vst [vmem:[#allocation2 + $0xf8] sm:$0xff] %v1538_v14  }
 0x124   :  { %1569 = vst [vmem:[#allocation2 + $0xf0] sm:$0xff] %v1533_v19  }
 0x125   :  { %v1127_v20 = vadd.f32 %v1126_v13, %v1064_v12  ;;  %v995_v21 = vadd.f32 %v1899_v63, %v994_v62 }
 0x127   :  { %v996_v57 = vadd.f32 %v995_v21, %v1909_v22  ;;  %v1128_v25 = vadd.f32 %v1127_v20, %v1065_v4 }
 0x128   :  { %1725 = shalt.err (!%p1722_p4)
}
 0x129   :  { %s1726_s27 = scalar_lea.hbm %s2104_s2, 4096 }
 0x12a   :  { %p1727_p5 = scmp.ne.s32.totalorder %s2104_s2, %s1726_s27  ;;  %p1730_p6 = scmp.lt.u32.totalorder %s1726_s27, %s2104_s2 }
 0x12c   :  { %p1732_p7 = pnand %p1730_p6, %p1727_p5 }
 0x12e   :  { %1735 = shalt.err (!%p1732_p7)
}
 0x12f   :  { %s1739_s5 = smov 64   ;;  %s1740_s6 = smov 4   ;;  %v1129_v63 = vadd.f32 %v1128_v25, %v1066_v24  ;;  %v997_v22 = vadd.f32 %v996_v57, %v1915_v28  ;;  %v1067_v26 = vmul.f32 %v1915_v28, %v1915_v28  ;;  %v1068_v27 = vmul.f32 %v1907_v17, %v1907_v17 }
 0x130   :  { %1177 = dma.vmem_to_hbm [thread:$0]  %s1172_s23, 4096, %s2104_s2, [#allocation3], %s1739_s5, %s1739_s5, %s1740_s6   ;;  %v1069_v31 = vmul.f32 %v1911_v23, %v1911_v23  ;;  %v1070_v36 = vmul.f32 %v1921_v46, %v1921_v46  ;;  %v1071_v48 = vmul.f32 %v1927_v52, %v1927_v52  ;;  %v1075_v59 = vmul.f32 %v1939_v16, %v1939_v16 }
 0x131   :  { %v998_v29 = vadd.f32 %v1907_v17, %v997_v22  ;;  %v1130_v30 = vadd.f32 %v1129_v63, %v1067_v26  ;;  %v1072_v17 = vmul.f32 %v1919_v41, %v1919_v41  ;;  %v1079_v14 = vmul.f32 %v1951_v45, %v1951_v45 }
 0x132   :  { %v1083_v63 = vmul.f32 %v1963_v15, %v1963_v15  ;;  %vm1163_vm1 = vcmask 1040384  }
 0x133   :  { %v1131_v32 = vadd.f32 %v1130_v30, %v1068_v27  ;;  %v999_v35 = vadd.f32 %v1911_v23, %v998_v29  ;;  %v1073_v23 = vmul.f32 %v1923_v47, %v1923_v47 }
 0x135   :  { %v1000_v37 = vadd.f32 %v999_v35, %v1921_v46  ;;  %v1132_v40 = vadd.f32 %v1131_v32, %v1069_v31  ;;  %v1074_v46 = vmul.f32 %v1933_v10, %v1933_v10  ;;  %v1087_v35 = vmul.f32 %v1975_v51, %v1975_v51 }
 0x137   :  { %v1133_v44 = vadd.f32 %v1132_v40, %v1070_v36  ;;  %v1001_v28 = vadd.f32 %v1000_v37, %v1927_v52 }
 0x139   :  { %v1002_v49 = vadd.f32 %v1919_v41, %v1001_v28  ;;  %v1134_v50 = vadd.f32 %v1133_v44, %v1071_v48  ;;  %v1076_v41 = vmul.f32 %v1931_v5, %v1931_v5 }
 0x13b   :  { %v1135_v53 = vadd.f32 %v1134_v50, %v1072_v17  ;;  %v1003_v54 = vadd.f32 %v1923_v47, %v1002_v49  ;;  %v1077_v47 = vmul.f32 %v1935_v11, %v1935_v11  ;;  %v1091_v49 = vmul.f32 %v1996_v18, %v1996_v18 }
 0x13d   :  { %v1004_v55 = vadd.f32 %v1003_v54, %v1933_v10  ;;  %v1136_v56 = vadd.f32 %v1135_v53, %v1073_v23  ;;  %v1078_v10 = vmul.f32 %v1945_v38, %v1945_v38 }
 0x13f   :  { %v1137_v58 = vadd.f32 %v1136_v56, %v1074_v46  ;;  %v1005_v52 = vadd.f32 %v1004_v55, %v1939_v16 }
 0x141   :  { %v1006_v60 = vadd.f32 %v1931_v5, %v1005_v52  ;;  %v1138_v1 = vadd.f32 %v1137_v58, %v1075_v59  ;;  %v1080_v5 = vmul.f32 %v1943_v33, %v1943_v33 }
 0x143   :  { %v1139_v2 = vadd.f32 %v1138_v1, %v1076_v41  ;;  %v1007_v3 = vadd.f32 %v1935_v11, %v1006_v60  ;;  %v1081_v11 = vmul.f32 %v1947_v39, %v1947_v39 }
 0x145   :  { %v1008_v12 = vadd.f32 %v1007_v3, %v1945_v38  ;;  %v1140_v62 = vadd.f32 %v1139_v2, %v1077_v47  ;;  %v1082_v38 = vmul.f32 %v1957_v7, %v1957_v7 }
 0x147   :  { %v1141_v13 = vadd.f32 %v1140_v62, %v1078_v10  ;;  %v1009_v16 = vadd.f32 %v1008_v12, %v1951_v45 }
 0x149   :  { %v1010_v19 = vadd.f32 %v1943_v33, %v1009_v16  ;;  %v1142_v4 = vadd.f32 %v1141_v13, %v1079_v14  ;;  %v1084_v33 = vmul.f32 %v1955_v0, %v1955_v0 }
 0x14b   :  { %v1143_v20 = vadd.f32 %v1142_v4, %v1080_v5  ;;  %v1011_v21 = vadd.f32 %v1947_v39, %v1010_v19  ;;  %v1085_v39 = vmul.f32 %v1959_v8, %v1959_v8 }
 0x14d   :  { %v1012_v24 = vadd.f32 %v1011_v21, %v1957_v7  ;;  %v1144_v57 = vadd.f32 %v1143_v20, %v1081_v11  ;;  %v1086_v7 = vmul.f32 %v1969_v42, %v1969_v42 }
 0x14f   :  { %v1145_v25 = vadd.f32 %v1144_v57, %v1082_v38  ;;  %v1013_v45 = vadd.f32 %v1012_v24, %v1963_v15 }
 0x151   :  { %v1014_v22 = vadd.f32 %v1955_v0, %v1013_v45  ;;  %v1146_v26 = vadd.f32 %v1145_v25, %v1083_v63  ;;  %v1088_v0 = vmul.f32 %v1967_v34, %v1967_v34 }
 0x153   :  { %v1147_v27 = vadd.f32 %v1146_v26, %v1084_v33  ;;  %v1015_v29 = vadd.f32 %v1959_v8, %v1014_v22  ;;  %v1089_v8 = vmul.f32 %v1971_v43, %v1971_v43 }
 0x155   :  { %v1016_v30 = vadd.f32 %v1015_v29, %v1969_v42  ;;  %v1148_v31 = vadd.f32 %v1147_v27, %v1085_v39  ;;  %v1090_v42 = vmul.f32 %v1987_v6, %v1987_v6 }
 0x157   :  { %v1149_v32 = vadd.f32 %v1148_v31, %v1086_v7  ;;  %v1017_v15 = vadd.f32 %v1016_v30, %v1975_v51 }
 0x159   :  { %v1018_v36 = vadd.f32 %v1967_v34, %v1017_v15  ;;  %v1150_v37 = vadd.f32 %v1149_v32, %v1087_v35  ;;  %v1092_v34 = vmul.f32 %v1982_v61, %v1982_v61 }
 0x15b   :  { %v1151_v40 = vadd.f32 %v1150_v37, %v1088_v0  ;;  %v1019_v44 = vadd.f32 %v1971_v43, %v1018_v36  ;;  %v1093_v43 = vmul.f32 %v1989_v9, %v1989_v9 }
 0x15d   :  { %v1020_v28 = vadd.f32 %v1019_v44, %v1987_v6  ;;  %v1152_v48 = vadd.f32 %v1151_v40, %v1089_v8 }
 0x15f   :  { %v1153_v17 = vadd.f32 %v1152_v48, %v1090_v42  ;;  %v1021_v51 = vadd.f32 %v1020_v28, %v1996_v18 }
 0x161   :  { %v1022_v50 = vadd.f32 %v1982_v61, %v1021_v51  ;;  %v1154_v23 = vadd.f32 %v1153_v17, %v1091_v49 }
 0x163   :  { %v1023_v53 = vadd.f32 %v1989_v9, %v1022_v50  ;;  %v1155_v54 = vadd.f32 %v1154_v23, %v1092_v34 }
 0x165   :  { %v1024_v6 = vrot.slane %v1023_v53, 4  ;;  %v1156_v46 = vadd.f32 %v1155_v54, %v1093_v43 }
 0x167   :  { %v1025_v55 = vadd.f32 %v1024_v6, %v1023_v53  ;;  %v1157_v56 = vrot.slane %v1156_v46, 4 }
 0x169   :  { %v1026_v58 = vrot.slane %v1025_v55, 2  ;;  %v1158_v52 = vadd.f32 %v1157_v56, %v1156_v46 }
 0x16b   :  { %v1027_v59 = vadd.f32 %v1026_v58, %v1025_v55  ;;  %v1159_v18 = vrot.slane %v1158_v52, 2 }
 0x16d   :  { %v1028_v41 = vrot.slane %v1027_v59, 1  ;;  %v1160_v60 = vadd.f32 %v1159_v18, %v1158_v52 }
 0x16f   :  { %v1161_v1 = vrot.slane %v1160_v60, 1  ;;  %v1029_v61 = vadd.f32 %v1028_v41, %v1027_v59 }
 0x171   :  { %v1162_v47 = vadd.f32 %v1161_v1, %v1160_v60 }
 0x173   :  { %v1164_v2 = vsel %vm1163_vm1, %v1029_v61, %v1162_v47 }
 0x174   :  { %1165 = vst [vmem:[%s2105_s3] sm:$0x3] %v1164_v2 }
 0x175   :  { %1736 = dma.done.wait [#allocation3], 4096  }
 0x176   :  { %1737 = vsyncadd [#allocation3], 4294963200 }
 0x177   :  { %1185 = vsyncpa [#allocation3], 1 }

// kernel: bottleneck_forward.6
= control target key start
LH: loop header
LB: loop body
LE: loop exit
PB: predicated region body
PF: predicated region fallthrough
CT: control target
= control target key end

     0   :  { %11 = vsyncpa [#allocation3], 0  ;;  %s2333_s18 = smov [#allocation2]   ;;  %s2865_s0 = inlined_call_operand.hbm [shape: bf16[512,128], index: 0, kind: input, shape index: {}]   ;;  %s2866_s1 = inlined_call_operand.vmem [shape: f32[1,128], index: 1, kind: input, shape index: {}]   ;;  %s2867_s2 = inlined_call_operand.vmem [shape: f32[1,128], index: 2, kind: input, shape index: {}]   ;;  %s2868_s3 = inlined_call_operand.vmem [shape: bf16[128,128], index: 3, kind: input, shape index: {}]   ;;  %s2869_s4 = inlined_call_operand.vmem [shape: bf16[512,128], index: 4, kind: output, shape index: {0}]   ;;  %s2870_s5 = inlined_call_operand.vmem [shape: f32[1,2,128], index: 5, kind: output, shape index: {1}]  }
   0x1   :  { %s17_s19 = sshll.u32 %s2333_s18, 4  ;;  %s2309_s22 = scalar_lea.hbm %s2865_s0, 4096  ;;  %s18_s19 = int_to_ptr.vmem [resolvable:$true] %s17_s19 }
   0x2   :  { %p2310_p0 = scmp.ne.s32.totalorder %s2865_s0, %s2309_s22  ;;  %p2313_p1 = scmp.lt.u32.totalorder %s2309_s22, %s2865_s0 }
   0x4   :  { %p2315_p2 = pnand %p2313_p1, %p2310_p0 }
   0x6   :  { %2318 = shalt.err (!%p2315_p2)
}
   0x7   :  { %s2319_s27 = scalar_lea.vmem %s18_s19, 4096  ;;  %p2324_p4 = scmp.lt.s32.totalorder %s18_s19, %s18_s19 }
   0x8   :  { %p2320_p3 = scmp.ne.s32.totalorder %s18_s19, %s2319_s27  ;;  %p2325_p5 = scmp.lt.s32.totalorder %s2319_s27, %s2319_s27 }
   0xa   :  { %p2326_p6 = por %p2325_p5, %p2324_p4 }
   0xc   :  { %p2327_p7 = pnand %p2326_p6, %p2320_p3 }
   0xe   :  { %2330 = shalt.err (!%p2327_p7)
}
   0xf   :  { %s2334_s28 = smov 64   ;;  %s2335_s29 = smov 4  }
  0x10   :  { %23 = dma.hbm_to_vmem [thread:$0]  %s2865_s0, 4096, %s18_s19, [#allocation3], %s2334_s28, %s2334_s28, %s2335_s29  }
  0x11   :  { %2331 = dma.done.wait [#allocation3], 4096  }
  0x12   :  { %2332 = vsyncadd [#allocation3], 4294963200  ;;  %v2301_v0 = vld [vmem:[%s2868_s3] sm:$0xff]   ;;  %v2302_v1 = vld [vmem:[%s2868_s3 + $0x8] sm:$0xff]   ;;  %vm1662_vm0 = vcmask 1040384  }
  0x13   :  { %2202 = vmatprep.subr.bf16.mxu0 %v2301_v0  ;;  %2282 = vmatprep.subr.bf16.mxu1 %v2301_v0  ;;  %v2303_v2 = vld [vmem:[%s2868_s3 + $0x10] sm:$0xff]   ;;  %v2304_v3 = vld [vmem:[%s2868_s3 + $0x18] sm:$0xff]   ;;  %v1813_v4 = vld [vmem:[#allocation2] sm:$0xff]  }
  0x14   :  { %2203 = vmatpush3.bf16.msra.mxu0 %v2301_v0  ;;  %2290 = vmatpush3.bf16.msra.mxu1 %v2301_v0  ;;  %v2393_v5 = vld [vmem:[%s2866_s1] ss:$0 sm:$0xff]  ;;  %v1814_v6 = vunpack.c.l.bf16 %v1813_v4  ;;  %v1815_v7 = vunpack.c.h.bf16 %v1813_v4  ;;  %v2100_v8 = vld [vmem:[#allocation2 + $0x8] sm:$0xff]   ;;  %v2101_v9 = vld [vmem:[#allocation2 + $0x10] sm:$0xff]  }
  0x15   :  { %2204 = vmatprep.subr.bf16.mxu0 %v2302_v1  ;;  %2283 = vmatprep.subr.bf16.mxu1 %v2302_v1  ;;  %v2398_v10 = vld [vmem:[%s2867_s2] ss:$0 sm:$0xff]  ;;  %v1818_v14 = vunpack.c.l.bf16 %v2100_v8  ;;  %v1819_v15 = vunpack.c.h.bf16 %v2100_v8  ;;  %v1822_v16 = vunpack.c.l.bf16 %v2101_v9  ;;  %v1823_v19 = vunpack.c.h.bf16 %v2101_v9  ;;  %v2306_v22 = vld [vmem:[%s2868_s3 + $0x28] sm:$0xff]   ;;  %v2102_v26 = vld [vmem:[#allocation2 + $0x18] sm:$0xff]  }
  0x16   :  { %v492_v11 = vmul.f32 %v1814_v6, %v2393_v5  ;;  %v493_v12 = vmul.f32 %v1815_v7, %v2393_v5  ;;  %v2305_v13 = vld [vmem:[%s2868_s3 + $0x20] sm:$0xff]   ;;  %v1826_v30 = vunpack.c.l.bf16 %v2102_v26  ;;  %v2307_v31 = vld [vmem:[%s2868_s3 + $0x30] sm:$0xff]   ;;  %v1827_v35 = vunpack.c.h.bf16 %v2102_v26  ;;  %v2104_v38 = vld [vmem:[#allocation2 + $0x28] sm:$0xff]  }
  0x17   :  { %v494_v23 = vmul.f32 %v1818_v14, %v2393_v5  ;;  %v495_v24 = vmul.f32 %v1819_v15, %v2393_v5  ;;  %v496_v25 = vmul.f32 %v1822_v16, %v2393_v5  ;;  %v497_v28 = vmul.f32 %v1823_v19, %v2393_v5  ;;  %v2103_v29 = vld [vmem:[#allocation2 + $0x20] sm:$0xff]   ;;  %v2105_v41 = vld [vmem:[#allocation2 + $0x30] sm:$0xff]   ;;  %v2106_v42 = vld [vmem:[#allocation2 + $0x38] sm:$0xff]  }
  0x18   :  { %2205 = vmatpush3.bf16.msra.mxu0 %v2302_v1  ;;  %2291 = vmatpush3.bf16.msra.mxu1 %v2302_v1  ;;  %v563_v17 = vadd.f32 %v2398_v10, %v492_v11  ;;  %v564_v18 = vadd.f32 %v2398_v10, %v493_v12  ;;  %v1830_v37 = vunpack.c.l.bf16 %v2103_v29  ;;  %v498_v39 = vmul.f32 %v1826_v30, %v2393_v5  ;;  %v2308_v43 = vld [vmem:[%s2868_s3 + $0x38] sm:$0xff]   ;;  %v2107_v48 = vld [vmem:[#allocation2 + $0x40] sm:$0xff]   ;;  %v2108_v63 = vld [vmem:[#allocation2 + $0x48] sm:$0xff]  }
  0x19   :  { %2206 = vmatprep.subr.bf16.mxu0 %v2303_v2  ;;  %2284 = vmatprep.subr.bf16.mxu1 %v2303_v2  ;;  %v565_v32 = vadd.f32 %v2398_v10, %v494_v23  ;;  %v566_v33 = vadd.f32 %v2398_v10, %v495_v24  ;;  %v567_v34 = vadd.f32 %v2398_v10, %v496_v25  ;;  %v1831_v40 = vunpack.c.h.bf16 %v2103_v29  ;;  %v2109_v4 = vld [vmem:[#allocation2 + $0x50] sm:$0xff]   ;;  %v2110_v23 = vld [vmem:[#allocation2 + $0x58] sm:$0xff]  }
  0x1a   :  { %v627_v20 = vmax.f32 %v563_v17, 0.0  ;;  %v628_v21 = vmax.f32 %v564_v18, 0.0  ;;  %v568_v36 = vadd.f32 %v2398_v10, %v497_v28  ;;  %v499_v47 = vmul.f32 %v1827_v35, %v2393_v5 }
  0x1b   :  { %v629_v44 = vmax.f32 %v565_v32, 0.0  ;;  %v630_v45 = vmax.f32 %v566_v33, 0.0  ;;  %v631_v46 = vmax.f32 %v567_v34, 0.0  ;;  %v500_v50 = vmul.f32 %v1830_v37, %v2393_v5 }
  0x1c   :  { %2207 = vmatpush3.bf16.msra.mxu0 %v2303_v2  ;;  %2292 = vmatpush3.bf16.msra.mxu1 %v2303_v2  ;;  %v755_v27 = vpack.c.bf16 %v628_v21, %v627_v20  ;;  %v632_v49 = vmax.f32 %v568_v36, 0.0  ;;  %v1834_v51 = vunpack.c.l.bf16 %v2104_v38  ;;  %v1835_v52 = vunpack.c.h.bf16 %v2104_v38 }
  0x1d   :  { %2208 = vmatprep.subr.bf16.mxu0 %v2304_v3  ;;  %2285 = vmatprep.subr.bf16.mxu1 %v2304_v3  ;;  %v1838_v53 = vunpack.c.l.bf16 %v2105_v41  ;;  %v1839_v54 = vunpack.c.h.bf16 %v2105_v41  ;;  %v1842_v55 = vunpack.c.l.bf16 %v2106_v42  ;;  %v1843_v56 = vunpack.c.h.bf16 %v2106_v42 }
  0x1e   :  { %2218 = vmatprep.mubr.bf16.mxu0 %v755_v27  ;;  %v501_v57 = vmul.f32 %v1831_v40, %v2393_v5  ;;  %v1846_v58 = vunpack.c.l.bf16 %v2107_v48  ;;  %v1847_v59 = vunpack.c.h.bf16 %v2107_v48  ;;  %v756_v60 = vpack.c.bf16 %v630_v45, %v629_v44  ;;  %v2115_v44 = vld [vmem:[#allocation2 + $0x80] sm:$0xff]  }
  0x1f   :  { %v569_v61 = vadd.f32 %v2398_v10, %v498_v39  ;;  %v570_v62 = vadd.f32 %v2398_v10, %v499_v47  ;;  %v757_v0 = vpack.c.bf16 %v632_v49, %v631_v46  ;;  %v571_v1 = vadd.f32 %v2398_v10, %v500_v50 }
  0x20   :  { %2209 = vmatpush3.bf16.msra.mxu0 %v2304_v3  ;;  %2293 = vmatpush3.bf16.msra.mxu1 %v2304_v3  ;;  %v502_v2 = vmul.f32 %v1834_v51, %v2393_v5  ;;  %v503_v3 = vmul.f32 %v1835_v52, %v2393_v5  ;;  %v504_v6 = vmul.f32 %v1838_v53, %v2393_v5  ;;  %v1850_v14 = vunpack.c.l.bf16 %v2108_v63  ;;  %v2458_v52 = vld [vmem:[#allocation2 + $0x60] sm:$0xff]  }
  0x21   :  { %2210 = vmatprep.subr.bf16.mxu0 %v2305_v13  ;;  %2286 = vmatprep.subr.bf16.mxu1 %v2305_v13  ;;  %v505_v7 = vmul.f32 %v1839_v54, %v2393_v5  ;;  %v506_v8 = vmul.f32 %v1842_v55, %v2393_v5  ;;  %v507_v9 = vmul.f32 %v1843_v56, %v2393_v5  ;;  %v633_v15 = vmax.f32 %v569_v61, 0.0 }
  0x22   :  { %v572_v11 = vadd.f32 %v2398_v10, %v501_v57  ;;  %v508_v12 = vmul.f32 %v1846_v58, %v2393_v5  ;;  %v634_v16 = vmax.f32 %v570_v62, 0.0  ;;  %v1851_v17 = vunpack.c.h.bf16 %v2108_v63 }
  0x23   :  { %v1854_v18 = vunpack.c.l.bf16 %v2109_v4  ;;  %v635_v19 = vmax.f32 %v571_v1, 0.0  ;;  %v573_v20 = vadd.f32 %v2398_v10, %v502_v2  ;;  %v574_v21 = vadd.f32 %v2398_v10, %v503_v3 }
  0x24   :  { %2211 = vmatpush3.bf16.msra.mxu0 %v2305_v13  ;;  %2294 = vmatpush3.bf16.msra.mxu1 %v2305_v13  ;;  %v509_v13 = vmul.f32 %v1847_v59, %v2393_v5  ;;  %v575_v24 = vadd.f32 %v2398_v10, %v504_v6  ;;  %v576_v25 = vadd.f32 %v2398_v10, %v505_v7  ;;  %v636_v28 = vmax.f32 %v572_v11, 0.0  ;;  %v2116_v59 = vld [vmem:[#allocation2 + $0x88] sm:$0xff]   ;;  %v2118_v11 = vld [vmem:[#allocation2 + $0x98] sm:$0xff]  }
  0x25   :  { %2212 = vmatprep.subr.bf16.mxu0 %v2306_v22  ;;  %2287 = vmatprep.subr.bf16.mxu1 %v2306_v22  ;;  %v577_v26 = vadd.f32 %v2398_v10, %v506_v8  ;;  %v578_v27 = vadd.f32 %v2398_v10, %v507_v9  ;;  %v579_v29 = vadd.f32 %v2398_v10, %v508_v12  ;;  %v1858_v35 = vunpack.c.l.bf16 %v2110_v23 }
  0x26   :  { %v580_v30 = vadd.f32 %v2398_v10, %v509_v13  ;;  %v758_v32 = vpack.c.bf16 %v634_v16, %v633_v15  ;;  %v511_v33 = vmul.f32 %v1851_v17, %v2393_v5  ;;  %v512_v34 = vmul.f32 %v1854_v18, %v2393_v5 }
  0x27   :  { %v637_v36 = vmax.f32 %v573_v20, 0.0  ;;  %v638_v37 = vmax.f32 %v574_v21, 0.0  ;;  %v1859_v39 = vunpack.c.h.bf16 %v2110_v23  ;;  %v639_v40 = vmax.f32 %v575_v24, 0.0  ;;  %v2119_v24 = vld [vmem:[#allocation2 + $0xa0] sm:$0xff]  }
  0x28   :  { %2213 = vmatpush3.bf16.msra.mxu0 %v2306_v22  ;;  %2295 = vmatpush3.bf16.msra.mxu1 %v2306_v22  ;;  %v1855_v22 = vunpack.c.h.bf16 %v2109_v4  ;;  %v640_v41 = vmax.f32 %v576_v25, 0.0  ;;  %v641_v42 = vmax.f32 %v577_v26, 0.0  ;;  %v759_v45 = vpack.c.bf16 %v636_v28, %v635_v19 }
  0x29   :  { %2214 = vmatprep.subr.bf16.mxu0 %v2307_v31  ;;  %2288 = vmatprep.subr.bf16.mxu1 %v2307_v31  ;;  %v643_v46 = vmax.f32 %v579_v29, 0.0  ;;  %v644_v47 = vmax.f32 %v580_v30, 0.0  ;;  %v582_v49 = vadd.f32 %v2398_v10, %v511_v33  ;;  %v2455_v50 = vadd.f32 %v2398_v10, %v512_v34  ;;  %v2120_v33 = vld [vmem:[#allocation2 + $0xa8] sm:$0xff]  }
  0x2a   :  { %v513_v38 = vmul.f32 %v1855_v22, %v2393_v5  ;;  %v514_v51 = vmul.f32 %v1858_v35, %v2393_v5  ;;  %v515_v54 = vmul.f32 %v1859_v39, %v2393_v5  ;;  %v1878_v55 = vunpack.c.l.bf16 %v2115_v44 }
  0x2b   :  { %v760_v56 = vpack.c.bf16 %v638_v37, %v637_v36  ;;  %v761_v57 = vpack.c.bf16 %v640_v41, %v639_v40  ;;  %v1862_v62 = vunpack.c.l.bf16 %v2458_v52  ;;  %v1879_v63 = vunpack.c.h.bf16 %v2115_v44 }
  0x2c   :  { %2215 = vmatpush3.bf16.msra.mxu0 %v2307_v31  ;;  %2296 = vmatpush3.bf16.msra.mxu1 %v2307_v31  ;;  %v510_v31 = vmul.f32 %v1850_v14, %v2393_v5  ;;  %v2461_v53 = vadd.f32 %v2398_v10, %v513_v38  ;;  %v646_v1 = vmax.f32 %v582_v49, 0.0  ;;  %v647_v2 = vmax.f32 %v2455_v50, 0.0 }
  0x2d   :  { %2216 = vmatprep.subr.bf16.mxu0 %v2308_v43  ;;  %2289 = vmatprep.subr.bf16.mxu1 %v2308_v43  ;;  %v2471_v3 = vadd.f32 %v2398_v10, %v514_v51  ;;  %v524_v4 = vmul.f32 %v1878_v55, %v2393_v5  ;;  %v2476_v7 = vadd.f32 %v2398_v10, %v515_v54  ;;  %v1882_v9 = vunpack.c.l.bf16 %v2116_v59 }
  0x2e   :  { %v581_v48 = vadd.f32 %v2398_v10, %v510_v31  ;;  %v648_v6 = vmax.f32 %v2461_v53, 0.0  ;;  %v525_v8 = vmul.f32 %v1879_v63, %v2393_v5  ;;  %v1863_v12 = vunpack.c.h.bf16 %v2458_v52 }
  0x2f   :  { %v595_v13 = vadd.f32 %v2398_v10, %v524_v4  ;;  %v1883_v14 = vunpack.c.h.bf16 %v2116_v59  ;;  %v2482_v16 = vmul.f32 %v1862_v62, %v2393_v5  ;;  %v526_v18 = vmul.f32 %v1882_v9, %v2393_v5 }
  0x30   :  { %2217 = vmatpush3.bf16.msra.mxu0 %v2308_v43  ;;  %2297 = vmatpush3.bf16.msra.mxu1 %v2308_v43  ;;  %v642_v43 = vmax.f32 %v578_v27, 0.0  ;;  %v645_v61 = vmax.f32 %v581_v48, 0.0  ;;  %v596_v17 = vadd.f32 %v2398_v10, %v525_v8  ;;  %v1890_v23 = vunpack.c.l.bf16 %v2118_v11 }
  0x31   :  { %v659_v20 = vmax.f32 %v595_v13, 0.0  ;;  %v527_v21 = vmul.f32 %v1883_v14, %v2393_v5  ;;  %v597_v27 = vadd.f32 %v2398_v10, %v526_v18  ;;  %v1891_v31 = vunpack.c.h.bf16 %v2118_v11  ;;  %v2123_v18 = vld [vmem:[#allocation2 + $0xc0] sm:$0xff]  }
  0x32   :  { %v2464_v58 = vpack.c.bf16 %v642_v43, %v641_v42  ;;  %v2488_v25 = vpack.c.bf16 %v646_v1, %v645_v61  ;;  %v660_v26 = vmax.f32 %v596_v17, 0.0  ;;  %v1894_v37 = vunpack.c.l.bf16 %v2119_v24  ;;  %v2122_v1 = vld [vmem:[#allocation2 + $0xb8] sm:$0xff]  }
  0x33   :  { %2219 = vmatmul.mubr.bf16.vlgmr.msra.gmra.mrb[0].mxu0 %v756_v60  ;;  %v2466_v60 = vpack.c.bf16 %v644_v47, %v643_v46  ;;  %v598_v29 = vadd.f32 %v2398_v10, %v527_v21  ;;  %v661_v35 = vmax.f32 %v597_v27, 0.0  ;;  %v531_v40 = vmul.f32 %v1891_v31, %v2393_v5  ;;  %v2121_v46 = vld [vmem:[#allocation2 + $0xb0] sm:$0xff]   ;;  %v2112_v47 = vld [vmem:[#allocation2 + $0x68] sm:$0xff]  }
  0x34   :  { %2222 = vmatprep.mubr.bf16.mxu0 %v757_v0  ;;  %v2117_v0 = vld [vmem:[#allocation2 + $0x90] sm:$0xff]   ;;  %v771_v34 = vpack.c.bf16 %v660_v26, %v659_v20  ;;  %v1895_v43 = vunpack.c.h.bf16 %v2119_v24  ;;  %v532_v44 = vmul.f32 %v1894_v37, %v2393_v5  ;;  %v1899_v54 = vunpack.c.h.bf16 %v2120_v33 }
  0x35   :  { %v1886_v15 = vunpack.c.l.bf16 %v2117_v0  ;;  %v1887_v19 = vunpack.c.h.bf16 %v2117_v0  ;;  %v662_v38 = vmax.f32 %v598_v29, 0.0  ;;  %v602_v49 = vadd.f32 %v2398_v10, %v531_v40  ;;  %v2125_v40 = vld [vmem:[#allocation2 + $0xd0] sm:$0xff]  }
  0x36   :  { %2250 = vmatprep.mubr.bf16.mxu1 %v771_v34  ;;  %v535_v62 = vmul.f32 %v1899_v54, %v2393_v5  ;;  %v1902_v63 = vunpack.c.l.bf16 %v2121_v46  ;;  %v1903_v0 = vunpack.c.h.bf16 %v2121_v46  ;;  %v649_v4 = vmax.f32 %v2471_v3, 0.0 }
  0x37   :  { %v528_v22 = vmul.f32 %v1886_v15, %v2393_v5  ;;  %v529_v28 = vmul.f32 %v1887_v19, %v2393_v5  ;;  %v772_v48 = vpack.c.bf16 %v662_v38, %v661_v35  ;;  %v666_v61 = vmax.f32 %v602_v49, 0.0  ;;  %v2113_v19 = vld [vmem:[#allocation2 + $0x70] sm:$0xff]  }
  0x38   :  { %v1866_v8 = vunpack.c.l.bf16 %v2112_v47  ;;  %v650_v13 = vmax.f32 %v2476_v7, 0.0  ;;  %v1867_v14 = vunpack.c.h.bf16 %v2112_v47  ;;  %v536_v15 = vmul.f32 %v1902_v63, %v2393_v5 }
  0x39   :  { %v599_v30 = vadd.f32 %v2398_v10, %v528_v22  ;;  %v600_v36 = vadd.f32 %v2398_v10, %v529_v28  ;;  %2251 = vmatmul.mubr.bf16.vlgmr.msra.gmra.mrb[0].mxu1 %v772_v48  ;;  %v537_v17 = vmul.f32 %v1903_v0, %v2393_v5  ;;  %v517_v3 = vmul.f32 %v1863_v12, %v2393_v5 }
  0x3a   :  { %v1906_v21 = vunpack.c.l.bf16 %v2122_v1  ;;  %v1907_v22 = vunpack.c.h.bf16 %v2122_v1  ;;  %v606_v7 = vadd.f32 %v2398_v10, %v535_v62  ;;  %v607_v24 = vadd.f32 %v2398_v10, %v536_v15  ;;  %v2126_v15 = vld [vmem:[#allocation2 + $0xd8] sm:$0xff]  }
  0x3b   :  { %2223 = vmatmul.mubr.bf16.gmra.mrb[4].mxu0 %v758_v32  ;;  %v530_v32 = vmul.f32 %v1890_v23, %v2393_v5  ;;  %v663_v39 = vmax.f32 %v599_v30, 0.0  ;;  %v664_v42 = vmax.f32 %v600_v36, 0.0  ;;  %v608_v27 = vadd.f32 %v2398_v10, %v537_v17 }
  0x3c   :  { %2226 = vmatprep.mubr.bf16.mxu0 %v759_v45  ;;  %v1898_v45 = vunpack.c.l.bf16 %v2120_v33  ;;  %v1910_v28 = vunpack.c.l.bf16 %v2123_v18  ;;  %v765_v52 = vpack.c.bf16 %v648_v6, %v647_v2  ;;  %v587_v12 = vadd.f32 %v2398_v10, %v2482_v16  ;;  %v2114_v33 = vld [vmem:[#allocation2 + $0x78] sm:$0xff]   ;;  %v2124_v6 = vld [vmem:[#allocation2 + $0xc8] sm:$0xff]  }
  0x3d   :  { %v601_v41 = vadd.f32 %v2398_v10, %v530_v32  ;;  %v773_v55 = vpack.c.bf16 %v664_v42, %v663_v39  ;;  %v1870_v29 = vunpack.c.l.bf16 %v2113_v19  ;;  %v1871_v30 = vunpack.c.h.bf16 %v2113_v19 }
  0x3e   :  { %v534_v59 = vmul.f32 %v1898_v45, %v2393_v5  ;;  %v588_v31 = vadd.f32 %v2398_v10, %v517_v3  ;;  %v518_v32 = vmul.f32 %v1866_v8, %v2393_v5  ;;  %v538_v34 = vmul.f32 %v1906_v21, %v2393_v5 }
  0x3f   :  { %v665_v51 = vmax.f32 %v601_v41, 0.0  ;;  %2254 = vmatprep.mubr.bf16.mxu1 %v773_v55  ;;  %v539_v35 = vmul.f32 %v1907_v22, %v2393_v5  ;;  %v766_v36 = vpack.c.bf16 %v650_v13, %v649_v4  ;;  %v519_v50 = vmul.f32 %v1867_v14, %v2393_v5 }
  0x40   :  { %v670_v2 = vmax.f32 %v606_v7, 0.0  ;;  %v671_v16 = vmax.f32 %v607_v24, 0.0  ;;  %v672_v37 = vmax.f32 %v608_v27, 0.0  ;;  %v540_v38 = vmul.f32 %v1910_v28, %v2393_v5 }
  0x41   :  { %v774_v23 = vpack.c.bf16 %v666_v61, %v665_v51  ;;  %v651_v41 = vmax.f32 %v587_v12, 0.0  ;;  %v520_v42 = vmul.f32 %v1870_v29, %v2393_v5  ;;  %v652_v45 = vmax.f32 %v588_v31, 0.0 }
  0x42   :  { %v609_v46 = vadd.f32 %v2398_v10, %v538_v34  ;;  %v610_v47 = vadd.f32 %v2398_v10, %v539_v35  ;;  %v1914_v48 = vunpack.c.l.bf16 %v2124_v6  ;;  %v1915_v51 = vunpack.c.h.bf16 %v2124_v6 }
  0x43   :  { %2227 = vmatmul.mubr.bf16.gmra.mrb[8].mxu0 %v760_v56  ;;  %v533_v56 = vmul.f32 %v1895_v43, %v2393_v5  ;;  %2255 = vmatmul.mubr.bf16.gmra.mrb[4].mxu1 %v774_v23  ;;  %v521_v43 = vmul.f32 %v1871_v30, %v2393_v5  ;;  %v1918_v54 = vunpack.c.l.bf16 %v2125_v40  ;;  %v1919_v55 = vunpack.c.h.bf16 %v2125_v40  ;;  %v2127_v23 = vld [vmem:[#allocation2 + $0xe0] sm:$0xff]  }
  0x44   :  { %2230 = vmatprep.mubr.bf16.mxu0 %v761_v57  ;;  %v603_v57 = vadd.f32 %v2398_v10, %v532_v44  ;;  %v1874_v44 = vunpack.c.l.bf16 %v2114_v33  ;;  %v590_v61 = vadd.f32 %v2398_v10, %v519_v50  ;;  %v591_v62 = vadd.f32 %v2398_v10, %v520_v42 }
  0x45   :  { %v604_v9 = vadd.f32 %v2398_v10, %v533_v56  ;;  %v589_v56 = vadd.f32 %v2398_v10, %v518_v32  ;;  %v592_v63 = vadd.f32 %v2398_v10, %v521_v43  ;;  %v1875_v0 = vunpack.c.h.bf16 %v2114_v33 }
  0x46   :  { %v667_v11 = vmax.f32 %v603_v57, 0.0  ;;  %v611_v57 = vadd.f32 %v2398_v10, %v540_v38  ;;  %v767_v1 = vpack.c.bf16 %v652_v45, %v651_v41  ;;  %v673_v4 = vmax.f32 %v609_v46, 0.0  ;;  %v2129_v41 = vld [vmem:[#allocation2 + $0xf0] sm:$0xff]  }
  0x47   :  { %v668_v20 = vmax.f32 %v604_v9, 0.0  ;;  %v674_v8 = vmax.f32 %v610_v47, 0.0  ;;  %v542_v9 = vmul.f32 %v1914_v48, %v2393_v5  ;;  %v544_v13 = vmul.f32 %v1918_v54, %v2393_v5 }
  0x48   :  { %v545_v14 = vmul.f32 %v1919_v55, %v2393_v5  ;;  %v522_v17 = vmul.f32 %v1874_v44, %v2393_v5  ;;  %v653_v19 = vmax.f32 %v589_v56, 0.0  ;;  %v655_v21 = vmax.f32 %v591_v62, 0.0 }
  0x49   :  { %v775_v26 = vpack.c.bf16 %v668_v20, %v667_v11  ;;  %v543_v11 = vmul.f32 %v1915_v51, %v2393_v5  ;;  %v654_v20 = vmax.f32 %v590_v61, 0.0  ;;  %v523_v22 = vmul.f32 %v1875_v0, %v2393_v5 }
  0x4a   :  { %v778_v7 = vpack.c.bf16 %v674_v8, %v673_v4  ;;  %v613_v24 = vadd.f32 %v2398_v10, %v542_v9  ;;  %v615_v28 = vadd.f32 %v2398_v10, %v544_v13  ;;  %v1926_v29 = vunpack.c.l.bf16 %v2127_v23 }
  0x4b   :  { %2231 = vmatmul.mubr.bf16.gmra.mrb[12].mxu0 %v2464_v58  ;;  %v605_v58 = vadd.f32 %v2398_v10, %v534_v59  ;;  %2258 = vmatprep.mubr.bf16.mxu1 %v775_v26  ;;  %v1922_v26 = vunpack.c.l.bf16 %v2126_v15  ;;  %v614_v27 = vadd.f32 %v2398_v10, %v543_v11  ;;  %v1927_v30 = vunpack.c.h.bf16 %v2127_v23 }
  0x4c   :  { %2234 = vmatprep.mubr.bf16.mxu0 %v2466_v60  ;;  %v1911_v60 = vunpack.c.h.bf16 %v2123_v18  ;;  %v675_v18 = vmax.f32 %v611_v57, 0.0  ;;  %v768_v31 = vpack.c.bf16 %v654_v20, %v653_v19  ;;  %v593_v32 = vadd.f32 %v2398_v10, %v522_v17 }
  0x4d   :  { %v669_v53 = vmax.f32 %v605_v58, 0.0  ;;  %v656_v58 = vmax.f32 %v592_v63, 0.0  ;;  %v594_v33 = vadd.f32 %v2398_v10, %v523_v22  ;;  %v677_v35 = vmax.f32 %v613_v24, 0.0 }
  0x4e   :  { %v541_v39 = vmul.f32 %v1911_v60, %v2393_v5  ;;  %v616_v60 = vadd.f32 %v2398_v10, %v545_v14  ;;  %v678_v50 = vmax.f32 %v614_v27, 0.0  ;;  %v549_v38 = vmul.f32 %v1927_v30, %v2393_v5 }
  0x4f   :  { %v776_v49 = vpack.c.bf16 %v670_v2, %v669_v53  ;;  %v769_v34 = vpack.c.bf16 %v656_v58, %v655_v21  ;;  %v679_v53 = vmax.f32 %v615_v28, 0.0  ;;  %v658_v40 = vmax.f32 %v594_v33, 0.0 }
  0x50   :  { %v612_v59 = vadd.f32 %v2398_v10, %v541_v39  ;;  %v680_v2 = vmax.f32 %v616_v60, 0.0  ;;  %v657_v39 = vmax.f32 %v593_v32, 0.0  ;;  %v780_v44 = vpack.c.bf16 %v678_v50, %v677_v35 }
  0x51   :  { %2259 = vmatmul.mubr.bf16.gmra.mrb[8].mxu1 %v776_v49  ;;  %v620_v49 = vadd.f32 %v2398_v10, %v549_v38  ;;  %v1934_v51 = vunpack.c.l.bf16 %v2129_v41  ;;  %v1935_v54 = vunpack.c.h.bf16 %v2129_v41 }
  0x52   :  { %v676_v3 = vmax.f32 %v612_v59, 0.0  ;;  %v781_v45 = vpack.c.bf16 %v680_v2, %v679_v53  ;;  %v770_v55 = vpack.c.bf16 %v658_v40, %v657_v39 }
  0x53   :  { %2235 = vmatmul.mubr.bf16.gmra.mrb[16].mxu0 %v2488_v25  ;;  %v777_v25 = vpack.c.bf16 %v672_v37, %v671_v16  ;;  %v2128_v16 = vld [vmem:[#allocation2 + $0xe8] sm:$0xff]   ;;  %v548_v37 = vmul.f32 %v1926_v29, %v2393_v5  ;;  %v684_v62 = vmax.f32 %v620_v49, 0.0  ;;  %v552_v63 = vmul.f32 %v1934_v51, %v2393_v5 }
  0x54   :  { %2238 = vmatprep.mubr.bf16.mxu0 %v765_v52  ;;  %v1923_v52 = vunpack.c.h.bf16 %v2126_v15  ;;  %v779_v12 = vpack.c.bf16 %v676_v3, %v675_v18  ;;  %v1930_v43 = vunpack.c.l.bf16 %v2128_v16  ;;  %v1931_v47 = vunpack.c.h.bf16 %v2128_v16 }
  0x55   :  { %2262 = vmatprep.mubr.bf16.mxu1 %v777_v25  ;;  %v619_v48 = vadd.f32 %v2398_v10, %v548_v37  ;;  %v553_v0 = vmul.f32 %v1935_v54, %v2393_v5  ;;  %v623_v15 = vadd.f32 %v2398_v10, %v552_v63 }
  0x56   :  { %v547_v6 = vmul.f32 %v1923_v52, %v2393_v5  ;;  %v550_v56 = vmul.f32 %v1930_v43, %v2393_v5  ;;  %v551_v59 = vmul.f32 %v1931_v47, %v2393_v5 }
  0x57   :  { %v683_v61 = vmax.f32 %v619_v48, 0.0  ;;  %v624_v17 = vadd.f32 %v2398_v10, %v553_v0  ;;  %v687_v21 = vmax.f32 %v623_v15, 0.0 }
  0x58   :  { %v618_v46 = vadd.f32 %v2398_v10, %v547_v6  ;;  %v621_v4 = vadd.f32 %v2398_v10, %v550_v56  ;;  %v622_v9 = vadd.f32 %v2398_v10, %v551_v59 }
  0x59   :  { %2263 = vmatmul.mubr.bf16.gmra.mrb[12].mxu1 %v778_v7  ;;  %v783_v14 = vpack.c.bf16 %v684_v62, %v683_v61  ;;  %v688_v22 = vmax.f32 %v624_v17, 0.0 }
  0x5a   :  { %2266 = vmatprep.mubr.bf16.mxu1 %v779_v12  ;;  %v682_v57 = vmax.f32 %v618_v46, 0.0  ;;  %v685_v18 = vmax.f32 %v621_v4, 0.0  ;;  %v686_v3 = vmax.f32 %v622_v9, 0.0 }
  0x5b   :  { %2239 = vmatmul.mubr.bf16.gmra.mrb[20].mxu0 %v766_v36  ;;  %v546_v36 = vmul.f32 %v1922_v26, %v2393_v5  ;;  %v785_v24 = vpack.c.bf16 %v688_v22, %v687_v21 }
  0x5c   :  { %2242 = vmatprep.mubr.bf16.mxu0 %v767_v1  ;;  %v2130_v1 = vld [vmem:[#allocation2 + $0xf8] sm:$0xff]   ;;  %v784_v23 = vpack.c.bf16 %v686_v3, %v685_v18 }
  0x5d   :  { %v617_v42 = vadd.f32 %v2398_v10, %v546_v36  ;;  %v1938_v11 = vunpack.c.l.bf16 %v2130_v1  ;;  %v1939_v13 = vunpack.c.h.bf16 %v2130_v1 }
  0x5f   :  { %v681_v25 = vmax.f32 %v617_v42, 0.0  ;;  %v554_v19 = vmul.f32 %v1938_v11, %v2393_v5  ;;  %v555_v20 = vmul.f32 %v1939_v13, %v2393_v5 }
  0x61   :  { %2267 = vmatmul.mubr.bf16.gmra.mrb[16].mxu1 %v780_v44  ;;  %v782_v8 = vpack.c.bf16 %v682_v57, %v681_v25  ;;  %v625_v58 = vadd.f32 %v2398_v10, %v554_v19  ;;  %v626_v7 = vadd.f32 %v2398_v10, %v555_v20 }
  0x62   :  { %2270 = vmatprep.mubr.bf16.mxu1 %v781_v45 }
  0x63   :  { %2243 = vmatmul.mubr.bf16.gmra.mrb[24].mxu0 %v768_v31  ;;  %v689_v26 = vmax.f32 %v625_v58, 0.0  ;;  %v690_v27 = vmax.f32 %v626_v7, 0.0 }
  0x64   :  { %2246 = vmatprep.mubr.bf16.mxu0 %v769_v34 }
  0x65   :  { %v786_v28 = vpack.c.bf16 %v690_v27, %v689_v26 }
  0x69   :  { %2271 = vmatmul.mubr.bf16.gmra.mrb[20].mxu1 %v782_v8 }
  0x6a   :  { %2274 = vmatprep.mubr.bf16.mxu1 %v783_v14 }
  0x6b   :  { %2247 = vmatmul.mubr.bf16.gmra.mrb[28].mxu0 %v770_v55 }
  0x71   :  { %2275 = vmatmul.mubr.bf16.gmra.mrb[24].mxu1 %v784_v23 }
  0x72   :  { %2278 = vmatprep.mubr.bf16.mxu1 %v785_v24 }
  0x79   :  { %2279 = vmatmul.mubr.bf16.gmra.mrb[28].mxu1 %v786_v28 }
 0x106   :  { %v2220_v60 = vpop.f32.mrb[0].mxu0 }
 0x107   :  { %v885_v52 = vpop.f32.mrb[1].mxu0  ;;  %v1531_v10 = vmul.f32 %v2220_v60, %v2220_v60 }
 0x108   :  { %v2221_v12 = vpop.f32.mrb[2].mxu0  ;;  %v1529_v30 = vmul.f32 %v885_v52, %v885_v52 }
 0x109   :  { %v1948_v29 = vpack.c.bf16 %v2221_v12, %v2220_v60  ;;  %v888_v5 = vpop.f32.mrb[3].mxu0  ;;  %v1532_v36 = vmul.f32 %v2221_v12, %v2221_v12 }
 0x10a   :  { %v1943_v31 = vpack.c.bf16 %v888_v5, %v885_v52  ;;  %v1460_v32 = vadd.f32 %v888_v5, %v885_v52  ;;  %v1530_v33 = vmul.f32 %v888_v5, %v888_v5 }
 0x10b   :  { %2131 = vst [vmem:[%s2869_s4 + $0x8] sm:$0xff] %v1948_v29  }
 0x10c   :  { %1944 = vst [vmem:[%s2869_s4] sm:$0xff] %v1943_v31   ;;  %v1461_v34 = vadd.f32 %v2220_v60, %v1460_v32  ;;  %v1593_v35 = vadd.f32 %v1530_v33, %v1529_v30  ;;  %v2592_v14 = vpop.f32.mrb[0].mxu1 }
 0x10d   :  { %v2594_v15 = vpop.f32.mrb[1].mxu1 }
 0x10e   :  { %v1594_v50 = vadd.f32 %v1593_v35, %v1531_v10  ;;  %v2224_v53 = vpop.f32.mrb[4].mxu0  ;;  %v1462_v2 = vadd.f32 %v2221_v12, %v1461_v34  ;;  %v2596_v20 = vpop.f32.mrb[2].mxu1 }
 0x10f   :  { %v901_v6 = vpop.f32.mrb[5].mxu0  ;;  %v1535_v46 = vmul.f32 %v2224_v53, %v2224_v53  ;;  %v2028_v22 = vpack.c.bf16 %v2596_v20, %v2592_v14  ;;  %v2600_v23 = vpop.f32.mrb[3].mxu1 }
 0x110   :  { %v1463_v16 = vadd.f32 %v1462_v2, %v901_v6  ;;  %v1533_v37 = vmul.f32 %v901_v6, %v901_v6  ;;  %v1595_v38 = vadd.f32 %v1594_v50, %v1532_v36  ;;  %v2225_v39 = vpop.f32.mrb[6].mxu0  ;;  %v2023_v27 = vpack.c.bf16 %v2600_v23, %v2594_v15 }
 0x111   :  { %v1958_v40 = vpack.c.bf16 %v2225_v39, %v2224_v53  ;;  %v904_v41 = vpop.f32.mrb[7].mxu0  ;;  %v1536_v49 = vmul.f32 %v2225_v39, %v2225_v39  ;;  %2147 = vst [vmem:[%s2869_s4 + $0x88] sm:$0xff] %v2028_v22  }
 0x112   :  { %v1596_v42 = vadd.f32 %v1595_v38, %v1533_v37  ;;  %v1953_v43 = vpack.c.bf16 %v904_v41, %v901_v6  ;;  %v1464_v44 = vadd.f32 %v1463_v16, %v904_v41  ;;  %v1534_v45 = vmul.f32 %v904_v41, %v904_v41  ;;  %2146 = vst [vmem:[%s2869_s4 + $0x80] sm:$0xff] %v2023_v27  }
 0x113   :  { %2133 = vst [vmem:[%s2869_s4 + $0x18] sm:$0xff] %v1958_v40  }
 0x114   :  { %2132 = vst [vmem:[%s2869_s4 + $0x10] sm:$0xff] %v1953_v43   ;;  %v1465_v47 = vadd.f32 %v2224_v53, %v1464_v44  ;;  %v1597_v48 = vadd.f32 %v1596_v42, %v1534_v45 }
 0x116   :  { %v1598_v51 = vadd.f32 %v1597_v48, %v1535_v46  ;;  %v2228_v54 = vpop.f32.mrb[8].mxu0  ;;  %v1466_v55 = vadd.f32 %v2225_v39, %v1465_v47  ;;  %v2616_v33 = vpop.f32.mrb[4].mxu1 }
 0x117   :  { %v917_v56 = vpop.f32.mrb[9].mxu0  ;;  %v1539_v9 = vmul.f32 %v2228_v54, %v2228_v54  ;;  %v2618_v10 = vpop.f32.mrb[5].mxu1 }
 0x118   :  { %v1467_v25 = vadd.f32 %v1466_v55, %v917_v56  ;;  %v1537_v57 = vmul.f32 %v917_v56, %v917_v56  ;;  %v1599_v59 = vadd.f32 %v1598_v51, %v1536_v49  ;;  %v2229_v61 = vpop.f32.mrb[10].mxu0  ;;  %v2620_v53 = vpop.f32.mrb[6].mxu1 }
 0x119   :  { %v1968_v62 = vpack.c.bf16 %v2229_v61, %v2228_v54  ;;  %v920_v63 = vpop.f32.mrb[11].mxu0  ;;  %v1540_v17 = vmul.f32 %v2229_v61, %v2229_v61  ;;  %v2038_v6 = vpack.c.bf16 %v2620_v53, %v2616_v33  ;;  %v2624_v16 = vpop.f32.mrb[7].mxu1 }
 0x11a   :  { %v1600_v0 = vadd.f32 %v1599_v59, %v1537_v57  ;;  %v1963_v1 = vpack.c.bf16 %v920_v63, %v917_v56  ;;  %v1468_v4 = vadd.f32 %v1467_v25, %v920_v63  ;;  %v1538_v8 = vmul.f32 %v920_v63, %v920_v63 }
 0x11b   :  { %2135 = vst [vmem:[%s2869_s4 + $0x28] sm:$0xff] %v1968_v62   ;;  %v2033_v41 = vpack.c.bf16 %v2624_v16, %v2618_v10  ;;  %2149 = vst [vmem:[%s2869_s4 + $0x98] sm:$0xff] %v2038_v6  }
 0x11c   :  { %2134 = vst [vmem:[%s2869_s4 + $0x20] sm:$0xff] %v1963_v1   ;;  %v1469_v11 = vadd.f32 %v2228_v54, %v1468_v4  ;;  %v1601_v13 = vadd.f32 %v1600_v0, %v1538_v8 }
 0x11d   :  { %2148 = vst [vmem:[%s2869_s4 + $0x90] sm:$0xff] %v2033_v41  }
 0x11e   :  { %v1602_v18 = vadd.f32 %v1601_v13, %v1539_v9  ;;  %v2232_v3 = vpop.f32.mrb[12].mxu0  ;;  %v1470_v19 = vadd.f32 %v2229_v61, %v1469_v11 }
 0x11f   :  { %v933_v21 = vpop.f32.mrb[13].mxu0  ;;  %v1543_v30 = vmul.f32 %v2232_v3, %v2232_v3 }
 0x120   :  { %v1471_v58 = vadd.f32 %v1470_v19, %v933_v21  ;;  %v1541_v7 = vmul.f32 %v933_v21, %v933_v21  ;;  %v1603_v24 = vadd.f32 %v1602_v18, %v1540_v17  ;;  %v2233_v26 = vpop.f32.mrb[14].mxu0 }
 0x121   :  { %v1978_v28 = vpack.c.bf16 %v2233_v26, %v2232_v3  ;;  %v936_v60 = vpop.f32.mrb[15].mxu0  ;;  %v1544_v34 = vmul.f32 %v2233_v26, %v2233_v26 }
 0x122   :  { %v1604_v52 = vadd.f32 %v1603_v24, %v1541_v7  ;;  %v1973_v12 = vpack.c.bf16 %v936_v60, %v933_v21  ;;  %v1472_v29 = vadd.f32 %v1471_v58, %v936_v60  ;;  %v1542_v5 = vmul.f32 %v936_v60, %v936_v60 }
 0x123   :  { %2137 = vst [vmem:[%s2869_s4 + $0x38] sm:$0xff] %v1978_v28  }
 0x124   :  { %2136 = vst [vmem:[%s2869_s4 + $0x30] sm:$0xff] %v1973_v12   ;;  %v1473_v31 = vadd.f32 %v2232_v3, %v1472_v29  ;;  %v1605_v32 = vadd.f32 %v1604_v52, %v1542_v5  ;;  %v2640_v54 = vpop.f32.mrb[8].mxu1 }
 0x125   :  { %v2642_v55 = vpop.f32.mrb[9].mxu1 }
 0x126   :  { %v1606_v35 = vadd.f32 %v1605_v32, %v1543_v30  ;;  %v2236_v36 = vpop.f32.mrb[16].mxu0  ;;  %v1474_v50 = vadd.f32 %v2233_v26, %v1473_v31  ;;  %v2644_v61 = vpop.f32.mrb[10].mxu1 }
 0x127   :  { %v949_v2 = vpop.f32.mrb[17].mxu0  ;;  %v1547_v48 = vmul.f32 %v2236_v36, %v2236_v36  ;;  %v2048_v63 = vpack.c.bf16 %v2644_v61, %v2640_v54  ;;  %v2648_v0 = vpop.f32.mrb[11].mxu1 }
 0x128   :  { %v1475_v37 = vadd.f32 %v1474_v50, %v949_v2  ;;  %v1545_v38 = vmul.f32 %v949_v2, %v949_v2  ;;  %v1607_v39 = vadd.f32 %v1606_v35, %v1544_v34  ;;  %v2237_v40 = vpop.f32.mrb[18].mxu0  ;;  %v2043_v11 = vpack.c.bf16 %v2648_v0, %v2642_v55 }
 0x129   :  { %v1988_v42 = vpack.c.bf16 %v2237_v40, %v2236_v36  ;;  %v952_v43 = vpop.f32.mrb[19].mxu0  ;;  %v1548_v56 = vmul.f32 %v2237_v40, %v2237_v40  ;;  %2151 = vst [vmem:[%s2869_s4 + $0xa8] sm:$0xff] %v2048_v63  }
 0x12a   :  { %v1608_v44 = vadd.f32 %v1607_v39, %v1545_v38  ;;  %v1983_v45 = vpack.c.bf16 %v952_v43, %v949_v2  ;;  %v1476_v46 = vadd.f32 %v1475_v37, %v952_v43  ;;  %v1546_v47 = vmul.f32 %v952_v43, %v952_v43  ;;  %2150 = vst [vmem:[%s2869_s4 + $0xa0] sm:$0xff] %v2043_v11  }
 0x12b   :  { %2139 = vst [vmem:[%s2869_s4 + $0x48] sm:$0xff] %v1988_v42  }
 0x12c   :  { %2138 = vst [vmem:[%s2869_s4 + $0x40] sm:$0xff] %v1983_v45   ;;  %v1477_v49 = vadd.f32 %v2236_v36, %v1476_v46  ;;  %v1609_v51 = vadd.f32 %v1608_v44, %v1546_v47  ;;  %v2664_v24 = vpop.f32.mrb[12].mxu1 }
 0x12d   :  { %v2666_v26 = vpop.f32.mrb[13].mxu1 }
 0x12e   :  { %v1610_v25 = vadd.f32 %v1609_v51, %v1547_v48  ;;  %v2240_v57 = vpop.f32.mrb[20].mxu0  ;;  %v1478_v59 = vadd.f32 %v2237_v40, %v1477_v49  ;;  %v2668_v12 = vpop.f32.mrb[14].mxu1 }
 0x12f   :  { %v965_v62 = vpop.f32.mrb[21].mxu0  ;;  %v1551_v22 = vmul.f32 %v2240_v57, %v2240_v57  ;;  %v2058_v5 = vpack.c.bf16 %v2668_v12, %v2664_v24  ;;  %v2672_v30 = vpop.f32.mrb[15].mxu1 }
 0x130   :  { %v1479_v1 = vadd.f32 %v1478_v59, %v965_v62  ;;  %v1549_v4 = vmul.f32 %v965_v62, %v965_v62  ;;  %v1611_v8 = vadd.f32 %v1610_v25, %v1548_v56  ;;  %v2241_v9 = vpop.f32.mrb[22].mxu0  ;;  %v2053_v36 = vpack.c.bf16 %v2672_v30, %v2666_v26 }
 0x131   :  { %v1998_v13 = vpack.c.bf16 %v2241_v9, %v2240_v57  ;;  %v968_v17 = vpop.f32.mrb[23].mxu0  ;;  %v1552_v27 = vmul.f32 %v2241_v9, %v2241_v9  ;;  %2153 = vst [vmem:[%s2869_s4 + $0xb8] sm:$0xff] %v2058_v5  }
 0x132   :  { %v1612_v18 = vadd.f32 %v1611_v8, %v1549_v4  ;;  %v1993_v3 = vpack.c.bf16 %v968_v17, %v965_v62  ;;  %v1480_v19 = vadd.f32 %v1479_v1, %v968_v17  ;;  %v1550_v21 = vmul.f32 %v968_v17, %v968_v17  ;;  %2152 = vst [vmem:[%s2869_s4 + $0xb0] sm:$0xff] %v2053_v36  }
 0x133   :  { %2141 = vst [vmem:[%s2869_s4 + $0x58] sm:$0xff] %v1998_v13   ;;  %v1562_v36 = vmul.f32 %v2600_v23, %v2600_v23 }
 0x134   :  { %2140 = vst [vmem:[%s2869_s4 + $0x50] sm:$0xff] %v1993_v3   ;;  %v1481_v58 = vadd.f32 %v2240_v57, %v1480_v19  ;;  %v1613_v7 = vadd.f32 %v1612_v18, %v1550_v21  ;;  %v2688_v43 = vpop.f32.mrb[16].mxu1 }
 0x135   :  { %v2690_v44 = vpop.f32.mrb[17].mxu1 }
 0x136   :  { %v1614_v28 = vadd.f32 %v1613_v7, %v1551_v22  ;;  %v2244_v60 = vpop.f32.mrb[24].mxu0  ;;  %v1482_v52 = vadd.f32 %v2241_v9, %v1481_v58  ;;  %v2692_v49 = vpop.f32.mrb[18].mxu1 }
 0x137   :  { %v981_v29 = vpop.f32.mrb[25].mxu0  ;;  %v1555_v40 = vmul.f32 %v2244_v60, %v2244_v60  ;;  %v2068_v56 = vpack.c.bf16 %v2692_v49, %v2688_v43  ;;  %v2696_v25 = vpop.f32.mrb[19].mxu1 }
 0x138   :  { %v1483_v31 = vadd.f32 %v1482_v52, %v981_v29  ;;  %v1553_v32 = vmul.f32 %v981_v29, %v981_v29  ;;  %v1615_v34 = vadd.f32 %v1614_v28, %v1552_v27  ;;  %v2245_v35 = vpop.f32.mrb[26].mxu0  ;;  %v2063_v1 = vpack.c.bf16 %v2696_v25, %v2690_v44 }
 0x139   :  { %v2008_v50 = vpack.c.bf16 %v2245_v35, %v2244_v60  ;;  %v984_v2 = vpop.f32.mrb[27].mxu0  ;;  %v1556_v45 = vmul.f32 %v2245_v35, %v2245_v35  ;;  %2155 = vst [vmem:[%s2869_s4 + $0xc8] sm:$0xff] %v2068_v56   ;;  %v1561_v28 = vmul.f32 %v2594_v15, %v2594_v15 }
 0x13a   :  { %v1616_v6 = vadd.f32 %v1615_v34, %v1553_v32  ;;  %v2003_v37 = vpack.c.bf16 %v984_v2, %v981_v29  ;;  %v1484_v38 = vadd.f32 %v1483_v31, %v984_v2  ;;  %v1554_v39 = vmul.f32 %v984_v2, %v984_v2  ;;  %2154 = vst [vmem:[%s2869_s4 + $0xc0] sm:$0xff] %v2063_v1  }
 0x13b   :  { %2143 = vst [vmem:[%s2869_s4 + $0x68] sm:$0xff] %v2008_v50  }
 0x13c   :  { %2142 = vst [vmem:[%s2869_s4 + $0x60] sm:$0xff] %v2003_v37   ;;  %v1485_v41 = vadd.f32 %v2244_v60, %v1484_v38  ;;  %v1617_v42 = vadd.f32 %v1616_v6, %v1554_v39  ;;  %v2712_v21 = vpop.f32.mrb[20].mxu1  ;;  %v1564_v38 = vmul.f32 %v2596_v20, %v2596_v20 }
 0x13d   :  { %v2714_v22 = vpop.f32.mrb[21].mxu1 }
 0x13e   :  { %v1618_v46 = vadd.f32 %v1617_v42, %v1555_v40  ;;  %v2248_v47 = vpop.f32.mrb[28].mxu0  ;;  %v1486_v48 = vadd.f32 %v2245_v35, %v1485_v41  ;;  %v2718_v60 = vpop.f32.mrb[22].mxu1  ;;  %v1565_v40 = vmul.f32 %v2618_v10, %v2618_v10 }
 0x13f   :  { %v997_v51 = vpop.f32.mrb[29].mxu0  ;;  %v1559_v18 = vmul.f32 %v2248_v47, %v2248_v47  ;;  %v2078_v52 = vpack.c.bf16 %v2718_v60, %v2712_v21  ;;  %v2722_v29 = vpop.f32.mrb[23].mxu1 }
 0x140   :  { %v1487_v57 = vadd.f32 %v1486_v48, %v997_v51  ;;  %v1557_v59 = vmul.f32 %v997_v51, %v997_v51  ;;  %v1619_v62 = vadd.f32 %v1618_v46, %v1556_v45  ;;  %v2249_v63 = vpop.f32.mrb[30].mxu0  ;;  %v2073_v32 = vpack.c.bf16 %v2722_v29, %v2714_v22 }
 0x141   :  { %v2018_v4 = vpack.c.bf16 %v2249_v63, %v2248_v47  ;;  %v1000_v8 = vpop.f32.mrb[31].mxu0  ;;  %v1560_v58 = vmul.f32 %v2249_v63, %v2249_v63  ;;  %2157 = vst [vmem:[%s2869_s4 + $0xd8] sm:$0xff] %v2078_v52   ;;  %v1573_v52 = vmul.f32 %v2666_v26, %v2666_v26 }
 0x142   :  { %v1620_v9 = vadd.f32 %v1619_v62, %v1557_v59  ;;  %v2013_v11 = vpack.c.bf16 %v1000_v8, %v997_v51  ;;  %v1488_v13 = vadd.f32 %v1487_v57, %v1000_v8  ;;  %v1558_v17 = vmul.f32 %v1000_v8, %v1000_v8  ;;  %2156 = vst [vmem:[%s2869_s4 + $0xd0] sm:$0xff] %v2073_v32  }
 0x143   :  { %2145 = vst [vmem:[%s2869_s4 + $0x78] sm:$0xff] %v2018_v4   ;;  %v1566_v51 = vmul.f32 %v2624_v16, %v2624_v16  ;;  %v1569_v4 = vmul.f32 %v2642_v55, %v2642_v55 }
 0x144   :  { %2144 = vst [vmem:[%s2869_s4 + $0x70] sm:$0xff] %v2013_v11   ;;  %v1489_v3 = vadd.f32 %v2248_v47, %v1488_v13  ;;  %v1621_v19 = vadd.f32 %v1620_v9, %v1558_v17  ;;  %v2739_v6 = vpop.f32.mrb[24].mxu1 }
 0x145   :  { %v2741_v37 = vpop.f32.mrb[25].mxu1 }
 0x146   :  { %v1622_v7 = vadd.f32 %v1621_v19, %v1559_v18  ;;  %v1490_v27 = vadd.f32 %v2249_v63, %v1489_v3  ;;  %v2748_v41 = vpop.f32.mrb[26].mxu1  ;;  %v1568_v63 = vmul.f32 %v2620_v53, %v2620_v53  ;;  %v1570_v3 = vmul.f32 %v2648_v0, %v2648_v0 }
 0x147   :  { %v2088_v42 = vpack.c.bf16 %v2748_v41, %v2739_v6 }
 0x148   :  { %v1491_v5 = vadd.f32 %v1490_v27, %v2594_v15  ;;  %v1623_v31 = vadd.f32 %v1622_v7, %v1560_v58  ;;  %v1563_v15 = vmul.f32 %v2592_v14, %v2592_v14  ;;  %v1572_v7 = vmul.f32 %v2644_v61, %v2644_v61 }
 0x149   :  { %2159 = vst [vmem:[%s2869_s4 + $0xe8] sm:$0xff] %v2088_v42  }
 0x14a   :  { %v1624_v34 = vadd.f32 %v1623_v31, %v1561_v28  ;;  %v1492_v35 = vadd.f32 %v1491_v5, %v2600_v23 }
 0x14c   :  { %v1493_v50 = vadd.f32 %v2592_v14, %v1492_v35  ;;  %v1625_v2 = vadd.f32 %v1624_v34, %v1562_v36  ;;  %v2752_v14 = vpop.f32.mrb[27].mxu1  ;;  %v1574_v34 = vmul.f32 %v2672_v30, %v2672_v30 }
 0x14d   :  { %v2083_v47 = vpack.c.bf16 %v2752_v14, %v2741_v37  ;;  %v2769_v59 = vpop.f32.mrb[28].mxu1 }
 0x14e   :  { %v1626_v39 = vadd.f32 %v1625_v2, %v1563_v15  ;;  %v1494_v23 = vadd.f32 %v2596_v20, %v1493_v50  ;;  %v2771_v62 = vpop.f32.mrb[29].mxu1 }
 0x14f   :  { %2158 = vst [vmem:[%s2869_s4 + $0xe0] sm:$0xff] %v2083_v47   ;;  %v2778_v8 = vpop.f32.mrb[30].mxu1 }
 0x150   :  { %v1495_v45 = vadd.f32 %v1494_v23, %v2618_v10  ;;  %v1627_v46 = vadd.f32 %v1626_v39, %v1564_v38  ;;  %v1567_v10 = vmul.f32 %v2616_v33, %v2616_v33  ;;  %v2098_v9 = vpack.c.bf16 %v2778_v8, %v2769_v59 }
 0x151   :  { %v1578_v23 = vmul.f32 %v2696_v25, %v2696_v25 }
 0x152   :  { %v1628_v20 = vadd.f32 %v1627_v46, %v1565_v40  ;;  %v1496_v48 = vadd.f32 %v1495_v45, %v2624_v16  ;;  %2161 = vst [vmem:[%s2869_s4 + $0xf8] sm:$0xff] %v2098_v9   ;;  %v1586_v9 = vmul.f32 %v2752_v14, %v2752_v14 }
 0x154   :  { %v1497_v56 = vadd.f32 %v2616_v33, %v1496_v48  ;;  %v1629_v57 = vadd.f32 %v1628_v20, %v1566_v51  ;;  %v2782_v33 = vpop.f32.mrb[31].mxu1  ;;  %v1582_v51 = vmul.f32 %v2722_v29, %v2722_v29 }
 0x155   :  { %v2093_v17 = vpack.c.bf16 %v2782_v33, %v2771_v62 }
 0x156   :  { %v1630_v1 = vadd.f32 %v1629_v57, %v1567_v10  ;;  %v1498_v16 = vadd.f32 %v2620_v53, %v1497_v56 }
 0x157   :  { %2160 = vst [vmem:[%s2869_s4 + $0xf0] sm:$0xff] %v2093_v17  }
 0x158   :  { %v1499_v11 = vadd.f32 %v1498_v16, %v2642_v55  ;;  %v1631_v13 = vadd.f32 %v1630_v1, %v1568_v63  ;;  %v1571_v55 = vmul.f32 %v2640_v54, %v2640_v54 }
 0x15a   :  { %v1632_v53 = vadd.f32 %v1631_v13, %v1569_v4  ;;  %v1500_v18 = vadd.f32 %v1499_v11, %v2648_v0 }
 0x15c   :  { %v1501_v19 = vadd.f32 %v2640_v54, %v1500_v18  ;;  %v1633_v58 = vadd.f32 %v1632_v53, %v1570_v3  ;;  %v1575_v54 = vmul.f32 %v2664_v24, %v2664_v24 }
 0x15e   :  { %v1634_v27 = vadd.f32 %v1633_v58, %v1571_v55  ;;  %v1502_v28 = vadd.f32 %v2644_v61, %v1501_v19  ;;  %v1576_v61 = vmul.f32 %v2668_v12, %v2668_v12  ;;  %v1590_v19 = vmul.f32 %v2782_v33, %v2782_v33 }
 0x160   :  { %v1503_v0 = vadd.f32 %v1502_v28, %v2666_v26  ;;  %v1635_v5 = vadd.f32 %v1634_v27, %v1572_v7  ;;  %v1577_v26 = vmul.f32 %v2690_v44, %v2690_v44 }
 0x162   :  { %v1636_v31 = vadd.f32 %v1635_v5, %v1573_v52  ;;  %v1504_v32 = vadd.f32 %v1503_v0, %v2672_v30 }
 0x164   :  { %v1505_v35 = vadd.f32 %v2664_v24, %v1504_v32  ;;  %v1637_v36 = vadd.f32 %v1636_v31, %v1574_v34  ;;  %v1579_v24 = vmul.f32 %v2688_v43, %v2688_v43 }
 0x166   :  { %v1638_v15 = vadd.f32 %v1637_v36, %v1575_v54  ;;  %v1506_v50 = vadd.f32 %v2668_v12, %v1505_v35  ;;  %v1580_v12 = vmul.f32 %v2692_v49, %v2692_v49 }
 0x168   :  { %v1507_v2 = vadd.f32 %v1506_v50, %v2690_v44  ;;  %v1639_v38 = vadd.f32 %v1638_v15, %v1576_v61  ;;  %v1581_v44 = vmul.f32 %v2714_v22, %v2714_v22 }
 0x16a   :  { %v1640_v39 = vadd.f32 %v1639_v38, %v1577_v26  ;;  %v1508_v30 = vadd.f32 %v1507_v2, %v2696_v25 }
 0x16c   :  { %v1509_v40 = vadd.f32 %v2688_v43, %v1508_v30  ;;  %v1641_v42 = vadd.f32 %v1640_v39, %v1578_v23  ;;  %v1583_v43 = vmul.f32 %v2712_v21, %v2712_v21 }
 0x16e   :  { %v1642_v45 = vadd.f32 %v1641_v42, %v1579_v24  ;;  %v1510_v46 = vadd.f32 %v2692_v49, %v1509_v40  ;;  %v1584_v49 = vmul.f32 %v2718_v60, %v2718_v60 }
 0x170   :  { %v1511_v47 = vadd.f32 %v1510_v46, %v2714_v22  ;;  %v1643_v20 = vadd.f32 %v1642_v45, %v1580_v12  ;;  %v1585_v22 = vmul.f32 %v2741_v37, %v2741_v37 }
 0x172   :  { %v1644_v48 = vadd.f32 %v1643_v20, %v1581_v44  ;;  %v1512_v25 = vadd.f32 %v1511_v47, %v2722_v29 }
 0x174   :  { %v1513_v10 = vadd.f32 %v2712_v21, %v1512_v25  ;;  %v1645_v56 = vadd.f32 %v1644_v48, %v1582_v51  ;;  %v1587_v21 = vmul.f32 %v2739_v6, %v2739_v6 }
 0x176   :  { %v1646_v57 = vadd.f32 %v1645_v56, %v1583_v43  ;;  %v1514_v63 = vadd.f32 %v2718_v60, %v1513_v10  ;;  %v1588_v60 = vmul.f32 %v2748_v41, %v2748_v41 }
 0x178   :  { %v1515_v1 = vadd.f32 %v1514_v63, %v2741_v37  ;;  %v1647_v16 = vadd.f32 %v1646_v57, %v1584_v49  ;;  %v1589_v37 = vmul.f32 %v2771_v62, %v2771_v62 }
 0x17a   :  { %v1648_v4 = vadd.f32 %v1647_v16, %v1585_v22  ;;  %v1516_v29 = vadd.f32 %v1515_v1, %v2752_v14 }
 0x17c   :  { %v1517_v11 = vadd.f32 %v2739_v6, %v1516_v29  ;;  %v1649_v13 = vadd.f32 %v1648_v4, %v1586_v9  ;;  %v1591_v6 = vmul.f32 %v2769_v59, %v2769_v59 }
 0x17e   :  { %v1650_v17 = vadd.f32 %v1649_v13, %v1587_v21  ;;  %v1518_v53 = vadd.f32 %v2748_v41, %v1517_v11  ;;  %v1592_v41 = vmul.f32 %v2778_v8, %v2778_v8 }
 0x180   :  { %v1519_v18 = vadd.f32 %v1518_v53, %v2771_v62  ;;  %v1651_v3 = vadd.f32 %v1650_v17, %v1588_v60 }
 0x182   :  { %v1652_v55 = vadd.f32 %v1651_v3, %v1589_v37  ;;  %v1520_v14 = vadd.f32 %v1519_v18, %v2782_v33 }
 0x184   :  { %v1521_v58 = vadd.f32 %v2769_v59, %v1520_v14  ;;  %v1653_v7 = vadd.f32 %v1652_v55, %v1590_v19 }
 0x186   :  { %v1522_v27 = vadd.f32 %v2778_v8, %v1521_v58  ;;  %v1654_v28 = vadd.f32 %v1653_v7, %v1591_v6 }
 0x188   :  { %v1523_v62 = vrot.slane %v1522_v27, 4  ;;  %v1655_v52 = vadd.f32 %v1654_v28, %v1592_v41 }
 0x18a   :  { %v1524_v0 = vadd.f32 %v1523_v62, %v1522_v27  ;;  %v1656_v5 = vrot.slane %v1655_v52, 4 }
 0x18c   :  { %v1525_v31 = vrot.slane %v1524_v0, 2  ;;  %v1657_v32 = vadd.f32 %v1656_v5, %v1655_v52 }
 0x18e   :  { %v1526_v34 = vadd.f32 %v1525_v31, %v1524_v0  ;;  %v1658_v33 = vrot.slane %v1657_v32, 2 }
 0x190   :  { %v1527_v54 = vrot.slane %v1526_v34, 1  ;;  %v1659_v35 = vadd.f32 %v1658_v33, %v1657_v32 }
 0x192   :  { %v1660_v36 = vrot.slane %v1659_v35, 1  ;;  %v1528_v59 = vadd.f32 %v1527_v54, %v1526_v34 }
 0x194   :  { %v1661_v61 = vadd.f32 %v1660_v36, %v1659_v35 }
 0x196   :  { %v1663_v15 = vsel %vm1662_vm0, %v1528_v59, %v1661_v61 }
 0x197   :  { %1664 = vst [vmem:[%s2870_s5] sm:$0x3] %v1663_v15 }
 0x198   :  { %1673 = vsyncpa [#allocation3], 1 }

// kernel: bottleneck_forward.5
= control target key start
LH: loop header
LB: loop body
LE: loop exit
PB: predicated region body
PF: predicated region fallthrough
CT: control target
= control target key end

     0   :  { %11 = vsyncpa [#allocation4], 0  ;;  %s8182_s0 = inlined_call_operand.hbm [shape: bf16[2,256,128], index: 0, kind: input, shape index: {}]   ;;  %s8183_s1 = inlined_call_operand.hbm [shape: f32[1,128], index: 1, kind: input, shape index: {}]   ;;  %s8184_s2 = inlined_call_operand.hbm [shape: f32[1,128], index: 2, kind: input, shape index: {}]   ;;  %s8185_s3 = inlined_call_operand.hbm [shape: bf16[1152,128], index: 3, kind: input, shape index: {}]   ;;  %s8186_s4 = inlined_call_operand.hbm [shape: bf16[2,256,128], index: 4, kind: output, shape index: {0}]   ;;  %s8187_s5 = inlined_call_operand.hbm [shape: f32[2,2,128], index: 5, kind: output, shape index: {1}]  }
   0x1   :  { %13 = vsyncpa [#allocation4 + $0x1], 0 }
   0x2   :  { %14 = vsyncpa [#allocation7], 0 }
   0x3   :  { %15 = vsyncpa [#allocation10], 0 }
   0x4   :  { %16 = vsyncpa [#allocation5], 0 }
   0x5   :  { %18 = vsyncpa [#allocation5 + $0x1], 0 }
   0x6   :  { %19 = vsyncpa [#allocation13], 0 }
   0x7   :  { %21 = vsyncpa [#allocation13 + $0x1], 0  ;;  %s5738_s18 = smov 0   ;;  %s5740_s19 = smov 0  }
   0x8   :  { %s5742_s20 = smov 0   ;;  %s5744_s21 = smov 0  }
   0x9 LB: > { %s5759_s22 = sadd.s32 4294967295, %s5693_s21   ;;  %s4739_s23 = sadd.s32 4294967294, %s5693_s21   ;;  %s5693_s21 = sphi %s5744_s21, %s8558_s21   ;;  %s5689_s20 = sphi %s5742_s20, %s8557_s20   ;;  %s5685_s19 = sphi %s5740_s19, %s8556_s19   ;;  %s5681_s18 = sphi %s5738_s18, %s8555_s18  }
   0xa   : > { %p47_p0 = scmp.ne.s32.totalorder %s5685_s19, %s5681_s18  ;;  %p8188_p1 = scmp.eq.s32.totalorder %s5759_s22, 0 }
   0xb   : > { %p140_p3 = scmp.eq.s32.totalorder %s4739_s23, 1  ;;  %p4740_p5 = scmp.ge.s32.totalorder %s5693_s21, 1 }
   0xc   : > { %p5768_p4 = por %p8188_p1, %p47_p0  ;;  %p173_p7 = scmp.lt.s32.totalorder %s5693_s21, 3 }
   0xd   : > { %p5773_p6 = por %p140_p3, %p47_p0  ;;  %s5695_s27 = smov [#allocation6]  }
   0xe   : > { %s8328_s24 = scalar_select %p5768_p4, 1, 0 }
   0xf   : > { %s8329_s25 = scalar_select %p5773_p6, 1, 0 }
  0x10   : > { %p5778_p8 = pnand %p4740_p5, %p173_p7  ;;  %s186_s28 = sshll.u32 %s5695_s27, 4  ;;  %s187_s28 = int_to_ptr.vmem [resolvable:$true] %s186_s28 }
  0x11   : > { %s5696_s29 = smov [#allocation8]   ;;  %s5697_s7 = smov [#allocation9]  }
  0x12   : > { %s8330_s26 = scalar_select %p5778_p8, 1, 0 }
  0x13   : > { %p5310_p10 = pneg %p5778_p8  ;;  %s197_s30 = sshll.u32 %s5696_s29, 4  ;;  %s5791_s30 = int_to_ptr.vmem [resolvable:$true] %s197_s30 }
  0x14   : > { %s207_s8 = sshll.u32 %s5697_s7, 4  ;;  %s5473_s11 = scalar_lea.hbm %s8183_s1, 16  ;;  %s5793_s8 = int_to_ptr.vmem [resolvable:$true] %s207_s8 }
  0x15   : > { %p5787_p11 = pnand %p5310_p10, %p8188_p1  ;;  %p5474_p12 = scmp.ne.s32.totalorder %s8183_s1, %s5473_s11 }
  0x16   : > { %p5480_p5 = scmp.lt.u32.totalorder %s5473_s11, %s8183_s1 }
  0x17   : > { %p5803_p13 = pneg %p5787_p11 }
  0x19   : > { %p5476_p0 = pnand %p5803_p13, %p5474_p12 }
  0x1b   : > { %p5477_p3 = pneg %p5476_p0 }
  0x1d   : > { %p5482_p7 = pnand %p5480_p5, %p5477_p3 }
  0x1f   : > { %5485 = shalt.err (!%p5482_p7)
}
  0x20   : > { %s5486_s17 = scalar_lea.vmem %s187_s28, 16  ;;  %s5493_s23 = scalar_lea.vmem %s187_s28, 32 }
  0x21   : > { %p5487_p10 = scmp.ne.s32.totalorder %s187_s28, %s5486_s17  ;;  %p5494_p2 = scmp.lt.s32.totalorder %s187_s28, %s187_s28 }
  0x22   : > { %p5495_p6 = scmp.lt.s32.totalorder %s5493_s23, %s5486_s17 }
  0x23   : > { %p5489_p9 = pnand %p5487_p10, %p5803_p13 }
  0x24   : > { %p5496_p4 = por %p5495_p6, %p5494_p2 }
  0x25   : > { %p5490_p1 = pneg %p5489_p9 }
  0x27   : > { %p5497_p8 = pnand %p5496_p4, %p5490_p1 }
  0x29   : > { %5500 = shalt.err (!%p5497_p8)
}
  0x2a   : > { %5313 = dma.hbm_to_vmem [thread:$0]  (!%p5787_p11), %s8183_s1, 16, %s187_s28, [#allocation7]  }
  0x2b   : > { %s5501_s10 = scalar_lea.hbm %s8184_s2, 16 }
  0x2c   : > { %p5502_p9 = scmp.ne.s32.totalorder %s8184_s2, %s5501_s10  ;;  %p5508_p1 = scmp.lt.u32.totalorder %s5501_s10, %s8184_s2 }
  0x2e   : > { %p5504_p12 = pnand %p5502_p9, %p5803_p13 }
  0x30   : > { %p5505_p2 = pneg %p5504_p12 }
  0x32   : > { %p5510_p4 = pnand %p5508_p1, %p5505_p2 }
  0x34   : > { %5513 = shalt.err (!%p5510_p4)
}
  0x35   : > { %s5514_s28 = scalar_lea.vmem %s5791_s30, 16  ;;  %s5521_s16 = scalar_lea.vmem %s5791_s30, 32 }
  0x36   : > { %p5515_p6 = scmp.ne.s32.totalorder %s5791_s30, %s5514_s28  ;;  %p5522_p3 = scmp.lt.s32.totalorder %s5791_s30, %s5791_s30 }
  0x37   : > { %p5523_p5 = scmp.lt.s32.totalorder %s5521_s16, %s5514_s28 }
  0x38   : > { %p5517_p8 = pnand %p5515_p6, %p5803_p13 }
  0x39   : > { %p5524_p7 = por %p5523_p5, %p5522_p3 }
  0x3a   : > { %p5518_p0 = pneg %p5517_p8 }
  0x3c   : > { %p5525_p10 = pnand %p5524_p7, %p5518_p0 }
  0x3e   : > { %5528 = shalt.err (!%p5525_p10)
}
  0x3f   : > { %5316 = dma.hbm_to_vmem [thread:$0]  (!%p5787_p11), %s8184_s2, 16, %s5791_s30, [#allocation7]  }
  0x40   : > { %s5529_s7 = scalar_lea.hbm %s8185_s3, 9216 }
  0x41   : > { %p5530_p9 = scmp.ne.s32.totalorder %s8185_s3, %s5529_s7  ;;  %p5536_p1 = scmp.lt.u32.totalorder %s5529_s7, %s8185_s3 }
  0x43   : > { %p5532_p12 = pnand %p5530_p9, %p5803_p13 }
  0x45   : > { %p5533_p2 = pneg %p5532_p12 }
  0x47   : > { %p5538_p4 = pnand %p5536_p1, %p5533_p2 }
  0x49   : > { %5541 = shalt.err (!%p5538_p4)
}
  0x4a   : > { %s5542_s30 = scalar_lea.vmem %s5793_s8, 9216  ;;  %p5550_p3 = scmp.lt.s32.totalorder %s5793_s8, %s5793_s8 }
  0x4b   : > { %p5543_p6 = scmp.ne.s32.totalorder %s5793_s8, %s5542_s30  ;;  %p5551_p5 = scmp.lt.s32.totalorder %s5542_s30, %s5542_s30 }
  0x4d   : > { %p5545_p8 = pnand %p5543_p6, %p5803_p13  ;;  %p5552_p7 = por %p5551_p5, %p5550_p3 }
  0x4f   : > { %p5546_p0 = pneg %p5545_p8 }
  0x51   : > { %p5553_p10 = pnand %p5552_p7, %p5546_p0 }
  0x53   : > { %5556 = shalt.err (!%p5553_p10)
}
  0x54   : > { %s5698_s13 = smov 64   ;;  %s5699_s14 = smov 4  }
  0x55   : > { %5319 = dma.hbm_to_vmem [thread:$0]  (!%p5787_p11), %s8185_s3, 9216, %s5793_s8, [#allocation10], %s5698_s13, %s5698_s13, %s5699_s14  }
  0x56   : > { %s5870_s16 = sadd.s32 1, %s5693_s21   ;;  %s34_s23 = sadd.s32 1, %s5689_s20 }
  0x57   : > { %s31_s17 = ssub.s32 %s5693_s21, %s5870_s16  ;;  %p41_p9 = scmp.ne.s32.totalorder %s5689_s20, %s5685_s19 }
  0x58   : > { %p32_p13 = scmp.eq.s32.totalorder %s31_s17, 0  ;;  %p42_p12 = scmp.eq.s32.totalorder %s5693_s21, 0 }
  0x59   : > { %p5334_p2 = scmp.lt.s32.totalorder %s5693_s21, 2  ;;  %p8333_p4 = scmp.eq.s32.totalorder %s5759_s22, 1 }
  0x5a   : > { %s5880_s27 = scalar_select %p32_p13, %s5689_s20, %s34_s23  }
  0x5b   : > { %p43_p1 = por %p42_p12, %p41_p9  ;;  %p5884_p6 = por %p8333_p4, %p41_p9 }
  0x5c   : > { %s221_s29 = sand.u32 1, %s5689_s20   ;;  %s4868_s7 = sshll.u32 %s5693_s21, 11 }
  0x5d   : > { %s4745_s8 = sshll.u32 %s221_s29, 7  ;;  %s5893_s11 = scalar_lea.hbm %s8182_s0, %s4868_s7 }
  0x5e   : > { %s225_s12 = scalar_lea.vmem [#allocation3], %s4745_s8  ;;  %p5895_p11 = pnand %p5334_p2, %p43_p1 }
  0x5f   : > { %s232_s30 = sshll.u32 %s225_s12, 4  ;;  %s5901_s28 = scalar_lea.sflag [#allocation4], %s221_s29  ;;  %s5899_s30 = int_to_ptr.vmem [resolvable:$true] %s232_s30 }
  0x60   : > { %s5557_s17 = scalar_lea.hbm %s5893_s11, 2048  ;;  %p5559_p0 = pneg %p5895_p11 }
  0x61   : > { %p5558_p8 = scmp.ne.s32.totalorder %s5893_s11, %s5557_s17  ;;  %s5562_s8 = scalar_lea.hbm %s8182_s0, 4096 }
  0x62   : > { %p5563_p7 = scmp.lt.u32.totalorder %s5893_s11, %s8182_s0  ;;  %p5564_p10 = scmp.lt.u32.totalorder %s5562_s8, %s5557_s17 }
  0x63   : > { %p5560_p3 = pnand %p5559_p0, %p5558_p8  ;;  %p5566_p9 = scmp.lt.u32.totalorder %s5557_s17, %s5893_s11 }
  0x64   : > { %p5565_p13 = por %p5564_p10, %p5563_p7 }
  0x65   : > { %p5561_p5 = pneg %p5560_p3 }
  0x66   : > { %p5567_p12 = por %p5566_p9, %p5565_p13 }
  0x68   : > { %p5568_p2 = pnand %p5567_p12, %p5561_p5 }
  0x6a   : > { %5571 = shalt.err (!%p5568_p2)
}
  0x6b   : > { %s5572_s29 = scalar_lea.vmem %s5899_s30, 2048  ;;  %s5700_s12 = smov [#allocation3]  }
  0x6c   : > { %p5573_p1 = scmp.ne.s32.totalorder %s5899_s30, %s5572_s29  ;;  %s5577_s23 = sshll.u32 %s5700_s12, 4  ;;  %s5578_s23 = int_to_ptr.vmem [resolvable:$false] %s5577_s23 }
  0x6d   : > { %s5579_s7 = scalar_lea.vmem %s5578_s23, 4096  ;;  %p5580_p3 = scmp.lt.s32.totalorder %s5899_s30, %s5578_s23 }
  0x6e   : > { %p5575_p4 = pnand %p5573_p1, %p5559_p0  ;;  %p5581_p7 = scmp.lt.s32.totalorder %s5579_s7, %s5572_s29 }
  0x70   : > { %p5576_p8 = pneg %p5575_p4  ;;  %p5582_p10 = por %p5581_p7, %p5580_p3 }
  0x72   : > { %p5583_p13 = pnand %p5582_p10, %p5576_p8 }
  0x74   : > { %5586 = shalt.err (!%p5583_p13)
}
  0x75   : > { %5323 = dma.hbm_to_vmem [thread:$0]  (!%p5895_p11), %s5893_s11, 2048, %s5899_s30, %s5901_s28, %s5698_s13, %s5698_s13, %s5699_s14  }
  0x76   : > { %p8336_p0 = scmp.ne.s32.totalorder %s8330_s26, 0 }
  0x78   : > { %244 = sbr.rel (%p8336_p0) target bundleno = 959 (0x3bf), region = 36 }
  0x7f   : > { %s5935_s17 = sand.u32 1, %s5685_s19   ;;  %p8337_p5 = scmp.ne.s32.totalorder %s8328_s24, 0 }
  0x80   : > { %s4749_s8 = sshll.u32 %s5935_s17, 7  ;;  %s247_s9 = scalar_lea.sflag [#allocation4], %s5935_s17 }
  0x81   : > { %s5941_s15 = scalar_lea.vmem [#allocation3], %s4749_s8 }
  0x82   : > { %5660 = dma.done.wait (%p8337_p5), %s247_s9, 2048  }
  0x83   : > { %5662 = vsyncadd (%p8337_p5), %s247_s9, 4294965248  ;;  %p8338_p11 = scmp.eq.s32.totalorder %s5759_s22, 0 }
  0x85   : > { %5664 = dma.done.wait (%p8338_p11), [#allocation7], 32   ;;  %p8339_p9 = pmov %p8338_p11 }
  0x87   : > { %5666 = vsyncadd (%p8339_p9), [#allocation7], 4294967264  ;;  %p8340_p12 = pmov %p8339_p9 }
  0x88   : > { %p8341_p2 = pmov %p8339_p9 }
  0x89   : > { %5668 = dma.done.wait (%p8340_p12), [#allocation10], 9216  }
  0x8a   : > { %5670 = vsyncadd (%p8341_p2), [#allocation10], 4294958080  ;;  %v8208_v0 = vmov 0   ;;  %v5381_v1 = vld [vmem:[#allocation9] sm:$0xff]   ;;  %v5383_v3 = vld [vmem:[#allocation9 + $0x8] sm:$0xff]   ;;  %v5702_v20 = vmov 0.0|0.0  }
  0x8b   : > { %3259 = vmatprep.subr.bf16.mxu1 %v8208_v0  ;;  %3468 = vmatprep.subr.bf16.mxu0 %v8208_v0  ;;  %v5382_v2 = vld [vmem:[#allocation9 + $0x80] sm:$0xff]   ;;  %v5384_v4 = vld [vmem:[#allocation9 + $0x88] sm:$0xff]   ;;  %v5385_v5 = vld [vmem:[#allocation9 + $0x10] sm:$0xff]   ;;  %v679_v13 = vrot.slane %v8208_v0, 4  ;;  %v682_v14 = vrot.slane %v8208_v0, 5  ;;  %v5974_v21 = vrot.slane %v5702_v20, 5 }
  0x8c   : > { %3260 = vmatpush1.bf16.msra.mxu1 %v5381_v1  ;;  %3469 = vmatpush1.bf16.msra.mxu0 %v5382_v2  ;;  %v5386_v6 = vld [vmem:[#allocation9 + $0x90] sm:$0xff]   ;;  %v5387_v7 = vld [vmem:[#allocation9 + $0x18] sm:$0xff]   ;;  %v5389_v9 = vld [vmem:[#allocation9 + $0x20] sm:$0xff]   ;;  %v1442_v23 = vrot.slane %v8208_v0, 3  ;;  %vm675_vm0 = vsmask.f32 3328 }
  0x8d   : > { %3261 = vmatprep.subr.bf16.mxu1 %v8208_v0  ;;  %3470 = vmatprep.subr.bf16.mxu0 %v8208_v0  ;;  %v5388_v8 = vld [vmem:[#allocation9 + $0x98] sm:$0xff]   ;;  %v5390_v10 = vld [vmem:[#allocation9 + $0xa0] sm:$0xff]   ;;  %v5391_v11 = vld [vmem:[#allocation9 + $0x28] sm:$0xff]   ;;  %v5971_v17 = vor.u32 %v682_v14, %v679_v13  ;;  %8343 = vst [vmem:[#allocation20_spill] sm:$0xff] %v5974_v21  ;;  %v1474_v27 = vshrl.u32 %v5974_v21, 16  ;;  %v1477_v32 = vshll.u32 %v5974_v21, 16 }
  0x8e   : > { %v5392_v12 = vld [vmem:[#allocation9 + $0xa8] sm:$0xff]   ;;  %v5393_v15 = vld [vmem:[#allocation9 + $0x30] sm:$0xff]   ;;  %v5395_v18 = vld [vmem:[#allocation9 + $0x38] sm:$0xff]   ;;  %v6002_v54 = vor.u32 %v1442_v23, %v679_v13  ;;  %vm916_vm1 = vcmask 1042432   ;;  %vm1438_vm2 = vsmask.f32 4352 }
  0x8f   : > { %v5394_v16 = vld [vmem:[#allocation9 + $0xb0] sm:$0xff]   ;;  %8342 = vst [vmem:[#allocation19_spill] sm:$0xff] %v5971_v17  ;;  %v5396_v19 = vld [vmem:[#allocation9 + $0xb8] sm:$0xff]   ;;  %v1457_v22 = vshrl.u32 %v5971_v17, 16  ;;  %v5397_v24 = vld [vmem:[#allocation9 + $0x40] sm:$0xff]   ;;  %v1460_v25 = vshll.u32 %v5971_v17, 16 }
  0x90   : > { %3262 = vmatpush1.bf16.msra.mxu1 %v5383_v3  ;;  %3471 = vmatpush1.bf16.msra.mxu0 %v5384_v4  ;;  %v5398_v26 = vld [vmem:[#allocation9 + $0xc0] sm:$0xff]   ;;  %v5399_v28 = vld [vmem:[#allocation9 + $0x48] sm:$0xff]   ;;  %v5984_v30 = vld [vmem:[#allocation6] ss:$0 sm:$0xff]  ;;  %v1476_v44 = vrot.slane %v1474_v27, 3  ;;  %v1479_v45 = vrot.slane %v1477_v32, 4 }
  0x91   : > { %3263 = vmatprep.subr.bf16.mxu1 %v8208_v0  ;;  %3472 = vmatprep.subr.bf16.mxu0 %v8208_v0  ;;  %v4903_v29 = vld [vmem:[%s5941_s15] sm:$0xff]   ;;  %v1459_v31 = vrot.slane %v1457_v22, 3  ;;  %v1462_v36 = vrot.slane %v1460_v25, 4  ;;  %v5046_v37 = vld [vmem:[%s5941_s15 + $0x8] sm:$0xff]   ;;  %v5047_v43 = vld [vmem:[%s5941_s15 + $0x10] sm:$0xff]   ;;  %v8204_v3 = vmov 0.0  }
  0x92   : > { %v4904_v33 = vunpack.c.l.bf16 %v4903_v29  ;;  %v5987_v34 = vld [vmem:[#allocation8] ss:$0 sm:$0xff]  ;;  %v4905_v35 = vunpack.c.h.bf16 %v4903_v29  ;;  %v5400_v38 = vld [vmem:[#allocation9 + $0xc8] sm:$0xff]   ;;  %v4908_v41 = vunpack.c.l.bf16 %v5046_v37  ;;  %v4909_v42 = vunpack.c.h.bf16 %v5046_v37  ;;  %v6000_v52 = vld [vmem:[%s5941_s15 + $0x18] sm:$0xff]   ;;  %s7894_s24 = scalar_lea.vmem [#allocation11], %s4749_s8  ;;  %s4901_s26 = sshll.u32 %s5759_s22, 11 }
  0x93   : > { %v4912_v46 = vunpack.c.l.bf16 %v5047_v43  ;;  %v4913_v47 = vunpack.c.h.bf16 %v5047_v43  ;;  %v5401_v53 = vld [vmem:[#allocation9 + $0x50] sm:$0xff]   ;;  %v6014_v62 = vor.u32 %v1462_v36, %v1459_v31  ;;  %v6016_v63 = vor.u32 %v1479_v45, %v1476_v44  ;;  %v5404_v13 = vld [vmem:[#allocation9 + $0xd8] sm:$0xff]   ;;  %s4592_s13 = sshll.u32 %s7894_s24, 4  ;;  %s8032_s30 = scalar_lea.hbm %s8186_s4, %s4901_s26  ;;  %s8034_s13 = int_to_ptr.vmem [resolvable:$true] %s4592_s13 }
  0x94   : > { %3264 = vmatpush1.bf16.msra.mxu1 %v5385_v5  ;;  %3473 = vmatpush1.bf16.msra.mxu0 %v5386_v6  ;;  %v424_v39 = vmul.f32 %v4904_v33, %v5984_v30  ;;  %v425_v40 = vmul.f32 %v4905_v35, %v5984_v30  ;;  %v426_v50 = vmul.f32 %v4908_v41, %v5984_v30  ;;  %v5402_v57 = vld [vmem:[#allocation9 + $0xd0] sm:$0xff]   ;;  %v4916_v2 = vunpack.c.l.bf16 %v6000_v52  ;;  %v5406_v35 = vld [vmem:[#allocation9 + $0xe0] sm:$0xff]   ;;  %s4574_s28 = scalar_lea.sflag [#allocation5], %s5935_s17  ;;  %s5587_s10 = scalar_lea.vmem %s8034_s13, 2048 }
  0x95   : > { %3265 = vmatprep.subr.bf16.mxu1 %v8208_v0  ;;  %3474 = vmatprep.subr.bf16.mxu0 %v8208_v0  ;;  %v427_v51 = vmul.f32 %v4909_v42, %v5984_v30  ;;  %v428_v55 = vmul.f32 %v4912_v46, %v5984_v30  ;;  %v429_v56 = vmul.f32 %v4913_v47, %v5984_v30  ;;  %p5588_p1 = scmp.ne.s32.totalorder %s8034_s13, %s5587_s10  ;;  %s5704_s29 = smov [#allocation11]  }
  0x96   : > { %v463_v48 = vadd.f32 %v5987_v34, %v424_v39  ;;  %v464_v49 = vadd.f32 %v5987_v34, %v425_v40  ;;  %v6008_v60 = vadd.f32 %v5987_v34, %v426_v50  ;;  %8344 = vst [vmem:[#allocation21_spill] sm:$0xff] %v6014_v62  ;;  %8345 = vst [vmem:[#allocation22_spill] sm:$0xff] %v6016_v63  ;;  %v5407_v40 = vld [vmem:[#allocation9 + $0x68] sm:$0xff]   ;;  %s5591_s12 = sshll.u32 %s5704_s29, 4  ;;  %s5592_s12 = int_to_ptr.vmem [resolvable:$false] %s5591_s12 }
  0x97   : > { %v6011_v61 = vadd.f32 %v5987_v34, %v427_v51  ;;  %v6019_v1 = vadd.f32 %v5987_v34, %v428_v55  ;;  %p5589_p4 = pnand %p5588_p1, %p5884_p6  ;;  %s5593_s23 = scalar_lea.vmem %s5592_s12, 4096 }
  0x98   : > { %3266 = vmatpush1.bf16.msra.mxu1 %v5387_v7  ;;  %3475 = vmatpush1.bf16.msra.mxu0 %v5388_v8  ;;  %v495_v58 = vmax.f32 %v463_v48, 0.0  ;;  %v496_v59 = vmax.f32 %v464_v49, 0.0  ;;  %v497_v6 = vmax.f32 %v6008_v60, 0.0  ;;  %v5403_v8 = vld [vmem:[#allocation9 + $0x58] sm:$0xff]   ;;  %v5408_v49 = vld [vmem:[#allocation9 + $0xe8] sm:$0xff]   ;;  %p5594_p3 = scmp.lt.s32.totalorder %s8034_s13, %s5592_s12  ;;  %p5595_p7 = scmp.lt.s32.totalorder %s5593_s23, %s5587_s10 }
  0x99   : > { %3267 = vmatprep.subr.bf16.mxu1 %v8208_v0  ;;  %3476 = vmatprep.subr.bf16.mxu0 %v8208_v0  ;;  %v498_v7 = vmax.f32 %v6011_v61, 0.0  ;;  %p5590_p8 = pneg %p5589_p4 }
  0x9a   : > { %v6023_v4 = vpack.c.bf16 %v495_v58, %v8204_v3  ;;  %v6026_v5 = vpack.c.bf16 %v8204_v3, %v496_v59  ;;  %p5596_p10 = por %p5595_p7, %p5594_p3 }
  0x9b   : > { %v6048_v22 = vpack.c.bf16 %v498_v7, %v497_v6 }
  0x9c   : > { %3268 = vmatpush1.bf16.msra.mxu1 %v5389_v9  ;;  %3477 = vmatpush1.bf16.msra.mxu0 %v5390_v10  ;;  %v6030_v9 = vpack.c.bf16 %v496_v59, %v495_v58  ;;  %v499_v10 = vmax.f32 %v6019_v1, 0.0  ;;  %v685_v14 = vshrl.u32 %v6023_v4, 16  ;;  %v918_v20 = vrot.slane %v6023_v4, 5  ;;  %p5597_p13 = pnand %p5596_p10, %p5590_p8 }
  0x9d   : > { %3269 = vmatprep.subr.bf16.mxu1 %v8208_v0  ;;  %3478 = vmatprep.subr.bf16.mxu0 %v8208_v0  ;;  %v703_v39 = vshrl.u32 %v6048_v22, 16  ;;  %v706_v48 = vshll.u32 %v6048_v22, 16 }
  0x9e   : > { %v967_v23 = vshrl.u32 %v6030_v9, 16  ;;  %v687_v25 = vrot.slane %v685_v14, 4  ;;  %v1490_v29 = vrot.slane %v685_v14, 3 }
  0x9f   : > { %v705_v47 = vrot.slane %v703_v39, 4  ;;  %v708_v59 = vrot.slane %v706_v48, 5  ;;  %v1594_v14 = vrot.slane %v703_v39, 3 }
  0xa0   : > { %3270 = vmatpush1.bf16.msra.mxu1 %v5391_v11  ;;  %3479 = vmatpush1.bf16.msra.mxu0 %v5392_v12  ;;  %v6034_v11 = vadd.f32 %v5987_v34, %v429_v56  ;;  %v4917_v12 = vunpack.c.h.bf16 %v6000_v52 }
  0xa1   : > { %3271 = vmatprep.subr.bf16.mxu1 %v8208_v0  ;;  %3480 = vmatprep.subr.bf16.mxu0 %v8208_v0 }
  0xa4   : > { %3272 = vmatpush1.bf16.msra.mxu1 %v5393_v15  ;;  %3481 = vmatpush1.bf16.msra.mxu0 %v5394_v16  ;;  %v688_v15 = vshll.u32 %v6023_v4, 16  ;;  %v694_v16 = vshrl.u32 %v6026_v5, 16 }
  0xa5   : > { %3273 = vmatprep.subr.bf16.mxu1 %v8208_v0  ;;  %3482 = vmatprep.subr.bf16.mxu0 %v8208_v0 }
  0xa6   : > { %v696_v27 = vrot.slane %v694_v16, 4  ;;  %v1491_v31 = vrot.slane %v688_v15, 4  ;;  %v1493_v32 = vrot.slane %v694_v16, 3 }
  0xa8   : > { %3274 = vmatpush1.bf16.msra.mxu1 %v5395_v18  ;;  %3483 = vmatpush1.bf16.msra.mxu0 %v5396_v19  ;;  %v697_v18 = vshll.u32 %v6026_v5, 16  ;;  %v5405_v19 = vld [vmem:[#allocation9 + $0x60] sm:$0xff]   ;;  %v1492_v41 = vor.u32 %v1491_v31, %v1490_v29  ;;  %v969_v29 = vrot.slane %v967_v23, 4 }
  0xa9   : > { %3275 = vmatprep.subr.bf16.mxu1 %v8208_v0  ;;  %3484 = vmatprep.subr.bf16.mxu0 %v8208_v0 }
  0xaa   : > { %v1494_v33 = vrot.slane %v697_v18, 4 }
  0xac   : > { %3276 = vmatpush1.bf16.msra.mxu1 %v5397_v24  ;;  %3485 = vmatpush1.bf16.msra.mxu0 %v5398_v26  ;;  %v970_v24 = vshll.u32 %v6030_v9, 16  ;;  %v690_v26 = vrot.slane %v688_v15, 5  ;;  %v6059_v42 = vor.u32 %v1494_v33, %v1493_v32  ;;  %v1595_v15 = vrot.slane %v706_v48, 4 }
  0xad   : > { %3277 = vmatprep.subr.bf16.mxu1 %v8208_v0  ;;  %3486 = vmatprep.subr.bf16.mxu0 %v8208_v0  ;;  %v6079_v32 = vmul.f32 %v4917_v12, %v5984_v30  ;;  %v920_v12 = vrot.slane %v6026_v5, 5 }
  0xae   : > { %v691_v36 = vor.u32 %v690_v26, %v687_v25  ;;  %v430_v25 = vmul.f32 %v4916_v2, %v5984_v30  ;;  %v5409_v26 = vld [vmem:[#allocation9 + $0x70] sm:$0xff]   ;;  %v972_v31 = vrot.slane %v970_v24, 5  ;;  %v1572_v2 = vrot.slane %v967_v23, 3 }
  0xaf   : > { %v1573_v52 = vrot.slane %v970_v24, 4  ;;  %v921_v24 = vsel %vm916_vm1, %v918_v20, %v920_v12 }
  0xb0   : > { %3278 = vmatpush1.bf16.msra.mxu1 %v5399_v28  ;;  %3487 = vmatpush1.bf16.msra.mxu0 %v5400_v38  ;;  %v699_v28 = vrot.slane %v697_v18, 5  ;;  %v919_v38 = vsel %vm916_vm1, %v5974_v21, %v918_v20  ;;  %v692_v45 = vsel %vm675_vm0, %v5971_v17, %v691_v36  ;;  %v1586_v48 = vshrl.u32 %v921_v24, 16 }
  0xb1   : > { %3279 = vmatprep.subr.bf16.mxu1 %v8208_v0  ;;  %3488 = vmatprep.subr.bf16.mxu0 %v8208_v0  ;;  %v1482_v43 = vshrl.u32 %v919_v38, 16  ;;  %v1485_v44 = vshll.u32 %v919_v38, 16  ;;  %v1465_v50 = vshrl.u32 %v692_v45, 16  ;;  %v1468_v51 = vshll.u32 %v692_v45, 16  ;;  %v5411_v38 = vld [vmem:[#allocation9 + $0x78] sm:$0xff]  }
  0xb2   : > { %v700_v37 = vor.u32 %v699_v28, %v696_v27  ;;  %v5410_v27 = vld [vmem:[#allocation9 + $0xf0] sm:$0xff]   ;;  %v6123_v60 = vor.u32 %v1573_v52, %v1572_v2 }
  0xb3   : > { %v1484_v55 = vrot.slane %v1482_v43, 3  ;;  %v1487_v56 = vrot.slane %v1485_v44, 4  ;;  %v6102_v43 = vpack.c.bf16 %v499_v10, %v8204_v3  ;;  %v6105_v44 = vadd.f32 %v5987_v34, %v430_v25 }
  0xb4   : > { %3280 = vmatpush1.bf16.msra.mxu1 %v5401_v53  ;;  %3489 = vmatpush1.bf16.msra.mxu0 %v5402_v57  ;;  %v701_v46 = vsel %vm675_vm0, %v691_v36, %v700_v37  ;;  %v1496_v53 = vsel %vm1438_vm2, %v1492_v41, %v6059_v42  ;;  %v500_v36 = vmax.f32 %v6034_v11, 0.0  ;;  %v6095_v41 = vor.u32 %v1595_v15, %v1594_v14  ;;  %v5417_v14 = vld [vmem:[#allocation9 + $0x180] sm:$0xff]  }
  0xb5   : > { %3281 = vmatprep.subr.bf16.mxu1 %v8208_v0  ;;  %3490 = vmatprep.subr.bf16.mxu0 %v8208_v0  ;;  %v1577_v57 = vshrl.u32 %v701_v46, 16  ;;  %v1580_v58 = vshll.u32 %v701_v46, 16  ;;  %v6082_v33 = vor.u32 %v1487_v56, %v1484_v55  ;;  %v6113_v46 = vpack.c.bf16 %v497_v6, %v8204_v3 }
  0xb6   : > { %3500 = vmatprep.mubr.bf16.mxu0 %v1496_v53  ;;  %v712_v4 = vshrl.u32 %v6102_v43, 16  ;;  %v715_v6 = vshll.u32 %v6102_v43, 16  ;;  %v1588_v53 = vrot.slane %v1586_v48, 3  ;;  %v6129_v25 = vrot.slane %v6048_v22, 5  ;;  %v5414_v22 = vld [vmem:[#allocation9 + $0x108] sm:$0xff]  }
  0xb7   : > { %v1579_v16 = vrot.slane %v1577_v57, 3  ;;  %v1582_v18 = vrot.slane %v1580_v58, 4 }
  0xb8   : > { %3282 = vmatpush1.bf16.msra.mxu1 %v5403_v8  ;;  %3491 = vmatpush1.bf16.msra.mxu0 %v5404_v13  ;;  %v1467_v8 = vrot.slane %v1465_v50, 3  ;;  %v1470_v13 = vrot.slane %v1468_v51, 4  ;;  %v975_v50 = vshrl.u32 %v6113_v46, 16  ;;  %v5413_v51 = vld [vmem:[#allocation9 + $0x100] sm:$0xff]   ;;  %v714_v57 = vrot.slane %v712_v4, 4  ;;  %8347 = vst [vmem:[#allocation24_spill] sm:$0xff] %v6129_v25 }
  0xb9   : > { %3283 = vmatprep.subr.bf16.mxu1 %v8208_v0  ;;  %3492 = vmatprep.subr.bf16.mxu0 %v8208_v0 }
  0xba   : > { %v1471_v28 = vor.u32 %v1470_v13, %v1467_v8  ;;  %v1657_v8 = vrot.slane %v712_v4, 3  ;;  %v1658_v13 = vrot.slane %v715_v6, 4  ;;  %v977_v15 = vrot.slane %v975_v50, 4 }
  0xbc   : > { %3284 = vmatpush1.bf16.msra.mxu1 %v5405_v19  ;;  %3493 = vmatpush1.bf16.msra.mxu0 %v5406_v35  ;;  %v6069_v19 = vor.u32 %v708_v59, %v705_v47  ;;  %v6084_v35 = vor.u32 %v1582_v18, %v1579_v16  ;;  %v1472_v39 = vsel %vm1438_vm2, %v6014_v62, %v1471_v28  ;;  %v717_v59 = vrot.slane %v715_v6, 5 }
  0xbd   : > { %3285 = vmatprep.subr.bf16.mxu1 %v8208_v0  ;;  %3494 = vmatprep.subr.bf16.mxu0 %v8208_v0  ;;  %v1489_v47 = vsel %vm1438_vm2, %v6016_v63, %v6082_v33  ;;  %v978_v16 = vshll.u32 %v6113_v46, 16  ;;  %v1531_v18 = vrot.slane %v975_v50, 3 }
  0xbe   : > { %8346 = vst [vmem:[#allocation23_spill] sm:$0xff] %v6069_v19  ;;  %3291 = vmatprep.mubr.bf16.mxu1 %v1472_v39  ;;  %v710_v23 = vsel %vm675_vm0, %v700_v37, %v6069_v19  ;;  %v5412_v37 = vld [vmem:[#allocation9 + $0xf8] sm:$0xff]   ;;  %v1584_v20 = vsel %vm1438_vm2, %v1471_v28, %v6084_v35  ;;  %v718_v28 = vor.u32 %v717_v59, %v714_v57 }
  0xbf   : > { %v1640_v5 = vshrl.u32 %v710_v23, 16  ;;  %v1643_v45 = vshll.u32 %v710_v23, 16  ;;  %v980_v2 = vrot.slane %v978_v16, 5 }
  0xc0   : > { %3286 = vmatpush1.bf16.msra.mxu1 %v5407_v40  ;;  %3495 = vmatpush1.bf16.msra.mxu0 %v5408_v49  ;;  %v6090_v40 = vor.u32 %v972_v31, %v969_v29  ;;  %v1589_v49 = vshll.u32 %v921_v24, 16  ;;  %v6142_v29 = vpack.c.bf16 %v8204_v3, %v500_v36  ;;  %v719_v24 = vsel %vm675_vm0, %v6069_v19, %v718_v28 }
  0xc1   : > { %3287 = vmatprep.subr.bf16.mxu1 %v8208_v0  ;;  %3496 = vmatprep.subr.bf16.mxu0 %v8208_v0  ;;  %v1642_v55 = vrot.slane %v1640_v5, 3  ;;  %v1645_v56 = vrot.slane %v1643_v45, 4  ;;  %v6153_v5 = vor.u32 %v1658_v13, %v1657_v8  ;;  %v6155_v45 = vor.u32 %v980_v2, %v977_v15  ;;  %v5415_v13 = vld [vmem:[#allocation9 + $0x110] sm:$0xff]   ;;  %v5423_v2 = vld [vmem:[#allocation9 + $0x198] sm:$0xff]  }
  0xc2   : > { %v1591_v58 = vrot.slane %v1589_v49, 4  ;;  %v1550_v48 = vshll.u32 %v719_v24, 16  ;;  %v721_v49 = vshrl.u32 %v6142_v29, 16  ;;  %v724_v4 = vshll.u32 %v6142_v29, 16 }
  0xc3   : > { %v6145_v31 = vor.u32 %v1645_v56, %v1642_v55  ;;  %v1660_v61 = vsel %vm1438_vm2, %v6095_v41, %v6153_v5 }
  0xc4   : > { %3288 = vmatpush1.bf16.msra.mxu1 %v5409_v26  ;;  %3497 = vmatpush1.bf16.msra.mxu0 %v5410_v27  ;;  %v1597_v26 = vsel %vm1438_vm2, %v6059_v42, %v6095_v41  ;;  %v1575_v27 = vsel %vm1438_vm2, %v6002_v54, %v6123_v60  ;;  %v923_v42 = vsel %vm916_vm1, %v920_v12, %v6129_v25  ;;  %v723_v56 = vrot.slane %v721_v49, 4 }
  0xc5   : > { %3289 = vmatprep.subr.bf16.mxu1 %v8208_v0  ;;  %3498 = vmatprep.subr.bf16.mxu0 %v8208_v0  ;;  %v6149_v39 = vor.u32 %v1591_v58, %v1588_v53  ;;  %v1649_v52 = vshrl.u32 %v923_v42, 16  ;;  %v1652_v23 = vshll.u32 %v923_v42, 16  ;;  %v6165_v53 = vpack.c.bf16 %v8204_v3, %v498_v7 }
  0xc6   : > { %v1647_v55 = vsel %vm1438_vm2, %v6084_v35, %v6145_v31  ;;  %v726_v57 = vrot.slane %v724_v4, 5  ;;  %v1703_v58 = vrot.slane %v721_v49, 3  ;;  %v1704_v7 = vrot.slane %v724_v4, 4  ;;  %v6215_v4 = vld [vmem:[%s5941_s15 + $0x20] sm:$0xff]  }
  0xc7   : > { %v1651_v12 = vrot.slane %v1649_v52, 3  ;;  %v1593_v59 = vsel %vm1438_vm2, %v6082_v33, %v6149_v39  ;;  %v8200_v8 = vshrl.u32 %v6165_v53, 16  ;;  %v8199_v15 = vshll.u32 %v6165_v53, 16 }
  0xc8   : > { %3290 = vmatpush1.bf16.msra.mxu1 %v5411_v38  ;;  %3499 = vmatpush1.bf16.msra.mxu0 %v5412_v37  ;;  %v1532_v38 = vrot.slane %v978_v16, 4  ;;  %v1547_v37 = vshrl.u32 %v719_v24, 16  ;;  %v924_v35 = vrot.slane %v6102_v43, 5  ;;  %v6181_v16 = vor.u32 %v726_v57, %v723_v56 }
  0xc9   : > { %5172 = vmatprep.subr.bf16.mxu1 %v8208_v0  ;;  %3677 = vmatprep.subr.bf16.mxu0 %v8208_v0  ;;  %v6185_v33 = vadd.f32 %v5987_v34, %v6079_v32  ;;  %v6195_v43 = vor.u32 %v1704_v7, %v1703_v58  ;;  %v6212_v49 = vpack.c.bf16 %v500_v36, %v499_v10 }
  0xca   : > { %v6160_v6 = vor.u32 %v1532_v38, %v1531_v18  ;;  %v1549_v50 = vrot.slane %v1547_v37, 3  ;;  %v925_v32 = vsel %vm916_vm1, %v6129_v25, %v924_v35  ;;  %v501_v37 = vmax.f32 %v6105_v44, 0.0 }
  0xcb   : > { %3292 = vmatmul.mubr.bf16.vlgmr.msra.gmra.mrb[0].mxu1 %v6002_v54  ;;  %3501 = vmatmul.mubr.bf16.vlgmr.msra.gmra.mrb[0].mxu0 %v1489_v47  ;;  %v1654_v47 = vrot.slane %v1652_v23, 4  ;;  %v1564_v38 = vshrl.u32 %v925_v32, 16  ;;  %v1567_v42 = vshll.u32 %v925_v32, 16  ;;  %v1535_v23 = vrot.slane %v8199_v15, 4 }
  0xcc   : > { %3299 = vmatprep.mubr.bf16.mxu1 %v1584_v20  ;;  %3678 = vmatpush1.bf16.msra.mxu0 %v5413_v51  ;;  %v5419_v20 = vld [vmem:[#allocation9 + $0x188] sm:$0xff]   ;;  %v1552_v51 = vrot.slane %v1550_v48, 4  ;;  %v1638_v41 = vsel %vm1438_vm2, %v6123_v60, %v6160_v6  ;;  %v1534_v60 = vrot.slane %v8200_v8, 3  ;;  %v502_v48 = vmax.f32 %v6185_v33, 0.0 }
  0xcd   : > { %3508 = vmatprep.mubr.bf16.mxu0 %v1597_v26  ;;  %3679 = vmatprep.subr.bf16.mxu0 %v8208_v0  ;;  %v6190_v18 = vor.u32 %v1654_v47, %v1651_v12  ;;  %v1569_v12 = vrot.slane %v1567_v42, 4  ;;  %v1706_v10 = vsel %vm1438_vm2, %v6153_v5, %v6195_v43  ;;  %v8196_v11 = vshrl.u32 %v6212_v49, 16 }
  0xce   : > { %5188 = vmatpush1.bf16.msra.mxu1 %v5417_v14  ;;  %v5421_v14 = vld [vmem:[#allocation9 + $0x190] sm:$0xff]   ;;  %v6192_v26 = vor.u32 %v1552_v51, %v1549_v50  ;;  %v6223_v50 = vpack.c.bf16 %v502_v48, %v501_v37  ;;  %v926_v51 = vrot.slane %v6142_v29, 5  ;;  %v8195_v36 = vshll.u32 %v6212_v49, 16 }
  0xcf   : > { %5173 = vmatprep.subr.bf16.mxu1 %v8208_v0  ;;  %v1656_v44 = vsel %vm1438_vm2, %v6149_v39, %v6190_v18  ;;  %v5418_v39 = vld [vmem:[#allocation9 + $0x120] sm:$0xff]   ;;  %v6241_v5 = vor.u32 %v1535_v23, %v1534_v60  ;;  %v1616_v32 = vrot.slane %v8196_v11, 3  ;;  %v6256_v42 = vpack.c.bf16 %v501_v37, %v8204_v3 }
  0xd0   : > { %3680 = vmatpush1.bf16.msra.mxu0 %v5414_v22  ;;  %8348 = vst [vmem:[#allocation25_spill] sm:$0xff] %v6192_v26  ;;  %v5416_v22 = vld [vmem:[#allocation9 + $0x118] sm:$0xff]   ;;  %v1701_v1 = vsel %vm1438_vm2, %v6145_v31, %v6192_v26  ;;  %v730_v56 = vshrl.u32 %v6223_v50, 16  ;;  %v733_v57 = vshll.u32 %v6223_v50, 16  ;;  %v927_v58 = vsel %vm916_vm1, %v924_v35, %v926_v51  ;;  %v5420_v35 = vld [vmem:[#allocation9 + $0x128] sm:$0xff]  }
  0xd1   : > { %3681 = vmatprep.subr.bf16.mxu0 %v8208_v0  ;;  %v4920_v31 = vunpack.c.l.bf16 %v6215_v4  ;;  %v6262_v23 = vsel %vm1438_vm2, %v6160_v6, %v6241_v5  ;;  %v8192_v6 = vshll.u32 %v6256_v42, 16 }
  0xd2   : > { %5189 = vmatpush1.bf16.msra.mxu1 %v5419_v20  ;;  %v732_v7 = vrot.slane %v730_v56, 4  ;;  %8350 = vst [vmem:[#allocation27_spill] sm:$0xff] %v6262_v23 }
  0xd3   : > { %3300 = vmatmul.mubr.bf16.gmra.mrb[4].mxu1 %v1575_v27  ;;  %5174 = vmatprep.subr.bf16.mxu1 %v8208_v0  ;;  %v728_v27 = vsel %vm675_vm0, %v718_v28, %v6181_v16  ;;  %v1566_v28 = vrot.slane %v1564_v38, 3  ;;  %v432_v38 = vmul.f32 %v4920_v31, %v5984_v30 }
  0xd4   : > { %3509 = vmatmul.mubr.bf16.gmra.mrb[4].mxu0 %v1593_v59  ;;  %3306 = vmatprep.mubr.bf16.mxu1 %v1647_v55  ;;  %v1621_v52 = vshrl.u32 %v728_v27, 16  ;;  %v1624_v24 = vshll.u32 %v728_v27, 16  ;;  %v5425_v55 = vld [vmem:[#allocation9 + $0x1a0] sm:$0xff]   ;;  %v1633_v27 = vshll.u32 %v927_v58, 16 }
  0xd5   : > { %3515 = vmatprep.mubr.bf16.mxu0 %v1660_v61  ;;  %3682 = vmatpush1.bf16.msra.mxu0 %v5415_v13  ;;  %v6243_v59 = vor.u32 %v1569_v12, %v1566_v28  ;;  %v735_v13 = vrot.slane %v733_v57, 5  ;;  %v928_v12 = vrot.slane %v6223_v50, 5 }
  0xd6   : > { %3683 = vmatprep.subr.bf16.mxu0 %v8208_v0  ;;  %5190 = vmatpush1.bf16.msra.mxu1 %v5421_v14  ;;  %v1623_v47 = vrot.slane %v1621_v52, 3  ;;  %v1626_v20 = vrot.slane %v1624_v24, 4  ;;  %v1747_v14 = vrot.slane %v730_v56, 3  ;;  %v5427_v52 = vld [vmem:[#allocation9 + $0x1a8] sm:$0xff]  }
  0xd7   : > { %5175 = vmatprep.subr.bf16.mxu1 %v8208_v0  ;;  %8349 = vst [vmem:[#allocation26_spill] sm:$0xff] %v6243_v59  ;;  %v6252_v60 = vor.u32 %v735_v13, %v732_v7  ;;  %v1680_v13 = vrot.slane %v8192_v6, 4 }
  0xd8   : > { %v6246_v61 = vor.u32 %v1626_v20, %v1623_v47  ;;  %v5422_v47 = vld [vmem:[#allocation9 + $0x130] sm:$0xff]   ;;  %v8194_v20 = vshrl.u32 %v6256_v42, 16 }
  0xd9   : > { %3684 = vmatpush1.bf16.msra.mxu0 %v5416_v22  ;;  %v1748_v22 = vrot.slane %v733_v57, 4  ;;  %v737_v37 = vsel %vm675_vm0, %v6181_v16, %v6252_v60 }
  0xda   : > { %3685 = vmatprep.subr.bf16.mxu0 %v8208_v0  ;;  %5191 = vmatpush1.bf16.msra.mxu1 %v5423_v2  ;;  %v1617_v2 = vrot.slane %v8195_v36, 4  ;;  %v1687_v56 = vshll.u32 %v737_v37, 16  ;;  %v1679_v7 = vrot.slane %v8194_v20, 3  ;;  %v5430_v20 = vld [vmem:[#allocation9 + $0x150] sm:$0xff]  }
  0xdb   : > { %3307 = vmatmul.mubr.bf16.gmra.mrb[8].mxu1 %v1638_v41  ;;  %5176 = vmatprep.subr.bf16.mxu1 %v8208_v0  ;;  %v1630_v41 = vshrl.u32 %v927_v58, 16  ;;  %v6264_v24 = vor.u32 %v1748_v22, %v1747_v14  ;;  %v5429_v58 = vld [vmem:[#allocation9 + $0x1b0] sm:$0xff]   ;;  %v4921_v22 = vunpack.c.h.bf16 %v6215_v4 }
  0xdc   : > { %3516 = vmatmul.mubr.bf16.gmra.mrb[8].mxu0 %v1656_v44  ;;  %3313 = vmatprep.mubr.bf16.mxu1 %v1701_v1  ;;  %v6272_v44 = vadd.f32 %v5987_v34, %v432_v38  ;;  %v1702_v1 = vsel %vm1438_vm2, %v6190_v18, %v6243_v59  ;;  %v1618_v18 = vor.u32 %v1617_v2, %v1616_v32  ;;  %v5424_v38 = vld [vmem:[#allocation9 + $0x138] sm:$0xff]  }
  0xdd   : > { %3522 = vmatprep.mubr.bf16.mxu0 %v1706_v10  ;;  %3686 = vmatpush1.bf16.msra.mxu0 %v5418_v39  ;;  %v1632_v28 = vrot.slane %v1630_v41, 3  ;;  %v6282_v10 = vsel %vm1438_vm2, %v6192_v26, %v6246_v61  ;;  %v1635_v39 = vrot.slane %v1633_v27, 4  ;;  %v1750_v16 = vsel %vm1438_vm2, %v6195_v43, %v6264_v24 }
  0xde   : > { %3687 = vmatprep.subr.bf16.mxu0 %v8208_v0  ;;  %5192 = vmatpush1.bf16.msra.mxu1 %v5425_v55  ;;  %8351 = vst [vmem:[#allocation28_spill] sm:$0xff] %v6282_v10  ;;  %v1684_v55 = vshrl.u32 %v737_v37, 16  ;;  %v503_v57 = vmax.f32 %v6272_v44, 0.0  ;;  %v1689_v43 = vrot.slane %v1687_v56, 4  ;;  %v6312_v2 = vpack.c.bf16 %v8204_v3, %v502_v48 }
  0xdf   : > { %5177 = vmatprep.subr.bf16.mxu1 %v8208_v0  ;;  %v6307_v32 = vor.u32 %v1635_v39, %v1632_v28  ;;  %v433_v4 = vmul.f32 %v4921_v22, %v5984_v30  ;;  %v5431_v28 = vld [vmem:[#allocation9 + $0x1b8] sm:$0xff]   ;;  %v6322_v33 = vsel %vm1438_vm2, %v6241_v5, %v1618_v18  ;;  %v6324_v48 = vor.u32 %v1680_v13, %v1679_v7  ;;  %v5050_v7 = vld [vmem:[%s5941_s15 + $0x28] sm:$0xff]  }
  0xe0   : > { %v1686_v31 = vrot.slane %v1684_v55, 3  ;;  %v6299_v14 = vpack.c.bf16 %v503_v57, %v8204_v3  ;;  %8352 = vst [vmem:[#allocation29_spill] sm:$0xff] %v6322_v33  ;;  %v5426_v13 = vld [vmem:[#allocation9 + $0x140] sm:$0xff]  }
  0xe1   : > { %3688 = vmatpush1.bf16.msra.mxu0 %v5420_v35  ;;  %v929_v35 = vsel %vm916_vm1, %v926_v51, %v928_v12  ;;  %v6331_v56 = vsel %vm1438_vm2, %v6243_v59, %v6307_v32 }
  0xe2   : > { %3689 = vmatprep.subr.bf16.mxu0 %v8208_v0  ;;  %5193 = vmatpush1.bf16.msra.mxu1 %v5427_v52  ;;  %v1693_v41 = vshrl.u32 %v929_v35, 16  ;;  %v1696_v27 = vshll.u32 %v929_v35, 16  ;;  %v6314_v52 = vor.u32 %v1689_v43, %v1686_v31  ;;  %v739_v29 = vshrl.u32 %v6299_v14, 16  ;;  %8353 = vst [vmem:[#allocation30_spill] sm:$0xff] %v6331_v56 }
  0xe3   : > { %3314 = vmatmul.mubr.bf16.gmra.mrb[12].mxu1 %v6262_v23  ;;  %5178 = vmatprep.subr.bf16.mxu1 %v8208_v0  ;;  %v742_v51 = vshll.u32 %v6299_v14, 16  ;;  %v472_v31 = vadd.f32 %v5987_v34, %v433_v4  ;;  %v8193_v35 = vshll.u32 %v6312_v2, 16  ;;  %v930_v22 = vrot.slane %v6299_v14, 5 }
  0xe4   : > { %3523 = vmatmul.mubr.bf16.gmra.mrb[12].mxu0 %v1702_v1  ;;  %3321 = vmatprep.mubr.bf16.mxu1 %v6282_v10  ;;  %v1698_v37 = vrot.slane %v1696_v27, 4  ;;  %v741_v1 = vrot.slane %v739_v29, 4  ;;  %v1791_v55 = vrot.slane %v739_v29, 3  ;;  %v6336_v5 = vsel %vm1438_vm2, %v6246_v61, %v6314_v52  ;;  %v5433_v29 = vld [vmem:[#allocation9 + $0x1c0] sm:$0xff]  }
  0xe5   : > { %3530 = vmatprep.mubr.bf16.mxu0 %v1750_v16  ;;  %3690 = vmatpush1.bf16.msra.mxu0 %v5422_v47  ;;  %v1695_v47 = vrot.slane %v1693_v41, 3  ;;  %v744_v39 = vrot.slane %v742_v51, 5  ;;  %v8191_v16 = vshrl.u32 %v6312_v2, 16  ;;  %8354 = vst [vmem:[#allocation31_spill] sm:$0xff] %v6336_v5  ;;  %v6350_v61 = vsel %vm1438_vm2, %v1618_v18, %v6324_v48 }
  0xe6   : > { %3691 = vmatprep.subr.bf16.mxu0 %v8208_v0  ;;  %5194 = vmatpush1.bf16.msra.mxu1 %v5429_v58  ;;  %v1792_v58 = vrot.slane %v742_v51, 4  ;;  %8355 = vst [vmem:[#allocation32_spill] sm:$0xff] %v6350_v61  ;;  %v931_v18 = vsel %vm916_vm1, %v928_v12, %v930_v22 }
  0xe7   : > { %5179 = vmatprep.subr.bf16.mxu1 %v8208_v0  ;;  %v6340_v43 = vor.u32 %v744_v39, %v741_v1  ;;  %v6352_v27 = vor.u32 %v1698_v37, %v1695_v47  ;;  %v1725_v4 = vrot.slane %v8191_v16, 3  ;;  %v1742_v50 = vshll.u32 %v931_v18, 16 }
  0xe8   : > { %v6346_v41 = vor.u32 %v1792_v58, %v1791_v55  ;;  %v1726_v55 = vrot.slane %v8193_v35, 4  ;;  %v1739_v58 = vshrl.u32 %v931_v18, 16 }
  0xe9   : > { %3692 = vmatpush1.bf16.msra.mxu0 %v5424_v38  ;;  %v504_v38 = vmax.f32 %v472_v31, 0.0  ;;  %v746_v51 = vsel %vm675_vm0, %v6252_v60, %v6340_v43  ;;  %v5428_v60 = vld [vmem:[#allocation9 + $0x148] sm:$0xff]   ;;  %v4925_v31 = vunpack.c.h.bf16 %v5050_v7  ;;  %v1744_v6 = vrot.slane %v1742_v50, 4 }
  0xea   : > { %3693 = vmatprep.subr.bf16.mxu0 %v8208_v0  ;;  %5195 = vmatpush1.bf16.msra.mxu1 %v5431_v28  ;;  %v4924_v28 = vunpack.c.l.bf16 %v5050_v7  ;;  %v1794_v47 = vsel %vm1438_vm2, %v6264_v24, %v6346_v41  ;;  %v1730_v37 = vshrl.u32 %v746_v51, 16  ;;  %v1733_v1 = vshll.u32 %v746_v51, 16  ;;  %v6429_v50 = vld [vmem:[%s5941_s15 + $0x30] sm:$0xff]  }
  0xeb   : > { %3322 = vmatmul.mubr.bf16.gmra.mrb[16].mxu1 %v6322_v33  ;;  %5180 = vmatprep.subr.bf16.mxu1 %v8208_v0  ;;  %v6371_v39 = vpack.c.bf16 %v8204_v3, %v504_v38  ;;  %v435_v11 = vmul.f32 %v4925_v31, %v5984_v30 }
  0xec   : > { %3531 = vmatmul.mubr.bf16.gmra.mrb[16].mxu0 %v6331_v56  ;;  %3328 = vmatprep.mubr.bf16.mxu1 %v6336_v5  ;;  %v1732_v12 = vrot.slane %v1730_v37, 3  ;;  %v1735_v16 = vrot.slane %v1733_v1, 4  ;;  %v434_v35 = vmul.f32 %v4924_v28, %v5984_v30 }
  0xed   : > { %3694 = vmatpush1.bf16.msra.mxu0 %v5426_v13  ;;  %3537 = vmatprep.mubr.bf16.mxu0 %v1794_v47  ;;  %v748_v24 = vshrl.u32 %v6371_v39, 16  ;;  %v751_v51 = vshll.u32 %v6371_v39, 16  ;;  %v6381_v13 = vsel %vm1438_vm2, %v6307_v32, %v6352_v27  ;;  %v1741_v47 = vrot.slane %v1739_v58, 3 }
  0xee   : > { %3695 = vmatprep.subr.bf16.mxu0 %v8208_v0  ;;  %5196 = vmatpush1.bf16.msra.mxu1 %v5433_v29  ;;  %8356 = vst [vmem:[#allocation33_spill] sm:$0xff] %v6381_v13  ;;  %v6385_v7 = vor.u32 %v1735_v16, %v1732_v12  ;;  %v6387_v29 = vor.u32 %v1726_v55, %v1725_v4  ;;  %v932_v4 = vrot.slane %v6371_v39, 5 }
  0xef   : > { %5181 = vmatprep.subr.bf16.mxu1 %v8208_v0  ;;  %v750_v18 = vrot.slane %v748_v24, 4  ;;  %v753_v37 = vrot.slane %v751_v51, 5  ;;  %v1835_v1 = vrot.slane %v748_v24, 3  ;;  %v1836_v36 = vrot.slane %v751_v51, 4  ;;  %v5435_v51 = vld [vmem:[#allocation9 + $0x1c8] sm:$0xff]  }
  0xf0   : > { %v473_v32 = vadd.f32 %v5987_v34, %v434_v35  ;;  %v6396_v16 = vsel %vm1438_vm2, %v6314_v52, %v6385_v7  ;;  %v6409_v35 = vor.u32 %v1744_v6, %v1741_v47  ;;  %v6412_v52 = vadd.f32 %v5987_v34, %v435_v11  ;;  %v5432_v6 = vld [vmem:[#allocation9 + $0x158] sm:$0xff]  }
  0xf1   : > { %3696 = vmatpush1.bf16.msra.mxu0 %v5428_v60  ;;  %8357 = vst [vmem:[#allocation34_spill] sm:$0xff] %v6396_v16  ;;  %v6398_v28 = vor.u32 %v753_v37, %v750_v18  ;;  %v6402_v60 = vpack.c.bf16 %v504_v38, %v503_v57  ;;  %v6407_v30 = vor.u32 %v1836_v36, %v1835_v1  ;;  %v4928_v18 = vunpack.c.l.bf16 %v6429_v50  ;;  %v5434_v1 = vld [vmem:[#allocation9 + $0x160] sm:$0xff]  }
  0xf2   : > { %3697 = vmatprep.subr.bf16.mxu0 %v8208_v0  ;;  %v505_v55 = vmax.f32 %v473_v32, 0.0  ;;  %v933_v36 = vsel %vm916_vm1, %v930_v22, %v932_v4  ;;  %v6435_v14 = vsel %vm1438_vm2, %v6324_v48, %v6387_v29  ;;  %v6448_v47 = vsel %vm1438_vm2, %v6352_v27, %v6409_v35  ;;  %5197 = vmatpush1.bf16.msra.mxu1 %v5435_v51 }
  0xf3   : > { %3329 = vmatmul.mubr.bf16.gmra.mrb[20].mxu1 %v6350_v61  ;;  %v755_v44 = vsel %vm675_vm0, %v6340_v43, %v6398_v28  ;;  %v8198_v57 = vshrl.u32 %v6402_v60, 16  ;;  %v8197_v38 = vshll.u32 %v6402_v60, 16  ;;  %v1838_v34 = vsel %vm1438_vm2, %v6346_v41, %v6407_v30  ;;  %8358 = vst [vmem:[#allocation35_spill] sm:$0xff] %v6435_v14  ;;  %8359 = vst [vmem:[#allocation36_spill] sm:$0xff] %v6448_v47  ;;  %v5441_v61 = vld [vmem:[#allocation9 + $0x178] sm:$0xff]  }
  0xf4   : > { %3538 = vmatmul.mubr.bf16.gmra.mrb[20].mxu0 %v6381_v13  ;;  %3335 = vmatprep.mubr.bf16.mxu1 %v6396_v16  ;;  %v1774_v11 = vshrl.u32 %v755_v44, 16  ;;  %v1777_v58 = vshll.u32 %v755_v44, 16  ;;  %v8206_v43 = vmax.f32 %v6412_v52, 0.0  ;;  %v1783_v24 = vshrl.u32 %v933_v36, 16 }
  0xf5   : > { %3698 = vmatpush1.bf16.msra.mxu0 %v5430_v20  ;;  %3544 = vmatprep.mubr.bf16.mxu0 %v1838_v34  ;;  %v1769_v20 = vrot.slane %v8198_v57, 3  ;;  %v1770_v22 = vrot.slane %v8197_v38, 4  ;;  %v1786_v48 = vshll.u32 %v933_v36, 16  ;;  %v6452_v37 = vpack.c.bf16 %v505_v55, %v8204_v3  ;;  %v5436_v38 = vld [vmem:[#allocation9 + $0x168] sm:$0xff]  }
  0xf6   : > { %3699 = vmatprep.subr.bf16.mxu0 %v8208_v0  ;;  %v1776_v41 = vrot.slane %v1774_v11, 3  ;;  %v1779_v31 = vrot.slane %v1777_v58, 4  ;;  %v6443_v12 = vpack.c.bf16 %v8206_v43, %v505_v55  ;;  %v1785_v11 = vrot.slane %v1783_v24, 3  ;;  %v6460_v58 = vld [vmem:[#allocation6] ss:$0 sm:$0xff]  ;;  %5182 = vmatprep.subr.bf16.mxu1 %v8208_v0 }
  0xf7   : > { %v1771_v27 = vor.u32 %v1770_v22, %v1769_v20  ;;  %v1788_v36 = vrot.slane %v1786_v48, 4  ;;  %v436_v55 = vmul.f32 %v6460_v58, %v4928_v18  ;;  %v6472_v48 = vld [vmem:[#allocation8] ss:$0 sm:$0xff]  ;;  %v8201_v15 = vshll.u32 %v6452_v37, 16 }
  0xf8   : > { %v6454_v32 = vor.u32 %v1779_v31, %v1776_v41  ;;  %v757_v44 = vshrl.u32 %v6443_v12, 16  ;;  %v760_v34 = vshll.u32 %v6443_v12, 16  ;;  %v934_v8 = vrot.slane %v6443_v12, 5 }
  0xf9   : > { %3700 = vmatpush1.bf16.msra.mxu0 %v5432_v6  ;;  %v8202_v6 = vshrl.u32 %v6452_v37, 16  ;;  %v1789_v22 = vor.u32 %v1788_v36, %v1785_v11  ;;  %v6475_v18 = vadd.f32 %v6472_v48, %v436_v55  ;;  %v1814_v12 = vrot.slane %v8201_v15, 4 }
  0xfa   : > { %3701 = vmatprep.subr.bf16.mxu0 %v8208_v0  ;;  %v6469_v41 = vsel %vm1438_vm2, %v6385_v7, %v6454_v32  ;;  %v759_v31 = vrot.slane %v757_v44, 4  ;;  %v762_v24 = vrot.slane %v760_v34, 5  ;;  %v1879_v51 = vrot.slane %v757_v44, 3 }
  0xfb   : > { %3336 = vmatmul.mubr.bf16.gmra.mrb[24].mxu1 %v6435_v14  ;;  %8360 = vst [vmem:[#allocation37_spill] sm:$0xff] %v6469_v41  ;;  %v1880_v20 = vrot.slane %v760_v34, 4  ;;  %v1813_v7 = vrot.slane %v8202_v6, 3  ;;  %v6484_v34 = vsel %vm1438_vm2, %v6387_v29, %v1771_v27  ;;  %v8203_v11 = vmax.f32 %v6475_v18, 0.0 }
  0xfc   : > { %3545 = vmatmul.mubr.bf16.gmra.mrb[24].mxu0 %v6448_v47  ;;  %3343 = vmatprep.mubr.bf16.mxu1 %v6469_v41  ;;  %v763_v57 = vor.u32 %v762_v24, %v759_v31  ;;  %8361 = vst [vmem:[#allocation38_spill] sm:$0xff] %v6484_v34  ;;  %v6490_v36 = vsel %vm1438_vm2, %v6409_v35, %v1789_v22 }
  0xfd   : > { %3702 = vmatpush1.bf16.msra.mxu0 %v5434_v1  ;;  %v1881_v44 = vor.u32 %v1880_v20, %v1879_v51  ;;  %v4929_v1 = vunpack.c.h.bf16 %v6429_v50  ;;  %8362 = vst [vmem:[#allocation39_spill] sm:$0xff] %v6490_v36  ;;  %v935_v31 = vsel %vm916_vm1, %v932_v4, %v934_v8  ;;  %v6504_v35 = vpack.c.bf16 %v8203_v11, %v8204_v3  ;;  %v5437_v4 = vld [vmem:[#allocation9 + $0x1d0] sm:$0xff]  }
  0xfe   : > { %3703 = vmatprep.subr.bf16.mxu0 %v8208_v0  ;;  %v764_v55 = vsel %vm675_vm0, %v6398_v28, %v763_v57  ;;  %v6506_v28 = vor.u32 %v1814_v12, %v1813_v7  ;;  %v1827_v50 = vshrl.u32 %v935_v31, 16  ;;  %v1830_v20 = vshll.u32 %v935_v31, 16  ;;  %v5052_v31 = vld [vmem:[%s5941_s15 + $0x38] sm:$0xff]   ;;  %5198 = vmatpush1.bf16.msra.mxu1 %v5437_v4 }
  0xff   : > { %v1882_v29 = vsel %vm1438_vm2, %v6407_v30, %v1881_v44  ;;  %v1818_v24 = vshrl.u32 %v764_v55, 16  ;;  %v1821_v51 = vshll.u32 %v764_v55, 16  ;;  %v437_v39 = vmul.f32 %v6460_v58, %v4929_v1  ;;  %5183 = vmatprep.subr.bf16.mxu1 %v8208_v0 }
 0x100   : > { %3552 = vmatprep.mubr.bf16.mxu0 %v1882_v29  ;;  %v766_v15 = vshrl.u32 %v6504_v35, 16  ;;  %v769_v6 = vshll.u32 %v6504_v35, 16  ;;  %v1829_v7 = vrot.slane %v1827_v50, 3  ;;  %v1832_v12 = vrot.slane %v1830_v20, 4 }
 0x101   : > { %3704 = vmatpush1.bf16.msra.mxu0 %v5436_v38  ;;  %v1820_v30 = vrot.slane %v1818_v24, 3  ;;  %v1823_v55 = vrot.slane %v1821_v51, 4  ;;  %v6516_v38 = vsel %vm1438_vm2, %v1771_v27, %v6506_v28  ;;  %v6519_v1 = vadd.f32 %v6472_v48, %v437_v39 }
 0x102   : > { %3705 = vmatprep.subr.bf16.mxu0 %v8208_v0  ;;  %8363 = vst [vmem:[#allocation40_spill] sm:$0xff] %v6516_v38  ;;  %v768_v24 = vrot.slane %v766_v15, 4  ;;  %v771_v51 = vrot.slane %v769_v6, 5  ;;  %v1923_v11 = vrot.slane %v766_v15, 3  ;;  %v1924_v3 = vrot.slane %v769_v6, 4  ;;  %v5439_v0 = vld [vmem:[#allocation9 + $0x1d8] sm:$0xff]  }
 0x103   : > { %3344 = vmatmul.mubr.bf16.gmra.mrb[28].mxu1 %v6484_v34  ;;  %v1824_v29 = vor.u32 %v1823_v55, %v1820_v30  ;;  %v6523_v43 = vor.u32 %v1832_v12, %v1829_v7  ;;  %v508_v34 = vmax.f32 %v6519_v1, 0.0  ;;  %v8364_v27 = vmax.f32 %v6412_v52, 0.0 }
 0x104   : > { %3553 = vmatmul.mubr.bf16.gmra.mrb[28].mxu0 %v6490_v36  ;;  %v8365_v50 = vmov 0.0   ;;  %v772_v4 = vor.u32 %v771_v51, %v768_v24  ;;  %v8210_v30 = vrot.slane %v6504_v35, 5  ;;  %v4932_v15 = vunpack.c.l.bf16 %v5052_v31  ;;  %5199 = vmatpush1.bf16.msra.mxu1 %v5439_v0 }
 0x105   : > { %v6529_v20 = vpack.c.bf16 %v8365_v50, %v8364_v27  ;;  %v6533_v39 = vsel %vm1438_vm2, %v6454_v32, %v1824_v29  ;;  %v1925_v6 = vor.u32 %v1924_v3, %v1923_v11  ;;  %v6539_v55 = vsel %vm1438_vm2, %v1789_v22, %v6523_v43  ;;  %v5438_v27 = vld [vmem:[#allocation9 + $0x170] sm:$0xff]  }
 0x106   : > { %8366 = vst [vmem:[#allocation41_spill] sm:$0xff] %v6533_v39  ;;  %3350 = vmatprep.mubr.bf16.mxu1 %v6533_v39  ;;  %8367 = vst [vmem:[#allocation42_spill] sm:$0xff] %v6539_v55  ;;  %v6542_v52 = vpack.c.bf16 %v8365_v50, %v508_v34  ;;  %v773_v12 = vsel %vm675_vm0, %v763_v57, %v772_v4  ;;  %v937_v1 = vsel %vm916_vm1, %v934_v8, %v8210_v30 }
 0x107   : > { %v8218_v7 = vshrl.u32 %v6529_v20, 16  ;;  %v4933_v24 = vunpack.c.h.bf16 %v5052_v31  ;;  %v1926_v3 = vsel %vm1438_vm2, %v1881_v44, %v1925_v6  ;;  %v1862_v11 = vshrl.u32 %v773_v12, 16  ;;  %3706 = vmatpush1.bf16.msra.mxu0 %v5438_v27 }
 0x108   : > { %v1865_v51 = vshll.u32 %v773_v12, 16  ;;  %v775_v22 = vshrl.u32 %v6542_v52, 16  ;;  %3559 = vmatprep.mubr.bf16.mxu0 %v1926_v3  ;;  %v778_v57 = vshll.u32 %v6542_v52, 16  ;;  %v8368_v41 = vshll.u32 %v6529_v20, 16 }
 0x109   : > { %v1857_v32 = vrot.slane %v8218_v7, 3  ;;  %v1864_v8 = vrot.slane %v1862_v11, 3  ;;  %v1871_v3 = vshrl.u32 %v937_v1, 16  ;;  %v1874_v16 = vshll.u32 %v937_v1, 16 }
 0x10a   : > { %v1867_v31 = vrot.slane %v1865_v51, 4  ;;  %v777_v30 = vrot.slane %v775_v22, 4  ;;  %v1967_v44 = vrot.slane %v775_v22, 3  ;;  %v780_v12 = vrot.slane %v778_v57, 5 }
 0x10b   : > { %3351 = vmatmul.mubr.bf16.gmra.mrb[32].mxu1 %v6516_v38  ;;  %v1968_v39 = vrot.slane %v778_v57, 4  ;;  %v1858_v63 = vrot.slane %v8368_v41, 4  ;;  %v8369_v38 = vmov 0   ;;  %v438_v7 = vmul.f32 %v6460_v58, %v4932_v15 }
 0x10c   : > { %3560 = vmatmul.mubr.bf16.gmra.mrb[32].mxu0 %v6539_v55  ;;  %5184 = vmatprep.subr.bf16.mxu1 %v8369_v38  ;;  %v1868_v14 = vor.u32 %v1867_v31, %v1864_v8  ;;  %v439_v11 = vmul.f32 %v6460_v58, %v4933_v24  ;;  %v1873_v22 = vrot.slane %v1871_v3, 3  ;;  %v6565_v57 = vor.u32 %v780_v12, %v777_v30  ;;  %v6588_v30 = vld [vmem:[%s5941_s15 + $0x40] sm:$0xff]  }
 0x10d   : > { %3707 = vmatprep.subr.bf16.mxu0 %v8369_v38  ;;  %v6563_v51 = vor.u32 %v1968_v39, %v1967_v44  ;;  %v1859_v0 = vor.u32 %v1858_v63, %v1857_v32  ;;  %v1876_v27 = vrot.slane %v1874_v16, 4  ;;  %v477_v8 = vadd.f32 %v6472_v48, %v438_v7 }
 0x10e   : > { %v6568_v41 = vsel %vm1438_vm2, %v1824_v29, %v1868_v14  ;;  %v6572_v1 = vadd.f32 %v6472_v48, %v439_v11  ;;  %v782_v39 = vsel %vm675_vm0, %v772_v4, %v6565_v57  ;;  %v8370_v29 = vmax.f32 %v6475_v18, 0.0  ;;  %3708 = vmatpush1.bf16.msra.mxu0 %v5441_v61 }
 0x10f   : > { %3357 = vmatprep.mubr.bf16.mxu1 %v6568_v41  ;;  %v1970_v15 = vsel %vm1438_vm2, %v1925_v6, %v6563_v51  ;;  %v6579_v63 = vsel %vm1438_vm2, %v6506_v28, %v1859_v0  ;;  %v1877_v7 = vor.u32 %v1876_v27, %v1873_v22  ;;  %v1906_v32 = vshrl.u32 %v782_v39, 16  ;;  %3886 = vmatprep.subr.bf16.mxu0 %v8369_v38 }
 0x110   : > { %v6585_v16 = vpack.c.bf16 %v508_v34, %v8370_v29  ;;  %3566 = vmatprep.mubr.bf16.mxu0 %v1970_v15  ;;  %v1909_v24 = vshll.u32 %v782_v39, 16  ;;  %v509_v31 = vmax.f32 %v477_v8, 0.0  ;;  %v8219_v6 = vmax.f32 %v6572_v1, 0.0  ;;  %v5440_v39 = vld [vmem:[#allocation9 + $0x1e0] sm:$0xff]  }
 0x111   : > { %v938_v4 = vrot.slane %v6542_v52, 5  ;;  %v6597_v18 = vsel %vm1438_vm2, %v6523_v43, %v1877_v7  ;;  %v1908_v34 = vrot.slane %v1906_v32, 3  ;;  %v4936_v3 = vunpack.c.l.bf16 %v6588_v30  ;;  %5200 = vmatpush1.bf16.msra.mxu1 %v5440_v39 }
 0x112   : > { %v8222_v28 = vshrl.u32 %v6585_v16, 16  ;;  %v8221_v44 = vshll.u32 %v6585_v16, 16  ;;  %8371 = vst [vmem:[#allocation43_spill] sm:$0xff] %v6597_v18  ;;  %v1911_v12 = vrot.slane %v1909_v24, 4  ;;  %v6603_v11 = vpack.c.bf16 %v8219_v6, %v509_v31  ;;  %5185 = vmatprep.subr.bf16.mxu1 %v8369_v38 }
 0x113   : > { %3358 = vmatmul.mubr.bf16.gmra.mrb[36].mxu1 %v6579_v63  ;;  %v8372_v43 = vrot.slane %v6504_v35, 5  ;;  %v440_v15 = vmul.f32 %v6460_v58, %v4936_v3  ;;  %v6625_v35 = vpack.c.bf16 %v509_v31, %v8365_v50  ;;  %v5442_v3 = vld [vmem:[#allocation9 + $0x1e8] sm:$0xff]  }
 0x114   : > { %3567 = vmatmul.mubr.bf16.gmra.mrb[36].mxu0 %v6597_v18  ;;  %v1901_v22 = vrot.slane %v8222_v28, 3  ;;  %v6607_v27 = vor.u32 %v1911_v12, %v1908_v34  ;;  %v1902_v52 = vrot.slane %v8221_v44, 4  ;;  %v784_v29 = vshrl.u32 %v6603_v11, 16 }
 0x115   : > { %v939_v8 = vsel %vm916_vm1, %v8372_v43, %v938_v4  ;;  %v787_v32 = vshll.u32 %v6603_v11, 16  ;;  %v6622_v44 = vadd.f32 %v6472_v48, %v440_v15  ;;  %v8234_v33 = vshrl.u32 %v6625_v35, 16  ;;  %5201 = vmatpush1.bf16.msra.mxu1 %v5442_v3 }
 0x116   : > { %v1915_v24 = vshrl.u32 %v939_v8, 16  ;;  %v1918_v6 = vshll.u32 %v939_v8, 16  ;;  %v6619_v34 = vsel %vm1438_vm2, %v1868_v14, %v6607_v27  ;;  %v1903_v12 = vor.u32 %v1902_v52, %v1901_v22  ;;  %5186 = vmatprep.subr.bf16.mxu1 %v8369_v38 }
 0x117   : > { %3365 = vmatprep.mubr.bf16.mxu1 %v6619_v34  ;;  %v786_v43 = vrot.slane %v784_v29, 4  ;;  %v789_v28 = vrot.slane %v787_v32, 5  ;;  %v2011_v5 = vrot.slane %v784_v29, 3  ;;  %v2012_v8 = vrot.slane %v787_v32, 4 }
 0x118   : > { %v6630_v14 = vsel %vm1438_vm2, %v1859_v0, %v1903_v12  ;;  %v1917_v22 = vrot.slane %v1915_v24, 3  ;;  %v1920_v52 = vrot.slane %v1918_v6, 4  ;;  %v8226_v15 = vmax.f32 %v6622_v44, 0.0 }
 0x119   : > { %v2013_v31 = vor.u32 %v2012_v8, %v2011_v5  ;;  %v790_v39 = vor.u32 %v789_v28, %v786_v43  ;;  %v8235_v10 = vshll.u32 %v6625_v35, 16  ;;  %v940_v6 = vrot.slane %v6603_v11, 5  ;;  %v5443_v11 = vld [vmem:[#allocation9 + $0x1f0] sm:$0xff]  }
 0x11a   : > { %v1921_v29 = vor.u32 %v1920_v52, %v1917_v22  ;;  %v6640_v0 = vpack.c.bf16 %v8226_v15, %v8365_v50  ;;  %v4937_v28 = vunpack.c.h.bf16 %v6588_v30  ;;  %5202 = vmatpush1.bf16.msra.mxu1 %v5443_v11 }
 0x11b   : > { %3366 = vmatmul.mubr.bf16.gmra.mrb[40].mxu1 %v6630_v14  ;;  %v2014_v5 = vsel %vm1438_vm2, %v6563_v51, %v2013_v31  ;;  %v791_v61 = vsel %vm675_vm0, %v6565_v57, %v790_v39  ;;  %v1945_v57 = vrot.slane %v8234_v33, 3  ;;  %v1946_v30 = vrot.slane %v8235_v10, 4  ;;  %5187 = vmatprep.subr.bf16.mxu1 %v8369_v38 }
 0x11c   : > { %3574 = vmatprep.mubr.bf16.mxu0 %v2014_v5  ;;  %v6650_v32 = vsel %vm1438_vm2, %v1877_v7, %v1921_v29  ;;  %v1950_v24 = vshrl.u32 %v791_v61, 16  ;;  %v1953_v43 = vshll.u32 %v791_v61, 16  ;;  %v793_v8 = vshrl.u32 %v6640_v0, 16  ;;  %v5444_v61 = vld [vmem:[#allocation9 + $0x1f8] sm:$0xff]  }
 0x11d   : > { %8373 = vst [vmem:[#allocation44_spill] sm:$0xff] %v6650_v32  ;;  %3575 = vmatmul.mubr.bf16.gmra.mrb[40].mxu0 %v6650_v32  ;;  %v796_v51 = vshll.u32 %v6640_v0, 16  ;;  %v941_v3 = vsel %vm916_vm1, %v938_v4, %v940_v6  ;;  %v1947_v26 = vor.u32 %v1946_v30, %v1945_v57  ;;  %v441_v33 = vmul.f32 %v6460_v58, %v4937_v28  ;;  %v5054_v30 = vld [vmem:[%s5941_s15 + $0x48] sm:$0xff]  }
 0x11e   : > { %v1952_v22 = vrot.slane %v1950_v24, 3  ;;  %v1955_v7 = vrot.slane %v1953_v43, 4  ;;  %v795_v52 = vrot.slane %v793_v8, 4  ;;  %v2055_v5 = vrot.slane %v793_v8, 3  ;;  %5203 = vmatpush1.bf16.msra.mxu1 %v5444_v61 }
 0x11f   : > { %v798_v15 = vrot.slane %v796_v51, 5  ;;  %v2056_v23 = vrot.slane %v796_v51, 4  ;;  %v1959_v19 = vshrl.u32 %v941_v3, 16  ;;  %v1962_v21 = vshll.u32 %v941_v3, 16 }
 0x120   : > { %v1956_v32 = vor.u32 %v1955_v7, %v1952_v22  ;;  %v8374_v10 = vmax.f32 %v6572_v1, 0.0  ;;  %v6670_v43 = vsel %vm1438_vm2, %v1903_v12, %v1947_v26  ;;  %v480_v28 = vadd.f32 %v6472_v48, %v441_v33 }
 0x121   : > { %v6667_v24 = vor.u32 %v2056_v23, %v2055_v5  ;;  %v1961_v8 = vrot.slane %v1959_v19, 3  ;;  %v799_v11 = vor.u32 %v798_v15, %v795_v52  ;;  %v1964_v57 = vrot.slane %v1962_v21, 4 }
 0x122   : > { %v6665_v4 = vpack.c.bf16 %v8365_v50, %v8374_v10  ;;  %v6674_v51 = vsel %vm1438_vm2, %v6607_v27, %v1956_v32  ;;  %v942_v12 = vrot.slane %v6640_v0, 5  ;;  %v512_v15 = vmax.f32 %v480_v28, 0.0 }
 0x123   : > { %3372 = vmatprep.mubr.bf16.mxu1 %v6674_v51  ;;  %v2058_v23 = vsel %vm1438_vm2, %v2013_v31, %v6667_v24  ;;  %v800_v10 = vsel %vm675_vm0, %v790_v39, %v799_v11  ;;  %v1965_v21 = vor.u32 %v1964_v57, %v1961_v8  ;;  %v4940_v61 = vunpack.c.l.bf16 %v5054_v30 }
 0x124   : > { %v8237_v1 = vshrl.u32 %v6665_v4, 16  ;;  %v8236_v19 = vshll.u32 %v6665_v4, 16  ;;  %3581 = vmatprep.mubr.bf16.mxu0 %v2058_v23  ;;  %3373 = vmatmul.mubr.bf16.gmra.mrb[44].mxu1 %v6670_v43  ;;  %v1994_v27 = vshrl.u32 %v800_v10, 16  ;;  %v1997_v33 = vshll.u32 %v800_v10, 16 }
 0x125   : > { %v6691_v39 = vsel %vm1438_vm2, %v1921_v29, %v1965_v21  ;;  %v6694_v0 = vpack.c.bf16 %v8365_v50, %v512_v15  ;;  %v943_v5 = vsel %vm916_vm1, %v940_v6, %v942_v12  ;;  %v4941_v8 = vunpack.c.h.bf16 %v5054_v30 }
 0x126   : > { %v1989_v3 = vrot.slane %v8237_v1, 3  ;;  %v1990_v31 = vrot.slane %v8236_v19, 4  ;;  %8375 = vst [vmem:[#allocation45_spill] sm:$0xff] %v6691_v39  ;;  %v1996_v22 = vrot.slane %v1994_v27, 3  ;;  %v1999_v7 = vrot.slane %v1997_v33, 4  ;;  %3582 = vmatmul.mubr.bf16.gmra.mrb[44].mxu0 %v6691_v39 }
 0x127   : > { %v802_v28 = vshrl.u32 %v6694_v0, 16  ;;  %v805_v23 = vshll.u32 %v6694_v0, 16  ;;  %v2003_v29 = vshrl.u32 %v943_v5, 16  ;;  %v2006_v27 = vshll.u32 %v943_v5, 16 }
 0x128   : > { %v1991_v52 = vor.u32 %v1990_v31, %v1989_v3  ;;  %v2000_v57 = vor.u32 %v1999_v7, %v1996_v22  ;;  %v442_v33 = vmul.f32 %v6460_v58, %v4940_v61  ;;  %v443_v19 = vmul.f32 %v6460_v58, %v4941_v8  ;;  %v6709_v22 = vld [vmem:[%s5941_s15 + $0x50] sm:$0xff]  }
 0x129   : > { %v804_v6 = vrot.slane %v802_v28, 4  ;;  %v807_v31 = vrot.slane %v805_v23, 5  ;;  %v2099_v30 = vrot.slane %v802_v28, 3  ;;  %v2100_v7 = vrot.slane %v805_v23, 4 }
 0x12a   : > { %v6701_v10 = vsel %vm1438_vm2, %v1947_v26, %v1991_v52  ;;  %v6706_v3 = vsel %vm1438_vm2, %v1956_v32, %v2000_v57  ;;  %v2005_v1 = vrot.slane %v2003_v29, 3  ;;  %v2008_v39 = vrot.slane %v2006_v27, 4 }
 0x12b   : > { %3379 = vmatprep.mubr.bf16.mxu1 %v6706_v3  ;;  %v481_v26 = vadd.f32 %v6472_v48, %v442_v33  ;;  %v808_v5 = vor.u32 %v807_v31, %v804_v6  ;;  %v6715_v61 = vadd.f32 %v6472_v48, %v443_v19  ;;  %v8376_v32 = vmax.f32 %v6622_v44, 0.0 }
 0x12c   : > { %3380 = vmatmul.mubr.bf16.gmra.mrb[48].mxu1 %v6701_v10  ;;  %v944_v28 = vrot.slane %v6694_v0, 5  ;;  %v2101_v18 = vor.u32 %v2100_v7, %v2099_v30  ;;  %v2009_v55 = vor.u32 %v2008_v39, %v2005_v1  ;;  %v4944_v23 = vunpack.c.l.bf16 %v6709_v22 }
 0x12d   : > { %v6719_v8 = vpack.c.bf16 %v512_v15, %v8376_v32  ;;  %v513_v36 = vmax.f32 %v481_v26, 0.0  ;;  %v809_v29 = vsel %vm675_vm0, %v799_v11, %v808_v5  ;;  %v8242_v27 = vmax.f32 %v6715_v61, 0.0 }
 0x12e   : > { %v2102_v44 = vsel %vm1438_vm2, %v6667_v24, %v2101_v18  ;;  %v6730_v15 = vsel %vm1438_vm2, %v1965_v21, %v2009_v55  ;;  %v2038_v0 = vshrl.u32 %v809_v29, 16  ;;  %v2041_v6 = vshll.u32 %v809_v29, 16 }
 0x12f   : > { %v8243_v33 = vshrl.u32 %v6719_v8, 16  ;;  %v8246_v19 = vshll.u32 %v6719_v8, 16  ;;  %8377 = vst [vmem:[#allocation46_spill] sm:$0xff] %v6730_v15  ;;  %3588 = vmatprep.mubr.bf16.mxu0 %v2102_v44  ;;  %v6734_v1 = vpack.c.bf16 %v8242_v27, %v513_v36  ;;  %v945_v21 = vsel %vm916_vm1, %v942_v12, %v944_v28 }
 0x130   : > { %3589 = vmatmul.mubr.bf16.gmra.mrb[48].mxu0 %v6730_v15  ;;  %v2040_v39 = vrot.slane %v2038_v0, 3  ;;  %v2043_v31 = vrot.slane %v2041_v6, 4  ;;  %v2047_v26 = vshrl.u32 %v945_v21, 16  ;;  %v2050_v32 = vshll.u32 %v945_v21, 16 }
 0x131   : > { %v2033_v11 = vrot.slane %v8243_v33, 3  ;;  %v2034_v24 = vrot.slane %v8246_v19, 4  ;;  %v811_v30 = vshrl.u32 %v6734_v1, 16  ;;  %v814_v7 = vshll.u32 %v6734_v1, 16 }
 0x132   : > { %v2044_v29 = vor.u32 %v2043_v31, %v2040_v39  ;;  %v444_v27 = vmul.f32 %v6460_v58, %v4944_v23  ;;  %v6746_v33 = vpack.c.bf16 %v513_v36, %v8365_v50  ;;  %v2049_v13 = vrot.slane %v2047_v26, 3 }
 0x133   : > { %v2035_v44 = vor.u32 %v2034_v24, %v2033_v11  ;;  %v813_v0 = vrot.slane %v811_v30, 4  ;;  %v816_v6 = vrot.slane %v814_v7, 5  ;;  %v2143_v15 = vrot.slane %v811_v30, 3 }
 0x134   : > { %v2144_v47 = vrot.slane %v814_v7, 4  ;;  %v6749_v19 = vsel %vm1438_vm2, %v2000_v57, %v2044_v29  ;;  %v2052_v56 = vrot.slane %v2050_v32, 4  ;;  %v6756_v23 = vadd.f32 %v6472_v48, %v444_v27 }
 0x135   : > { %v6752_v12 = vsel %vm1438_vm2, %v1991_v52, %v2035_v44  ;;  %3387 = vmatprep.mubr.bf16.mxu1 %v6749_v19  ;;  %v817_v39 = vor.u32 %v816_v6, %v813_v0  ;;  %v8250_v36 = vshrl.u32 %v6746_v33, 16  ;;  %v8252_v57 = vshll.u32 %v6746_v33, 16 }
 0x136   : > { %8378 = vst [vmem:[#allocation47_spill] sm:$0xff] %v6752_v12  ;;  %v2145_v11 = vor.u32 %v2144_v47, %v2143_v15  ;;  %3388 = vmatmul.mubr.bf16.gmra.mrb[52].mxu1 %v6752_v12  ;;  %v2053_v31 = vor.u32 %v2052_v56, %v2049_v13  ;;  %v946_v24 = vrot.slane %v6734_v1, 5  ;;  %v8249_v30 = vmax.f32 %v6756_v23, 0.0 }
 0x137   : > { %v818_v21 = vsel %vm675_vm0, %v808_v5, %v817_v39  ;;  %v4945_v47 = vunpack.c.h.bf16 %v6709_v22  ;;  %v2077_v13 = vrot.slane %v8250_v36, 3 }
 0x138   : > { %v2146_v52 = vsel %vm1438_vm2, %v2101_v18, %v2145_v11  ;;  %v6767_v27 = vsel %vm1438_vm2, %v2009_v55, %v2053_v31  ;;  %v2082_v15 = vshrl.u32 %v818_v21, 16  ;;  %v2085_v7 = vshll.u32 %v818_v21, 16 }
 0x139   : > { %3596 = vmatprep.mubr.bf16.mxu0 %v2146_v52  ;;  %8379 = vst [vmem:[#allocation48_spill] sm:$0xff] %v6767_v27  ;;  %v6773_v56 = vpack.c.bf16 %v8249_v30, %v8365_v50  ;;  %v2078_v18 = vrot.slane %v8252_v57, 4  ;;  %v947_v22 = vsel %vm916_vm1, %v944_v28, %v946_v24  ;;  %v445_v52 = vmul.f32 %v6460_v58, %v4945_v47 }
 0x13a   : > { %3597 = vmatmul.mubr.bf16.gmra.mrb[52].mxu0 %v6767_v27  ;;  %v2084_v5 = vrot.slane %v2082_v15, 3  ;;  %v2087_v55 = vrot.slane %v2085_v7, 4  ;;  %v2091_v1 = vshrl.u32 %v947_v22, 16  ;;  %v2094_v26 = vshll.u32 %v947_v22, 16  ;;  %v5056_v22 = vld [vmem:[%s5941_s15 + $0x58] sm:$0xff]  }
 0x13b   : > { %v820_v32 = vshrl.u32 %v6773_v56, 16  ;;  %v823_v0 = vshll.u32 %v6773_v56, 16  ;;  %v2079_v6 = vor.u32 %v2078_v18, %v2077_v13  ;;  %v8380_v27 = vmax.f32 %v6715_v61, 0.0 }
 0x13c   : > { %v2088_v21 = vor.u32 %v2087_v55, %v2084_v5  ;;  %v2093_v30 = vrot.slane %v2091_v1, 3  ;;  %v2096_v36 = vrot.slane %v2094_v26, 4  ;;  %v484_v18 = vadd.f32 %v6472_v48, %v445_v52 }
 0x13d   : > { %v6786_v57 = vpack.c.bf16 %v8365_v50, %v8380_v27  ;;  %v822_v28 = vrot.slane %v820_v32, 4  ;;  %v825_v15 = vrot.slane %v823_v0, 5  ;;  %v2187_v7 = vrot.slane %v820_v32, 3 }
 0x13e   : > { %v2188_v59 = vrot.slane %v823_v0, 4  ;;  %v6790_v25 = vsel %vm1438_vm2, %v2044_v29, %v2088_v21  ;;  %v6793_v13 = vsel %vm1438_vm2, %v2035_v44, %v2079_v6  ;;  %v2097_v47 = vor.u32 %v2096_v36, %v2093_v30 }
 0x13f   : > { %8381 = vst [vmem:[#allocation49_spill] sm:$0xff] %v6786_v57  ;;  %8382 = vst [vmem:[#allocation50_spill] sm:$0xff] %v6790_v25  ;;  %3394 = vmatprep.mubr.bf16.mxu1 %v6790_v25  ;;  %v826_v5 = vor.u32 %v825_v15, %v822_v28  ;;  %v8256_v27 = vshrl.u32 %v6786_v57, 16  ;;  %v8260_v55 = vshll.u32 %v6786_v57, 16  ;;  %v516_v29 = vmax.f32 %v484_v18, 0.0 }
 0x140   : > { %8383 = vst [vmem:[#allocation51_spill] sm:$0xff] %v6793_v13  ;;  %v2189_v61 = vor.u32 %v2188_v59, %v2187_v7  ;;  %3395 = vmatmul.mubr.bf16.gmra.mrb[56].mxu1 %v6793_v13  ;;  %v6801_v1 = vsel %vm1438_vm2, %v2053_v31, %v2097_v47  ;;  %v948_v44 = vrot.slane %v6773_v56, 5  ;;  %v4948_v26 = vunpack.c.l.bf16 %v5056_v22  ;;  %v6826_v13 = vld [vmem:[%s5941_s15 + $0x60] sm:$0xff]  }
 0x141   : > { %8384 = vst [vmem:[#allocation52_spill] sm:$0xff] %v6801_v1  ;;  %v827_v30 = vsel %vm675_vm0, %v817_v39, %v826_v5  ;;  %v6807_v0 = vpack.c.bf16 %v8365_v50, %v516_v29  ;;  %v2121_v52 = vrot.slane %v8256_v27, 3  ;;  %v2122_v31 = vrot.slane %v8260_v55, 4 }
 0x142   : > { %v2190_v36 = vsel %vm1438_vm2, %v2145_v11, %v2189_v61  ;;  %v2126_v59 = vshrl.u32 %v827_v30, 16  ;;  %v2129_v32 = vshll.u32 %v827_v30, 16  ;;  %v949_v56 = vsel %vm916_vm1, %v946_v24, %v948_v44 }
 0x143   : > { %3603 = vmatprep.mubr.bf16.mxu0 %v2190_v36  ;;  %v4949_v28 = vunpack.c.h.bf16 %v5056_v22  ;;  %v446_v11 = vmul.f32 %v6460_v58, %v4948_v26  ;;  %v829_v7 = vshrl.u32 %v6807_v0, 16  ;;  %v832_v18 = vshll.u32 %v6807_v0, 16 }
 0x144   : > { %3604 = vmatmul.mubr.bf16.gmra.mrb[56].mxu0 %v6801_v1  ;;  %v2128_v39 = vrot.slane %v2126_v59, 3  ;;  %v2131_v15 = vrot.slane %v2129_v32, 4  ;;  %v6818_v36 = vor.u32 %v2122_v31, %v2121_v52  ;;  %v2135_v30 = vshrl.u32 %v949_v56, 16 }
 0x145   : > { %v2138_v27 = vshll.u32 %v949_v56, 16  ;;  %v447_v1 = vmul.f32 %v6460_v58, %v4949_v28  ;;  %v831_v55 = vrot.slane %v829_v7, 4  ;;  %v834_v17 = vrot.slane %v832_v18, 5 }
 0x146   : > { %v2132_v62 = vor.u32 %v2131_v15, %v2128_v39  ;;  %v2231_v24 = vrot.slane %v829_v7, 3  ;;  %v2232_v22 = vrot.slane %v832_v18, 4  ;;  %v6823_v26 = vsel %vm1438_vm2, %v2079_v6, %v6818_v36 }
 0x147   : > { %8385 = vst [vmem:[#allocation53_spill] sm:$0xff] %v6823_v26  ;;  %v2137_v59 = vrot.slane %v2135_v30, 3  ;;  %v2140_v32 = vrot.slane %v2138_v27, 4  ;;  %v835_v31 = vor.u32 %v834_v17, %v831_v55  ;;  %v485_v56 = vadd.f32 %v6472_v48, %v446_v11 }
 0x148   : > { %v6829_v52 = vsel %vm1438_vm2, %v2088_v21, %v2132_v62  ;;  %v6833_v28 = vadd.f32 %v6472_v48, %v447_v1  ;;  %v2233_v39 = vor.u32 %v2232_v22, %v2231_v24  ;;  %v8387_v6 = vmax.f32 %v6756_v23, 0.0  ;;  %v6856_v22 = vld [vmem:[#allocation9 + $0x200] sm:$0xff]  }
 0x149   : > { %8386 = vst [vmem:[#allocation54_spill] sm:$0xff] %v6829_v52  ;;  %3401 = vmatprep.mubr.bf16.mxu1 %v6829_v52  ;;  %v2141_v15 = vor.u32 %v2140_v32, %v2137_v59  ;;  %v950_v27 = vrot.slane %v6807_v0, 5  ;;  %v836_v21 = vsel %vm675_vm0, %v826_v5, %v835_v31  ;;  %v517_v17 = vmax.f32 %v485_v56, 0.0  ;;  %5108 = vmatprep.subr.bf16.mxu1 %v6856_v22 }
 0x14a   : > { %v6838_v7 = vpack.c.bf16 %v516_v29, %v8387_v6  ;;  %3402 = vmatmul.mubr.bf16.gmra.mrb[60].mxu1 %v6823_v26  ;;  %v8263_v55 = vmax.f32 %v6833_v28, 0.0  ;;  %v4952_v1 = vunpack.c.l.bf16 %v6826_v13  ;;  %v2234_v11 = vsel %vm1438_vm2, %v2189_v61, %v2233_v39 }
 0x14b   : > { %v6847_v18 = vsel %vm1438_vm2, %v2097_v47, %v2141_v15  ;;  %v2170_v30 = vshrl.u32 %v836_v21, 16  ;;  %v2173_v23 = vshll.u32 %v836_v21, 16  ;;  %3610 = vmatprep.mubr.bf16.mxu0 %v2234_v11  ;;  %v951_v24 = vsel %vm916_vm1, %v948_v44, %v950_v27 }
 0x14c   : > { %8388 = vst [vmem:[#allocation55_spill] sm:$0xff] %v6838_v7  ;;  %8389 = vst [vmem:[#allocation56_spill] sm:$0xff] %v6847_v18  ;;  %v6851_v29 = vpack.c.bf16 %v8263_v55, %v517_v17  ;;  %v8270_v0 = vshrl.u32 %v6838_v7, 16  ;;  %v8273_v5 = vshll.u32 %v6838_v7, 16  ;;  %3611 = vmatmul.mubr.bf16.gmra.mrb[60].mxu0 %v6847_v18  ;;  %v2179_v59 = vshrl.u32 %v951_v24, 16 }
 0x14d   : > { %v2172_v61 = vrot.slane %v2170_v30, 3  ;;  %v2175_v47 = vrot.slane %v2173_v23, 4  ;;  %v2182_v32 = vshll.u32 %v951_v24, 16  ;;  %v448_v25 = vmul.f32 %v6460_v58, %v4952_v1 }
 0x14e   : > { %v838_v56 = vshrl.u32 %v6851_v29, 16  ;;  %v841_v6 = vshll.u32 %v6851_v29, 16  ;;  %v2165_v11 = vrot.slane %v8270_v0, 3  ;;  %v2166_v44 = vrot.slane %v8273_v5, 4 }
 0x14f   : > { %v2176_v21 = vor.u32 %v2175_v47, %v2172_v61  ;;  %v2181_v55 = vrot.slane %v2179_v59, 3  ;;  %v2184_v57 = vrot.slane %v2182_v32, 4  ;;  %v6872_v0 = vpack.c.bf16 %v517_v17, %v8365_v50 }
 0x150   : > { %v840_v26 = vrot.slane %v838_v56, 4  ;;  %v843_v18 = vrot.slane %v841_v6, 5  ;;  %v2275_v30 = vrot.slane %v838_v56, 3  ;;  %v2276_v23 = vrot.slane %v841_v6, 4 }
 0x151   : > { %v6867_v24 = vsel %vm1438_vm2, %v2132_v62, %v2176_v21  ;;  %v2167_v52 = vor.u32 %v2166_v44, %v2165_v11  ;;  %8391 = vst [vmem:[#allocation58_spill] sm:$0xff] %v6872_v0  ;;  %v8275_v59 = vrot.slane %v6851_v29, 5  ;;  %v2185_v6 = vor.u32 %v2184_v57, %v2181_v55 }
 0x152   : > { %8390 = vst [vmem:[#allocation57_spill] sm:$0xff] %v6867_v24  ;;  %3409 = vmatprep.mubr.bf16.mxu1 %v6867_v24  ;;  %v2277_v61 = vor.u32 %v2276_v23, %v2275_v30  ;;  %v844_v47 = vor.u32 %v843_v18, %v840_v26  ;;  %v6880_v62 = vadd.f32 %v6472_v48, %v448_v25  ;;  %v4953_v32 = vunpack.c.h.bf16 %v6826_v13 }
 0x153   : > { %v6877_v56 = vsel %vm1438_vm2, %v6818_v36, %v2167_v52  ;;  %v8271_v17 = vshrl.u32 %v6872_v0, 16  ;;  %v8272_v18 = vshll.u32 %v6872_v0, 16  ;;  %v6889_v36 = vsel %vm1438_vm2, %v2141_v15, %v2185_v6 }
 0x154   : > { %8392 = vst [vmem:[#allocation59_spill] sm:$0xff] %v6877_v56  ;;  %v2278_v1 = vsel %vm1438_vm2, %v2233_v39, %v2277_v61  ;;  %3410 = vmatmul.mubr.bf16.gmra.mrb[64].mxu1 %v6877_v56  ;;  %v845_v26 = vsel %vm675_vm0, %v835_v31, %v844_v47  ;;  %8393 = vst [vmem:[#allocation60_spill] sm:$0xff] %v6889_v36  ;;  %v8274_v25 = vmax.f32 %v6880_v62, 0.0 }
 0x155   : > { %3618 = vmatprep.mubr.bf16.mxu0 %v2278_v1  ;;  %v2214_v57 = vshrl.u32 %v845_v26, 16  ;;  %v2217_v55 = vshll.u32 %v845_v26, 16  ;;  %v2209_v13 = vrot.slane %v8271_v17, 3  ;;  %v2210_v31 = vrot.slane %v8272_v18, 4 }
 0x156   : > { %3619 = vmatmul.mubr.bf16.gmra.mrb[64].mxu0 %v6889_v36  ;;  %v6900_v44 = vpack.c.bf16 %v8274_v25, %v8365_v50  ;;  %v953_v15 = vsel %vm916_vm1, %v950_v27, %v8275_v59  ;;  %v449_v26 = vmul.f32 %v6460_v58, %v4953_v32  ;;  %v5058_v59 = vld [vmem:[%s5941_s15 + $0x68] sm:$0xff]  }
 0x157   : > { %v2216_v39 = vrot.slane %v2214_v57, 3  ;;  %v2219_v11 = vrot.slane %v2217_v55, 4  ;;  %v2211_v30 = vor.u32 %v2210_v31, %v2209_v13  ;;  %v2223_v23 = vshrl.u32 %v953_v15, 16 }
 0x158   : > { %v2226_v1 = vshll.u32 %v953_v15, 16  ;;  %v847_v18 = vshrl.u32 %v6900_v44, 16  ;;  %v850_v57 = vshll.u32 %v6900_v44, 16  ;;  %v8394_v55 = vmax.f32 %v6833_v28, 0.0 }
 0x159   : > { %v2220_v17 = vor.u32 %v2219_v11, %v2216_v39  ;;  %v6914_v25 = vsel %vm1438_vm2, %v2167_v52, %v2211_v30  ;;  %v2225_v27 = vrot.slane %v2223_v23, 3  ;;  %v488_v31 = vadd.f32 %v6472_v48, %v449_v26 }
 0x15a   : > { %v6911_v5 = vpack.c.bf16 %v8365_v50, %v8394_v55  ;;  %8396 = vst [vmem:[#allocation62_spill] sm:$0xff] %v6914_v25  ;;  %v2228_v13 = vrot.slane %v2226_v1, 4  ;;  %v849_v32 = vrot.slane %v847_v18, 4  ;;  %v852_v39 = vrot.slane %v850_v57, 5 }
 0x15b   : > { %v6918_v15 = vsel %vm1438_vm2, %v2176_v21, %v2220_v17  ;;  %v2319_v11 = vrot.slane %v847_v18, 3  ;;  %v2320_v28 = vrot.slane %v850_v57, 4  ;;  %v520_v55 = vmax.f32 %v488_v31, 0.0 }
 0x15c   : > { %8395 = vst [vmem:[#allocation61_spill] sm:$0xff] %v6911_v5  ;;  %8397 = vst [vmem:[#allocation63_spill] sm:$0xff] %v6918_v15  ;;  %3416 = vmatprep.mubr.bf16.mxu1 %v6918_v15  ;;  %v2229_v36 = vor.u32 %v2228_v13, %v2225_v27  ;;  %v8281_v56 = vshrl.u32 %v6911_v5, 16  ;;  %v853_v52 = vor.u32 %v852_v39, %v849_v32  ;;  %v8282_v23 = vshll.u32 %v6911_v5, 16 }
 0x15d   : > { %3417 = vmatmul.mubr.bf16.gmra.mrb[68].mxu1 %v6914_v25  ;;  %v2321_v21 = vor.u32 %v2320_v28, %v2319_v11  ;;  %v6927_v26 = vpack.c.bf16 %v8365_v50, %v520_v55  ;;  %v4956_v18 = vunpack.c.l.bf16 %v5058_v59 }
 0x15e   : > { %v6930_v0 = vsel %vm1438_vm2, %v2185_v6, %v2229_v36  ;;  %v854_v57 = vsel %vm675_vm0, %v844_v47, %v853_v52  ;;  %v2253_v27 = vrot.slane %v8281_v56, 3  ;;  %v2254_v13 = vrot.slane %v8282_v23, 4 }
 0x15f   : > { %8398 = vst [vmem:[#allocation64_spill] sm:$0xff] %v6930_v0  ;;  %v2322_v31 = vsel %vm1438_vm2, %v2277_v61, %v2321_v21  ;;  %v2258_v32 = vshrl.u32 %v854_v57, 16  ;;  %v2261_v39 = vshll.u32 %v854_v57, 16  ;;  %v856_v11 = vshrl.u32 %v6927_v26, 16 }
 0x160   : > { %3625 = vmatprep.mubr.bf16.mxu0 %v2322_v31  ;;  %v859_v28 = vshll.u32 %v6927_v26, 16  ;;  %v2255_v1 = vor.u32 %v2254_v13, %v2253_v27  ;;  %v8399_v6 = vrot.slane %v6900_v44, 5  ;;  %v8400_v47 = vrot.slane %v6851_v29, 5 }
 0x161   : > { %v4957_v56 = vunpack.c.h.bf16 %v5058_v59  ;;  %3626 = vmatmul.mubr.bf16.gmra.mrb[68].mxu0 %v6930_v0  ;;  %v2260_v23 = vrot.slane %v2258_v32, 3  ;;  %v2263_v15 = vrot.slane %v2261_v39, 4  ;;  %v858_v61 = vrot.slane %v856_v11, 4 }
 0x162   : > { %v955_v25 = vsel %vm916_vm1, %v8400_v47, %v8399_v6  ;;  %v2363_v5 = vrot.slane %v856_v11, 3  ;;  %v861_v57 = vrot.slane %v859_v28, 5  ;;  %v2364_v24 = vrot.slane %v859_v28, 4 }
 0x163   : > { %v6947_v31 = vsel %vm1438_vm2, %v2211_v30, %v2255_v1  ;;  %v2267_v7 = vshrl.u32 %v955_v25, 16  ;;  %v2264_v27 = vor.u32 %v2263_v15, %v2260_v23  ;;  %v2270_v13 = vshll.u32 %v955_v25, 16 }
 0x164   : > { %8401 = vst [vmem:[#allocation65_spill] sm:$0xff] %v6947_v31  ;;  %v450_v12 = vmul.f32 %v6460_v58, %v4956_v18  ;;  %v451_v29 = vmul.f32 %v6460_v58, %v4957_v56  ;;  %v6951_v6 = vor.u32 %v2364_v24, %v2363_v5  ;;  %v6953_v47 = vor.u32 %v861_v57, %v858_v61 }
 0x165   : > { %v2269_v59 = vrot.slane %v2267_v7, 3  ;;  %v8402_v32 = vmax.f32 %v6880_v62, 0.0  ;;  %v6960_v30 = vsel %vm1438_vm2, %v2220_v17, %v2264_v27  ;;  %v2272_v11 = vrot.slane %v2270_v13, 4 }
 0x166   : > { %8404 = vst [vmem:[#allocation67_spill] sm:$0xff] %v6960_v30  ;;  %v489_v25 = vadd.f32 %v6472_v48, %v450_v12  ;;  %v490_v15 = vadd.f32 %v6472_v48, %v451_v29  ;;  %3423 = vmatprep.mubr.bf16.mxu1 %v6960_v30  ;;  %v2366_v58 = vsel %vm1438_vm2, %v2321_v21, %v6951_v6  ;;  %v5059_v48 = vld [vmem:[%s5941_s15 + $0x70] sm:$0xff]   ;;  %v956_v57 = vrot.slane %v6927_v26, 5  ;;  %v6997_v26 = vld [vmem:[#allocation6] ss:$0 sm:$0xff] }
 0x167   : > { %v6957_v39 = vpack.c.bf16 %v520_v55, %v8402_v32  ;;  %v863_v7 = vsel %vm675_vm0, %v853_v52, %v6953_v47  ;;  %3632 = vmatprep.mubr.bf16.mxu0 %v2366_v58  ;;  %3424 = vmatmul.mubr.bf16.gmra.mrb[72].mxu1 %v6947_v31  ;;  %v2273_v56 = vor.u32 %v2272_v11, %v2269_v59  ;;  %v4960_v13 = vunpack.c.l.bf16 %v5059_v48 }
 0x168   : > { %v2302_v62 = vshrl.u32 %v863_v7, 16  ;;  %v2305_v12 = vshll.u32 %v863_v7, 16  ;;  %v521_v17 = vmax.f32 %v489_v25, 0.0  ;;  %v522_v55 = vmax.f32 %v490_v15, 0.0 }
 0x169   : > { %8403 = vst [vmem:[#allocation66_spill] sm:$0xff] %v6957_v39  ;;  %v8291_v5 = vshrl.u32 %v6957_v39, 16  ;;  %v8290_v24 = vshll.u32 %v6957_v39, 16  ;;  %v6976_v21 = vsel %vm1438_vm2, %v2229_v36, %v2273_v56  ;;  %v4961_v36 = vunpack.c.h.bf16 %v5059_v48 }
 0x16a   : > { %8405 = vst [vmem:[#allocation68_spill] sm:$0xff] %v6976_v21  ;;  %v2304_v52 = vrot.slane %v2302_v62, 3  ;;  %v2307_v18 = vrot.slane %v2305_v12, 4  ;;  %3633 = vmatmul.mubr.bf16.gmra.mrb[72].mxu0 %v6976_v21  ;;  %v6981_v61 = vpack.c.bf16 %v522_v55, %v521_v17  ;;  %v6985_v29 = vpack.c.bf16 %v521_v17, %v8365_v50 }
 0x16b   : > { %v2297_v23 = vrot.slane %v8291_v5, 3  ;;  %v2298_v28 = vrot.slane %v8290_v24, 4  ;;  %v6990_v11 = vpack.c.bf16 %v8365_v50, %v522_v55  ;;  %v8408_v58 = vrot.slane %v6900_v44, 5 }
 0x16c   : > { %8406 = vst [vmem:[#allocation69_spill] sm:$0xff] %v6985_v29  ;;  %v6987_v59 = vor.u32 %v2307_v18, %v2304_v52  ;;  %v865_v25 = vshrl.u32 %v6981_v61, 16  ;;  %v868_v15 = vshll.u32 %v6981_v61, 16  ;;  %v452_v62 = vmul.f32 %v6997_v26, %v4960_v13  ;;  %v7009_v13 = vld [vmem:[#allocation8] ss:$0 sm:$0xff] }
 0x16d   : > { %v2299_v32 = vor.u32 %v2298_v28, %v2297_v23  ;;  %8407 = vst [vmem:[#allocation70_spill] sm:$0xff] %v6990_v11  ;;  %v957_v7 = vsel %vm916_vm1, %v8408_v58, %v956_v57  ;;  %v958_v21 = vrot.slane %v6981_v61, 5 }
 0x16e   : > { %v7002_v12 = vsel %vm1438_vm2, %v2264_v27, %v6987_v59  ;;  %v2311_v48 = vshrl.u32 %v957_v7, 16  ;;  %v2314_v55 = vshll.u32 %v957_v7, 16  ;;  %v867_v23 = vrot.slane %v865_v25, 4 }
 0x16f   : > { %8409 = vst [vmem:[#allocation71_spill] sm:$0xff] %v7002_v12  ;;  %v7005_v17 = vsel %vm1438_vm2, %v2255_v1, %v2299_v32  ;;  %3431 = vmatprep.mubr.bf16.mxu1 %v7002_v12  ;;  %v870_v52 = vrot.slane %v868_v15, 5  ;;  %v2407_v44 = vrot.slane %v865_v25, 3  ;;  %v2408_v18 = vrot.slane %v868_v15, 4 }
 0x170   : > { %8410 = vst [vmem:[#allocation72_spill] sm:$0xff] %v7005_v17  ;;  %3432 = vmatmul.mubr.bf16.gmra.mrb[76].mxu1 %v7005_v17  ;;  %v2313_v28 = vrot.slane %v2311_v48, 3  ;;  %v2316_v58 = vrot.slane %v2314_v55, 4  ;;  %v7012_v27 = vadd.f32 %v7009_v13, %v452_v62  ;;  %v8295_v1 = vshrl.u32 %v6985_v29, 16 }
 0x171   : > { %v2409_v24 = vor.u32 %v2408_v18, %v2407_v44  ;;  %v871_v5 = vor.u32 %v870_v52, %v867_v23  ;;  %v8294_v7 = vshll.u32 %v6985_v29, 16  ;;  %v8411_v48 = vshrl.u32 %v6165_v53, 16 }
 0x172   : > { %v2317_v0 = vor.u32 %v2316_v58, %v2313_v28  ;;  %v8296_v25 = vmax.f32 %v7012_v27, 0.0  ;;  %v2341_v15 = vrot.slane %v8295_v1, 3  ;;  %v959_v58 = vsel %vm916_vm1, %v956_v57, %v958_v21 }
 0x173   : > { %v7022_v55 = vrot.slane %v8411_v48, 4  ;;  %v2410_v62 = vsel %vm1438_vm2, %v6951_v6, %v2409_v24  ;;  %v872_v23 = vsel %vm675_vm0, %v6953_v47, %v871_v5  ;;  %v2342_v52 = vrot.slane %v8294_v7, 4 }
 0x174   : > { %3640 = vmatprep.mubr.bf16.mxu0 %v2410_v62  ;;  %v7031_v61 = vsel %vm1438_vm2, %v2273_v56, %v2317_v0  ;;  %v2346_v44 = vshrl.u32 %v872_v23, 16  ;;  %v2349_v18 = vshll.u32 %v872_v23, 16  ;;  %v7036_v28 = vpack.c.bf16 %v8296_v25, %v8365_v50 }
 0x175   : > { %8412 = vst [vmem:[#allocation73_spill] sm:$0xff] %v7031_v61  ;;  %3641 = vmatmul.mubr.bf16.gmra.mrb[76].mxu0 %v7031_v61  ;;  %v2343_v6 = vor.u32 %v2342_v52, %v2341_v15  ;;  %v453_v47 = vmul.f32 %v6997_v26, %v4961_v36  ;;  %v2355_v25 = vshrl.u32 %v959_v58, 16  ;;  %v2358_v17 = vshll.u32 %v959_v58, 16 }
 0x176   : > { %v2348_v62 = vrot.slane %v2346_v44, 3  ;;  %v2351_v7 = vrot.slane %v2349_v18, 4  ;;  %v874_v56 = vshrl.u32 %v7036_v28, 16  ;;  %v877_v23 = vshll.u32 %v7036_v28, 16 }
 0x177   : > { %v7045_v1 = vsel %vm1438_vm2, %v2299_v32, %v2343_v6  ;;  %v492_v61 = vadd.f32 %v7009_v13, %v453_v47  ;;  %v2357_v31 = vrot.slane %v2355_v25, 3  ;;  %v2360_v48 = vrot.slane %v2358_v17, 4 }
 0x178   : > { %8413 = vst [vmem:[#allocation74_spill] sm:$0xff] %v7045_v1  ;;  %v2352_v15 = vor.u32 %v2351_v7, %v2348_v62  ;;  %v876_v52 = vrot.slane %v874_v56, 4  ;;  %v879_v57 = vrot.slane %v877_v23, 5  ;;  %v2451_v12 = vrot.slane %v874_v56, 3 }
 0x179   : > { %v2452_v36 = vrot.slane %v877_v23, 4  ;;  %v524_v44 = vmax.f32 %v492_v61, 0.0  ;;  %v8414_v18 = vshll.u32 %v6165_v53, 16  ;;  %v8304_v58 = vshll.u32 %v6990_v11, 16 }
 0x17a   : > { %v7054_v32 = vsel %vm1438_vm2, %v6987_v59, %v2352_v15  ;;  %v880_v30 = vor.u32 %v879_v57, %v876_v52  ;;  %v2361_v47 = vor.u32 %v2360_v48, %v2357_v31  ;;  %v8416_v17 = vshrl.u32 %v6990_v11, 16 }
 0x17b   : > { %v7050_v29 = vrot.slane %v8414_v18, 5  ;;  %8415 = vst [vmem:[#allocation75_spill] sm:$0xff] %v7054_v32  ;;  %3438 = vmatprep.mubr.bf16.mxu1 %v7054_v32  ;;  %v2453_v7 = vor.u32 %v2452_v36, %v2451_v12  ;;  %v663_v62 = vpack.c.bf16 %v8365_v50, %v524_v44  ;;  %v8417_v61 = vshrl.u32 %v6212_v49, 16  ;;  %v5060_v32 = vld [vmem:[%s5941_s15 + $0x78] sm:$0xff]  }
 0x17c   : > { %v2385_v25 = vrot.slane %v8416_v17, 3  ;;  %3439 = vmatmul.mubr.bf16.gmra.mrb[80].mxu1 %v7045_v1  ;;  %v881_v59 = vsel %vm675_vm0, %v871_v5, %v880_v30  ;;  %v2386_v23 = vrot.slane %v8304_v58, 4  ;;  %v960_v12 = vrot.slane %v7036_v28, 5 }
 0x17d   : > { %v7063_v56 = vrot.slane %v8417_v61, 4  ;;  %v2454_v31 = vsel %vm1438_vm2, %v2409_v24, %v2453_v7  ;;  %v7072_v48 = vsel %vm1438_vm2, %v2317_v0, %v2361_v47  ;;  %v2390_v52 = vshrl.u32 %v881_v59, 16 }
 0x17e   : > { %8418 = vst [vmem:[#allocation76_spill] sm:$0xff] %v7072_v48  ;;  %v2393_v57 = vshll.u32 %v881_v59, 16  ;;  %3647 = vmatprep.mubr.bf16.mxu0 %v2454_v31  ;;  %v883_v36 = vshrl.u32 %v663_v62, 16  ;;  %v886_v18 = vshll.u32 %v663_v62, 16  ;;  %v7074_v17 = vor.u32 %v2386_v23, %v2385_v25 }
 0x17f   : > { %v961_v5 = vsel %vm916_vm1, %v958_v21, %v960_v12  ;;  %3648 = vmatmul.mubr.bf16.gmra.mrb[80].mxu0 %v7072_v48  ;;  %v2392_v61 = vrot.slane %v2390_v52, 3  ;;  %v4964_v52 = vunpack.c.l.bf16 %v5060_v32 }
 0x180   : > { %v2395_v58 = vrot.slane %v2393_v57, 4  ;;  %v2399_v1 = vshrl.u32 %v961_v5, 16  ;;  %v2402_v28 = vshll.u32 %v961_v5, 16  ;;  %v885_v24 = vrot.slane %v883_v36, 4 }
 0x181   : > { %v888_v50 = vrot.slane %v886_v18, 5  ;;  %v2495_v0 = vrot.slane %v883_v36, 3  ;;  %v2496_v11 = vrot.slane %v886_v18, 4  ;;  %v7081_v59 = vsel %vm1438_vm2, %v2343_v6, %v7074_v17 }
 0x182   : > { %v2396_v39 = vor.u32 %v2395_v58, %v2392_v61  ;;  %v2401_v25 = vrot.slane %v2399_v1, 3  ;;  %v2404_v23 = vrot.slane %v2402_v28, 4  ;;  %v4965_v57 = vunpack.c.h.bf16 %v5060_v32 }
 0x183   : > { %v7083_v31 = vor.u32 %v888_v50, %v885_v24  ;;  %v7085_v21 = vor.u32 %v2496_v11, %v2495_v0  ;;  %v8419_v36 = vmax.f32 %v7012_v27, 0.0  ;;  %v7094_v58 = vrot.slane %v663_v62, 5 }
 0x184   : > { %v7088_v5 = vsel %vm1438_vm2, %v2352_v15, %v2396_v39  ;;  %v2405_v48 = vor.u32 %v2404_v23, %v2401_v25  ;;  %v454_v1 = vmul.f32 %v6997_v26, %v4964_v52  ;;  %v455_v6 = vmul.f32 %v6997_v26, %v4965_v57 }
 0x185   : > { %v7092_v18 = vpack.c.bf16 %v524_v44, %v8419_v36  ;;  %8420 = vst [vmem:[#allocation77_spill] sm:$0xff] %v7094_v58  ;;  %3445 = vmatprep.mubr.bf16.mxu1 %v7088_v5  ;;  %v2498_v50 = vsel %vm1438_vm2, %v2453_v7, %v7085_v21  ;;  %v890_v11 = vsel %vm675_vm0, %v880_v30, %v7083_v31  ;;  %v8423_v61 = vshll.u32 %v6212_v49, 16 }
 0x186   : > { %3654 = vmatprep.mubr.bf16.mxu0 %v2498_v50  ;;  %3446 = vmatmul.mubr.bf16.gmra.mrb[84].mxu1 %v7081_v59  ;;  %v7105_v27 = vsel %vm1438_vm2, %v2361_v47, %v2405_v48  ;;  %v2434_v15 = vshrl.u32 %v890_v11, 16  ;;  %v2437_v44 = vshll.u32 %v890_v11, 16  ;;  %v493_v62 = vadd.f32 %v7009_v13, %v454_v1 }
 0x187   : > { %8421 = vst [vmem:[#allocation78_spill] sm:$0xff] %v7105_v27  ;;  %v8315_v32 = vshrl.u32 %v7092_v18, 16  ;;  %v7110_v7 = vadd.f32 %v7009_v13, %v455_v6  ;;  %v8314_v30 = vshll.u32 %v7092_v18, 16  ;;  %v963_v26 = vsel %vm916_vm1, %v960_v12, %v7094_v58  ;;  %3655 = vmatmul.mubr.bf16.gmra.mrb[84].mxu0 %v7105_v27 }
 0x188   : > { %v7117_v28 = vrot.slane %v8423_v61, 5  ;;  %v2436_v47 = vrot.slane %v2434_v15, 3  ;;  %v2439_v24 = vrot.slane %v2437_v44, 4  ;;  %v8424_v25 = vshrl.u32 %v6256_v42, 16 }
 0x189   : > { %8422 = vst [vmem:[#allocation79_spill] sm:$0xff] %v7110_v7  ;;  %v2429_v0 = vrot.slane %v8315_v32, 3  ;;  %v7126_v23 = vmax.f32 %v493_v62, 0.0  ;;  %v8313_v52 = vmax.f32 %v7110_v7, 0.0  ;;  %v2430_v12 = vrot.slane %v8314_v30, 4 }
 0x18a   : > { %v7124_v13 = vrot.slane %v8424_v25, 4  ;;  %v7131_v57 = vor.u32 %v2439_v24, %v2436_v47  ;;  %v2443_v36 = vshrl.u32 %v963_v26, 16  ;;  %v2446_v50 = vshll.u32 %v963_v26, 16 }
 0x18b   : > { %v2598_v11 = vshrl.u32 %v7083_v31, 16  ;;  %v7137_v1 = vpack.c.bf16 %v8313_v52, %v7126_v23  ;;  %v7139_v6 = vor.u32 %v2430_v12, %v2429_v0  ;;  %v2601_v15 = vshll.u32 %v7083_v31, 16 }
 0x18c   : > { %8425 = vst [vmem:[#allocation80_spill] sm:$0xff] %v7131_v57  ;;  %v664_v44 = vpack.c.bf16 %v7126_v23, %v7126_v23  ;;  %v7146_v62 = vsel %vm1438_vm2, %v2396_v39, %v7131_v57  ;;  %v2445_v61 = vrot.slane %v2443_v36, 3  ;;  %v2448_v26 = vrot.slane %v2446_v50, 4 }
 0x18d   : > { %8426 = vst [vmem:[#allocation81_spill] sm:$0xff] %v7139_v6  ;;  %8427 = vst [vmem:[#allocation82_spill] sm:$0xff] %v7146_v62  ;;  %v2600_v47 = vrot.slane %v2598_v11, 3  ;;  %3453 = vmatprep.mubr.bf16.mxu1 %v7146_v62  ;;  %v8317_v24 = vshrl.u32 %v7137_v1, 16  ;;  %v8319_v25 = vshll.u32 %v7137_v1, 16  ;;  %v7154_v0 = vsel %vm1438_vm2, %v7074_v17, %v7139_v6 }
 0x18e   : > { %8428 = vst [vmem:[#allocation83_spill] sm:$0xff] %v7154_v0  ;;  %v2603_v12 = vrot.slane %v2601_v15, 4  ;;  %v8429_v52 = vshll.u32 %v6256_v42, 16  ;;  %3454 = vmatmul.mubr.bf16.gmra.mrb[88].mxu1 %v7154_v0  ;;  %v7161_v39 = vor.u32 %v2448_v26, %v2445_v61  ;;  %v964_v36 = vrot.slane %v664_v44, 5 }
 0x18f   : > { %v1206_v50 = vrot.slane %v6030_v9, 5  ;;  %v8430_v11 = vshrl.u32 %v6312_v2, 16  ;;  %v2539_v17 = vrot.slane %v8317_v24, 3  ;;  %v2540_v15 = vrot.slane %v8319_v25, 4 }
 0x190   : > { %v7158_v30 = vrot.slane %v8429_v52, 5  ;;  %v2596_v52 = vsel %vm1438_vm2, %v7139_v6, %v6002_v54  ;;  %v7177_v61 = vsel %vm1438_vm2, %v2405_v48, %v7161_v39  ;;  %v2604_v44 = vor.u32 %v2603_v12, %v2600_v47 }
 0x191   : > { %v7166_v32 = vrot.slane %v8430_v11, 4  ;;  %8431 = vst [vmem:[#allocation84_spill] sm:$0xff] %v7177_v61  ;;  %v965_v9 = vsel %vm916_vm1, %v7094_v58, %v964_v36  ;;  %v1207_v26 = vrot.slane %v6113_v46, 5  ;;  %v2541_v11 = vor.u32 %v2540_v15, %v2539_v17 }
 0x192   : > { %v2607_v27 = vshrl.u32 %v965_v9, 16  ;;  %v2610_v24 = vshll.u32 %v965_v9, 16  ;;  %v1515_v0 = vshrl.u32 %v1206_v50, 16  ;;  %v2605_v25 = vsel %vm1438_vm2, %v7131_v57, %v2604_v44 }
 0x193   : > { %v1208_v7 = vsel %vm916_vm1, %v1206_v50, %v1207_v26  ;;  %v1518_v6 = vshll.u32 %v1206_v50, 16  ;;  %v982_v48 = vsel %vm675_vm0, %v6090_v40, %v6155_v45  ;;  %v2542_v47 = vsel %vm1438_vm2, %v7085_v21, %v2541_v11  ;;  %3460 = vmatprep.mubr.bf16.mxu1 %v2605_v25 }
 0x194   : > { %v2623_v46 = vsel %vm1438_vm2, %v2541_v11, %v6002_v54  ;;  %v2609_v12 = vrot.slane %v2607_v27, 3  ;;  %v2612_v36 = vrot.slane %v2610_v24, 4  ;;  %3662 = vmatprep.mubr.bf16.mxu0 %v2542_v47  ;;  %v1517_v17 = vrot.slane %v1515_v0, 3 }
 0x195   : > { %v1520_v15 = vrot.slane %v1518_v6, 4  ;;  %v1523_v44 = vshrl.u32 %v1208_v7, 16  ;;  %v1526_v9 = vshll.u32 %v1208_v7, 16  ;;  %3663 = vmatmul.mubr.bf16.gmra.mrb[88].mxu0 %v7177_v61  ;;  %v1498_v58 = vshrl.u32 %v6090_v40, 16 }
 0x196   : > { %v2613_v50 = vor.u32 %v2612_v36, %v2609_v12  ;;  %v1501_v57 = vshll.u32 %v6090_v40, 16  ;;  %v1506_v62 = vshrl.u32 %v982_v48, 16  ;;  %3669 = vmatprep.mubr.bf16.mxu0 %v2623_v46  ;;  %3461 = vmatmul.mubr.bf16.gmra.mrb[92].mxu1 %v2596_v52  ;;  %v1509_v27 = vshll.u32 %v982_v48, 16 }
 0x197   : > { %v1521_v21 = vor.u32 %v1520_v15, %v1517_v17  ;;  %v1525_v25 = vrot.slane %v1523_v44, 3  ;;  %v1528_v11 = vrot.slane %v1526_v9, 4  ;;  %v8432_v24 = vshll.u32 %v6312_v2, 16  ;;  %3962 = vmatprep.mubr.bf16.mxu1 %v6568_v41 }
 0x198   : > { %v1500_v7 = vrot.slane %v1498_v58, 3  ;;  %v1503_v6 = vrot.slane %v1501_v57, 4  ;;  %v1508_v47 = vrot.slane %v1506_v62, 3  ;;  %v1511_v36 = vrot.slane %v1509_v27, 4 }
 0x199   : > { %v1016_v0 = vrot.slane %v8432_v24, 5  ;;  %v1529_v12 = vor.u32 %v1528_v11, %v1525_v25  ;;  %v1209_v61 = vrot.slane %v6165_v53, 5  ;;  %v990_v40 = vor.u32 %v7050_v29, %v7022_v55 }
 0x19a   : > { %v2614_v52 = vsel %vm1438_vm2, %v7161_v39, %v2613_v50  ;;  %v1504_v46 = vor.u32 %v1503_v6, %v1500_v7  ;;  %v1211_v48 = vrot.slane %v6212_v49, 5  ;;  %v999_v17 = vor.u32 %v7117_v28, %v7063_v56 }
 0x19b   : > { %v1530_v41 = vsel %vm1438_vm2, %v1521_v21, %v1529_v12  ;;  %v1512_v58 = vor.u32 %v1511_v36, %v1508_v47  ;;  %v1210_v57 = vsel %vm916_vm1, %v1207_v26, %v1209_v61  ;;  %v991_v53 = vsel %vm675_vm0, %v6155_v45, %v990_v40  ;;  %v5446_v21 = vld [vmem:[#allocation9 + $0x208] sm:$0xff]  }
 0x19c   : > { %v1608_v62 = vshrl.u32 %v1210_v57, 16  ;;  %v1611_v15 = vshll.u32 %v1210_v57, 16  ;;  %v1599_v29 = vshrl.u32 %v991_v53, 16  ;;  %v1602_v55 = vshll.u32 %v991_v53, 16 }
 0x19d   : > { %v8433_v44 = vshrl.u32 %v6402_v60, 16  ;;  %v1513_v49 = vsel %vm1438_vm2, %v1504_v46, %v1512_v58  ;;  %v1212_v50 = vsel %vm916_vm1, %v1209_v61, %v1211_v48  ;;  %v1000_v56 = vsel %vm675_vm0, %v990_v40, %v999_v17  ;;  %3670 = vmatmul.mubr.bf16.gmra.mrb[92].mxu0 %v2614_v52 }
 0x19e   : > { %v7215_v28 = vpop.f32.mrb[0].mxu1  ;;  %v1610_v26 = vrot.slane %v1608_v62, 3  ;;  %v1613_v25 = vrot.slane %v1611_v15, 4  ;;  %v1601_v45 = vrot.slane %v1599_v29, 3  ;;  %v1604_v11 = vrot.slane %v1602_v55, 4  ;;  %3709 = vmatprep.mubr.bf16.mxu0 %v1530_v41  ;;  %3963 = vmatmul.mubr.bf16.vlgmr.msra.gmra.mrb[96].mxu1 %v6579_v63  ;;  %v5447_v62 = vld [vmem:[#allocation9 + $0x210] sm:$0xff]  }
 0x19f   : > { %v1022_v9 = vrot.slane %v8433_v44, 4  ;;  %8434 = vst [vmem:[#allocation85_spill] sm:$0xff] %v7215_v28  ;;  %v3295_v27 = vpop.f32.mrb[1].mxu1  ;;  %v1671_v24 = vshrl.u32 %v1212_v50, 16  ;;  %v1662_v7 = vshrl.u32 %v1000_v56, 16  ;;  %v1665_v6 = vshll.u32 %v1000_v56, 16  ;;  %3970 = vmatprep.mubr.bf16.mxu1 %v6619_v34  ;;  %5109 = vmatpush3.bf16.msra.mxu1 %v6856_v22 }
 0x1a0   : > { %v1213_v47 = vrot.slane %v6256_v42, 5  ;;  %v7219_v61 = vpop.f32.mrb[2].mxu1  ;;  %v8436_v36 = vshll.u32 %v6402_v60, 16  ;;  %v7223_v46 = vor.u32 %v1613_v25, %v1610_v26  ;;  %v1605_v52 = vor.u32 %v1604_v11, %v1601_v45  ;;  %5110 = vmatprep.subr.bf16.mxu1 %v5446_v21 }
 0x1a1   : > { %8435 = vst [vmem:[#allocation86_spill] sm:$0xff] %v7219_v61  ;;  %v1674_v57 = vshll.u32 %v1212_v50, 16  ;;  %v3298_v53 = vpop.f32.mrb[3].mxu1  ;;  %v1664_v63 = vrot.slane %v1662_v7, 3  ;;  %v1667_v41 = vrot.slane %v1665_v6, 4  ;;  %v1673_v29 = vrot.slane %v1671_v24, 3 }
 0x1a2   : > { %v1025_v40 = vrot.slane %v8436_v36, 5  ;;  %v7228_v15 = vsel %vm1438_vm2, %v1512_v58, %v1605_v52  ;;  %v1214_v44 = vsel %vm916_vm1, %v1211_v48, %v1213_v47  ;;  %v1008_v34 = vor.u32 %v7158_v30, %v7124_v13 }
 0x1a3   : > { %v1668_v55 = vor.u32 %v1667_v41, %v1664_v63  ;;  %v1615_v50 = vsel %vm1438_vm2, %v1529_v12, %v7223_v46  ;;  %v1676_v22 = vrot.slane %v1674_v57, 4  ;;  %v1017_v56 = vor.u32 %v1016_v0, %v7166_v32  ;;  %5111 = vmatpush3.bf16.msra.mxu1 %v5446_v21  ;;  %v5457_v21 = vld [vmem:[#allocation9 + $0x180] sm:$0xff]  }
 0x1a4   : > { %v7238_v26 = vor.u32 %v1025_v40, %v1022_v9  ;;  %v8437_v58 = vshrl.u32 %v6452_v37, 16  ;;  %v1009_v48 = vsel %vm675_vm0, %v999_v17, %v1008_v34  ;;  %5112 = vmatprep.subr.bf16.mxu1 %v5447_v62  ;;  %v8438_v30 = vshll.u32 %v6452_v37, 16  ;;  %v5448_v9 = vld [vmem:[#allocation9 + $0x218] sm:$0xff]  }
 0x1a5   : > { %v7243_v45 = vsel %vm1438_vm2, %v1605_v52, %v1668_v55  ;;  %3710 = vmatmul.mubr.bf16.vlgmr.msra.gmra.mrb[0].mxu0 %v1513_v49  ;;  %v1708_v12 = vshrl.u32 %v1009_v48, 16  ;;  %v1711_v27 = vshll.u32 %v1009_v48, 16  ;;  %v1717_v24 = vshrl.u32 %v1214_v44, 16 }
 0x1a6   : > { %v1031_v25 = vrot.slane %v8437_v58, 4  ;;  %v3301_v11 = vpop.f32.mrb[4].mxu1  ;;  %v1034_v13 = vrot.slane %v8438_v30, 5  ;;  %3887 = vmatpush1.bf16.msra.mxu0 %v5457_v21  ;;  %3717 = vmatprep.mubr.bf16.mxu0 %v1615_v50  ;;  %v1720_v7 = vshll.u32 %v1214_v44, 16  ;;  %v1018_v17 = vsel %vm675_vm0, %v1008_v34, %v1017_v56 }
 0x1a7   : > { %v3510_v32 = vpop.f32.mrb[4].mxu0  ;;  %v3302_v0 = vpop.f32.mrb[5].mxu1  ;;  %v1027_v40 = vsel %vm675_vm0, %v1017_v56, %v7238_v26  ;;  %3971 = vmatmul.mubr.bf16.gmra.mrb[100].mxu1 %v6630_v14  ;;  %3888 = vmatprep.subr.bf16.mxu0 %v8369_v38  ;;  %v7253_v49 = vor.u32 %v1676_v22, %v1673_v29  ;;  %v1710_v52 = vrot.slane %v1708_v12, 3  ;;  %v1713_v57 = vrot.slane %v1711_v27, 4  ;;  %v5449_v12 = vld [vmem:[#allocation9 + $0x220] sm:$0xff]   ;;  %v5458_v27 = vld [vmem:[#allocation9 + $0x188] sm:$0xff]  }
 0x1a8   : > { %v3511_v6 = vpop.f32.mrb[5].mxu0  ;;  %v3303_v36 = vpop.f32.mrb[6].mxu1  ;;  %v1752_v63 = vshrl.u32 %v1018_v17, 16  ;;  %v8439_v44 = vshrl.u32 %v6529_v20, 16  ;;  %3977 = vmatprep.mubr.bf16.mxu1 %v6674_v51  ;;  %v1215_v56 = vrot.slane %v6312_v2, 5  ;;  %v1755_v14 = vshll.u32 %v1018_v17, 16  ;;  %5113 = vmatpush3.bf16.msra.mxu1 %v5447_v62 }
 0x1a9   : > { %v3512_v53 = vpop.f32.mrb[6].mxu0  ;;  %v3305_v41 = vpop.f32.mrb[7].mxu1  ;;  %v8440_v29 = vshll.u32 %v6529_v20, 16  ;;  %v1714_v48 = vor.u32 %v1713_v57, %v1710_v52  ;;  %v1796_v30 = vshrl.u32 %v1027_v40, 16  ;;  %5114 = vmatprep.subr.bf16.mxu1 %v5448_v9  ;;  %v1719_v32 = vrot.slane %v1717_v24, 3  ;;  %v5450_v57 = vld [vmem:[#allocation9 + $0x228] sm:$0xff]  }
 0x1aa   : > { %v1040_v50 = vrot.slane %v8439_v44, 4  ;;  %v7258_v34 = vadd.f32 %v3512_v53, %v3303_v36  ;;  %v3514_v58 = vpop.f32.mrb[7].mxu0  ;;  %v1754_v11 = vrot.slane %v1752_v63, 3  ;;  %3889 = vmatpush1.bf16.msra.mxu0 %v5458_v27  ;;  %v1722_v0 = vrot.slane %v1720_v7, 4  ;;  %v5459_v63 = vld [vmem:[#allocation9 + $0x190] sm:$0xff]  }
 0x1ab   : > { %v1043_v22 = vrot.slane %v8440_v29, 5  ;;  %v1757_v51 = vrot.slane %v1755_v14, 4  ;;  %v1799_v21 = vshll.u32 %v1027_v40, 16  ;;  %v1678_v6 = vsel %vm1438_vm2, %v7223_v46, %v7253_v49  ;;  %3890 = vmatprep.subr.bf16.mxu0 %v8369_v38 }
 0x1ac   : > { %v7267_v62 = vsel %vm1438_vm2, %v1668_v55, %v1714_v48  ;;  %v1798_v36 = vrot.slane %v1796_v30, 3  ;;  %v1216_v17 = vsel %vm916_vm1, %v1213_v47, %v1215_v56  ;;  %v1035_v52 = vor.u32 %v1034_v13, %v1031_v25  ;;  %5115 = vmatpush3.bf16.msra.mxu1 %v5448_v9  ;;  %v5451_v30 = vld [vmem:[#allocation9 + $0x230] sm:$0xff]  }
 0x1ad   : > { %v1758_v24 = vor.u32 %v1757_v51, %v1754_v11  ;;  %v1801_v40 = vrot.slane %v1799_v21, 4  ;;  %3718 = vmatmul.mubr.bf16.gmra.mrb[96].mxu0 %v7228_v15  ;;  %v7278_v55 = vor.u32 %v1043_v22, %v1040_v50  ;;  %5116 = vmatprep.subr.bf16.mxu1 %v5449_v12  ;;  %v7280_v53 = vor.u32 %v1722_v0, %v1719_v32 }
 0x1ae   : > { %v7275_v7 = vpop.f32.mrb[8].mxu1  ;;  %3724 = vmatprep.mubr.bf16.mxu0 %v1678_v6  ;;  %3891 = vmatpush1.bf16.msra.mxu0 %v5459_v63  ;;  %v1761_v25 = vshrl.u32 %v1216_v17, 16  ;;  %v1764_v13 = vshll.u32 %v1216_v17, 16  ;;  %v1217_v15 = vrot.slane %v6402_v60, 5  ;;  %v1036_v44 = vsel %vm675_vm0, %v7238_v26, %v1035_v52  ;;  %v5460_v26 = vld [vmem:[#allocation9 + $0x198] sm:$0xff]  }
 0x1af   : > { %8441 = vst [vmem:[#allocation87_spill] sm:$0xff] %v7275_v7  ;;  %v3310_v46 = vpop.f32.mrb[9].mxu1  ;;  %v7283_v42 = vsel %vm1438_vm2, %v1714_v48, %v1758_v24  ;;  %v1802_v47 = vor.u32 %v1801_v40, %v1798_v36  ;;  %3978 = vmatmul.mubr.bf16.gmra.mrb[104].mxu1 %v6670_v43  ;;  %3892 = vmatprep.subr.bf16.mxu0 %v8369_v38  ;;  %v1840_v58 = vshrl.u32 %v1036_v44, 16  ;;  %v8442_v14 = vshrl.u32 %v6585_v16, 16 }
 0x1b0   : > { %v3311_v41 = vpop.f32.mrb[10].mxu1  ;;  %3984 = vmatprep.mubr.bf16.mxu1 %v6706_v3  ;;  %5117 = vmatpush3.bf16.msra.mxu1 %v5449_v12  ;;  %v8443_v29 = vshll.u32 %v6585_v16, 16  ;;  %v1843_v48 = vshll.u32 %v1036_v44, 16  ;;  %v1045_v11 = vsel %vm675_vm0, %v1035_v52, %v7278_v55  ;;  %v1724_v3 = vsel %vm1438_vm2, %v7253_v49, %v7280_v53 }
 0x1b1   : > { %v3312_v9 = vpop.f32.mrb[11].mxu1  ;;  %v7292_v50 = vsel %vm1438_vm2, %v1758_v24, %v1802_v47  ;;  %v1049_v43 = vrot.slane %v8442_v14, 4  ;;  %5118 = vmatprep.subr.bf16.mxu1 %v5450_v57  ;;  %v1842_v27 = vrot.slane %v1840_v58, 3  ;;  %v1884_v12 = vshrl.u32 %v1045_v11, 16  ;;  %v5452_v58 = vld [vmem:[#allocation9 + $0x238] sm:$0xff]  }
 0x1b2   : > { %v1052_v22 = vrot.slane %v8443_v29, 5  ;;  %3893 = vmatpush1.bf16.msra.mxu0 %v5460_v26  ;;  %v1887_v32 = vshll.u32 %v1045_v11, 16  ;;  %v1763_v0 = vrot.slane %v1761_v25, 3  ;;  %v1766_v51 = vrot.slane %v1764_v13, 4  ;;  %v5461_v26 = vld [vmem:[#allocation9 + $0x1a0] sm:$0xff]  }
 0x1b3   : > { %v1218_v21 = vsel %vm916_vm1, %v1215_v56, %v1217_v15  ;;  %v1845_v6 = vrot.slane %v1843_v48, 4  ;;  %3894 = vmatprep.subr.bf16.mxu0 %v8369_v38  ;;  %v8444_v36 = vshrl.u32 %v6625_v35, 16  ;;  %v8445_v49 = vshll.u32 %v6625_v35, 16 }
 0x1b4   : > { %v1886_v52 = vrot.slane %v1884_v12, 3  ;;  %v1889_v46 = vrot.slane %v1887_v32, 4  ;;  %5119 = vmatpush3.bf16.msra.mxu1 %v5450_v57  ;;  %v8446_v63 = vshrl.u32 %v6665_v4, 16  ;;  %v8447_v2 = vshll.u32 %v6665_v4, 16 }
 0x1b5   : > { %v1058_v17 = vrot.slane %v8444_v36, 4  ;;  %v1061_v24 = vrot.slane %v8445_v49, 5  ;;  %3725 = vmatmul.mubr.bf16.gmra.mrb[8].mxu0 %v7243_v45  ;;  %v1846_v9 = vor.u32 %v1845_v6, %v1842_v27  ;;  %v1053_v44 = vor.u32 %v1052_v22, %v1049_v43  ;;  %5120 = vmatprep.subr.bf16.mxu1 %v5451_v30 }
 0x1b6   : > { %v3315_v40 = vpop.f32.mrb[12].mxu1  ;;  %v1067_v41 = vrot.slane %v8446_v63, 4  ;;  %v1070_v25 = vrot.slane %v8447_v2, 5  ;;  %3731 = vmatprep.mubr.bf16.mxu0 %v1724_v3  ;;  %v1805_v14 = vshrl.u32 %v1218_v21, 16  ;;  %v1808_v29 = vshll.u32 %v1218_v21, 16  ;;  %3895 = vmatpush1.bf16.msra.mxu0 %v5461_v26 }
 0x1b7   : > { %v3524_v56 = vpop.f32.mrb[12].mxu0  ;;  %v3317_v13 = vpop.f32.mrb[13].mxu1  ;;  %v1890_v12 = vor.u32 %v1889_v46, %v1886_v52  ;;  %3985 = vmatmul.mubr.bf16.gmra.mrb[108].mxu1 %v6701_v10  ;;  %v1767_v32 = vor.u32 %v1766_v51, %v1763_v0  ;;  %v1219_v36 = vrot.slane %v6452_v37, 5  ;;  %v7323_v43 = vsel %vm1438_vm2, %v1802_v47, %v1846_v9  ;;  %3896 = vmatprep.subr.bf16.mxu0 %v8369_v38 }
 0x1b8   : > { %v7318_v48 = vadd.f32 %v3524_v56, %v3315_v40  ;;  %v3526_v57 = vpop.f32.mrb[13].mxu0  ;;  %v3318_v11 = vpop.f32.mrb[14].mxu1  ;;  %v1054_v3 = vsel %vm675_vm0, %v7278_v55, %v1053_v44  ;;  %3992 = vmatprep.mubr.bf16.mxu1 %v6749_v19  ;;  %5121 = vmatpush3.bf16.msra.mxu1 %v5451_v30  ;;  %v1062_v6 = vor.u32 %v1061_v24, %v1058_v17  ;;  %v1807_v47 = vrot.slane %v1805_v14, 3  ;;  %v5462_v40 = vld [vmem:[#allocation9 + $0x1a8] sm:$0xff]  }
 0x1b9   : > { %v3527_v45 = vpop.f32.mrb[14].mxu0  ;;  %v3320_v22 = vpop.f32.mrb[15].mxu1  ;;  %v7332_v10 = vsel %vm1438_vm2, %v1846_v9, %v1890_v12  ;;  %v1928_v0 = vshrl.u32 %v1054_v3, 16  ;;  %v1931_v51 = vshll.u32 %v1054_v3, 16  ;;  %5122 = vmatprep.subr.bf16.mxu1 %v5452_v58  ;;  %v1810_v49 = vrot.slane %v1808_v29, 4  ;;  %v8453_v3 = vld [vmem:[#allocation47_spill] sm:$0xff] }
 0x1ba   : > { %v7329_v27 = vadd.f32 %v3527_v45, %v3318_v11  ;;  %v3529_v21 = vpop.f32.mrb[15].mxu0  ;;  %3897 = vmatpush1.bf16.msra.mxu0 %v5462_v40  ;;  %v8448_v55 = vshrl.u32 %v6719_v8, 16  ;;  %v1768_v63 = vsel %vm1438_vm2, %v7280_v53, %v1767_v32  ;;  %v1063_v2 = vsel %vm675_vm0, %v1053_v44, %v1062_v6  ;;  %v5463_v45 = vld [vmem:[#allocation9 + $0x1b0] sm:$0xff]  }
 0x1bb   : > { %v1930_v52 = vrot.slane %v1928_v0, 3  ;;  %v1933_v46 = vrot.slane %v1931_v51, 4  ;;  %3898 = vmatprep.subr.bf16.mxu0 %v8369_v38  ;;  %v1071_v56 = vor.u32 %v1070_v25, %v1067_v41  ;;  %v8449_v30 = vshll.u32 %v6719_v8, 16 }
 0x1bc   : > { %v1076_v19 = vrot.slane %v8448_v55, 4  ;;  %v1220_v24 = vsel %vm916_vm1, %v1217_v15, %v1219_v36  ;;  %v1972_v14 = vshrl.u32 %v1063_v2, 16  ;;  %5123 = vmatpush3.bf16.msra.mxu1 %v5452_v58  ;;  %v8450_v53 = vshrl.u32 %v6746_v33, 16 }
 0x1bd   : > { %v1079_v17 = vrot.slane %v8449_v30, 5  ;;  %v1934_v9 = vor.u32 %v1933_v46, %v1930_v52  ;;  %v8451_v44 = vshll.u32 %v6746_v33, 16  ;;  %3732 = vmatmul.mubr.bf16.gmra.mrb[100].mxu0 %v7267_v62  ;;  %v1975_v25 = vshll.u32 %v1063_v2, 16 }
 0x1be   : > { %v3323_v13 = vpop.f32.mrb[16].mxu1  ;;  %v1085_v29 = vrot.slane %v8450_v53, 4  ;;  %v1072_v11 = vsel %vm675_vm0, %v1062_v6, %v1071_v56  ;;  %3739 = vmatprep.mubr.bf16.mxu0 %v1768_v63  ;;  %v7353_v60 = vor.u32 %v1810_v49, %v1807_v47  ;;  %v1974_v58 = vrot.slane %v1972_v14, 3  ;;  %3899 = vmatpush1.bf16.msra.mxu0 %v5463_v45  ;;  %v8454_v6 = vld [vmem:[#allocation50_spill] sm:$0xff] }
 0x1bf   : > { %v1088_v57 = vrot.slane %v8451_v44, 5  ;;  %v3324_v41 = vpop.f32.mrb[17].mxu1  ;;  %v7358_v26 = vsel %vm1438_vm2, %v1890_v12, %v1934_v9  ;;  %v2016_v22 = vshrl.u32 %v1072_v11, 16  ;;  %3993 = vmatmul.mubr.bf16.gmra.mrb[112].mxu1 %v8453_v3  ;;  %v1849_v21 = vshrl.u32 %v1220_v24, 16  ;;  %3900 = vmatprep.subr.bf16.mxu0 %v8369_v38  ;;  %v5464_v63 = vld [vmem:[#allocation9 + $0x1b8] sm:$0xff]  }
 0x1c0   : > { %v7355_v15 = vpop.f32.mrb[18].mxu1  ;;  %v1852_v62 = vshll.u32 %v1220_v24, 16  ;;  %v1977_v51 = vrot.slane %v1975_v25, 4  ;;  %v2019_v40 = vshll.u32 %v1072_v11, 16  ;;  %3999 = vmatprep.mubr.bf16.mxu1 %v8454_v6  ;;  %v1221_v47 = vrot.slane %v6529_v20, 5  ;;  %v8455_v44 = vld [vmem:[#allocation49_spill] sm:$0xff] }
 0x1c1   : > { %8452 = vst [vmem:[#allocation88_spill] sm:$0xff] %v7355_v15  ;;  %v3327_v0 = vpop.f32.mrb[19].mxu1  ;;  %v2018_v49 = vrot.slane %v2016_v22, 3  ;;  %v1080_v12 = vor.u32 %v1079_v17, %v1076_v19  ;;  %v1812_v55 = vsel %vm1438_vm2, %v1767_v32, %v7353_v60  ;;  %v1089_v30 = vor.u32 %v1088_v57, %v1085_v29  ;;  %v8490_v15 = vld [vmem:[#allocation71_spill] sm:$0xff] }
 0x1c2   : > { %v1978_v52 = vor.u32 %v1977_v51, %v1974_v58  ;;  %v2021_v46 = vrot.slane %v2019_v40, 4  ;;  %3901 = vmatpush1.bf16.msra.mxu0 %v5464_v63  ;;  %v1851_v24 = vrot.slane %v1849_v21, 3  ;;  %v1854_v13 = vrot.slane %v1852_v62, 4  ;;  %v5465_v21 = vld [vmem:[#allocation9 + $0x1c0] sm:$0xff]  }
 0x1c3   : > { %v1081_v2 = vsel %vm675_vm0, %v1071_v56, %v1080_v12  ;;  %3902 = vmatprep.subr.bf16.mxu0 %v8369_v38  ;;  %v1222_v20 = vsel %vm916_vm1, %v1219_v36, %v1221_v47  ;;  %v8456_v41 = vshrl.u32 %v8455_v44, 16  ;;  %v8457_v56 = vshll.u32 %v8455_v44, 16  ;;  %v8458_v62 = vld [vmem:[#allocation51_spill] sm:$0xff]  ;;  %v8461_v63 = vld [vmem:[#allocation54_spill] sm:$0xff] }
 0x1c4   : > { %v7368_v14 = vsel %vm1438_vm2, %v1934_v9, %v1978_v52  ;;  %v2022_v53 = vor.u32 %v2021_v46, %v2018_v49  ;;  %v2060_v17 = vshrl.u32 %v1081_v2, 16  ;;  %v2063_v32 = vshll.u32 %v1081_v2, 16 }
 0x1c5   : > { %v1094_v25 = vrot.slane %v8456_v41, 4  ;;  %v1097_v29 = vrot.slane %v8457_v56, 5  ;;  %3740 = vmatmul.mubr.bf16.gmra.mrb[16].mxu0 %v7283_v42  ;;  %v1223_v58 = vrot.slane %v6585_v16, 5  ;;  %v7386_v0 = vor.u32 %v1854_v13, %v1851_v24 }
 0x1c6   : > { %v3330_v19 = vpop.f32.mrb[20].mxu1  ;;  %v7380_v11 = vsel %vm1438_vm2, %v1978_v52, %v2022_v53  ;;  %3746 = vmatprep.mubr.bf16.mxu0 %v1812_v55  ;;  %v2062_v22 = vrot.slane %v2060_v17, 3  ;;  %v2065_v3 = vrot.slane %v2063_v32, 4  ;;  %3903 = vmatpush1.bf16.msra.mxu0 %v5465_v21  ;;  %v1893_v42 = vshrl.u32 %v1222_v20, 16  ;;  %v8459_v52 = vld [vmem:[#allocation55_spill] sm:$0xff] }
 0x1c7   : > { %v3539_v9 = vpop.f32.mrb[20].mxu0  ;;  %v3332_v57 = vpop.f32.mrb[21].mxu1  ;;  %4000 = vmatmul.mubr.bf16.gmra.mrb[116].mxu1 %v8458_v62  ;;  %v1896_v51 = vshll.u32 %v1222_v20, 16  ;;  %v1090_v49 = vsel %vm675_vm0, %v1080_v12, %v1089_v30  ;;  %3904 = vmatprep.subr.bf16.mxu0 %v8369_v38  ;;  %v8460_v46 = vshrl.u32 %v8459_v52, 16  ;;  %v8462_v24 = vshll.u32 %v8459_v52, 16 }
 0x1c8   : > { %v7382_v37 = vadd.f32 %v3539_v9, %v3330_v19  ;;  %v3541_v36 = vpop.f32.mrb[21].mxu0  ;;  %v3333_v45 = vpop.f32.mrb[22].mxu1  ;;  %4006 = vmatprep.mubr.bf16.mxu1 %v8461_v63  ;;  %v2066_v19 = vor.u32 %v2065_v3, %v2062_v22  ;;  %v2104_v17 = vshrl.u32 %v1090_v49, 16  ;;  %v2107_v32 = vshll.u32 %v1090_v49, 16  ;;  %v5466_v3 = vld [vmem:[#allocation9 + $0x1c8] sm:$0xff]  }
 0x1c9   : > { %v3542_v40 = vpop.f32.mrb[22].mxu0  ;;  %v3334_v6 = vpop.f32.mrb[23].mxu1  ;;  %v1103_v55 = vrot.slane %v8460_v46, 4  ;;  %v1106_v13 = vrot.slane %v8462_v24, 5  ;;  %v8463_v20 = vshrl.u32 %v7137_v1, 16  ;;  %v8464_v56 = vshll.u32 %v7137_v1, 16 }
 0x1ca   : > { %v3543_v2 = vpop.f32.mrb[23].mxu0  ;;  %v1098_v9 = vor.u32 %v1097_v29, %v1094_v25  ;;  %v1224_v57 = vsel %vm916_vm1, %v1221_v47, %v1223_v58  ;;  %v7403_v36 = vsel %vm1438_vm2, %v2022_v53, %v2066_v19  ;;  %v2106_v45 = vrot.slane %v2104_v17, 3  ;;  %3905 = vmatpush1.bf16.msra.mxu0 %v5466_v3  ;;  %v8465_v24 = vld [vmem:[#allocation53_spill] sm:$0xff] }
 0x1cb   : > { %v1258_v41 = vrot.slane %v8463_v20, 4  ;;  %v1261_v12 = vrot.slane %v8464_v56, 5  ;;  %v2109_v22 = vrot.slane %v2107_v32, 4  ;;  %v1856_v21 = vsel %vm1438_vm2, %v7353_v60, %v7386_v0  ;;  %3906 = vmatprep.subr.bf16.mxu0 %v8369_v38  ;;  %v5467_v32 = vld [vmem:[#allocation9 + $0x1d0] sm:$0xff]  }
 0x1cc   : > { %v1895_v62 = vrot.slane %v1893_v42, 3  ;;  %v1898_v40 = vrot.slane %v1896_v51, 4  ;;  %v1099_v6 = vsel %vm675_vm0, %v1089_v30, %v1098_v9  ;;  %v1937_v49 = vshrl.u32 %v1224_v57, 16 }
 0x1cd   : > { %v2110_v47 = vor.u32 %v2109_v22, %v2106_v45  ;;  %v2148_v29 = vshrl.u32 %v1099_v6, 16  ;;  %v2151_v53 = vshll.u32 %v1099_v6, 16  ;;  %3747 = vmatmul.mubr.bf16.gmra.mrb[104].mxu0 %v7292_v50  ;;  %v7413_v63 = vor.u32 %v1261_v12, %v1258_v41  ;;  %v8466_v41 = vld [vmem:[#allocation57_spill] sm:$0xff]  ;;  %v8467_v12 = vld [vmem:[#allocation58_spill] sm:$0xff] }
 0x1ce   : > { %v7410_v25 = vpop.f32.mrb[24].mxu1  ;;  %v1107_v2 = vor.u32 %v1106_v13, %v1103_v55  ;;  %3753 = vmatprep.mubr.bf16.mxu0 %v1856_v21  ;;  %v1940_v60 = vshll.u32 %v1224_v57, 16  ;;  %3907 = vmatpush1.bf16.msra.mxu0 %v5467_v32  ;;  %v1899_v20 = vor.u32 %v1898_v40, %v1895_v62  ;;  %v1225_v55 = vrot.slane %v6625_v35, 5 }
 0x1cf   : > { %v3339_v46 = vpop.f32.mrb[25].mxu1  ;;  %v7418_v30 = vsel %vm1438_vm2, %v2066_v19, %v2110_v47  ;;  %v2150_v51 = vrot.slane %v2148_v29, 3  ;;  %v2153_v17 = vrot.slane %v2151_v53, 4  ;;  %4007 = vmatmul.mubr.bf16.gmra.mrb[120].mxu1 %v8465_v24  ;;  %3908 = vmatprep.subr.bf16.mxu0 %v8369_v38  ;;  %v8468_v19 = vshrl.u32 %v8467_v12, 16  ;;  %v5468_v29 = vld [vmem:[#allocation9 + $0x1d8] sm:$0xff]  }
 0x1d0   : > { %v7415_v42 = vpop.f32.mrb[26].mxu1  ;;  %4014 = vmatprep.mubr.bf16.mxu1 %v8466_v41  ;;  %v1108_v56 = vsel %vm675_vm0, %v1098_v9, %v1107_v2  ;;  %v8469_v3 = vshll.u32 %v8467_v12, 16  ;;  %v1939_v6 = vrot.slane %v1937_v49, 3  ;;  %v1942_v62 = vrot.slane %v1940_v60, 4 }
 0x1d1   : > { %v3342_v50 = vpop.f32.mrb[27].mxu1  ;;  %v2154_v13 = vor.u32 %v2153_v17, %v2150_v51  ;;  %v1112_v57 = vrot.slane %v8468_v19, 4  ;;  %v2192_v45 = vshrl.u32 %v1108_v56, 16  ;;  %v2195_v22 = vshll.u32 %v1108_v56, 16  ;;  %v8470_v17 = vld [vmem:[#allocation61_spill] sm:$0xff] }
 0x1d2   : > { %v1115_v21 = vrot.slane %v8469_v3, 5  ;;  %3909 = vmatpush1.bf16.msra.mxu0 %v5468_v29  ;;  %v1900_v35 = vsel %vm1438_vm2, %v7386_v0, %v1899_v20  ;;  %v1226_v46 = vsel %vm916_vm1, %v1223_v58, %v1225_v55  ;;  %v8471_v32 = vshrl.u32 %v8470_v17, 16  ;;  %v8473_v58 = vld [vmem:[#allocation59_spill] sm:$0xff] }
 0x1d3   : > { %v7430_v40 = vsel %vm1438_vm2, %v2110_v47, %v2154_v13  ;;  %v2194_v53 = vrot.slane %v2192_v45, 3  ;;  %v2197_v9 = vrot.slane %v2195_v22, 4  ;;  %3910 = vmatprep.subr.bf16.mxu0 %v8369_v38  ;;  %v1943_v50 = vor.u32 %v1942_v62, %v1939_v6  ;;  %v8474_v6 = vld [vmem:[#allocation63_spill] sm:$0xff] }
 0x1d4   : > { %v1121_v24 = vrot.slane %v8471_v32, 4  ;;  %v1227_v56 = vrot.slane %v6665_v4, 5  ;;  %v1116_v19 = vor.u32 %v1115_v21, %v1112_v57  ;;  %v8472_v16 = vshll.u32 %v8470_v17, 16 }
 0x1d5   : > { %3754 = vmatmul.mubr.bf16.gmra.mrb[24].mxu0 %v7323_v43  ;;  %v2198_v47 = vor.u32 %v2197_v9, %v2194_v53  ;;  %v1981_v22 = vshrl.u32 %v1226_v46, 16  ;;  %v1984_v43 = vshll.u32 %v1226_v46, 16  ;;  %v5469_v9 = vld [vmem:[#allocation9 + $0x1e0] sm:$0xff]  }
 0x1d6   : > { %v3345_v51 = vpop.f32.mrb[28].mxu1  ;;  %3761 = vmatprep.mubr.bf16.mxu0 %v1900_v35  ;;  %v1124_v45 = vrot.slane %v8472_v16, 5  ;;  %3911 = vmatpush1.bf16.msra.mxu0 %v5469_v9  ;;  %v1117_v57 = vsel %vm675_vm0, %v1107_v2, %v1116_v19  ;;  %v1944_v35 = vsel %vm1438_vm2, %v1899_v20, %v1943_v50  ;;  %v1228_v46 = vsel %vm916_vm1, %v1225_v55, %v1227_v56 }
 0x1d7   : > { %v3554_v49 = vpop.f32.mrb[28].mxu0  ;;  %v3346_v60 = vpop.f32.mrb[29].mxu1  ;;  %4015 = vmatmul.mubr.bf16.gmra.mrb[124].mxu1 %v8473_v58  ;;  %v7446_v53 = vsel %vm1438_vm2, %v2154_v13, %v2198_v47  ;;  %3912 = vmatprep.subr.bf16.mxu0 %v8369_v38  ;;  %v2236_v21 = vshrl.u32 %v1117_v57, 16  ;;  %v2239_v51 = vshll.u32 %v1117_v57, 16  ;;  %v1986_v13 = vrot.slane %v1984_v43, 4  ;;  %v8475_v43 = vld [vmem:[#allocation66_spill] sm:$0xff] }
 0x1d8   : > { %v3555_v0 = vpop.f32.mrb[29].mxu0  ;;  %v3347_v41 = vpop.f32.mrb[30].mxu1  ;;  %4021 = vmatprep.mubr.bf16.mxu1 %v8474_v6  ;;  %v1983_v49 = vrot.slane %v1981_v22, 3  ;;  %v1125_v32 = vor.u32 %v1124_v45, %v1121_v24  ;;  %v2025_v2 = vshrl.u32 %v1228_v46, 16  ;;  %v2028_v58 = vshll.u32 %v1228_v46, 16  ;;  %v8478_v6 = vld [vmem:[#allocation62_spill] sm:$0xff] }
 0x1d9   : > { %v3556_v3 = vpop.f32.mrb[30].mxu0  ;;  %v3349_v29 = vpop.f32.mrb[31].mxu1  ;;  %v2238_v60 = vrot.slane %v2236_v21, 3  ;;  %v5470_v0 = vld [vmem:[#allocation9 + $0x1e8] sm:$0xff]   ;;  %v8477_v45 = vshll.u32 %v8475_v43, 16  ;;  %v1229_v57 = vrot.slane %v6719_v8, 5 }
 0x1da   : > { %v7449_v62 = vadd.f32 %v3556_v3, %v3347_v41  ;;  %v3558_v4 = vpop.f32.mrb[31].mxu0  ;;  %3913 = vmatpush1.bf16.msra.mxu0 %v5470_v0  ;;  %v2241_v41 = vrot.slane %v2239_v51, 4  ;;  %v1126_v20 = vsel %vm675_vm0, %v1116_v19, %v1125_v32  ;;  %v8476_v29 = vshrl.u32 %v8475_v43, 16  ;;  %v5471_v21 = vld [vmem:[#allocation9 + $0x1f0] sm:$0xff]   ;;  %v8479_v46 = vld [vmem:[#allocation67_spill] sm:$0xff] }
 0x1db   : > { %3914 = vmatprep.subr.bf16.mxu0 %v8369_v38  ;;  %v1133_v9 = vrot.slane %v8477_v45, 5  ;;  %v1987_v4 = vor.u32 %v1986_v13, %v1983_v49  ;;  %v2283_v51 = vshll.u32 %v1126_v20, 16  ;;  %v2030_v0 = vrot.slane %v2028_v58, 4 }
 0x1dc   : > { %v2242_v22 = vor.u32 %v2241_v41, %v2238_v60  ;;  %v1130_v24 = vrot.slane %v8476_v29, 4  ;;  %v2027_v60 = vrot.slane %v2025_v2, 3  ;;  %v1230_v8 = vsel %vm916_vm1, %v1227_v56, %v1229_v57  ;;  %v8480_v29 = vld [vmem:[#allocation69_spill] sm:$0xff] }
 0x1dd   : > { %3762 = vmatmul.mubr.bf16.gmra.mrb[108].mxu0 %v7332_v10  ;;  %v1988_v49 = vsel %vm1438_vm2, %v1943_v50, %v1987_v4  ;;  %v8481_v45 = vshrl.u32 %v8480_v29, 16 }
 0x1de   : > { %v7455_v16 = vpop.f32.mrb[32].mxu1  ;;  %3768 = vmatprep.mubr.bf16.mxu0 %v1944_v35  ;;  %3915 = vmatpush1.bf16.msra.mxu0 %v5471_v21  ;;  %v7468_v19 = vsel %vm1438_vm2, %v2198_v47, %v2242_v22  ;;  %v2280_v35 = vshrl.u32 %v1126_v20, 16  ;;  %v1134_v13 = vor.u32 %v1133_v9, %v1130_v24  ;;  %v8482_v47 = vshll.u32 %v8480_v29, 16  ;;  %v8483_v20 = vld [vmem:[#allocation70_spill] sm:$0xff] }
 0x1df   : > { %v3354_v3 = vpop.f32.mrb[33].mxu1  ;;  %4022 = vmatmul.mubr.bf16.gmra.mrb[128].mxu1 %v8478_v6  ;;  %3916 = vmatprep.subr.bf16.mxu0 %v8369_v38  ;;  %v1139_v6 = vrot.slane %v8481_v45, 4  ;;  %v8484_v21 = vshrl.u32 %v8483_v20, 16  ;;  %v7482_v50 = vor.u32 %v2030_v0, %v2027_v60 }
 0x1e0   : > { %v3355_v55 = vpop.f32.mrb[34].mxu1  ;;  %4028 = vmatprep.mubr.bf16.mxu1 %v8479_v46  ;;  %v2282_v41 = vrot.slane %v2280_v35, 3  ;;  %v2285_v3 = vrot.slane %v2283_v51, 4  ;;  %v8485_v46 = vshll.u32 %v8483_v20, 16  ;;  %v1135_v9 = vsel %vm675_vm0, %v1125_v32, %v1134_v13 }
 0x1e1   : > { %v3356_v10 = vpop.f32.mrb[35].mxu1  ;;  %v5472_v55 = vld [vmem:[#allocation9 + $0x1f8] sm:$0xff]   ;;  %v1148_v38 = vrot.slane %v8484_v21, 4  ;;  %v2069_v51 = vshrl.u32 %v1230_v8, 16  ;;  %v8489_v32 = vshrl.u32 %v7092_v18, 16 }
 0x1e2   : > { %3917 = vmatpush1.bf16.msra.mxu0 %v5472_v55  ;;  %v1142_v10 = vrot.slane %v8482_v47, 5  ;;  %v2286_v58 = vor.u32 %v2285_v3, %v2282_v41  ;;  %v1151_v35 = vrot.slane %v8485_v46, 5  ;;  %v2324_v41 = vshrl.u32 %v1135_v9, 16  ;;  %v8486_v21 = vld [vmem:[#allocation65_spill] sm:$0xff] }
 0x1e3   : > { %v2327_v3 = vshll.u32 %v1135_v9, 16  ;;  %v2072_v46 = vshll.u32 %v1230_v8, 16  ;;  %v8491_v9 = vshll.u32 %v7092_v18, 16 }
 0x1e4   : > { %v7487_v47 = vsel %vm1438_vm2, %v2242_v22, %v2286_v58  ;;  %v2326_v7 = vrot.slane %v2324_v41, 3 }
 0x1e5   : > { %3769 = vmatmul.mubr.bf16.gmra.mrb[32].mxu0 %v7358_v26  ;;  %v2329_v61 = vrot.slane %v2327_v3, 4 }
 0x1e6   : > { %v3359_v2 = vpop.f32.mrb[36].mxu1  ;;  %3775 = vmatprep.mubr.bf16.mxu0 %v1988_v49  ;;  %v1157_v49 = vrot.slane %v8489_v32, 4  ;;  %v2071_v32 = vrot.slane %v2069_v51, 3 }
 0x1e7   : > { %v3361_v56 = vpop.f32.mrb[37].mxu1  ;;  %v3568_v55 = vpop.f32.mrb[36].mxu0  ;;  %4029 = vmatmul.mubr.bf16.gmra.mrb[132].mxu1 %v8486_v21  ;;  %v1160_v21 = vrot.slane %v8491_v9, 5  ;;  %v2330_v28 = vor.u32 %v2329_v61, %v2326_v7 }
 0x1e8   : > { %v3362_v45 = vpop.f32.mrb[38].mxu1  ;;  %v7490_v26 = vadd.f32 %v3568_v55, %v3359_v2  ;;  %v3570_v60 = vpop.f32.mrb[37].mxu0  ;;  %v8488_v56 = vmov 0.0   ;;  %4036 = vmatprep.mubr.bf16.mxu1 %v8490_v15  ;;  %v8493_v55 = vrot.slane %v6746_v33, 5  ;;  %v1152_v15 = vor.u32 %v1151_v35, %v1148_v38 }
 0x1e9   : > { %v3364_v0 = vpop.f32.mrb[39].mxu1  ;;  %v7494_v24 = vpack.c.bf16 %v7126_v23, %v8488_v56  ;;  %v3571_v22 = vpop.f32.mrb[38].mxu0  ;;  %v1143_v23 = vor.u32 %v1142_v10, %v1139_v6 }
 0x1ea   : > { %8487 = vst [vmem:[#allocation47_spill] sm:$0xff] %v7490_v26  ;;  %v7501_v8 = vadd.f32 %v3571_v22, %v3362_v45  ;;  %v3573_v2 = vpop.f32.mrb[39].mxu0  ;;  %v1232_v60 = vsel %vm916_vm1, %v1229_v57, %v8493_v55  ;;  %v2032_v0 = vsel %vm1438_vm2, %v1987_v4, %v7482_v50  ;;  %v2074_v26 = vrot.slane %v2072_v46, 4  ;;  %v8495_v55 = vld [vmem:[#allocation72_spill] sm:$0xff] }
 0x1eb   : > { %v8326_v41 = vshrl.u32 %v7494_v24, 16  ;;  %v8327_v3 = vshll.u32 %v7494_v24, 16  ;;  %v1144_v45 = vsel %vm675_vm0, %v1134_v13, %v1143_v23  ;;  %v2113_v22 = vshrl.u32 %v1232_v60, 16 }
 0x1ec   : > { %8492 = vst [vmem:[#allocation50_spill] sm:$0xff] %v7501_v8  ;;  %v7512_v2 = vsel %vm1438_vm2, %v2286_v58, %v2330_v28  ;;  %v2368_v57 = vshrl.u32 %v1144_v45, 16  ;;  %v2371_v6 = vshll.u32 %v1144_v45, 16  ;;  %v2116_v4 = vshll.u32 %v1232_v60, 16  ;;  %v8496_v45 = vld [vmem:[#allocation75_spill] sm:$0xff] }
 0x1ed   : > { %3776 = vmatmul.mubr.bf16.gmra.mrb[112].mxu0 %v7368_v14  ;;  %v1166_v61 = vrot.slane %v8326_v41, 4  ;;  %v1169_v7 = vrot.slane %v8327_v3, 5  ;;  %v1153_v38 = vsel %vm675_vm0, %v1143_v23, %v1152_v15  ;;  %v2075_v14 = vor.u32 %v2074_v26, %v2071_v32 }
 0x1ee   : > { %v3367_v9 = vpop.f32.mrb[40].mxu1  ;;  %3783 = vmatprep.mubr.bf16.mxu0 %v2032_v0  ;;  %v2370_v35 = vrot.slane %v2368_v57, 3  ;;  %v2373_v58 = vrot.slane %v2371_v6, 4  ;;  %v2412_v51 = vshrl.u32 %v1153_v38, 16  ;;  %v2415_v46 = vshll.u32 %v1153_v38, 16 }
 0x1ef   : > { %v3368_v10 = vpop.f32.mrb[41].mxu1  ;;  %4037 = vmatmul.mubr.bf16.gmra.mrb[136].mxu1 %v8495_v55  ;;  %v1233_v9 = vrot.slane %v8455_v44, 5  ;;  %v2115_v8 = vrot.slane %v2113_v22, 3  ;;  %v2118_v23 = vrot.slane %v2116_v4, 4  ;;  %v1161_v0 = vor.u32 %v1160_v21, %v1157_v49 }
 0x1f0   : > { %v7520_v13 = vpop.f32.mrb[42].mxu1  ;;  %4043 = vmatprep.mubr.bf16.mxu1 %v8496_v45  ;;  %v2374_v10 = vor.u32 %v2373_v58, %v2370_v35  ;;  %v2414_v41 = vrot.slane %v2412_v51, 3  ;;  %v2417_v3 = vrot.slane %v2415_v46, 4  ;;  %v7528_v6 = vor.u32 %v1169_v7, %v1166_v61 }
 0x1f1   : > { %8494 = vst [vmem:[#allocation49_spill] sm:$0xff] %v7520_v13  ;;  %v3371_v60 = vpop.f32.mrb[43].mxu1  ;;  %v2076_v26 = vsel %vm1438_vm2, %v7482_v50, %v2075_v14  ;;  %v1162_v32 = vsel %vm675_vm0, %v1152_v15, %v1161_v0  ;;  %v8497_v38 = vrot.slane %v6746_v33, 5  ;;  %v1263_v50 = vsel %vm675_vm0, %v7083_v31, %v7413_v63 }
 0x1f2   : > { %v7526_v13 = vsel %vm1438_vm2, %v2330_v28, %v2374_v10  ;;  %v2418_v57 = vor.u32 %v2417_v3, %v2414_v41  ;;  %v2456_v22 = vshrl.u32 %v1162_v32, 16  ;;  %v2459_v49 = vshll.u32 %v1162_v32, 16  ;;  %v8498_v3 = vld [vmem:[#allocation74_spill] sm:$0xff] }
 0x1f3   : > { %v1234_v44 = vsel %vm916_vm1, %v8497_v38, %v1233_v9  ;;  %v2119_v28 = vor.u32 %v2118_v23, %v2115_v8  ;;  %v1171_v21 = vsel %vm675_vm0, %v1161_v0, %v7528_v6  ;;  %v2478_v55 = vshrl.u32 %v1263_v50, 16 }
 0x1f4   : > { %v7537_v35 = vsel %vm1438_vm2, %v2374_v10, %v2418_v57  ;;  %v2458_v15 = vrot.slane %v2456_v22, 3  ;;  %v2461_v33 = vrot.slane %v2459_v49, 4  ;;  %v2500_v41 = vshrl.u32 %v1171_v21, 16 }
 0x1f5   : > { %3784 = vmatmul.mubr.bf16.gmra.mrb[40].mxu0 %v7380_v11  ;;  %v2157_v4 = vshrl.u32 %v1234_v44, 16  ;;  %v2160_v61 = vshll.u32 %v1234_v44, 16  ;;  %v2503_v58 = vshll.u32 %v1171_v21, 16  ;;  %v1235_v11 = vrot.slane %v8459_v52, 5 }
 0x1f6   : > { %3790 = vmatprep.mubr.bf16.mxu0 %v2076_v26  ;;  %v2462_v51 = vor.u32 %v2461_v33, %v2458_v15  ;;  %v2502_v46 = vrot.slane %v2500_v41, 3  ;;  %v2481_v60 = vshll.u32 %v1263_v50, 16  ;;  %v2120_v10 = vsel %vm1438_vm2, %v2075_v14, %v2119_v28 }
 0x1f7   : > { %4044 = vmatmul.mubr.bf16.gmra.mrb[140].mxu1 %v8498_v3  ;;  %v3374_v7 = vpop.f32.mrb[44].mxu1  ;;  %v2505_v31 = vrot.slane %v2503_v58, 4  ;;  %v2159_v32 = vrot.slane %v2157_v4, 3  ;;  %v2162_v38 = vrot.slane %v2160_v61, 4  ;;  %v1236_v49 = vsel %vm916_vm1, %v1233_v9, %v1235_v11 }
 0x1f8   : > { %4050 = vmatprep.mubr.bf16.mxu1 %v7088_v5  ;;  %v3376_v8 = vpop.f32.mrb[45].mxu1  ;;  %v7550_v26 = vsel %vm1438_vm2, %v2418_v57, %v2462_v51  ;;  %v2480_v50 = vrot.slane %v2478_v55, 3  ;;  %v2483_v14 = vrot.slane %v2481_v60, 4  ;;  %v8499_v57 = vld [vmem:[#allocation19_spill] sm:$0xff]  ;;  %v2201_v3 = vshrl.u32 %v1236_v49, 16 }
 0x1f9   : > { %v3377_v45 = vpop.f32.mrb[46].mxu1  ;;  %v3583_v23 = vpop.f32.mrb[44].mxu0  ;;  %v7554_v52 = vor.u32 %v2505_v31, %v2502_v46  ;;  %v1272_v33 = vsel %vm675_vm0, %v7413_v63, %v8499_v57  ;;  %v2163_v41 = vor.u32 %v2162_v38, %v2159_v32  ;;  %v2204_v4 = vshll.u32 %v1236_v49, 16 }
 0x1fa   : > { %v3378_v0 = vpop.f32.mrb[47].mxu1  ;;  %v7552_v44 = vadd.f32 %v3583_v23, %v3374_v7  ;;  %v3585_v5 = vpop.f32.mrb[45].mxu0  ;;  %v1237_v61 = vrot.slane %v8467_v12, 5  ;;  %v2484_v58 = vor.u32 %v2483_v14, %v2480_v50  ;;  %v2522_v8 = vshrl.u32 %v1272_v33, 16  ;;  %v8503_v12 = vld [vmem:[#allocation79_spill] sm:$0xff] }
 0x1fb   : > { %v3586_v22 = vpop.f32.mrb[46].mxu0  ;;  %v7560_v15 = vsel %vm1438_vm2, %v2462_v51, %v7554_v52  ;;  %v2525_v51 = vshll.u32 %v1272_v33, 16  ;;  %v2164_v63 = vsel %vm1438_vm2, %v2119_v28, %v2163_v41  ;;  %v2203_v60 = vrot.slane %v2201_v3, 3  ;;  %v8505_v5 = vld [vmem:[#allocation80_spill] sm:$0xff] }
 0x1fc   : > { %v3587_v21 = vpop.f32.mrb[47].mxu0  ;;  %v8501_v45 = vshrl.u32 %v7494_v24, 16  ;;  %v1238_v0 = vsel %vm916_vm1, %v1235_v11, %v1237_v61  ;;  %v8504_v32 = vmax.f32 %v8503_v12, 0.0  ;;  %v2485_v28 = vsel %vm1438_vm2, %v8505_v5, %v2484_v58 }
 0x1fd   : > { %3791 = vmatmul.mubr.bf16.gmra.mrb[116].mxu0 %v7403_v36  ;;  %v8500_v36 = vld [vmem:[#allocation82_spill] sm:$0xff]  ;;  %v2524_v22 = vrot.slane %v2522_v8, 3  ;;  %v2527_v49 = vrot.slane %v2525_v51, 4  ;;  %v8506_v21 = vld [vmem:[#allocation83_spill] sm:$0xff]  ;;  %v2245_v14 = vshrl.u32 %v1238_v0, 16  ;;  %v2248_v57 = vshll.u32 %v1238_v0, 16 }
 0x1fe   : > { %3797 = vmatprep.mubr.bf16.mxu0 %v2120_v10  ;;  %v2473_v31 = vrot.slane %v8501_v45, 3  ;;  %v8502_v10 = vshll.u32 %v7494_v24, 16  ;;  %v7581_v38 = vpack.c.bf16 %v8488_v56, %v8504_v32  ;;  %v1239_v3 = vrot.slane %v8470_v17, 5 }
 0x1ff   : > { %4051 = vmatmul.mubr.bf16.gmra.mrb[144].mxu1 %v7081_v59  ;;  %v7566_v9 = vpop.f32.mrb[48].mxu1  ;;  %v2206_v59 = vrot.slane %v2204_v4, 4  ;;  %v2250_v8 = vrot.slane %v2248_v57, 4 }
 0x200   : > { %4058 = vmatprep.mubr.bf16.mxu1 %v8500_v36  ;;  %v3383_v7 = vpop.f32.mrb[49].mxu1  ;;  %v2474_v23 = vrot.slane %v8502_v10, 4  ;;  %v1173_v33 = vshrl.u32 %v7581_v38, 16  ;;  %v1176_v56 = vshll.u32 %v7581_v38, 16 }
 0x201   : > { %v7570_v46 = vpop.f32.mrb[50].mxu1  ;;  %v2207_v50 = vor.u32 %v2206_v59, %v2203_v60  ;;  %v2247_v7 = vrot.slane %v2245_v14, 3 }
 0x202   : > { %v3386_v55 = vpop.f32.mrb[51].mxu1  ;;  %v2475_v11 = vor.u32 %v2474_v23, %v2473_v31  ;;  %v2517_v60 = vrot.slane %v1173_v33, 3  ;;  %v2518_v59 = vrot.slane %v1176_v56, 4  ;;  %v1240_v31 = vsel %vm916_vm1, %v1237_v61, %v1239_v3 }
 0x203   : > { %v2208_v36 = vsel %vm1438_vm2, %v2163_v41, %v2207_v50  ;;  %v8507_v55 = vld [vmem:[#allocation81_spill] sm:$0xff]  ;;  %v2251_v0 = vor.u32 %v2250_v8, %v2247_v7  ;;  %v2289_v32 = vshrl.u32 %v1240_v31, 16  ;;  %v2292_v5 = vshll.u32 %v1240_v31, 16 }
 0x204   : > { %v1241_v61 = vrot.slane %v8475_v43, 5 }
 0x205   : > { %3798 = vmatmul.mubr.bf16.gmra.mrb[48].mxu0 %v7418_v30  ;;  %v2528_v30 = vor.u32 %v2527_v49, %v2524_v22 }
 0x206   : > { %3805 = vmatprep.mubr.bf16.mxu0 %v2164_v63  ;;  %v2476_v63 = vsel %vm1438_vm2, %v8507_v55, %v2475_v11 }
 0x207   : > { %4059 = vmatmul.mubr.bf16.gmra.mrb[148].mxu1 %v8506_v21  ;;  %v2529_v17 = vsel %vm1438_vm2, %v2484_v58, %v2528_v30  ;;  %v2291_v21 = vrot.slane %v2289_v32, 3  ;;  %v2294_v58 = vrot.slane %v2292_v5, 4 }
 0x208   : > { %4065 = vmatprep.mubr.bf16.mxu1 %v2485_v28  ;;  %v2519_v28 = vor.u32 %v2518_v59, %v2517_v60  ;;  %v8509_v60 = vld [vmem:[#allocation24_spill] sm:$0xff] }
 0x209   : > { %v3389_v4 = vpop.f32.mrb[52].mxu1  ;;  %v2295_v43 = vor.u32 %v2294_v58, %v2291_v21  ;;  %v1556_v59 = vshrl.u32 %v8509_v60, 16 }
 0x20a   : > { %v3390_v51 = vpop.f32.mrb[53].mxu1  ;;  %v2520_v14 = vsel %vm1438_vm2, %v2475_v11, %v2519_v28  ;;  %v1242_v4 = vsel %vm916_vm1, %v1239_v3, %v1241_v61  ;;  %v1243_v11 = vrot.slane %v8480_v29, 5  ;;  %v1559_v3 = vshll.u32 %v8509_v60, 16 }
 0x20b   : > { %v3391_v45 = vpop.f32.mrb[54].mxu1  ;;  %v2333_v55 = vshrl.u32 %v1242_v4, 16 }
 0x20c   : > { %v3393_v10 = vpop.f32.mrb[55].mxu1 }
 0x20d   : > { %3806 = vmatmul.mubr.bf16.gmra.mrb[120].mxu0 %v7430_v40  ;;  %v3598_v41 = vpop.f32.mrb[52].mxu0  ;;  %v2252_v40 = vsel %vm1438_vm2, %v2207_v50, %v2251_v0  ;;  %v2336_v50 = vshll.u32 %v1242_v4, 16  ;;  %v1561_v10 = vrot.slane %v1559_v3, 4 }
 0x20e   : > { %3812 = vmatprep.mubr.bf16.mxu0 %v2208_v36  ;;  %v3599_v23 = vpop.f32.mrb[53].mxu0  ;;  %v8508_v36 = vld [vmem:[#allocation21_spill] sm:$0xff]  ;;  %v1558_v41 = vrot.slane %v1556_v59, 3  ;;  %v1247_v59 = vrot.slane %v7092_v18, 5  ;;  %v1249_v18 = vrot.slane %v7494_v24, 5 }
 0x20f   : > { %4066 = vmatmul.mubr.bf16.gmra.mrb[152].mxu1 %v2476_v63  ;;  %v3600_v12 = vpop.f32.mrb[54].mxu0  ;;  %v2578_v7 = vsel %vm1438_vm2, %v2528_v30, %v8508_v36  ;;  %v2338_v31 = vrot.slane %v2336_v50, 4  ;;  %v2569_v30 = vsel %vm1438_vm2, %v2519_v28, %v6002_v54 }
 0x210   : > { %4072 = vmatprep.mubr.bf16.mxu1 %v2529_v17  ;;  %v7600_v22 = vadd.f32 %v3600_v12, %v3391_v45  ;;  %v3602_v49 = vpop.f32.mrb[55].mxu0  ;;  %v2335_v45 = vrot.slane %v2333_v55, 3  ;;  %v1244_v17 = vsel %vm916_vm1, %v1241_v61, %v1243_v11  ;;  %v1562_v28 = vor.u32 %v1561_v10, %v1558_v41 }
 0x211   : > { %v2377_v32 = vshrl.u32 %v1244_v17, 16  ;;  %v2380_v5 = vshll.u32 %v1244_v17, 16  ;;  %v1245_v49 = vrot.slane %v8483_v20, 5 }
 0x212   : > { %v2339_v29 = vor.u32 %v2338_v31, %v2335_v45 }
 0x213   : > { %v7605_v57 = vpop.f32.mrb[56].mxu1  ;;  %v2379_v4 = vrot.slane %v2377_v32, 3  ;;  %v1246_v55 = vsel %vm916_vm1, %v1243_v11, %v1245_v49 }
 0x214   : > { %v3398_v8 = vpop.f32.mrb[57].mxu1  ;;  %v2340_v58 = vsel %vm1438_vm2, %v2295_v43, %v2339_v29  ;;  %v2424_v60 = vshll.u32 %v1246_v55, 16 }
 0x215   : > { %3813 = vmatmul.mubr.bf16.gmra.mrb[56].mxu0 %v7446_v53  ;;  %v3399_v51 = vpop.f32.mrb[58].mxu1  ;;  %v2296_v53 = vsel %vm1438_vm2, %v2251_v0, %v2295_v43 }
 0x216   : > { %3819 = vmatprep.mubr.bf16.mxu0 %v2252_v40  ;;  %v3400_v63 = vpop.f32.mrb[59].mxu1 }
 0x217   : > { %4073 = vmatmul.mubr.bf16.gmra.mrb[156].mxu1 %v2520_v14  ;;  %v2421_v63 = vshrl.u32 %v1246_v55, 16  ;;  %v1251_v55 = vrot.slane %v7581_v38, 5 }
 0x218   : > { %4080 = vmatprep.mubr.bf16.mxu1 %v2578_v7  ;;  %v2382_v7 = vrot.slane %v2380_v5, 4 }
 0x219   : > { %v2423_v45 = vrot.slane %v2421_v63, 3 }
 0x21a   : > { %v2383_v50 = vor.u32 %v2382_v7, %v2379_v4 }
 0x21c   : > { %v2384_v11 = vsel %vm1438_vm2, %v2339_v29, %v2383_v50 }
 0x21d   : > { %3820 = vmatmul.mubr.bf16.gmra.mrb[124].mxu0 %v7468_v19  ;;  %v3403_v23 = vpop.f32.mrb[60].mxu1 }
 0x21e   : > { %3827 = vmatprep.mubr.bf16.mxu0 %v2296_v53  ;;  %v3405_v12 = vpop.f32.mrb[61].mxu1 }
 0x21f   : > { %4081 = vmatmul.mubr.bf16.gmra.mrb[160].mxu1 %v2569_v30  ;;  %v3406_v0 = vpop.f32.mrb[62].mxu1  ;;  %v3612_v40 = vpop.f32.mrb[60].mxu0  ;;  %v1248_v30 = vsel %vm916_vm1, %v1245_v49, %v1247_v59 }
 0x220   : > { %4087 = vmatprep.mubr.bf16.mxu1 %v8508_v36  ;;  %v3408_v21 = vpop.f32.mrb[63].mxu1  ;;  %v7621_v61 = vadd.f32 %v3612_v40, %v3403_v23  ;;  %v3614_v19 = vpop.f32.mrb[61].mxu0  ;;  %v8510_v36 = vld [vmem:[#allocation26_spill] sm:$0xff]  ;;  %v2465_v41 = vshrl.u32 %v1248_v30, 16  ;;  %v2468_v10 = vshll.u32 %v1248_v30, 16  ;;  %v8512_v23 = vld [vmem:[#allocation33_spill] sm:$0xff] }
 0x221   : > { %v3615_v14 = vpop.f32.mrb[62].mxu0  ;;  %v1571_v20 = vsel %vm1438_vm2, %v1562_v28, %v8510_v36  ;;  %v8513_v21 = vld [vmem:[#allocation36_spill] sm:$0xff]  ;;  %v8516_v30 = vld [vmem:[#allocation43_spill] sm:$0xff] }
 0x222   : > { %v7624_v8 = vadd.f32 %v3615_v14, %v3406_v0  ;;  %v3617_v51 = vpop.f32.mrb[63].mxu0  ;;  %v2467_v5 = vrot.slane %v2465_v41, 3  ;;  %v2470_v0 = vrot.slane %v2468_v10, 4 }
 0x223   : > { %v8514_v51 = vld [vmem:[#allocation39_spill] sm:$0xff] }
 0x224   : > { %v2471_v24 = vor.u32 %v2470_v0, %v2467_v5  ;;  %v8518_v0 = vld [vmem:[#allocation44_spill] sm:$0xff] }
 0x225   : > { %3828 = vmatmul.mubr.bf16.gmra.mrb[64].mxu0 %v7487_v47  ;;  %v2426_v47 = vrot.slane %v2424_v60, 4 }
 0x226   : > { %3834 = vmatprep.mubr.bf16.mxu0 %v2340_v58 }
 0x227   : > { %4088 = vmatmul.mubr.bf16.gmra.mrb[164].mxu1 %v6002_v54  ;;  %v3411_v43 = vpop.f32.mrb[64].mxu1  ;;  %v8511_v54 = vld [vmem:[#allocation30_spill] sm:$0xff]  ;;  %v2427_v17 = vor.u32 %v2426_v47, %v2423_v45 }
 0x228   : > { %5124 = vmatprep.mubr.bf16.mxu1 %v1571_v20  ;;  %v3412_v3 = vpop.f32.mrb[65].mxu1  ;;  %v1175_v20 = vrot.slane %v1173_v33, 4  ;;  %v8515_v45 = vld [vmem:[#allocation42_spill] sm:$0xff] }
 0x229   : > { %v7632_v53 = vpop.f32.mrb[66].mxu1  ;;  %v2428_v29 = vsel %vm1438_vm2, %v2383_v50, %v2427_v17  ;;  %v2472_v50 = vsel %vm1438_vm2, %v2427_v17, %v2471_v24 }
 0x22a   : > { %v3415_v31 = vpop.f32.mrb[67].mxu1 }
 0x22d   : > { %3835 = vmatmul.mubr.bf16.gmra.mrb[128].mxu0 %v7512_v2  ;;  %v1250_v2 = vsel %vm916_vm1, %v1247_v59, %v1249_v18  ;;  %v1252_v59 = vsel %vm916_vm1, %v1249_v18, %v1251_v55 }
 0x22e   : > { %3841 = vmatprep.mubr.bf16.mxu0 %v2384_v11  ;;  %v2509_v14 = vshrl.u32 %v1250_v2, 16  ;;  %v2512_v4 = vshll.u32 %v1250_v2, 16  ;;  %v2553_v38 = vshrl.u32 %v1252_v59, 16 }
 0x22f   : > { %5125 = vmatmul.mubr.bf16.vlgmr.msra.gmra.mrb[168].mxu1 %v8511_v54 }
 0x230   : > { %5128 = vmatprep.mubr.bf16.mxu1 %v8512_v23  ;;  %v3418_v12 = vpop.f32.mrb[68].mxu1  ;;  %v2511_v63 = vrot.slane %v2509_v14, 3  ;;  %v2514_v60 = vrot.slane %v2512_v4, 4  ;;  %v2555_v17 = vrot.slane %v2553_v38, 3  ;;  %v8517_v23 = vld [vmem:[#allocation20_spill] sm:$0xff] }
 0x231   : > { %v3420_v32 = vpop.f32.mrb[69].mxu1  ;;  %v1254_v18 = vsel %vm916_vm1, %v1251_v55, %v8517_v23 }
 0x232   : > { %v3421_v40 = vpop.f32.mrb[70].mxu1  ;;  %v2515_v33 = vor.u32 %v2514_v60, %v2511_v63  ;;  %v2634_v2 = vshrl.u32 %v1254_v18, 16  ;;  %v8520_v63 = vld [vmem:[#allocation46_spill] sm:$0xff] }
 0x233   : > { %v3422_v49 = vpop.f32.mrb[71].mxu1 }
 0x234   : > { %v3627_v28 = vpop.f32.mrb[68].mxu0  ;;  %v2516_v54 = vsel %vm1438_vm2, %v2471_v24, %v2515_v33 }
 0x235   : > { %3842 = vmatmul.mubr.bf16.gmra.mrb[72].mxu0 %v7526_v13  ;;  %v7644_v19 = vadd.f32 %v3627_v28, %v3418_v12  ;;  %v3629_v58 = vpop.f32.mrb[69].mxu0  ;;  %v1178_v13 = vrot.slane %v1176_v56, 5  ;;  %v2556_v56 = vshll.u32 %v1252_v59, 16  ;;  %v2637_v28 = vshll.u32 %v1254_v18, 16  ;;  %v8521_v59 = vld [vmem:[#allocation23_spill] sm:$0xff]  ;;  %v8523_v18 = vld [vmem:[#allocation52_spill] sm:$0xff] }
 0x236   : > { %3849 = vmatprep.mubr.bf16.mxu0 %v2428_v29  ;;  %v3630_v7 = vpop.f32.mrb[70].mxu0 }
 0x237   : > { %5129 = vmatmul.mubr.bf16.gmra.mrb[172].mxu1 %v8513_v21  ;;  %v3631_v36 = vpop.f32.mrb[71].mxu0  ;;  %v1179_v31 = vor.u32 %v1178_v13, %v1175_v20  ;;  %v2558_v41 = vrot.slane %v2556_v56, 4  ;;  %v8519_v21 = vld [vmem:[#allocation45_spill] sm:$0xff]  ;;  %v2636_v7 = vrot.slane %v2634_v2, 3 }
 0x238   : > { %5132 = vmatprep.mubr.bf16.mxu1 %v8514_v51  ;;  %v2639_v51 = vrot.slane %v2637_v28, 4  ;;  %v8525_v2 = vld [vmem:[#allocation25_spill] sm:$0xff] }
 0x239   : > { %v2559_v40 = vor.u32 %v2558_v41, %v2555_v17  ;;  %v2625_v13 = vshrl.u32 %v1179_v31, 16 }
 0x23a   : > { %v7653_v43 = vpop.f32.mrb[72].mxu1  ;;  %v2640_v60 = vor.u32 %v2639_v51, %v2636_v7 }
 0x23b   : > { %v3427_v3 = vpop.f32.mrb[73].mxu1 }
 0x23c   : > { %v7657_v11 = vpop.f32.mrb[74].mxu1  ;;  %v1539_v3 = vshrl.u32 %v8521_v59, 16 }
 0x23d   : > { %3850 = vmatmul.mubr.bf16.gmra.mrb[132].mxu0 %v7537_v35  ;;  %v3430_v47 = vpop.f32.mrb[75].mxu1  ;;  %v1180_v35 = vsel %vm675_vm0, %v7528_v6, %v1179_v31 }
 0x23e   : > { %3856 = vmatprep.mubr.bf16.mxu0 %v2472_v50  ;;  %v2544_v29 = vshrl.u32 %v1180_v35, 16  ;;  %v2547_v5 = vshll.u32 %v1180_v35, 16  ;;  %v2628_v50 = vshll.u32 %v1179_v31, 16  ;;  %v2641_v31 = vsel %vm1438_vm2, %v2559_v40, %v2640_v60  ;;  %v8530_v60 = vld [vmem:[#allocation77_spill] sm:$0xff] }
 0x23f   : > { %5133 = vmatmul.mubr.bf16.gmra.mrb[176].mxu1 %v8515_v45  ;;  %v1542_v45 = vshll.u32 %v8521_v59, 16  ;;  %v1541_v41 = vrot.slane %v1539_v3, 3  ;;  %v8531_v3 = vld [vmem:[#allocation68_spill] sm:$0xff] }
 0x240   : > { %5136 = vmatprep.mubr.bf16.mxu1 %v8516_v30  ;;  %v2546_v24 = vrot.slane %v2544_v29, 3  ;;  %v2549_v14 = vrot.slane %v2547_v5, 4  ;;  %v2630_v30 = vrot.slane %v2628_v50, 4  ;;  %v8528_v50 = vld [vmem:[#allocation27_spill] sm:$0xff] }
 0x241   : > { %v1544_v35 = vrot.slane %v1542_v45, 4  ;;  %v8532_v45 = vld [vmem:[#allocation73_spill] sm:$0xff] }
 0x242   : > { %v2550_v20 = vor.u32 %v2549_v14, %v2546_v24 }
 0x243   : > { %v3433_v10 = vpop.f32.mrb[76].mxu1 }
 0x244   : > { %v3434_v12 = vpop.f32.mrb[77].mxu1  ;;  %v2551_v56 = vsel %vm1438_vm2, %v7554_v52, %v2550_v20 }
 0x245   : > { %3857 = vmatmul.mubr.bf16.gmra.mrb[80].mxu0 %v7550_v26  ;;  %v3435_v32 = vpop.f32.mrb[78].mxu1  ;;  %v2560_v26 = vsel %vm1438_vm2, %v2515_v33, %v2559_v40  ;;  %v8522_v33 = vld [vmem:[#allocation48_spill] sm:$0xff]  ;;  %v1545_v12 = vor.u32 %v1544_v35, %v1541_v41  ;;  %v8534_v35 = vld [vmem:[#allocation31_spill] sm:$0xff] }
 0x246   : > { %3863 = vmatprep.mubr.bf16.mxu0 %v2516_v54  ;;  %v3437_v49 = vpop.f32.mrb[79].mxu1 }
 0x247   : > { %5137 = vmatmul.mubr.bf16.gmra.mrb[180].mxu1 %v8518_v0  ;;  %v1554_v40 = vsel %vm1438_vm2, %v1545_v12, %v8525_v2  ;;  %v8536_v12 = vld [vmem:[#allocation78_spill] sm:$0xff] }
 0x248   : > { %5140 = vmatprep.mubr.bf16.mxu1 %v8519_v21  ;;  %v3642_v6 = vpop.f32.mrb[76].mxu0 }
 0x249   : > { %v3643_v58 = vpop.f32.mrb[77].mxu0 }
 0x24a   : > { %v3644_v4 = vpop.f32.mrb[78].mxu0 }
 0x24b   : > { %v7670_v55 = vadd.f32 %v3644_v4, %v3435_v32  ;;  %v3646_v36 = vpop.f32.mrb[79].mxu0  ;;  %v8524_v32 = vld [vmem:[#allocation56_spill] sm:$0xff] }
 0x24c   : > { %v8526_v4 = vld [vmem:[#allocation60_spill] sm:$0xff]  ;;  %v1286_v36 = vrot.slane %v7137_v1, 5 }
 0x24d   : > { %3864 = vmatmul.mubr.bf16.gmra.mrb[136].mxu0 %v7560_v15  ;;  %v2627_v15 = vrot.slane %v2625_v13, 3 }
 0x24e   : > { %3871 = vmatprep.mubr.bf16.mxu0 %v2560_v26  ;;  %v8527_v26 = vld [vmem:[#allocation64_spill] sm:$0xff]  ;;  %v1287_v59 = vsel %vm916_vm1, %v8530_v60, %v1286_v36  ;;  %v1289_v41 = vsel %vm916_vm1, %v1286_v36, %v8517_v23 }
 0x24f   : > { %5141 = vmatmul.mubr.bf16.gmra.mrb[184].mxu1 %v8520_v63  ;;  %v7676_v47 = vpop.f32.mrb[80].mxu1  ;;  %v2631_v10 = vor.u32 %v2630_v30, %v2627_v15  ;;  %v8529_v63 = vld [vmem:[#allocation28_spill] sm:$0xff] }
 0x250   : > { %5144 = vmatprep.mubr.bf16.mxu1 %v8522_v33  ;;  %v3442_v38 = vpop.f32.mrb[81].mxu1 }
 0x251   : > { %v3443_v54 = vpop.f32.mrb[82].mxu1  ;;  %v2632_v5 = vsel %vm1438_vm2, %v2550_v20, %v2631_v10  ;;  %v2487_v38 = vshrl.u32 %v1287_v59, 16  ;;  %v8535_v10 = vld [vmem:[#allocation76_spill] sm:$0xff] }
 0x252   : > { %v3444_v17 = vpop.f32.mrb[83].mxu1  ;;  %v8533_v54 = vld [vmem:[#allocation29_spill] sm:$0xff] }
 0x255   : > { %3872 = vmatmul.mubr.bf16.gmra.mrb[88].mxu0 %v2551_v56  ;;  %v2490_v56 = vshll.u32 %v1287_v59, 16  ;;  %v8540_v59 = vld [vmem:[#allocation35_spill] sm:$0xff] }
 0x256   : > { %3878 = vmatprep.mubr.bf16.mxu0 %v2641_v31  ;;  %v2489_v31 = vrot.slane %v2487_v38, 3  ;;  %v8542_v38 = vld [vmem:[#allocation37_spill] sm:$0xff] }
 0x257   : > { %5145 = vmatmul.mubr.bf16.gmra.mrb[188].mxu1 %v8523_v18  ;;  %v2492_v17 = vrot.slane %v2490_v56, 4 }
 0x258   : > { %5148 = vmatprep.mubr.bf16.mxu1 %v8524_v32  ;;  %v2531_v32 = vshrl.u32 %v1289_v41, 16 }
 0x259   : > { %v3447_v29 = vpop.f32.mrb[84].mxu1 }
 0x25a   : > { %v3449_v52 = vpop.f32.mrb[85].mxu1  ;;  %v3656_v0 = vpop.f32.mrb[84].mxu0  ;;  %v2533_v23 = vrot.slane %v2531_v32, 3 }
 0x25b   : > { %v3450_v49 = vpop.f32.mrb[86].mxu1  ;;  %v7687_v28 = vadd.f32 %v3656_v0, %v3447_v29  ;;  %v3658_v21 = vpop.f32.mrb[85].mxu0  ;;  %v2534_v29 = vshll.u32 %v1289_v41, 16  ;;  %v2493_v0 = vor.u32 %v2492_v17, %v2489_v31  ;;  %v8543_v41 = vld [vmem:[#allocation38_spill] sm:$0xff] }
 0x25c   : > { %v3452_v6 = vpop.f32.mrb[87].mxu1  ;;  %v3659_v58 = vpop.f32.mrb[86].mxu0 }
 0x25d   : > { %3879 = vmatmul.mubr.bf16.gmra.mrb[140].mxu0 %v2632_v5  ;;  %v7689_v24 = vadd.f32 %v3659_v58, %v3450_v49  ;;  %v3661_v14 = vpop.f32.mrb[87].mxu0  ;;  %v2536_v58 = vrot.slane %v2534_v29, 4  ;;  %v8545_v29 = vld [vmem:[#allocation40_spill] sm:$0xff] }
 0x25e   : > { %3918 = vmatprep.mubr.bf16.mxu0 %v1554_v40 }
 0x25f   : > { %5149 = vmatmul.mubr.bf16.gmra.mrb[192].mxu1 %v8526_v4  ;;  %v8537_v4 = vld [vmem:[#allocation32_spill] sm:$0xff]  ;;  %v2537_v36 = vor.u32 %v2536_v58, %v2533_v23 }
 0x260   : > { %5152 = vmatprep.mubr.bf16.mxu1 %v8527_v26  ;;  %v2494_v26 = vsel %vm1438_vm2, %v7161_v39, %v2493_v0 }
 0x261   : > { %v3455_v7 = vpop.f32.mrb[88].mxu1 }
 0x262   : > { %v3456_v51 = vpop.f32.mrb[89].mxu1  ;;  %v8538_v7 = vld [vmem:[#allocation34_spill] sm:$0xff] }
 0x263   : > { %v7694_v20 = vpop.f32.mrb[90].mxu1  ;;  %v8539_v51 = vld [vmem:[#allocation84_spill] sm:$0xff] }
 0x264   : > { %v3459_v13 = vpop.f32.mrb[91].mxu1 }
 0x265   : > { %3919 = vmatmul.mubr.bf16.vlgmr.msra.gmra.mrb[0].mxu0 %v8528_v50 }
 0x266   : > { %3926 = vmatprep.mubr.bf16.mxu0 %v8529_v63  ;;  %v2538_v63 = vsel %vm1438_vm2, %v2493_v0, %v2537_v36 }
 0x267   : > { %5153 = vmatmul.mubr.bf16.gmra.mrb[196].mxu1 %v8531_v3  ;;  %v8541_v3 = vld [vmem:[#allocation22_spill] sm:$0xff] }
 0x268   : > { %5156 = vmatprep.mubr.bf16.mxu1 %v8532_v45  ;;  %v2587_v45 = vsel %vm1438_vm2, %v2537_v36, %v8541_v3 }
 0x269   : > { %v3462_v33 = vpop.f32.mrb[92].mxu1 }
 0x26a   : > { %v3464_v15 = vpop.f32.mrb[93].mxu1 }
 0x26b   : > { %v3465_v30 = vpop.f32.mrb[94].mxu1 }
 0x26c   : > { %v3466_v1 = vpop.f32.mrb[95].mxu1 }
 0x26d   : > { %3927 = vmatmul.mubr.bf16.gmra.mrb[144].mxu0 %v8533_v54 }
 0x26e   : > { %3933 = vmatprep.mubr.bf16.mxu0 %v8534_v35 }
 0x26f   : > { %5157 = vmatmul.mubr.bf16.gmra.mrb[200].mxu1 %v8535_v10  ;;  %v8544_v10 = vld [vmem:[#allocation41_spill] sm:$0xff] }
 0x270   : > { %v3671_v18 = vpop.f32.mrb[92].mxu0  ;;  %5160 = vmatprep.mubr.bf16.mxu1 %v8536_v12 }
 0x271   : > { %v7708_v5 = vadd.f32 %v3671_v18, %v3462_v33  ;;  %v3673_v52 = vpop.f32.mrb[93].mxu0  ;;  %v7710_v49 = vpop.f32.mrb[96].mxu1 }
 0x272   : > { %v3674_v2 = vpop.f32.mrb[94].mxu0  ;;  %v3966_v40 = vpop.f32.mrb[97].mxu1 }
 0x273   : > { %v3675_v21 = vpop.f32.mrb[95].mxu0  ;;  %v7712_v6 = vpop.f32.mrb[98].mxu1 }
 0x274   : > { %v3969_v14 = vpop.f32.mrb[99].mxu1 }
 0x275   : > { %3934 = vmatmul.mubr.bf16.gmra.mrb[8].mxu0 %v8537_v4 }
 0x276   : > { %3940 = vmatprep.mubr.bf16.mxu0 %v8538_v7 }
 0x277   : > { %5161 = vmatmul.mubr.bf16.gmra.mrb[204].mxu1 %v8539_v51 }
 0x278   : > { %5164 = vmatprep.mubr.bf16.mxu1 %v2494_v26 }
 0x27a   : > { %v3972_v13 = vpop.f32.mrb[100].mxu1 }
 0x27b   : > { %v3973_v50 = vpop.f32.mrb[101].mxu1 }
 0x27c   : > { %v7720_v60 = vpop.f32.mrb[102].mxu1 }
 0x27d   : > { %3941 = vmatmul.mubr.bf16.gmra.mrb[148].mxu0 %v8540_v59  ;;  %v3976_v33 = vpop.f32.mrb[103].mxu1 }
 0x27e   : > { %3948 = vmatprep.mubr.bf16.mxu0 %v8542_v38 }
 0x27f   : > { %5165 = vmatmul.mubr.bf16.gmra.mrb[208].mxu1 %v2538_v63 }
 0x280   : > { %v3719_v39 = vpop.f32.mrb[96].mxu0  ;;  %5168 = vmatprep.mubr.bf16.mxu1 %v2587_v45 }
 0x281   : > { %v3720_v56 = vpop.f32.mrb[97].mxu0 }
 0x282   : > { %v3721_v15 = vpop.f32.mrb[98].mxu0  ;;  %v7726_v30 = vpop.f32.mrb[104].mxu1 }
 0x283   : > { %v7729_v1 = vadd.f32 %v3721_v15, %v7258_v34  ;;  %v3723_v54 = vpop.f32.mrb[99].mxu0  ;;  %v3981_v31 = vpop.f32.mrb[105].mxu1 }
 0x284   : > { %v3982_v17 = vpop.f32.mrb[106].mxu1 }
 0x285   : > { %3949 = vmatmul.mubr.bf16.gmra.mrb[16].mxu0 %v8543_v41  ;;  %v3983_v35 = vpop.f32.mrb[107].mxu1 }
 0x286   : > { %3955 = vmatprep.mubr.bf16.mxu0 %v8544_v10 }
 0x287   : > { %5169 = vmatmul.mubr.bf16.gmra.mrb[212].mxu1 %v8541_v3 }
 0x28a   : > { %v7734_v18 = vpop.f32.mrb[108].mxu1 }
 0x28b   : > { %v3988_v12 = vpop.f32.mrb[109].mxu1 }
 0x28c   : > { %v7736_v32 = vpop.f32.mrb[110].mxu1 }
 0x28d   : > { %3956 = vmatmul.mubr.bf16.gmra.mrb[152].mxu0 %v8545_v29  ;;  %v3991_v52 = vpop.f32.mrb[111].mxu1 }
 0x290   : > { %v3733_v34 = vpop.f32.mrb[100].mxu0 }
 0x291   : > { %v7740_v0 = vadd.f32 %v3733_v34, %v7318_v48  ;;  %v3735_v2 = vpop.f32.mrb[101].mxu0 }
 0x292   : > { %v3736_v40 = vpop.f32.mrb[102].mxu0  ;;  %v3994_v21 = vpop.f32.mrb[112].mxu1 }
 0x293   : > { %v7743_v23 = vadd.f32 %v3736_v40, %v7329_v27  ;;  %v3738_v58 = vpop.f32.mrb[103].mxu0  ;;  %v3995_v14 = vpop.f32.mrb[113].mxu1 }
 0x294   : > { %v7745_v4 = vpop.f32.mrb[114].mxu1 }
 0x295   : > { %v3998_v26 = vpop.f32.mrb[115].mxu1 }
 0x29a   : > { %v7747_v7 = vpop.f32.mrb[116].mxu1 }
 0x29b   : > { %v4003_v51 = vpop.f32.mrb[117].mxu1 }
 0x29c   : > { %v4004_v36 = vpop.f32.mrb[118].mxu1 }
 0x29d   : > { %v4005_v13 = vpop.f32.mrb[119].mxu1 }
 0x2a0   : > { %v3748_v50 = vpop.f32.mrb[104].mxu0 }
 0x2a1   : > { %v7750_v48 = vadd.f32 %v3748_v50, %v7382_v37  ;;  %v3750_v63 = vpop.f32.mrb[105].mxu0 }
 0x2a2   : > { %v3751_v59 = vpop.f32.mrb[106].mxu0  ;;  %v7752_v3 = vpop.f32.mrb[120].mxu1 }
 0x2a3   : > { %v3752_v27 = vpop.f32.mrb[107].mxu0  ;;  %v4010_v45 = vpop.f32.mrb[121].mxu1 }
 0x2a4   : > { %v7754_v33 = vpop.f32.mrb[122].mxu1 }
 0x2a5   : > { %v4013_v38 = vpop.f32.mrb[123].mxu1 }
 0x2a6   : > { %v8546_v38 = vld [vmem:[#allocation47_spill] sm:$0xff] }
 0x2a8   : > { %v3755_v39 = vpop.f32.mrb[24].mxu0 }
 0x2a9   : > { %v5208_v56 = vadd.f32 %v3755_v39, %v7410_v25  ;;  %v3757_v15 = vpop.f32.mrb[25].mxu0 }
 0x2aa   : > { %v3758_v54 = vpop.f32.mrb[26].mxu0  ;;  %v4016_v31 = vpop.f32.mrb[124].mxu1 }
 0x2ab   : > { %v5210_v17 = vadd.f32 %v3758_v54, %v7415_v42  ;;  %v3760_v41 = vpop.f32.mrb[27].mxu0  ;;  %v4017_v37 = vpop.f32.mrb[125].mxu1  ;;  %v7759_v35 = vadd.f32 %v5208_v56, %v7710_v49  ;;  %v8547_v54 = vld [vmem:[#allocation50_spill] sm:$0xff] }
 0x2ac   : > { %v7761_v10 = vpop.f32.mrb[126].mxu1 }
 0x2ad   : > { %v4020_v12 = vpop.f32.mrb[127].mxu1  ;;  %v7764_v29 = vadd.f32 %v5210_v17, %v7712_v6 }
 0x2b0   : > { %v3763_v52 = vpop.f32.mrb[108].mxu0 }
 0x2b1   : > { %v3764_v34 = vpop.f32.mrb[109].mxu0 }
 0x2b2   : > { %v3765_v2 = vpop.f32.mrb[110].mxu0  ;;  %v7766_v25 = vpop.f32.mrb[128].mxu1 }
 0x2b3   : > { %v3766_v40 = vadd.f32 %v3765_v2, %v7449_v62  ;;  %v3767_v21 = vpop.f32.mrb[111].mxu0  ;;  %v4025_v42 = vpop.f32.mrb[129].mxu1 }
 0x2b4   : > { %v4026_v58 = vpop.f32.mrb[130].mxu1  ;;  %v8548_v21 = vld [vmem:[#allocation49_spill] sm:$0xff] }
 0x2b5   : > { %v4027_v14 = vpop.f32.mrb[131].mxu1  ;;  %v7770_v49 = vadd.f32 %v7720_v60, %v3766_v40 }
 0x2b8   : > { %v3770_v26 = vpop.f32.mrb[32].mxu0 }
 0x2b9   : > { %v5212_v51 = vadd.f32 %v3770_v26, %v7455_v16  ;;  %v3772_v36 = vpop.f32.mrb[33].mxu0 }
 0x2ba   : > { %v3773_v6 = vpop.f32.mrb[34].mxu0  ;;  %v7773_v13 = vpop.f32.mrb[132].mxu1 }
 0x2bb   : > { %v3774_v50 = vpop.f32.mrb[35].mxu0  ;;  %v4032_v63 = vpop.f32.mrb[133].mxu1  ;;  %v7776_v59 = vadd.f32 %v5212_v51, %v7726_v30 }
 0x2bc   : > { %v7778_v62 = vpop.f32.mrb[134].mxu1 }
 0x2bd   : > { %v4035_v27 = vpop.f32.mrb[135].mxu1 }
 0x2c0   : > { %v3777_v45 = vpop.f32.mrb[112].mxu0 }
 0x2c1   : > { %v3778_v39 = vadd.f32 %v3777_v45, %v8546_v38  ;;  %v3779_v60 = vpop.f32.mrb[113].mxu0 }
 0x2c2   : > { %v3780_v56 = vpop.f32.mrb[114].mxu0  ;;  %v4038_v15 = vpop.f32.mrb[136].mxu1 }
 0x2c3   : > { %v3781_v16 = vadd.f32 %v3780_v56, %v8547_v54  ;;  %v3782_v31 = vpop.f32.mrb[115].mxu0  ;;  %v4039_v17 = vpop.f32.mrb[137].mxu1  ;;  %v7783_v41 = vadd.f32 %v7734_v18, %v3778_v39 }
 0x2c4   : > { %v7785_v37 = vpop.f32.mrb[138].mxu1 }
 0x2c5   : > { %v4042_v30 = vpop.f32.mrb[139].mxu1  ;;  %v7788_v12 = vadd.f32 %v7736_v32, %v3781_v16 }
 0x2c8   : > { %v3785_v52 = vpop.f32.mrb[40].mxu0 }
 0x2c9   : > { %v3786_v34 = vpop.f32.mrb[41].mxu0 }
 0x2ca   : > { %v3787_v2 = vpop.f32.mrb[42].mxu0  ;;  %v7790_v40 = vpop.f32.mrb[140].mxu1 }
 0x2cb   : > { %v5214_v42 = vadd.f32 %v3787_v2, %v8548_v21  ;;  %v3789_v58 = vpop.f32.mrb[43].mxu0  ;;  %v4047_v14 = vpop.f32.mrb[141].mxu1 }
 0x2cc   : > { %v4048_v26 = vpop.f32.mrb[142].mxu1 }
 0x2cd   : > { %v4049_v51 = vpop.f32.mrb[143].mxu1  ;;  %v7794_v18 = vadd.f32 %v5214_v42, %v7745_v4 }
 0x2d0   : > { %v3792_v36 = vpop.f32.mrb[116].mxu0 }
 0x2d1   : > { %v3793_v6 = vadd.f32 %v3792_v36, %v7552_v44  ;;  %v3794_v50 = vpop.f32.mrb[117].mxu0 }
 0x2d2   : > { %v3795_v32 = vpop.f32.mrb[118].mxu0  ;;  %v7797_v63 = vpop.f32.mrb[144].mxu1 }
 0x2d3   : > { %v3796_v27 = vpop.f32.mrb[119].mxu0  ;;  %v4054_v45 = vpop.f32.mrb[145].mxu1  ;;  %v7800_v38 = vadd.f32 %v7747_v7, %v3793_v6 }
 0x2d4   : > { %v7802_v39 = vpop.f32.mrb[146].mxu1 }
 0x2d5   : > { %v4057_v60 = vpop.f32.mrb[147].mxu1 }
 0x2d8   : > { %v3799_v56 = vpop.f32.mrb[48].mxu0 }
 0x2d9   : > { %v5216_v15 = vadd.f32 %v3799_v56, %v7566_v9  ;;  %v3801_v4 = vpop.f32.mrb[49].mxu0 }
 0x2da   : > { %v3802_v54 = vpop.f32.mrb[50].mxu0  ;;  %v4060_v16 = vpop.f32.mrb[148].mxu1 }
 0x2db   : > { %v5218_v44 = vadd.f32 %v3802_v54, %v7570_v46  ;;  %v3804_v31 = vpop.f32.mrb[51].mxu0  ;;  %v4061_v17 = vpop.f32.mrb[149].mxu1  ;;  %v7807_v30 = vadd.f32 %v5216_v15, %v7752_v3 }
 0x2dc   : > { %v7809_v52 = vpop.f32.mrb[150].mxu1 }
 0x2dd   : > { %v4064_v7 = vpop.f32.mrb[151].mxu1  ;;  %v7812_v34 = vadd.f32 %v5218_v44, %v7754_v33 }
 0x2e0   : > { %v3807_v2 = vpop.f32.mrb[120].mxu0 }
 0x2e1   : > { %v3808_v21 = vpop.f32.mrb[121].mxu0 }
 0x2e2   : > { %v3809_v42 = vpop.f32.mrb[122].mxu0  ;;  %v7814_v9 = vpop.f32.mrb[152].mxu1 }
 0x2e3   : > { %v3810_v58 = vadd.f32 %v3809_v42, %v7600_v22  ;;  %v3811_v14 = vpop.f32.mrb[123].mxu0  ;;  %v4069_v46 = vpop.f32.mrb[153].mxu1 }
 0x2e4   : > { %v4070_v26 = vpop.f32.mrb[154].mxu1 }
 0x2e5   : > { %v4071_v51 = vpop.f32.mrb[155].mxu1  ;;  %v7818_v3 = vadd.f32 %v7761_v10, %v3810_v58 }
 0x2e8   : > { %v3814_v36 = vpop.f32.mrb[56].mxu0 }
 0x2e9   : > { %v5220_v6 = vadd.f32 %v3814_v36, %v7605_v57  ;;  %v3816_v50 = vpop.f32.mrb[57].mxu0 }
 0x2ea   : > { %v3817_v33 = vpop.f32.mrb[58].mxu0  ;;  %v7821_v32 = vpop.f32.mrb[156].mxu1 }
 0x2eb   : > { %v3818_v27 = vpop.f32.mrb[59].mxu0  ;;  %v4076_v45 = vpop.f32.mrb[157].mxu1  ;;  %v7824_v60 = vadd.f32 %v5220_v6, %v7766_v25 }
 0x2ec   : > { %v7826_v22 = vpop.f32.mrb[158].mxu1 }
 0x2ed   : > { %v4079_v56 = vpop.f32.mrb[159].mxu1 }
 0x2f0   : > { %v3821_v15 = vpop.f32.mrb[124].mxu0 }
 0x2f1   : > { %v3822_v4 = vadd.f32 %v3821_v15, %v7621_v61  ;;  %v3823_v10 = vpop.f32.mrb[125].mxu0 }
 0x2f2   : > { %v3824_v54 = vpop.f32.mrb[126].mxu0  ;;  %v4082_v16 = vpop.f32.mrb[160].mxu1 }
 0x2f3   : > { %v3825_v57 = vadd.f32 %v3824_v54, %v7624_v8  ;;  %v3826_v44 = vpop.f32.mrb[127].mxu0  ;;  %v4083_v31 = vpop.f32.mrb[161].mxu1  ;;  %v7831_v17 = vadd.f32 %v7773_v13, %v3822_v4 }
 0x2f4   : > { %v7833_v7 = vpop.f32.mrb[162].mxu1 }
 0x2f5   : > { %v4086_v25 = vpop.f32.mrb[163].mxu1  ;;  %v7836_v2 = vadd.f32 %v7778_v62, %v3825_v57 }
 0x2f8   : > { %v3829_v21 = vpop.f32.mrb[64].mxu0 }
 0x2f9   : > { %v3830_v42 = vpop.f32.mrb[65].mxu0 }
 0x2fa   : > { %v3831_v58 = vpop.f32.mrb[66].mxu0  ;;  %v7838_v61 = vpop.f32.mrb[164].mxu1 }
 0x2fb   : > { %v5222_v14 = vadd.f32 %v3831_v58, %v7632_v53  ;;  %v3833_v46 = vpop.f32.mrb[67].mxu0  ;;  %v4091_v8 = vpop.f32.mrb[165].mxu1 }
 0x2fc   : > { %v4092_v26 = vpop.f32.mrb[166].mxu1 }
 0x2fd   : > { %v4093_v51 = vpop.f32.mrb[167].mxu1  ;;  %v7842_v13 = vadd.f32 %v5222_v14, %v7785_v37 }
 0x300   : > { %v3836_v36 = vpop.f32.mrb[128].mxu0 }
 0x301   : > { %v3837_v6 = vadd.f32 %v3836_v36, %v7644_v19  ;;  %v3838_v50 = vpop.f32.mrb[129].mxu0 }
 0x302   : > { %v3839_v62 = vpop.f32.mrb[130].mxu0  ;;  %v5126_v33 = vpop.f32.mrb[168].mxu1 }
 0x303   : > { %v3840_v27 = vpop.f32.mrb[131].mxu0  ;;  %v7845_v45 = vpop.f32.mrb[169].mxu1  ;;  %v7848_v56 = vadd.f32 %v7790_v40, %v3837_v6 }
 0x304   : > { %v7850_v53 = vpop.f32.mrb[170].mxu1 }
 0x305   : > { %v7852_v15 = vpop.f32.mrb[171].mxu1 }
 0x308   : > { %v3843_v4 = vpop.f32.mrb[72].mxu0 }
 0x309   : > { %v5224_v37 = vadd.f32 %v3843_v4, %v7653_v43  ;;  %v3845_v10 = vpop.f32.mrb[73].mxu0 }
 0x30a   : > { %v3846_v54 = vpop.f32.mrb[74].mxu0  ;;  %v7855_v16 = vpop.f32.mrb[172].mxu1 }
 0x30b   : > { %v5226_v19 = vadd.f32 %v3846_v54, %v7657_v11  ;;  %v3848_v57 = vpop.f32.mrb[75].mxu0  ;;  %v7858_v44 = vpop.f32.mrb[173].mxu1  ;;  %v7861_v31 = vadd.f32 %v5224_v37, %v7797_v63 }
 0x30c   : > { %v7863_v40 = vpop.f32.mrb[174].mxu1 }
 0x30d   : > { %v4147_v25 = vpop.f32.mrb[175].mxu1  ;;  %v7866_v21 = vadd.f32 %v5226_v19, %v7802_v39 }
 0x310   : > { %v3851_v42 = vpop.f32.mrb[132].mxu0 }
 0x311   : > { %v3852_v43 = vpop.f32.mrb[133].mxu0 }
 0x312   : > { %v3853_v58 = vpop.f32.mrb[134].mxu0  ;;  %v7868_v14 = vpop.f32.mrb[176].mxu1 }
 0x313   : > { %v3854_v46 = vadd.f32 %v3853_v58, %v7670_v55  ;;  %v3855_v11 = vpop.f32.mrb[135].mxu0  ;;  %v4159_v8 = vpop.f32.mrb[177].mxu1 }
 0x314   : > { %v5135_v26 = vpop.f32.mrb[178].mxu1 }
 0x315   : > { %v7871_v51 = vpop.f32.mrb[179].mxu1  ;;  %v7874_v63 = vadd.f32 %v7809_v52, %v3854_v46 }
 0x318   : > { %v3858_v36 = vpop.f32.mrb[80].mxu0 }
 0x319   : > { %v5228_v6 = vadd.f32 %v3858_v36, %v7676_v47  ;;  %v3860_v39 = vpop.f32.mrb[81].mxu0 }
 0x31a   : > { %v3861_v50 = vpop.f32.mrb[82].mxu0  ;;  %v5138_v62 = vpop.f32.mrb[180].mxu1 }
 0x31b   : > { %v3862_v33 = vpop.f32.mrb[83].mxu0  ;;  %v4173_v27 = vpop.f32.mrb[181].mxu1  ;;  %v7878_v4 = vadd.f32 %v5228_v6, %v7814_v9 }
 0x31c   : > { %v7881_v55 = vadd.f32 %v7759_v35, %v4173_v27  ;;  %v5139_v37 = vpop.f32.mrb[182].mxu1 }
 0x31d   : > { %v7884_v10 = vadd.f32 %v5139_v37, %v7770_v49  ;;  %v4176_v52 = vpop.f32.mrb[183].mxu1 }
 0x31e   : > { %v7887_v54 = vadd.f32 %v7764_v29, %v4176_v52 }
 0x320   : > { %v3865_v47 = vpop.f32.mrb[136].mxu0  ;;  %v4989_v19 = vpack.c.bf16 %v7887_v54, %v7881_v55 }
 0x321   : > { %v3866_v57 = vadd.f32 %v3865_v47, %v7687_v28  ;;  %v3867_v25 = vpop.f32.mrb[137].mxu0 }
 0x322   : > { %v3868_v9 = vpop.f32.mrb[138].mxu0  ;;  %5064 = vst [vmem:[%s7894_s24 + $0x20] sm:$0xff] %v4989_v19   ;;  %v5142_v35 = vpop.f32.mrb[184].mxu1 }
 0x323   : > { %v3869_v49 = vadd.f32 %v3868_v9, %v7689_v24  ;;  %v3870_v29 = vpop.f32.mrb[139].mxu0  ;;  %v7899_v42 = vadd.f32 %v5142_v35, %v7783_v41  ;;  %v4188_v43 = vpop.f32.mrb[185].mxu1  ;;  %v7902_v58 = vadd.f32 %v7821_v32, %v3866_v57 }
 0x324   : > { %v7905_v28 = vadd.f32 %v7776_v59, %v4188_v43  ;;  %v5143_v46 = vpop.f32.mrb[186].mxu1 }
 0x325   : > { %v7908_v11 = vadd.f32 %v5143_v46, %v7788_v12  ;;  %v4191_v8 = vpop.f32.mrb[187].mxu1  ;;  %v7911_v26 = vadd.f32 %v7826_v22, %v3869_v49 }
 0x326   : > { %v4994_v24 = vpack.c.bf16 %v7905_v28, %v7884_v10  ;;  %v8549_v8 = vld [vmem:[#allocation85_spill] sm:$0xff] }
 0x327   : > { %v4999_v41 = vpack.c.bf16 %v7908_v11, %v7899_v42 }
 0x328   : > { %v3873_v36 = vpop.f32.mrb[88].mxu0  ;;  %5065 = vst [vmem:[%s7894_s24 + $0x28] sm:$0xff] %v4994_v24  }
 0x329   : > { %v3874_v32 = vpop.f32.mrb[89].mxu0  ;;  %5066 = vst [vmem:[%s7894_s24 + $0x30] sm:$0xff] %v4999_v41  }
 0x32a   : > { %v3875_v59 = vpop.f32.mrb[90].mxu0  ;;  %v5146_v6 = vpop.f32.mrb[188].mxu1  ;;  %v8550_v32 = vld [vmem:[#allocation86_spill] sm:$0xff] }
 0x32b   : > { %v5230_v12 = vadd.f32 %v3875_v59, %v7694_v20  ;;  %v3877_v39 = vpop.f32.mrb[91].mxu0  ;;  %v7921_v50 = vadd.f32 %v5146_v6, %v7800_v38  ;;  %v4203_v22 = vpop.f32.mrb[189].mxu1 }
 0x32c   : > { %v5147_v62 = vpop.f32.mrb[190].mxu1 }
 0x32d   : > { %v4205_v33 = vpop.f32.mrb[191].mxu1  ;;  %v7924_v27 = vadd.f32 %v5230_v12, %v7833_v7 }
 0x32e   : > { %v7927_v37 = vadd.f32 %v7794_v18, %v4205_v33 }
 0x330   : > { %v3880_v52 = vpop.f32.mrb[140].mxu0  ;;  %v5004_v47 = vpack.c.bf16 %v7921_v50, %v7927_v37 }
 0x331   : > { %v3881_v19 = vadd.f32 %v3880_v52, %v7708_v5  ;;  %v3882_v20 = vpop.f32.mrb[141].mxu0 }
 0x332   : > { %v3883_v57 = vpop.f32.mrb[142].mxu0  ;;  %5067 = vst [vmem:[%s7894_s24 + $0x38] sm:$0xff] %v5004_v47   ;;  %v5150_v38 = vpop.f32.mrb[192].mxu1 }
 0x333   : > { %v3884_v25 = vpop.f32.mrb[143].mxu0  ;;  %v4217_v9 = vpop.f32.mrb[193].mxu1  ;;  %v7934_v35 = vadd.f32 %v7838_v61, %v3881_v19 }
 0x334   : > { %v7937_v7 = vadd.f32 %v7807_v30, %v4217_v9  ;;  %v5151_v18 = vpop.f32.mrb[194].mxu1 }
 0x335   : > { %v7940_v49 = vadd.f32 %v5151_v18, %v7818_v3  ;;  %v4220_v29 = vpop.f32.mrb[195].mxu1 }
 0x336   : > { %v7943_v5 = vadd.f32 %v7812_v34, %v4220_v29 }
 0x338   : > { %v3920_v43 = vpop.f32.mrb[0].mxu0  ;;  %v5009_v46 = vpack.c.bf16 %v7943_v5, %v7937_v7 }
 0x339   : > { %v5204_v24 = vadd.f32 %v3920_v43, %v8549_v8  ;;  %v3922_v41 = vpop.f32.mrb[1].mxu0 }
 0x33a   : > { %v3923_v61 = vpop.f32.mrb[2].mxu0  ;;  %5068 = vst [vmem:[%s7894_s24 + $0x40] sm:$0xff] %v5009_v46   ;;  %v5154_v36 = vpop.f32.mrb[196].mxu1 }
 0x33b   : > { %v4130_v30 = vadd.f32 %v5204_v24, %v7845_v45  ;;  %v5205_v59 = vadd.f32 %v3923_v61, %v8550_v32  ;;  %v3925_v3 = vpop.f32.mrb[3].mxu0  ;;  %v7952_v34 = vadd.f32 %v5154_v36, %v7831_v17  ;;  %v4232_v6 = vpop.f32.mrb[197].mxu1  ;;  %v8551_v32 = vld [vmem:[#allocation87_spill] sm:$0xff] }
 0x33c   : > { %v7955_v12 = vadd.f32 %v7824_v60, %v4232_v6  ;;  %v5155_v39 = vpop.f32.mrb[198].mxu1 }
 0x33d   : > { %v4133_v22 = vadd.f32 %v5205_v59, %v7852_v15  ;;  %v7959_v62 = vadd.f32 %v5155_v39, %v7836_v2  ;;  %v4235_v45 = vpop.f32.mrb[199].mxu1  ;;  %v4501_v33 = vmul.f32 %v4130_v30, %v4130_v30 }
 0x33e   : > { %v5014_v52 = vpack.c.bf16 %v7955_v12, %v7940_v49 }
 0x33f   : > { %v4969_v47 = vpack.c.bf16 %v4133_v22, %v4130_v30  ;;  %v4464_v19 = vadd.f32 %v4133_v22, %v4130_v30  ;;  %v4502_v17 = vmul.f32 %v4133_v22, %v4133_v22  ;;  %v5019_v20 = vpack.c.bf16 %v7959_v62, %v7952_v34 }
 0x340   : > { %v3928_v60 = vpop.f32.mrb[144].mxu0  ;;  %5069 = vst [vmem:[%s7894_s24 + $0x48] sm:$0xff] %v5014_v52  }
 0x341   : > { %4970 = vst [vmem:[%s7894_s24] sm:$0xff] %v4969_v47   ;;  %v4533_v57 = vadd.f32 %v4502_v17, %v4501_v33  ;;  %v3929_v38 = vpop.f32.mrb[145].mxu0  ;;  %5070 = vst [vmem:[%s7894_s24 + $0x50] sm:$0xff] %v5019_v20  }
 0x342   : > { %v3930_v15 = vpop.f32.mrb[146].mxu0  ;;  %v5158_v2 = vpop.f32.mrb[200].mxu1 }
 0x343   : > { %v3931_v25 = vadd.f32 %v3930_v15, %v7729_v1  ;;  %v3932_v9 = vpop.f32.mrb[147].mxu0  ;;  %v7970_v18 = vadd.f32 %v5158_v2, %v7848_v56  ;;  %v4247_v29 = vpop.f32.mrb[201].mxu1 }
 0x344   : > { %v5159_v43 = vpop.f32.mrb[202].mxu1 }
 0x345   : > { %v4140_v46 = vadd.f32 %v7850_v53, %v3931_v25  ;;  %v4249_v8 = vpop.f32.mrb[203].mxu1 }
 0x346   : > { %v7974_v24 = vadd.f32 %v7842_v13, %v4249_v8 }
 0x347   : > { %v4465_v41 = vadd.f32 %v4464_v19, %v4140_v46  ;;  %v4503_v61 = vmul.f32 %v4140_v46, %v4140_v46 }
 0x348   : > { %v3935_v36 = vpop.f32.mrb[8].mxu0  ;;  %v5024_v30 = vpack.c.bf16 %v7970_v18, %v7974_v24 }
 0x349   : > { %v4534_v1 = vadd.f32 %v4533_v57, %v4503_v61  ;;  %v5206_v59 = vadd.f32 %v3935_v36, %v8551_v32  ;;  %v3937_v56 = vpop.f32.mrb[9].mxu0 }
 0x34a   : > { %v3938_v3 = vpop.f32.mrb[10].mxu0  ;;  %5071 = vst [vmem:[%s7894_s24 + $0x58] sm:$0xff] %v5024_v30   ;;  %v5162_v6 = vpop.f32.mrb[204].mxu1 }
 0x34b   : > { %v4145_v53 = vadd.f32 %v5206_v59, %v7858_v44  ;;  %v3939_v39 = vpop.f32.mrb[11].mxu0  ;;  %v4261_v22 = vpop.f32.mrb[205].mxu1  ;;  %v8552_v6 = vld [vmem:[#allocation88_spill] sm:$0xff] }
 0x34c   : > { %v7982_v13 = vadd.f32 %v7861_v31, %v4261_v22  ;;  %v5163_v45 = vpop.f32.mrb[206].mxu1 }
 0x34d   : > { %v4974_v33 = vpack.c.bf16 %v4145_v53, %v4140_v46  ;;  %v4466_v52 = vadd.f32 %v4465_v41, %v4145_v53  ;;  %v4504_v47 = vmul.f32 %v4145_v53, %v4145_v53  ;;  %v7985_v19 = vadd.f32 %v5163_v45, %v7874_v63  ;;  %v4264_v17 = vpop.f32.mrb[207].mxu1 }
 0x34e   : > { %v7988_v20 = vadd.f32 %v7866_v21, %v4264_v17 }
 0x34f   : > { %5061 = vst [vmem:[%s7894_s24 + $0x8] sm:$0xff] %v4974_v33   ;;  %v4535_v60 = vadd.f32 %v4534_v1, %v4504_v47 }
 0x350   : > { %v3942_v44 = vpop.f32.mrb[148].mxu0  ;;  %v5029_v57 = vpack.c.bf16 %v7988_v20, %v7982_v13 }
 0x351   : > { %v3943_v31 = vadd.f32 %v3942_v44, %v7740_v0  ;;  %v3944_v38 = vpop.f32.mrb[149].mxu0 }
 0x352   : > { %v3945_v15 = vpop.f32.mrb[150].mxu0  ;;  %5072 = vst [vmem:[%s7894_s24 + $0x60] sm:$0xff] %v5029_v57   ;;  %v5166_v2 = vpop.f32.mrb[208].mxu1 }
 0x353   : > { %v4152_v25 = vadd.f32 %v7855_v16, %v3943_v31  ;;  %v3946_v63 = vadd.f32 %v3945_v15, %v7743_v23  ;;  %v3947_v9 = vpop.f32.mrb[151].mxu0  ;;  %v7998_v21 = vadd.f32 %v5166_v2, %v7902_v58  ;;  %v4276_v29 = vpop.f32.mrb[209].mxu1 }
 0x354   : > { %v8001_v43 = vadd.f32 %v7878_v4, %v4276_v29  ;;  %v5167_v46 = vpop.f32.mrb[210].mxu1 }
 0x355   : > { %v4467_v0 = vadd.f32 %v4466_v52, %v4152_v25  ;;  %v4505_v8 = vmul.f32 %v4152_v25, %v4152_v25  ;;  %v4155_v41 = vadd.f32 %v7863_v40, %v3946_v63  ;;  %v4279_v61 = vpop.f32.mrb[211].mxu1  ;;  %v8007_v16 = vadd.f32 %v5167_v46, %v7911_v26 }
 0x356   : > { %v5034_v23 = vpack.c.bf16 %v8001_v43, %v7985_v19  ;;  %v4509_v63 = vmul.f32 %v7881_v55, %v7881_v55 }
 0x357   : > { %v4536_v58 = vadd.f32 %v4535_v60, %v4505_v8  ;;  %v4979_v36 = vpack.c.bf16 %v4155_v41, %v4152_v25  ;;  %v4468_v30 = vadd.f32 %v4467_v0, %v4155_v41  ;;  %v4506_v1 = vmul.f32 %v4155_v41, %v4155_v41 }
 0x358   : > { %v3950_v32 = vpop.f32.mrb[16].mxu0  ;;  %5073 = vst [vmem:[%s7894_s24 + $0x68] sm:$0xff] %v5034_v23   ;;  %v5039_v4 = vpack.c.bf16 %v8007_v16, %v7998_v21 }
 0x359   : > { %5062 = vst [vmem:[%s7894_s24 + $0x10] sm:$0xff] %v4979_v36   ;;  %v4537_v59 = vadd.f32 %v4536_v58, %v4506_v1  ;;  %v3951_v56 = vpop.f32.mrb[17].mxu0 }
 0x35a   : > { %v3952_v40 = vpop.f32.mrb[18].mxu0  ;;  %5074 = vst [vmem:[%s7894_s24 + $0x70] sm:$0xff] %v5039_v4   ;;  %v5170_v3 = vpop.f32.mrb[212].mxu1 }
 0x35b   : > { %v5207_v53 = vadd.f32 %v3952_v40, %v8552_v6  ;;  %v3954_v26 = vpop.f32.mrb[19].mxu0  ;;  %v8016_v39 = vadd.f32 %v5170_v3, %v7934_v35  ;;  %v4291_v22 = vpop.f32.mrb[213].mxu1 }
 0x35c   : > { %v5171_v45 = vpop.f32.mrb[214].mxu1 }
 0x35d   : > { %v4162_v33 = vadd.f32 %v5207_v53, %v7871_v51  ;;  %v4293_v52 = vpop.f32.mrb[215].mxu1 }
 0x35e   : > { %v8020_v47 = vadd.f32 %v7924_v27, %v4293_v52 }
 0x35f   : > { %v4469_v17 = vadd.f32 %v4468_v30, %v4162_v33  ;;  %v4507_v60 = vmul.f32 %v4162_v33, %v4162_v33 }
 0x360   : > { %v3957_v44 = vpop.f32.mrb[152].mxu0  ;;  %v5044_v57 = vpack.c.bf16 %v8016_v39, %v8020_v47 }
 0x361   : > { %v4538_v31 = vadd.f32 %v4537_v59, %v4507_v60  ;;  %v3958_v35 = vadd.f32 %v3957_v44, %v7750_v48  ;;  %v3959_v38 = vpop.f32.mrb[153].mxu0 }
 0x362   : > { %v3960_v15 = vpop.f32.mrb[154].mxu0  ;;  %5075 = vst [vmem:[%s7894_s24 + $0x78] sm:$0xff] %v5044_v57  }
 0x363   : > { %v4167_v51 = vadd.f32 %v7868_v14, %v3958_v35  ;;  %v3961_v27 = vpop.f32.mrb[155].mxu0 }
 0x365   : > { %v4984_v48 = vpack.c.bf16 %v4167_v51, %v4162_v33  ;;  %v4470_v2 = vadd.f32 %v4469_v17, %v4167_v51  ;;  %v4508_v25 = vmul.f32 %v4167_v51, %v4167_v51 }
 0x367   : > { %5063 = vst [vmem:[%s7894_s24 + $0x18] sm:$0xff] %v4984_v48   ;;  %v4471_v14 = vadd.f32 %v4470_v2, %v7881_v55  ;;  %v4539_v9 = vadd.f32 %v4538_v31, %v4508_v25 }
 0x368   : > { %5600 = shalt.err (!%p5597_p13)
}
 0x369   : > { %s5601_s7 = scalar_lea.hbm %s8032_s30, 2048  ;;  %s5605_s15 = scalar_lea.hbm %s8186_s4, 4096 }
 0x36a   : > { %p5602_p0 = scmp.ne.s32.totalorder %s8032_s30, %s5601_s7  ;;  %p5606_p9 = scmp.lt.u32.totalorder %s8032_s30, %s8186_s4 }
 0x36b   : > { %p5607_p12 = scmp.lt.u32.totalorder %s5605_s15, %s5601_s7  ;;  %p5609_p1 = scmp.lt.u32.totalorder %s5601_s7, %s8032_s30 }
 0x36c   : > { %p5603_p5 = pnand %p5602_p0, %p5884_p6 }
 0x36d   : > { %p5608_p2 = por %p5607_p12, %p5606_p9 }
 0x36e   : > { %p5604_p11 = pneg %p5603_p5 }
 0x36f   : > { %p5610_p4 = por %p5609_p1, %p5608_p2 }
 0x371   : > { %p5611_p8 = pnand %p5610_p4, %p5604_p11 }
 0x373   : > { %5614 = shalt.err (!%p5611_p8)
}
 0x374   : > { %s5705_s14 = smov 64   ;;  %s5706_s11 = smov 4   ;;  %v4510_v55 = vmul.f32 %v7887_v54, %v7887_v54  ;;  %v4472_v29 = vadd.f32 %v4471_v14, %v7887_v54  ;;  %v4540_v46 = vadd.f32 %v4539_v9, %v4509_v63  ;;  %v4511_v0 = vmul.f32 %v7884_v10, %v7884_v10 }
 0x375   : > { %5306 = dma.vmem_to_hbm [thread:$0]  (%p5884_p6), %s8034_s13, 2048, %s8032_s30, %s4574_s28, %s5705_s14, %s5705_s14, %s5706_s11   ;;  %v4512_v61 = vmul.f32 %v7905_v28, %v7905_v28  ;;  %v4513_v36 = vmul.f32 %v7899_v42, %v7899_v42  ;;  %v4514_v54 = vmul.f32 %v7908_v11, %v7908_v11  ;;  %vm4570_vm3 = vcmask 1040384  }
 0x376   : > { %v4473_v8 = vadd.f32 %v4472_v29, %v7884_v10  ;;  %v4541_v41 = vadd.f32 %v4540_v46, %v4510_v55  ;;  %v4515_v10 = vmul.f32 %v7927_v37, %v7927_v37  ;;  %s4754_s13 = sshll.u32 %s5935_s17, 1  ;;  %s4865_s30 = sshll.u32 %s5759_s22, 5 }
 0x377   : > { %s293_s28 = scalar_lea.vmem [#allocation12], %s4754_s13  ;;  %s8138_s23 = scalar_lea.hbm %s8187_s5, %s4865_s30 }
 0x378   : > { %v4474_v23 = vadd.f32 %v4473_v8, %v7905_v28  ;;  %v4542_v58 = vadd.f32 %v4541_v41, %v4511_v0  ;;  %v4516_v28 = vmul.f32 %v7921_v50, %v7921_v50  ;;  %v4531_v41 = vmul.f32 %v8020_v47, %v8020_v47  ;;  %s4608_s10 = sshll.u32 %s293_s28, 4  ;;  %s4579_s7 = scalar_lea.sflag [#allocation13], %s5935_s17  ;;  %s8140_s10 = int_to_ptr.vmem [resolvable:$true] %s4608_s10 }
 0x379   : > { %s5615_s8 = scalar_lea.vmem %s8140_s10, 32  ;;  %s5707_s22 = smov [#allocation12]  }
 0x37a   : > { %v4475_v30 = vadd.f32 %v4474_v23, %v7899_v42  ;;  %v4543_v1 = vadd.f32 %v4542_v58, %v4512_v61  ;;  %v4517_v42 = vmul.f32 %v7937_v7, %v7937_v7  ;;  %v4532_v61 = vmul.f32 %v8016_v39, %v8016_v39  ;;  %p5616_p3 = scmp.ne.s32.totalorder %s8140_s10, %s5615_s8  ;;  %s5619_s9 = sshll.u32 %s5707_s22, 4  ;;  %s5620_s9 = int_to_ptr.vmem [resolvable:$false] %s5619_s9 }
 0x37b   : > { %s5621_s15 = scalar_lea.vmem %s5620_s9, 64  ;;  %p5622_p13 = scmp.lt.s32.totalorder %s8140_s10, %s5620_s9 }
 0x37c   : > { %v4476_v32 = vadd.f32 %v4475_v30, %v7908_v11  ;;  %v4544_v4 = vadd.f32 %v4543_v1, %v4513_v36  ;;  %v4518_v11 = vmul.f32 %v7943_v5, %v7943_v5  ;;  %p5617_p7 = pnand %p5616_p3, %p5884_p6  ;;  %p5623_p0 = scmp.lt.s32.totalorder %s5621_s15, %s5615_s8 }
 0x37e   : > { %v4477_v59 = vadd.f32 %v4476_v32, %v7927_v37  ;;  %v4545_v56 = vadd.f32 %v4544_v4, %v4514_v54  ;;  %v4519_v37 = vmul.f32 %v7940_v49, %v7940_v49  ;;  %p5618_p10 = pneg %p5617_p7  ;;  %p5624_p5 = por %p5623_p0, %p5622_p13 }
 0x380   : > { %v4478_v40 = vadd.f32 %v4477_v59, %v7921_v50  ;;  %v4546_v3 = vadd.f32 %v4545_v56, %v4515_v10  ;;  %v4520_v50 = vmul.f32 %v7955_v12, %v7955_v12  ;;  %p5625_p11 = pnand %p5624_p5, %p5618_p10 }
 0x382   : > { %v4479_v6 = vadd.f32 %v4478_v40, %v7937_v7  ;;  %v4547_v53 = vadd.f32 %v4546_v3, %v4516_v28  ;;  %v4521_v7 = vmul.f32 %v7952_v34, %v7952_v34 }
 0x384   : > { %v4480_v26 = vadd.f32 %v4479_v6, %v7943_v5  ;;  %v4548_v22 = vadd.f32 %v4547_v53, %v4517_v42  ;;  %v4522_v5 = vmul.f32 %v7959_v62, %v7959_v62 }
 0x386   : > { %v4549_v45 = vadd.f32 %v4548_v22, %v4518_v11  ;;  %v4481_v33 = vadd.f32 %v4480_v26, %v7940_v49  ;;  %v4523_v49 = vmul.f32 %v7974_v24, %v7974_v24 }
 0x388   : > { %v4482_v52 = vadd.f32 %v4481_v33, %v7955_v12  ;;  %v4550_v17 = vadd.f32 %v4549_v45, %v4519_v37  ;;  %v4524_v12 = vmul.f32 %v7970_v18, %v7970_v18 }
 0x38a   : > { %v4483_v60 = vadd.f32 %v4482_v52, %v7952_v34  ;;  %v4551_v44 = vadd.f32 %v4550_v17, %v4520_v50  ;;  %v4525_v34 = vmul.f32 %v7982_v13, %v7982_v13 }
 0x38c   : > { %v4484_v57 = vadd.f32 %v4483_v60, %v7959_v62  ;;  %v4552_v31 = vadd.f32 %v4551_v44, %v4521_v7  ;;  %v4526_v62 = vmul.f32 %v7988_v20, %v7988_v20 }
 0x38e   : > { %v4485_v35 = vadd.f32 %v4484_v57, %v7974_v24  ;;  %v4553_v38 = vadd.f32 %v4552_v31, %v4522_v5  ;;  %v4527_v24 = vmul.f32 %v7985_v19, %v7985_v19 }
 0x390   : > { %v4486_v15 = vadd.f32 %v4485_v35, %v7970_v18  ;;  %v4554_v51 = vadd.f32 %v4553_v38, %v4523_v49  ;;  %v4528_v18 = vmul.f32 %v8001_v43, %v8001_v43 }
 0x392   : > { %v4487_v27 = vadd.f32 %v4486_v15, %v7982_v13  ;;  %v4555_v48 = vadd.f32 %v4554_v51, %v4524_v12  ;;  %v4529_v13 = vmul.f32 %v7998_v21, %v7998_v21 }
 0x394   : > { %v4488_v2 = vadd.f32 %v4487_v27, %v7988_v20  ;;  %v4556_v25 = vadd.f32 %v4555_v48, %v4525_v34  ;;  %v4530_v20 = vmul.f32 %v8007_v16, %v8007_v16 }
 0x396   : > { %v4489_v63 = vadd.f32 %v4488_v2, %v7985_v19  ;;  %v4557_v14 = vadd.f32 %v4556_v25, %v4526_v62 }
 0x398   : > { %v4490_v9 = vadd.f32 %v4489_v63, %v8001_v43  ;;  %v4558_v55 = vadd.f32 %v4557_v14, %v4527_v24 }
 0x39a   : > { %v4491_v29 = vadd.f32 %v4490_v9, %v7998_v21  ;;  %v4559_v46 = vadd.f32 %v4558_v55, %v4528_v18 }
 0x39c   : > { %v4492_v0 = vadd.f32 %v4491_v29, %v8007_v16  ;;  %v4560_v19 = vadd.f32 %v4559_v46, %v4529_v13 }
 0x39e   : > { %v4493_v8 = vadd.f32 %v4492_v0, %v8020_v47  ;;  %v4561_v43 = vadd.f32 %v4560_v19, %v4530_v20 }
 0x3a0   : > { %v4494_v21 = vadd.f32 %v4493_v8, %v8016_v39  ;;  %v4562_v23 = vadd.f32 %v4561_v43, %v4531_v41 }
 0x3a2   : > { %v4495_v58 = vrot.slane %v4494_v21, 4  ;;  %v4563_v36 = vadd.f32 %v4562_v23, %v4532_v61 }
 0x3a4   : > { %v4496_v30 = vadd.f32 %v4495_v58, %v4494_v21  ;;  %v4564_v1 = vrot.slane %v4563_v36, 4 }
 0x3a6   : > { %v4497_v54 = vrot.slane %v4496_v30, 2  ;;  %v4565_v16 = vadd.f32 %v4564_v1, %v4563_v36 }
 0x3a8   : > { %v4498_v32 = vadd.f32 %v4497_v54, %v4496_v30  ;;  %v4566_v4 = vrot.slane %v4565_v16, 2 }
 0x3aa   : > { %v4499_v10 = vrot.slane %v4498_v32, 1  ;;  %v4567_v47 = vadd.f32 %v4566_v4, %v4565_v16 }
 0x3ac   : > { %v4568_v59 = vrot.slane %v4567_v47, 1  ;;  %v4500_v39 = vadd.f32 %v4499_v10, %v4498_v32 }
 0x3ae   : > { %v4569_v56 = vadd.f32 %v4568_v59, %v4567_v47 }
 0x3b0   : > { %v4571_v28 = vsel %vm4570_vm3, %v4500_v39, %v4569_v56 }
 0x3b1   : > { %4572 = vst [vmem:[%s293_s28] sm:$0x3] %v4571_v28 }
 0x3b2   : > { %5628 = shalt.err (!%p5625_p11)
}
 0x3b3   : > { %s5629_s17 = scalar_lea.hbm %s8138_s23, 32  ;;  %s5633_s14 = scalar_lea.hbm %s8187_s5, 64 }
 0x3b4   : > { %p5630_p9 = scmp.ne.s32.totalorder %s8138_s23, %s5629_s17  ;;  %p5634_p1 = scmp.lt.u32.totalorder %s8138_s23, %s8187_s5 }
 0x3b5   : > { %p5635_p4 = scmp.lt.u32.totalorder %s5633_s14, %s5629_s17  ;;  %p5637_p3 = scmp.lt.u32.totalorder %s5629_s17, %s8138_s23 }
 0x3b6   : > { %p5631_p12 = pnand %p5630_p9, %p5884_p6 }
 0x3b7   : > { %p5636_p8 = por %p5635_p4, %p5634_p1 }
 0x3b8   : > { %p5632_p2 = pneg %p5631_p12 }
 0x3b9   : > { %p5638_p7 = por %p5637_p3, %p5636_p8 }
 0x3bb   : > { %p5639_p10 = pnand %p5638_p7, %p5632_p2 }
 0x3bd   : > { %5642 = shalt.err (!%p5639_p10)
}
 0x3be   : > { %5307 = dma.vmem_to_hbm [thread:$0]  (%p5884_p6), %s8140_s10, 32, %s8138_s23, %s4579_s7  }
 0x3bf PF: > { %s4620_s30 = sand.u32 1, %s5681_s18   ;;  %p8553_p13 = scmp.ne.s32.totalorder %s8329_s25, 0 }
 0x3c0   : > { %p8554_p0 = scmp.ge.s32.totalorder %s5693_s21, 2  ;;  %s4621_s28 = scalar_lea.sflag [#allocation5], %s4620_s30 }
 0x3c2   : > { %p5325_p5 = pnand %p8554_p0, %p8553_p13 }
 0x3c4   : > { %5672 = dma.done.wait (!%p5325_p5), %s4621_s28, 2048  }
 0x3c5   : > { %5674 = vsyncadd (!%p5325_p5), %s4621_s28, 4294965248  ;;  %s4630_s29 = scalar_lea.sflag [#allocation13], %s4620_s30 }
 0x3c6   : > { %5676 = dma.done.wait (!%p5325_p5), %s4630_s29, 32  }
 0x3c7   : > { %5678 = vsyncadd (!%p5325_p5), %s4630_s29, 4294967264  ;;  %p24_p6 = scmp.ge.s32.totalorder %s5870_s16, 4   ;;  %s8555_s18 = smov %s5685_s19 }
 0x3c8   : > { %s8556_s19 = smov %s5689_s20  ;;  %s8557_s20 = smov %s5880_s27 }
 0x3c9   : > { %s8558_s21 = smov %s5870_s16  ;;  %26 = sbr.rel (!%p24_p6) target bundleno = 9 (0x9), region = 110 }
 0x3d0   :  { %4635 = vsyncpa [#allocation4], 1 }
 0x3d1   :  { %4637 = vsyncpa [#allocation4 + $0x1], 1 }
 0x3d2   :  { %4638 = vsyncpa [#allocation7], 1 }
 0x3d3   :  { %4639 = vsyncpa [#allocation10], 1 }
 0x3d4   :  { %4640 = vsyncpa [#allocation5], 1 }
 0x3d5   :  { %4642 = vsyncpa [#allocation5 + $0x1], 1 }
 0x3d6   :  { %4643 = vsyncpa [#allocation13], 1 }
 0x3d7   :  { %4645 = vsyncpa [#allocation13 + $0x1], 1 }

</bundles_post_ra>
